<compile_context>
chip_gen: v5e
topology: v5e:2x2
jax: 0.10.0
libtpu: 0.0.40
codegen_flags: <defaults>
</compile_context>

<pallas_src>
import functools

import jax
import jax.numpy as jnp
from jax.experimental import pallas as pl
from jax.experimental.pallas import tpu as pltpu

LN_EPS = 1e-5
THRESH = 0.25


# ----------------------------------------------------------------------------
# in-kernel helpers
# ----------------------------------------------------------------------------
def _layernorm(x, gamma, beta, eps=LN_EPS):
    mu = jnp.mean(x, axis=-1, keepdims=True)
    xc = x - mu
    var = jnp.mean(xc * xc, axis=-1, keepdims=True)
    return xc * jax.lax.rsqrt(var + eps) * gamma + beta


def _transpose_last2(x):
    """(G, R, C) -> (G, C, R) via an MXU identity matmul (A @ B^T pattern).

    Replaces the padded 128x128 XLU transposes: the batched A @ B^T contraction
    is the flash-attention dimension-numbers pattern (lowers cleanly), the MXU
    is otherwise idle here, and multiplying by an exact 0/1 identity keeps the
    result bit-exact in f32.
    """
    G, R, C = x.shape
    rows = jax.lax.broadcasted_iota(jnp.int32, (C, C), 0)
    cols = jax.lax.broadcasted_iota(jnp.int32, (C, C), 1)
    eye = jnp.broadcast_to((rows == cols).astype(x.dtype), (G, C, C))
    # out[g, c, r] = sum_k eye[g, c, k] * x[g, r, k] = x[g, r, c]
    return jax.lax.dot_general(eye, x, (((2,), (2,)), ((0,), (0,))),
                               preferred_element_type=jnp.float32)


def _tx_layer(x, wqv_ref, wffn_ref, vec_ref):
    """Single-head post-norm transformer encoder layer on G stacked sequences.

    Attention projections are pre-folded at init:
        Wqk = (Wq / sqrt(d)) @ Wk^T        s   = (x Wqk) x^T
        Wvo = Wv @ Wo,  b_vo = bv Wo + bo  out = softmax(s) (x Wvo) + b_vo
    so the layer issues 2 projection matmuls instead of 4 (plus the two
    attention matmuls and the two FFN matmuls).  MXU operands are bf16;
    accumulation / softmax / LayerNorm stay f32.

    x:        (G, S, d) f32
    wqv_ref:  (2, d, d)  bf16  [Wqk, Wvo]
    wffn_ref: (3, d, f)  bf16  [W1, W2^T, row 0 of slot 2 = b1]
    vec_ref:  (6, d)     f32   [b_vo, b2, ln1_g, ln1_b, ln2_g, ln2_b]
    """
    G, S, d = x.shape
    x2 = x.reshape(G * S, d)
    xb = x2.astype(jnp.bfloat16)

    b_vo = vec_ref[0:1]
    b2 = vec_ref[1:2]
    ln1g, ln1b = vec_ref[2:3], vec_ref[3:4]
    ln2g, ln2b = vec_ref[4:5], vec_ref[5:6]
    b1 = wffn_ref[2][0:1].astype(jnp.float32)                    # (1, f)

    # scores: s = (x Wqk) x^T  (Wk and the 1/sqrt(d) scale already folded in)
    t_qk = jnp.dot(xb, wqv_ref[0], preferred_element_type=jnp.float32)
    s = jnp.einsum("gqd,gkd->gqk",
                   t_qk.reshape(G, S, d).astype(jnp.bfloat16),
                   xb.reshape(G, S, d),
                   preferred_element_type=jnp.float32)           # (G, S, S)
    s = s - jnp.max(s, axis=-1, keepdims=True)
    e = jnp.exp(s)
    p = e / jnp.sum(e, axis=-1, keepdims=True)                   # exact divide

    # value / output path: out = p (x Wvo) + b_vo
    t_vo = jnp.dot(xb, wqv_ref[1], preferred_element_type=jnp.float32)
    a = jnp.einsum("gqk,gkd->gqd",
                   p.astype(jnp.bfloat16),
                   t_vo.reshape(G, S, d).astype(jnp.bfloat16),
                   preferred_element_type=jnp.float32)           # (G, S, d)

    h = _layernorm(x2 + a.reshape(G * S, d) + b_vo, ln1g, ln1b)

    f = jnp.dot(h.astype(jnp.bfloat16), wffn_ref[0],
                preferred_element_type=jnp.float32) + b1
    f = jnp.maximum(f, 0.0)
    o = jax.lax.dot_general(f.astype(jnp.bfloat16), wffn_ref[1],
                            (((1,), (1,)), ((), ())),            # f @ (W2^T)^T
                            preferred_element_type=jnp.float32) + b2

    return _layernorm(h + o, ln2g, ln2b).reshape(G, S, d)


# ----------------------------------------------------------------------------
# fused forward kernel (Bt images per grid step)
# ----------------------------------------------------------------------------
def _fwd_kernel(x_ref,
                r_wqv, r_wffn, r_vec,      # rgb channel encoder (d = W)
                a_wqv, a_wffn, a_vec,      # hidden_transformer0 (d = H)
                c_wqv, c_wffn, c_vec,      # hidden_transformer1 (d = W)
                ln_ref, comb_ref,
                o_ref):
    Bt, C, H, W = x_ref.shape
    x = x_ref[...]                                            # (Bt, C, H, W)

    # --- RawVisionTransformerRGBEncoder: every channel is a sequence of H
    #     row-tokens of width W; all Bt*C sequences share one encoder pass. ---
    enc = _tx_layer(x.reshape(Bt * C, H, W), r_wqv, r_wffn, r_vec)
    enc = enc.reshape(Bt, C, H, W)

    # --- RGBCombinator (learned channel mix + tanh) and channel mean;
    #     unrolled over the static, tiny channel axis. ---
    x_mean = x[:, 0]
    x0 = enc[:, 0] * comb_ref[0:1]
    for c in range(1, C):
        x_mean = x_mean + x[:, c]
        x0 = x0 + enc[:, c] * comb_ref[c:c + 1]
    x_mean = x_mean * (1.0 / C)
    x0 = jnp.tanh(x0 + comb_ref[C:C + 1])                     # (Bt, H, W)

    ln_g0, ln_b0 = ln_ref[0:1], ln_ref[1:2]
    ln_g1, ln_b1 = ln_ref[2:3], ln_ref[3:4]
    ln_g2, ln_b2 = ln_ref[4:5], ln_ref[5:6]

    # --- x_ = layer_norm0(x0 + x_mean_ch) ---
    x_a = _layernorm(x0 + x_mean, ln_g0, ln_b0)

    # --- x1 = t0(x_.permute(0,2,1)).permute(0,2,1): both permutes are MXU
    #     identity matmuls (no staging buffer, no XLU transpose). ---
    x1 = _transpose_last2(
        _tx_layer(_transpose_last2(x_a), a_wqv, a_wffn, a_vec))  # (Bt, H, W)

    # --- x_ = layer_norm1(x_ + x0 + x1) ---
    x_b = _layernorm(x_a + x0 + x1, ln_g1, ln_b1)

    # --- x2 = t1(x_) ---
    x2 = _tx_layer(x_b, c_wqv, c_wffn, c_vec)

    # --- threshold(sigmoid(layer_norm2(x_ + x0 + x1 + x2))) ---
    y = jax.nn.sigmoid(_layernorm(x_b + x0 + x1 + x2, ln_g2, ln_b2))
    o_ref[...] = jnp.where(y > THRESH, y, 0.0)


# ----------------------------------------------------------------------------
# wrapper
# ----------------------------------------------------------------------------
def vit_object_detection_forward(x, params, block_batch=4):
    B, C, H, W = x.shape
    bt = max(1, min(block_batch, B))
    while B % bt:                 # largest divisor of B not above block_batch
        bt -= 1
    grid = (B // bt,)
    # NOTE(v7x): keep block_batch <= B // 2 so the grid has >= 2 (even) steps
    # and the "parallel" axis can be split across both TensorCores.

    ops = []
    for name in ("rgb", "t0", "t1"):
        p = params[name]
        ops += [p["wqv"], p["wffn"], p["vec"]]
    ops += [params["ln"], params["comb"]]

    in_specs = [pl.BlockSpec((bt, C, H, W), lambda i: (i, 0, 0, 0))]
    for w in ops:   # weight blocks are grid-invariant (block index 0 everywhere)
        in_specs.append(pl.BlockSpec(w.shape, lambda i, _n=w.ndim: (0,) * _n))

    return pl.pallas_call(
        _fwd_kernel,
        out_shape=jax.ShapeDtypeStruct((B, H, W), jnp.float32),
        grid=grid,
        in_specs=in_specs,
        out_specs=pl.BlockSpec((bt, H, W), lambda i: (i, 0, 0)),
        compiler_params=pltpu.CompilerParams(
            dimension_semantics=("parallel",)),
    )(x, *ops)


# ----------------------------------------------------------------------------
# deterministic synthetic parameter init (pre-folded / packed weights)
# ----------------------------------------------------------------------------
def _init_tx(key, d, f):
    ks = jax.random.split(key, 6)
    scale = 0.05
    w = lambda k, s: scale * jax.random.normal(k, s, dtype=jnp.float32)
    wq, wk, wv, wo = (w(ks[i], (d, d)) for i in range(4))
    w1, w2 = w(ks[4], (d, f)), w(ks[5], (f, d))
    bv = jnp.zeros((d,), jnp.float32)
    bo = jnp.zeros((d,), jnp.float32)
    b1 = jnp.zeros((f,), jnp.float32)
    b2 = jnp.zeros((d,), jnp.float32)

    # Pre-fold the single-head attention projections:
    #   Wqk = (Wq / sqrt(d)) Wk^T,  Wvo = Wv Wo,  b_vo = bv Wo + bo.
    # TODO(synk): exact only while the q-bias is zero (the k-bias cancels
    # through the softmax); checkpoints with nonzero q-bias need separate q/k.
    wqk = (wq / float(d) ** 0.5) @ wk.T
    wvo = wv @ wo
    b_vo = bv @ wo + bo

    wqv = jnp.stack([wqk, wvo]).astype(jnp.bfloat16)             # (2, d, d)
    b1_row = jnp.zeros((d, f), jnp.float32).at[0].set(b1)
    wffn = jnp.stack([w1, w2.T, b1_row]).astype(jnp.bfloat16)    # (3, d, f)
    vec = jnp.stack([b_vo, b2,
                     jnp.ones((d,), jnp.float32), jnp.zeros((d,), jnp.float32),
                     jnp.ones((d,), jnp.float32), jnp.zeros((d,), jnp.float32)])
    return dict(wqv=wqv, wffn=wffn, vec=vec)                     # vec: (6, d)


def init_params(key, H, W, C=3):
    k1, k2, k3, k4 = jax.random.split(key, 4)
    ones_w = jnp.ones((W,), jnp.float32)
    zeros_w = jnp.zeros((W,), jnp.float32)
    # TODO(synk): exact mnn_encoder_config-driven layer/head counts and the
    # combinator internals are external; modelled as one single-head layer each.
    return dict(
        rgb=_init_tx(k1, W, H),        # d_model = W, ffn dim = image height
        t0=_init_tx(k2, H, 2 * H),     # d_model = H (permuted path)
        t1=_init_tx(k3, W, 2 * W),     # d_model = W (head)
        ln=jnp.stack([ones_w, zeros_w, ones_w, zeros_w, ones_w, zeros_w]),
        comb=jnp.concatenate(
            [(1.0 / C) + 0.1 * jax.random.normal(k4, (C, 1), jnp.float32),
             jnp.zeros((1, 1), jnp.float32)], axis=0),           # (C+1, 1)
    )


if __name__ == "__main__":
    B, C, H, W = 8, 3, 16, 32   # expected_image_size: width=W=d_model, height=H
    x = jax.random.normal(jax.random.PRNGKey(0), (B, C, H, W), dtype=jnp.float32)
    params = init_params(jax.random.PRNGKey(42), H=H, W=W, C=C)

    fwd = jax.jit(functools.partial(vit_object_detection_forward,
                                    params=params, block_batch=4))
    out = jax.block_until_ready(fwd(x))

    assert out.shape == (B, H, W) and out.dtype == jnp.float32
    # Threshold(0.25, 0) semantics: every value is either 0 or > 0.25
    assert bool(jnp.all((out == 0.0) | (out > THRESH)))
    print("KERNEL_OK")
</pallas_src>

<mosaic_0001>
module attributes {stable_mosaic.version = 11 : i64} {
  func.func @_fwd_kernel(%arg0: i32, %arg1: memref<4x3x16x32xf32, #tpu.memory_space<vmem>>, %arg2: memref<2x32x32xbf16, #tpu.memory_space<vmem>>, %arg3: memref<3x32x16xbf16, #tpu.memory_space<vmem>>, %arg4: memref<6x32xf32, #tpu.memory_space<vmem>>, %arg5: memref<2x16x16xbf16, #tpu.memory_space<vmem>>, %arg6: memref<3x16x32xbf16, #tpu.memory_space<vmem>>, %arg7: memref<6x16xf32, #tpu.memory_space<vmem>>, %arg8: memref<2x32x32xbf16, #tpu.memory_space<vmem>>, %arg9: memref<3x32x64xbf16, #tpu.memory_space<vmem>>, %arg10: memref<6x32xf32, #tpu.memory_space<vmem>>, %arg11: memref<6x32xf32, #tpu.memory_space<vmem>>, %arg12: memref<4x1xf32, #tpu.memory_space<vmem>>, %arg13: memref<4x16x32xf32, #tpu.memory_space<vmem>>) attributes {dimension_semantics = [#tpu.dimension_semantics<parallel>], iteration_bounds = array<i64: 2>, scalar_prefetch = 0 : i64, scratch_operands = 0 : i64, tpu.core_type = #tpu.core_type<tc>, window_params = [{transform_indices = @transform_0, window_bounds = array<i64: 4, 3, 16, 32>}, {pipeline_mode = #tpu.pipeline_mode<synchronous>, transform_indices = @transform_1, window_bounds = array<i64: 2, 32, 32>}, {pipeline_mode = #tpu.pipeline_mode<synchronous>, transform_indices = @transform_2, window_bounds = array<i64: 3, 32, 16>}, {pipeline_mode = #tpu.pipeline_mode<synchronous>, transform_indices = @transform_3, window_bounds = array<i64: 6, 32>}, {pipeline_mode = #tpu.pipeline_mode<synchronous>, transform_indices = @transform_4, window_bounds = array<i64: 2, 16, 16>}, {pipeline_mode = #tpu.pipeline_mode<synchronous>, transform_indices = @transform_5, window_bounds = array<i64: 3, 16, 32>}, {pipeline_mode = #tpu.pipeline_mode<synchronous>, transform_indices = @transform_6, window_bounds = array<i64: 6, 16>}, {pipeline_mode = #tpu.pipeline_mode<synchronous>, transform_indices = @transform_7, window_bounds = array<i64: 2, 32, 32>}, {pipeline_mode = #tpu.pipeline_mode<synchronous>, transform_indices = @transform_8, window_bounds = array<i64: 3, 32, 64>}, {pipeline_mode = #tpu.pipeline_mode<synchronous>, transform_indices = @transform_9, window_bounds = array<i64: 6, 32>}, {pipeline_mode = #tpu.pipeline_mode<synchronous>, transform_indices = @transform_10, window_bounds = array<i64: 6, 32>}, {pipeline_mode = #tpu.pipeline_mode<synchronous>, transform_indices = @transform_11, window_bounds = array<i64: 4, 1>}, {transform_indices = @transform_12, window_bounds = array<i64: 4, 16, 32>}]} {
    %c0 = arith.constant 0 : index
    %c0_0 = arith.constant 0 : index
    %c0_1 = arith.constant 0 : index
    %c0_2 = arith.constant 0 : index
    %0 = vector.load %arg1[%c0, %c0_0, %c0_1, %c0_2] : memref<4x3x16x32xf32, #tpu.memory_space<vmem>>, vector<4x3x16x32xf32>
    %1 = vector.shape_cast %0 : vector<4x3x16x32xf32> to vector<12x16x32xf32>
    %2 = vector.shape_cast %1 : vector<12x16x32xf32> to vector<192x32xf32>
    %3 = arith.truncf %2 : vector<192x32xf32> to vector<192x32xbf16>
    %c0_3 = arith.constant 0 : index
    %c0_4 = arith.constant 0 : index
    %4 = vector.load %arg4[%c0_3, %c0_4] : memref<6x32xf32, #tpu.memory_space<vmem>>, vector<1x32xf32>
    %c1 = arith.constant 1 : index
    %c0_5 = arith.constant 0 : index
    %5 = vector.load %arg4[%c1, %c0_5] : memref<6x32xf32, #tpu.memory_space<vmem>>, vector<1x32xf32>
    %c2 = arith.constant 2 : index
    %c0_6 = arith.constant 0 : index
    %6 = vector.load %arg4[%c2, %c0_6] : memref<6x32xf32, #tpu.memory_space<vmem>>, vector<1x32xf32>
    %c3 = arith.constant 3 : index
    %c0_7 = arith.constant 0 : index
    %7 = vector.load %arg4[%c3, %c0_7] : memref<6x32xf32, #tpu.memory_space<vmem>>, vector<1x32xf32>
    %c4 = arith.constant 4 : index
    %c0_8 = arith.constant 0 : index
    %8 = vector.load %arg4[%c4, %c0_8] : memref<6x32xf32, #tpu.memory_space<vmem>>, vector<1x32xf32>
    %c5 = arith.constant 5 : index
    %c0_9 = arith.constant 0 : index
    %9 = vector.load %arg4[%c5, %c0_9] : memref<6x32xf32, #tpu.memory_space<vmem>>, vector<1x32xf32>
    %c2_10 = arith.constant 2 : index
    %c0_11 = arith.constant 0 : index
    %c0_12 = arith.constant 0 : index
    %10 = vector.load %arg3[%c2_10, %c0_11, %c0_12] : memref<3x32x16xbf16, #tpu.memory_space<vmem>>, vector<1x32x16xbf16>
    %11 = vector.shape_cast %10 : vector<1x32x16xbf16> to vector<32x16xbf16>
    %12 = vector.extract_strided_slice %11 {offsets = [0, 0], sizes = [1, 16], strides = [1, 1]} : vector<32x16xbf16> to vector<1x16xbf16>
    %13 = arith.extf %12 : vector<1x16xbf16> to vector<1x16xf32>
    %c0_13 = arith.constant 0 : index
    %c0_14 = arith.constant 0 : index
    %c0_15 = arith.constant 0 : index
    %14 = vector.load %arg2[%c0_13, %c0_14, %c0_15] : memref<2x32x32xbf16, #tpu.memory_space<vmem>>, vector<1x32x32xbf16>
    %15 = vector.shape_cast %14 : vector<1x32x32xbf16> to vector<32x32xbf16>
    %cst = arith.constant dense<0.000000e+00> : vector<192x32xf32>
    %16 = tpu.matmul %3, %15, %cst {dimension_numbers = #tpu.dot_dimension_numbers<[1], [0], [0], [1], [0, 0, 1, 1], [], []>} : vector<192x32xbf16>, vector<32x32xbf16>, vector<192x32xf32> -> vector<192x32xf32>
    %17 = vector.shape_cast %16 : vector<192x32xf32> to vector<12x16x32xf32>
    %18 = arith.truncf %17 : vector<12x16x32xf32> to vector<12x16x32xbf16>
    %19 = vector.shape_cast %3 : vector<192x32xbf16> to vector<12x16x32xbf16>
    "tpu.trace_start"() <{level = 10 : i32, message = "gqd,gkd->gqk"}> : () -> ()
    %cst_16 = arith.constant dense<0.000000e+00> : vector<12x16x16xf32>
    %20 = tpu.matmul %18, %19, %cst_16 {dimension_numbers = #tpu.dot_dimension_numbers<[2], [2], [1], [1], [0, 0, 0, 1, 1, 1], [0], [0]>} : vector<12x16x32xbf16>, vector<12x16x32xbf16>, vector<12x16x16xf32> -> vector<12x16x16xf32>
    "tpu.trace_stop"() : () -> ()
    %cst_17 = arith.constant dense<0xFF800000> : vector<12x16xf32>
    %21 = vector.multi_reduction <maximumf>, %20, %cst_17 [2] : vector<12x16x16xf32> to vector<12x16xf32>
    %22 = vector.shape_cast %21 : vector<12x16xf32> to vector<12x16x1xf32>
    %23 = vector.broadcast %22 : vector<12x16x1xf32> to vector<12x16x16xf32>
    %24 = arith.subf %20, %23 : vector<12x16x16xf32>
    %25 = math.exp %24 : vector<12x16x16xf32>
    %cst_18 = arith.constant dense<0.000000e+00> : vector<12x16xf32>
    %26 = vector.multi_reduction <add>, %25, %cst_18 [2] : vector<12x16x16xf32> to vector<12x16xf32>
    %27 = vector.shape_cast %26 : vector<12x16xf32> to vector<12x16x1xf32>
    %28 = vector.broadcast %27 : vector<12x16x1xf32> to vector<12x16x16xf32>
    %29 = arith.divf %25, %28 : vector<12x16x16xf32>
    %c1_19 = arith.constant 1 : index
    %c0_20 = arith.constant 0 : index
    %c0_21 = arith.constant 0 : index
    %30 = vector.load %arg2[%c1_19, %c0_20, %c0_21] : memref<2x32x32xbf16, #tpu.memory_space<vmem>>, vector<1x32x32xbf16>
    %31 = vector.shape_cast %30 : vector<1x32x32xbf16> to vector<32x32xbf16>
    %cst_22 = arith.constant dense<0.000000e+00> : vector<192x32xf32>
    %32 = tpu.matmul %3, %31, %cst_22 {dimension_numbers = #tpu.dot_dimension_numbers<[1], [0], [0], [1], [0, 0, 1, 1], [], []>} : vector<192x32xbf16>, vector<32x32xbf16>, vector<192x32xf32> -> vector<192x32xf32>
    %33 = arith.truncf %29 : vector<12x16x16xf32> to vector<12x16x16xbf16>
    %34 = vector.shape_cast %32 : vector<192x32xf32> to vector<12x16x32xf32>
    %35 = arith.truncf %34 : vector<12x16x32xf32> to vector<12x16x32xbf16>
    "tpu.trace_start"() <{level = 10 : i32, message = "gqk,gkd->gqd"}> : () -> ()
    %cst_23 = arith.constant dense<0.000000e+00> : vector<12x16x32xf32>
    %36 = tpu.matmul %33, %35, %cst_23 {dimension_numbers = #tpu.dot_dimension_numbers<[2], [1], [1], [2], [0, 0, 0, 1, 1, 2], [0], [0]>} : vector<12x16x16xbf16>, vector<12x16x32xbf16>, vector<12x16x32xf32> -> vector<12x16x32xf32>
    "tpu.trace_stop"() : () -> ()
    %37 = vector.shape_cast %36 : vector<12x16x32xf32> to vector<192x32xf32>
    %38 = arith.addf %2, %37 : vector<192x32xf32>
    %39 = vector.broadcast %4 : vector<1x32xf32> to vector<192x32xf32>
    %40 = arith.addf %38, %39 : vector<192x32xf32>
    %cst_24 = arith.constant dense<0.000000e+00> : vector<192xf32>
    %41 = vector.multi_reduction <add>, %40, %cst_24 [1] : vector<192x32xf32> to vector<192xf32>
    %42 = vector.shape_cast %41 : vector<192xf32> to vector<192x1xf32>
    %cst_25 = arith.constant 3.200000e+01 : f32
    %43 = vector.broadcast %cst_25 : f32 to vector<192x1xf32>
    %44 = arith.divf %42, %43 : vector<192x1xf32>
    %45 = vector.broadcast %44 : vector<192x1xf32> to vector<192x32xf32>
    %46 = arith.subf %40, %45 : vector<192x32xf32>
    %47 = arith.mulf %46, %46 : vector<192x32xf32>
    %cst_26 = arith.constant dense<0.000000e+00> : vector<192xf32>
    %48 = vector.multi_reduction <add>, %47, %cst_26 [1] : vector<192x32xf32> to vector<192xf32>
    %49 = vector.shape_cast %48 : vector<192xf32> to vector<192x1xf32>
    %cst_27 = arith.constant 3.200000e+01 : f32
    %50 = vector.broadcast %cst_27 : f32 to vector<192x1xf32>
    %51 = arith.divf %49, %50 : vector<192x1xf32>
    %cst_28 = arith.constant 9.99999974E-6 : f32
    %52 = vector.broadcast %cst_28 : f32 to vector<192x1xf32>
    %53 = arith.addf %51, %52 : vector<192x1xf32>
    %54 = math.rsqrt %53 : vector<192x1xf32>
    %55 = vector.broadcast %54 : vector<192x1xf32> to vector<192x32xf32>
    %56 = arith.mulf %46, %55 : vector<192x32xf32>
    %57 = vector.broadcast %6 : vector<1x32xf32> to vector<192x32xf32>
    %58 = arith.mulf %56, %57 : vector<192x32xf32>
    %59 = vector.broadcast %7 : vector<1x32xf32> to vector<192x32xf32>
    %60 = arith.addf %58, %59 : vector<192x32xf32>
    %61 = arith.truncf %60 : vector<192x32xf32> to vector<192x32xbf16>
    %c0_29 = arith.constant 0 : index
    %c0_30 = arith.constant 0 : index
    %c0_31 = arith.constant 0 : index
    %62 = vector.load %arg3[%c0_29, %c0_30, %c0_31] : memref<3x32x16xbf16, #tpu.memory_space<vmem>>, vector<1x32x16xbf16>
    %63 = vector.shape_cast %62 : vector<1x32x16xbf16> to vector<32x16xbf16>
    %cst_32 = arith.constant dense<0.000000e+00> : vector<192x16xf32>
    %64 = tpu.matmul %61, %63, %cst_32 {dimension_numbers = #tpu.dot_dimension_numbers<[1], [0], [0], [1], [0, 0, 1, 1], [], []>} : vector<192x32xbf16>, vector<32x16xbf16>, vector<192x16xf32> -> vector<192x16xf32>
    %65 = vector.broadcast %13 : vector<1x16xf32> to vector<192x16xf32>
    %66 = arith.addf %64, %65 : vector<192x16xf32>
    %cst_33 = arith.constant 0.000000e+00 : f32
    %67 = vector.broadcast %cst_33 : f32 to vector<192x16xf32>
    %68 = arith.maximumf %66, %67 : vector<192x16xf32>
    %69 = arith.truncf %68 : vector<192x16xf32> to vector<192x16xbf16>
    %c1_34 = arith.constant 1 : index
    %c0_35 = arith.constant 0 : index
    %c0_36 = arith.constant 0 : index
    %70 = vector.load %arg3[%c1_34, %c0_35, %c0_36] : memref<3x32x16xbf16, #tpu.memory_space<vmem>>, vector<1x32x16xbf16>
    %71 = vector.shape_cast %70 : vector<1x32x16xbf16> to vector<32x16xbf16>
    %cst_37 = arith.constant dense<0.000000e+00> : vector<192x32xf32>
    %72 = tpu.matmul %69, %71, %cst_37 {dimension_numbers = #tpu.dot_dimension_numbers<[1], [1], [0], [0], [0, 0, 1, 0], [], []>} : vector<192x16xbf16>, vector<32x16xbf16>, vector<192x32xf32> -> vector<192x32xf32>
    %73 = vector.broadcast %5 : vector<1x32xf32> to vector<192x32xf32>
    %74 = arith.addf %72, %73 : vector<192x32xf32>
    %75 = arith.addf %60, %74 : vector<192x32xf32>
    %cst_38 = arith.constant dense<0.000000e+00> : vector<192xf32>
    %76 = vector.multi_reduction <add>, %75, %cst_38 [1] : vector<192x32xf32> to vector<192xf32>
    %77 = vector.shape_cast %76 : vector<192xf32> to vector<192x1xf32>
    %cst_39 = arith.constant 3.200000e+01 : f32
    %78 = vector.broadcast %cst_39 : f32 to vector<192x1xf32>
    %79 = arith.divf %77, %78 : vector<192x1xf32>
    %80 = vector.broadcast %79 : vector<192x1xf32> to vector<192x32xf32>
    %81 = arith.subf %75, %80 : vector<192x32xf32>
    %82 = arith.mulf %81, %81 : vector<192x32xf32>
    %cst_40 = arith.constant dense<0.000000e+00> : vector<192xf32>
    %83 = vector.multi_reduction <add>, %82, %cst_40 [1] : vector<192x32xf32> to vector<192xf32>
    %84 = vector.shape_cast %83 : vector<192xf32> to vector<192x1xf32>
    %cst_41 = arith.constant 3.200000e+01 : f32
    %85 = vector.broadcast %cst_41 : f32 to vector<192x1xf32>
    %86 = arith.divf %84, %85 : vector<192x1xf32>
    %cst_42 = arith.constant 9.99999974E-6 : f32
    %87 = vector.broadcast %cst_42 : f32 to vector<192x1xf32>
    %88 = arith.addf %86, %87 : vector<192x1xf32>
    %89 = math.rsqrt %88 : vector<192x1xf32>
    %90 = vector.broadcast %89 : vector<192x1xf32> to vector<192x32xf32>
    %91 = arith.mulf %81, %90 : vector<192x32xf32>
    %92 = vector.broadcast %8 : vector<1x32xf32> to vector<192x32xf32>
    %93 = arith.mulf %91, %92 : vector<192x32xf32>
    %94 = vector.broadcast %9 : vector<1x32xf32> to vector<192x32xf32>
    %95 = arith.addf %93, %94 : vector<192x32xf32>
    %96 = vector.shape_cast %95 : vector<192x32xf32> to vector<12x16x32xf32>
    %97 = vector.shape_cast %96 : vector<12x16x32xf32> to vector<4x3x16x32xf32>
    %98 = vector.extract_strided_slice %0 {offsets = [0, 0, 0, 0], sizes = [4, 1, 16, 32], strides = [1, 1, 1, 1]} : vector<4x3x16x32xf32> to vector<4x1x16x32xf32>
    %99 = vector.shape_cast %98 : vector<4x1x16x32xf32> to vector<4x16x32xf32>
    %100 = vector.extract_strided_slice %97 {offsets = [0, 0, 0, 0], sizes = [4, 1, 16, 32], strides = [1, 1, 1, 1]} : vector<4x3x16x32xf32> to vector<4x1x16x32xf32>
    %101 = vector.shape_cast %100 : vector<4x1x16x32xf32> to vector<4x16x32xf32>
    %c0_43 = arith.constant 0 : index
    %c0_44 = arith.constant 0 : index
    %102 = vector.load %arg12[%c0_43, %c0_44] : memref<4x1xf32, #tpu.memory_space<vmem>>, vector<1x1xf32>
    %103 = vector.shape_cast %102 : vector<1x1xf32> to vector<1x1x1xf32>
    %104 = vector.broadcast %103 : vector<1x1x1xf32> to vector<4x16x32xf32>
    %105 = arith.mulf %101, %104 : vector<4x16x32xf32>
    %106 = vector.extract_strided_slice %0 {offsets = [0, 1, 0, 0], sizes = [4, 1, 16, 32], strides = [1, 1, 1, 1]} : vector<4x3x16x32xf32> to vector<4x1x16x32xf32>
    %107 = vector.shape_cast %106 : vector<4x1x16x32xf32> to vector<4x16x32xf32>
    %108 = arith.addf %99, %107 : vector<4x16x32xf32>
    %109 = vector.extract_strided_slice %97 {offsets = [0, 1, 0, 0], sizes = [4, 1, 16, 32], strides = [1, 1, 1, 1]} : vector<4x3x16x32xf32> to vector<4x1x16x32xf32>
    %110 = vector.shape_cast %109 : vector<4x1x16x32xf32> to vector<4x16x32xf32>
    %c1_45 = arith.constant 1 : index
    %c0_46 = arith.constant 0 : index
    %111 = vector.load %arg12[%c1_45, %c0_46] : memref<4x1xf32, #tpu.memory_space<vmem>>, vector<1x1xf32>
    %112 = vector.shape_cast %111 : vector<1x1xf32> to vector<1x1x1xf32>
    %113 = vector.broadcast %112 : vector<1x1x1xf32> to vector<4x16x32xf32>
    %114 = arith.mulf %110, %113 : vector<4x16x32xf32>
    %115 = arith.addf %105, %114 : vector<4x16x32xf32>
    %116 = vector.extract_strided_slice %0 {offsets = [0, 2, 0, 0], sizes = [4, 1, 16, 32], strides = [1, 1, 1, 1]} : vector<4x3x16x32xf32> to vector<4x1x16x32xf32>
    %117 = vector.shape_cast %116 : vector<4x1x16x32xf32> to vector<4x16x32xf32>
    %118 = arith.addf %108, %117 : vector<4x16x32xf32>
    %119 = vector.extract_strided_slice %97 {offsets = [0, 2, 0, 0], sizes = [4, 1, 16, 32], strides = [1, 1, 1, 1]} : vector<4x3x16x32xf32> to vector<4x1x16x32xf32>
    %120 = vector.shape_cast %119 : vector<4x1x16x32xf32> to vector<4x16x32xf32>
    %c2_47 = arith.constant 2 : index
    %c0_48 = arith.constant 0 : index
    %121 = vector.load %arg12[%c2_47, %c0_48] : memref<4x1xf32, #tpu.memory_space<vmem>>, vector<1x1xf32>
    %122 = vector.shape_cast %121 : vector<1x1xf32> to vector<1x1x1xf32>
    %123 = vector.broadcast %122 : vector<1x1x1xf32> to vector<4x16x32xf32>
    %124 = arith.mulf %120, %123 : vector<4x16x32xf32>
    %125 = arith.addf %115, %124 : vector<4x16x32xf32>
    %cst_49 = arith.constant 0.333333343 : f32
    %126 = vector.broadcast %cst_49 : f32 to vector<4x16x32xf32>
    %127 = arith.mulf %118, %126 : vector<4x16x32xf32>
    %c3_50 = arith.constant 3 : index
    %c0_51 = arith.constant 0 : index
    %128 = vector.load %arg12[%c3_50, %c0_51] : memref<4x1xf32, #tpu.memory_space<vmem>>, vector<1x1xf32>
    %129 = vector.shape_cast %128 : vector<1x1xf32> to vector<1x1x1xf32>
    %130 = vector.broadcast %129 : vector<1x1x1xf32> to vector<4x16x32xf32>
    %131 = arith.addf %125, %130 : vector<4x16x32xf32>
    %132 = math.tanh %131 : vector<4x16x32xf32>
    %c0_52 = arith.constant 0 : index
    %c0_53 = arith.constant 0 : index
    %133 = vector.load %arg11[%c0_52, %c0_53] : memref<6x32xf32, #tpu.memory_space<vmem>>, vector<1x32xf32>
    %c1_54 = arith.constant 1 : index
    %c0_55 = arith.constant 0 : index
    %134 = vector.load %arg11[%c1_54, %c0_55] : memref<6x32xf32, #tpu.memory_space<vmem>>, vector<1x32xf32>
    %c2_56 = arith.constant 2 : index
    %c0_57 = arith.constant 0 : index
    %135 = vector.load %arg11[%c2_56, %c0_57] : memref<6x32xf32, #tpu.memory_space<vmem>>, vector<1x32xf32>
    %c3_58 = arith.constant 3 : index
    %c0_59 = arith.constant 0 : index
    %136 = vector.load %arg11[%c3_58, %c0_59] : memref<6x32xf32, #tpu.memory_space<vmem>>, vector<1x32xf32>
    %c4_60 = arith.constant 4 : index
    %c0_61 = arith.constant 0 : index
    %137 = vector.load %arg11[%c4_60, %c0_61] : memref<6x32xf32, #tpu.memory_space<vmem>>, vector<1x32xf32>
    %c5_62 = arith.constant 5 : index
    %c0_63 = arith.constant 0 : index
    %138 = vector.load %arg11[%c5_62, %c0_63] : memref<6x32xf32, #tpu.memory_space<vmem>>, vector<1x32xf32>
    %139 = arith.addf %132, %127 : vector<4x16x32xf32>
    %cst_64 = arith.constant dense<0.000000e+00> : vector<4x16xf32>
    %140 = vector.multi_reduction <add>, %139, %cst_64 [2] : vector<4x16x32xf32> to vector<4x16xf32>
    %141 = vector.shape_cast %140 : vector<4x16xf32> to vector<4x16x1xf32>
    %cst_65 = arith.constant 3.200000e+01 : f32
    %142 = vector.broadcast %cst_65 : f32 to vector<4x16x1xf32>
    %143 = arith.divf %141, %142 : vector<4x16x1xf32>
    %144 = vector.broadcast %143 : vector<4x16x1xf32> to vector<4x16x32xf32>
    %145 = arith.subf %139, %144 : vector<4x16x32xf32>
    %146 = arith.mulf %145, %145 : vector<4x16x32xf32>
    %cst_66 = arith.constant dense<0.000000e+00> : vector<4x16xf32>
    %147 = vector.multi_reduction <add>, %146, %cst_66 [2] : vector<4x16x32xf32> to vector<4x16xf32>
    %148 = vector.shape_cast %147 : vector<4x16xf32> to vector<4x16x1xf32>
    %cst_67 = arith.constant 3.200000e+01 : f32
    %149 = vector.broadcast %cst_67 : f32 to vector<4x16x1xf32>
    %150 = arith.divf %148, %149 : vector<4x16x1xf32>
    %cst_68 = arith.constant 9.99999974E-6 : f32
    %151 = vector.broadcast %cst_68 : f32 to vector<4x16x1xf32>
    %152 = arith.addf %150, %151 : vector<4x16x1xf32>
    %153 = math.rsqrt %152 : vector<4x16x1xf32>
    %154 = vector.broadcast %153 : vector<4x16x1xf32> to vector<4x16x32xf32>
    %155 = arith.mulf %145, %154 : vector<4x16x32xf32>
    %156 = vector.shape_cast %133 : vector<1x32xf32> to vector<1x1x32xf32>
    %157 = vector.broadcast %156 : vector<1x1x32xf32> to vector<4x16x32xf32>
    %158 = arith.mulf %155, %157 : vector<4x16x32xf32>
    %159 = vector.shape_cast %134 : vector<1x32xf32> to vector<1x1x32xf32>
    %160 = vector.broadcast %159 : vector<1x1x32xf32> to vector<4x16x32xf32>
    %161 = arith.addf %158, %160 : vector<4x16x32xf32>
    %162 = tpu.iota {dimensions = array<i32: 0>} : vector<32x32xi32>
    %163 = tpu.iota {dimensions = array<i32: 1>} : vector<32x32xi32>
    %164 = arith.cmpi eq, %162, %163 : vector<32x32xi32>
    %165 = arith.extui %164 : vector<32x32xi1> to vector<32x32xi32>
    %166 = arith.sitofp %165 : vector<32x32xi32> to vector<32x32xf32>
    %167 = vector.shape_cast %166 : vector<32x32xf32> to vector<1x32x32xf32>
    %168 = vector.broadcast %167 : vector<1x32x32xf32> to vector<4x32x32xf32>
    %cst_69 = arith.constant dense<0.000000e+00> : vector<4x32x16xf32>
    %169 = tpu.matmul %168, %161, %cst_69 {dimension_numbers = #tpu.dot_dimension_numbers<[2], [2], [1], [1], [0, 0, 0, 1, 1, 1], [0], [0]>} : vector<4x32x32xf32>, vector<4x16x32xf32>, vector<4x32x16xf32> -> vector<4x32x16xf32>
    %170 = vector.shape_cast %169 : vector<4x32x16xf32> to vector<128x16xf32>
    %171 = arith.truncf %170 : vector<128x16xf32> to vector<128x16xbf16>
    %c0_70 = arith.constant 0 : index
    %c0_71 = arith.constant 0 : index
    %172 = vector.load %arg7[%c0_70, %c0_71] : memref<6x16xf32, #tpu.memory_space<vmem>>, vector<1x16xf32>
    %c1_72 = arith.constant 1 : index
    %c0_73 = arith.constant 0 : index
    %173 = vector.load %arg7[%c1_72, %c0_73] : memref<6x16xf32, #tpu.memory_space<vmem>>, vector<1x16xf32>
    %c2_74 = arith.constant 2 : index
    %c0_75 = arith.constant 0 : index
    %174 = vector.load %arg7[%c2_74, %c0_75] : memref<6x16xf32, #tpu.memory_space<vmem>>, vector<1x16xf32>
    %c3_76 = arith.constant 3 : index
    %c0_77 = arith.constant 0 : index
    %175 = vector.load %arg7[%c3_76, %c0_77] : memref<6x16xf32, #tpu.memory_space<vmem>>, vector<1x16xf32>
    %c4_78 = arith.constant 4 : index
    %c0_79 = arith.constant 0 : index
    %176 = vector.load %arg7[%c4_78, %c0_79] : memref<6x16xf32, #tpu.memory_space<vmem>>, vector<1x16xf32>
    %c5_80 = arith.constant 5 : index
    %c0_81 = arith.constant 0 : index
    %177 = vector.load %arg7[%c5_80, %c0_81] : memref<6x16xf32, #tpu.memory_space<vmem>>, vector<1x16xf32>
    %c2_82 = arith.constant 2 : index
    %c0_83 = arith.constant 0 : index
    %c0_84 = arith.constant 0 : index
    %178 = vector.load %arg6[%c2_82, %c0_83, %c0_84] : memref<3x16x32xbf16, #tpu.memory_space<vmem>>, vector<1x16x32xbf16>
    %179 = vector.shape_cast %178 : vector<1x16x32xbf16> to vector<16x32xbf16>
    %180 = vector.extract_strided_slice %179 {offsets = [0, 0], sizes = [1, 32], strides = [1, 1]} : vector<16x32xbf16> to vector<1x32xbf16>
    %181 = arith.extf %180 : vector<1x32xbf16> to vector<1x32xf32>
    %c0_85 = arith.constant 0 : index
    %c0_86 = arith.constant 0 : index
    %c0_87 = arith.constant 0 : index
    %182 = vector.load %arg5[%c0_85, %c0_86, %c0_87] : memref<2x16x16xbf16, #tpu.memory_space<vmem>>, vector<1x16x16xbf16>
    %183 = vector.shape_cast %182 : vector<1x16x16xbf16> to vector<16x16xbf16>
    %cst_88 = arith.constant dense<0.000000e+00> : vector<128x16xf32>
    %184 = tpu.matmul %171, %183, %cst_88 {dimension_numbers = #tpu.dot_dimension_numbers<[1], [0], [0], [1], [0, 0, 1, 1], [], []>} : vector<128x16xbf16>, vector<16x16xbf16>, vector<128x16xf32> -> vector<128x16xf32>
    %185 = vector.shape_cast %184 : vector<128x16xf32> to vector<4x32x16xf32>
    %186 = arith.truncf %185 : vector<4x32x16xf32> to vector<4x32x16xbf16>
    %187 = vector.shape_cast %171 : vector<128x16xbf16> to vector<4x32x16xbf16>
    "tpu.trace_start"() <{level = 10 : i32, message = "gqd,gkd->gqk"}> : () -> ()
    %cst_89 = arith.constant dense<0.000000e+00> : vector<4x32x32xf32>
    %188 = tpu.matmul %186, %187, %cst_89 {dimension_numbers = #tpu.dot_dimension_numbers<[2], [2], [1], [1], [0, 0, 0, 1, 1, 1], [0], [0]>} : vector<4x32x16xbf16>, vector<4x32x16xbf16>, vector<4x32x32xf32> -> vector<4x32x32xf32>
    "tpu.trace_stop"() : () -> ()
    %cst_90 = arith.constant dense<0xFF800000> : vector<4x32xf32>
    %189 = vector.multi_reduction <maximumf>, %188, %cst_90 [2] : vector<4x32x32xf32> to vector<4x32xf32>
    %190 = vector.shape_cast %189 : vector<4x32xf32> to vector<4x32x1xf32>
    %191 = vector.broadcast %190 : vector<4x32x1xf32> to vector<4x32x32xf32>
    %192 = arith.subf %188, %191 : vector<4x32x32xf32>
    %193 = math.exp %192 : vector<4x32x32xf32>
    %cst_91 = arith.constant dense<0.000000e+00> : vector<4x32xf32>
    %194 = vector.multi_reduction <add>, %193, %cst_91 [2] : vector<4x32x32xf32> to vector<4x32xf32>
    %195 = vector.shape_cast %194 : vector<4x32xf32> to vector<4x32x1xf32>
    %196 = vector.broadcast %195 : vector<4x32x1xf32> to vector<4x32x32xf32>
    %197 = arith.divf %193, %196 : vector<4x32x32xf32>
    %c1_92 = arith.constant 1 : index
    %c0_93 = arith.constant 0 : index
    %c0_94 = arith.constant 0 : index
    %198 = vector.load %arg5[%c1_92, %c0_93, %c0_94] : memref<2x16x16xbf16, #tpu.memory_space<vmem>>, vector<1x16x16xbf16>
    %199 = vector.shape_cast %198 : vector<1x16x16xbf16> to vector<16x16xbf16>
    %cst_95 = arith.constant dense<0.000000e+00> : vector<128x16xf32>
    %200 = tpu.matmul %171, %199, %cst_95 {dimension_numbers = #tpu.dot_dimension_numbers<[1], [0], [0], [1], [0, 0, 1, 1], [], []>} : vector<128x16xbf16>, vector<16x16xbf16>, vector<128x16xf32> -> vector<128x16xf32>
    %201 = arith.truncf %197 : vector<4x32x32xf32> to vector<4x32x32xbf16>
    %202 = vector.shape_cast %200 : vector<128x16xf32> to vector<4x32x16xf32>
    %203 = arith.truncf %202 : vector<4x32x16xf32> to vector<4x32x16xbf16>
    "tpu.trace_start"() <{level = 10 : i32, message = "gqk,gkd->gqd"}> : () -> ()
    %cst_96 = arith.constant dense<0.000000e+00> : vector<4x32x16xf32>
    %204 = tpu.matmul %201, %203, %cst_96 {dimension_numbers = #tpu.dot_dimension_numbers<[2], [1], [1], [2], [0, 0, 0, 1, 1, 2], [0], [0]>} : vector<4x32x32xbf16>, vector<4x32x16xbf16>, vector<4x32x16xf32> -> vector<4x32x16xf32>
    "tpu.trace_stop"() : () -> ()
    %205 = vector.shape_cast %204 : vector<4x32x16xf32> to vector<128x16xf32>
    %206 = arith.addf %170, %205 : vector<128x16xf32>
    %207 = vector.broadcast %172 : vector<1x16xf32> to vector<128x16xf32>
    %208 = arith.addf %206, %207 : vector<128x16xf32>
    %cst_97 = arith.constant dense<0.000000e+00> : vector<128xf32>
    %209 = vector.multi_reduction <add>, %208, %cst_97 [1] : vector<128x16xf32> to vector<128xf32>
    %210 = vector.shape_cast %209 : vector<128xf32> to vector<128x1xf32>
    %cst_98 = arith.constant 1.600000e+01 : f32
    %211 = vector.broadcast %cst_98 : f32 to vector<128x1xf32>
    %212 = arith.divf %210, %211 : vector<128x1xf32>
    %213 = vector.broadcast %212 : vector<128x1xf32> to vector<128x16xf32>
    %214 = arith.subf %208, %213 : vector<128x16xf32>
    %215 = arith.mulf %214, %214 : vector<128x16xf32>
    %cst_99 = arith.constant dense<0.000000e+00> : vector<128xf32>
    %216 = vector.multi_reduction <add>, %215, %cst_99 [1] : vector<128x16xf32> to vector<128xf32>
    %217 = vector.shape_cast %216 : vector<128xf32> to vector<128x1xf32>
    %cst_100 = arith.constant 1.600000e+01 : f32
    %218 = vector.broadcast %cst_100 : f32 to vector<128x1xf32>
    %219 = arith.divf %217, %218 : vector<128x1xf32>
    %cst_101 = arith.constant 9.99999974E-6 : f32
    %220 = vector.broadcast %cst_101 : f32 to vector<128x1xf32>
    %221 = arith.addf %219, %220 : vector<128x1xf32>
    %222 = math.rsqrt %221 : vector<128x1xf32>
    %223 = vector.broadcast %222 : vector<128x1xf32> to vector<128x16xf32>
    %224 = arith.mulf %214, %223 : vector<128x16xf32>
    %225 = vector.broadcast %174 : vector<1x16xf32> to vector<128x16xf32>
    %226 = arith.mulf %224, %225 : vector<128x16xf32>
    %227 = vector.broadcast %175 : vector<1x16xf32> to vector<128x16xf32>
    %228 = arith.addf %226, %227 : vector<128x16xf32>
    %229 = arith.truncf %228 : vector<128x16xf32> to vector<128x16xbf16>
    %c0_102 = arith.constant 0 : index
    %c0_103 = arith.constant 0 : index
    %c0_104 = arith.constant 0 : index
    %230 = vector.load %arg6[%c0_102, %c0_103, %c0_104] : memref<3x16x32xbf16, #tpu.memory_space<vmem>>, vector<1x16x32xbf16>
    %231 = vector.shape_cast %230 : vector<1x16x32xbf16> to vector<16x32xbf16>
    %cst_105 = arith.constant dense<0.000000e+00> : vector<128x32xf32>
    %232 = tpu.matmul %229, %231, %cst_105 {dimension_numbers = #tpu.dot_dimension_numbers<[1], [0], [0], [1], [0, 0, 1, 1], [], []>} : vector<128x16xbf16>, vector<16x32xbf16>, vector<128x32xf32> -> vector<128x32xf32>
    %233 = vector.broadcast %181 : vector<1x32xf32> to vector<128x32xf32>
    %234 = arith.addf %232, %233 : vector<128x32xf32>
    %cst_106 = arith.constant 0.000000e+00 : f32
    %235 = vector.broadcast %cst_106 : f32 to vector<128x32xf32>
    %236 = arith.maximumf %234, %235 : vector<128x32xf32>
    %237 = arith.truncf %236 : vector<128x32xf32> to vector<128x32xbf16>
    %c1_107 = arith.constant 1 : index
    %c0_108 = arith.constant 0 : index
    %c0_109 = arith.constant 0 : index
    %238 = vector.load %arg6[%c1_107, %c0_108, %c0_109] : memref<3x16x32xbf16, #tpu.memory_space<vmem>>, vector<1x16x32xbf16>
    %239 = vector.shape_cast %238 : vector<1x16x32xbf16> to vector<16x32xbf16>
    %cst_110 = arith.constant dense<0.000000e+00> : vector<128x16xf32>
    %240 = tpu.matmul %237, %239, %cst_110 {dimension_numbers = #tpu.dot_dimension_numbers<[1], [1], [0], [0], [0, 0, 1, 0], [], []>} : vector<128x32xbf16>, vector<16x32xbf16>, vector<128x16xf32> -> vector<128x16xf32>
    %241 = vector.broadcast %173 : vector<1x16xf32> to vector<128x16xf32>
    %242 = arith.addf %240, %241 : vector<128x16xf32>
    %243 = arith.addf %228, %242 : vector<128x16xf32>
    %cst_111 = arith.constant dense<0.000000e+00> : vector<128xf32>
    %244 = vector.multi_reduction <add>, %243, %cst_111 [1] : vector<128x16xf32> to vector<128xf32>
    %245 = vector.shape_cast %244 : vector<128xf32> to vector<128x1xf32>
    %cst_112 = arith.constant 1.600000e+01 : f32
    %246 = vector.broadcast %cst_112 : f32 to vector<128x1xf32>
    %247 = arith.divf %245, %246 : vector<128x1xf32>
    %248 = vector.broadcast %247 : vector<128x1xf32> to vector<128x16xf32>
    %249 = arith.subf %243, %248 : vector<128x16xf32>
    %250 = arith.mulf %249, %249 : vector<128x16xf32>
    %cst_113 = arith.constant dense<0.000000e+00> : vector<128xf32>
    %251 = vector.multi_reduction <add>, %250, %cst_113 [1] : vector<128x16xf32> to vector<128xf32>
    %252 = vector.shape_cast %251 : vector<128xf32> to vector<128x1xf32>
    %cst_114 = arith.constant 1.600000e+01 : f32
    %253 = vector.broadcast %cst_114 : f32 to vector<128x1xf32>
    %254 = arith.divf %252, %253 : vector<128x1xf32>
    %cst_115 = arith.constant 9.99999974E-6 : f32
    %255 = vector.broadcast %cst_115 : f32 to vector<128x1xf32>
    %256 = arith.addf %254, %255 : vector<128x1xf32>
    %257 = math.rsqrt %256 : vector<128x1xf32>
    %258 = vector.broadcast %257 : vector<128x1xf32> to vector<128x16xf32>
    %259 = arith.mulf %249, %258 : vector<128x16xf32>
    %260 = vector.broadcast %176 : vector<1x16xf32> to vector<128x16xf32>
    %261 = arith.mulf %259, %260 : vector<128x16xf32>
    %262 = vector.broadcast %177 : vector<1x16xf32> to vector<128x16xf32>
    %263 = arith.addf %261, %262 : vector<128x16xf32>
    %264 = vector.shape_cast %263 : vector<128x16xf32> to vector<4x32x16xf32>
    %265 = tpu.iota {dimensions = array<i32: 0>} : vector<16x16xi32>
    %266 = tpu.iota {dimensions = array<i32: 1>} : vector<16x16xi32>
    %267 = arith.cmpi eq, %265, %266 : vector<16x16xi32>
    %268 = arith.extui %267 : vector<16x16xi1> to vector<16x16xi32>
    %269 = arith.sitofp %268 : vector<16x16xi32> to vector<16x16xf32>
    %270 = vector.shape_cast %269 : vector<16x16xf32> to vector<1x16x16xf32>
    %271 = vector.broadcast %270 : vector<1x16x16xf32> to vector<4x16x16xf32>
    %cst_116 = arith.constant dense<0.000000e+00> : vector<4x16x32xf32>
    %272 = tpu.matmul %271, %264, %cst_116 {dimension_numbers = #tpu.dot_dimension_numbers<[2], [2], [1], [1], [0, 0, 0, 1, 1, 1], [0], [0]>} : vector<4x16x16xf32>, vector<4x32x16xf32>, vector<4x16x32xf32> -> vector<4x16x32xf32>
    %273 = arith.addf %161, %132 : vector<4x16x32xf32>
    %274 = arith.addf %273, %272 : vector<4x16x32xf32>
    %cst_117 = arith.constant dense<0.000000e+00> : vector<4x16xf32>
    %275 = vector.multi_reduction <add>, %274, %cst_117 [2] : vector<4x16x32xf32> to vector<4x16xf32>
    %276 = vector.shape_cast %275 : vector<4x16xf32> to vector<4x16x1xf32>
    %cst_118 = arith.constant 3.200000e+01 : f32
    %277 = vector.broadcast %cst_118 : f32 to vector<4x16x1xf32>
    %278 = arith.divf %276, %277 : vector<4x16x1xf32>
    %279 = vector.broadcast %278 : vector<4x16x1xf32> to vector<4x16x32xf32>
    %280 = arith.subf %274, %279 : vector<4x16x32xf32>
    %281 = arith.mulf %280, %280 : vector<4x16x32xf32>
    %cst_119 = arith.constant dense<0.000000e+00> : vector<4x16xf32>
    %282 = vector.multi_reduction <add>, %281, %cst_119 [2] : vector<4x16x32xf32> to vector<4x16xf32>
    %283 = vector.shape_cast %282 : vector<4x16xf32> to vector<4x16x1xf32>
    %cst_120 = arith.constant 3.200000e+01 : f32
    %284 = vector.broadcast %cst_120 : f32 to vector<4x16x1xf32>
    %285 = arith.divf %283, %284 : vector<4x16x1xf32>
    %cst_121 = arith.constant 9.99999974E-6 : f32
    %286 = vector.broadcast %cst_121 : f32 to vector<4x16x1xf32>
    %287 = arith.addf %285, %286 : vector<4x16x1xf32>
    %288 = math.rsqrt %287 : vector<4x16x1xf32>
    %289 = vector.broadcast %288 : vector<4x16x1xf32> to vector<4x16x32xf32>
    %290 = arith.mulf %280, %289 : vector<4x16x32xf32>
    %291 = vector.shape_cast %135 : vector<1x32xf32> to vector<1x1x32xf32>
    %292 = vector.broadcast %291 : vector<1x1x32xf32> to vector<4x16x32xf32>
    %293 = arith.mulf %290, %292 : vector<4x16x32xf32>
    %294 = vector.shape_cast %136 : vector<1x32xf32> to vector<1x1x32xf32>
    %295 = vector.broadcast %294 : vector<1x1x32xf32> to vector<4x16x32xf32>
    %296 = arith.addf %293, %295 : vector<4x16x32xf32>
    %297 = vector.shape_cast %296 : vector<4x16x32xf32> to vector<64x32xf32>
    %298 = arith.truncf %297 : vector<64x32xf32> to vector<64x32xbf16>
    %c0_122 = arith.constant 0 : index
    %c0_123 = arith.constant 0 : index
    %299 = vector.load %arg10[%c0_122, %c0_123] : memref<6x32xf32, #tpu.memory_space<vmem>>, vector<1x32xf32>
    %c1_124 = arith.constant 1 : index
    %c0_125 = arith.constant 0 : index
    %300 = vector.load %arg10[%c1_124, %c0_125] : memref<6x32xf32, #tpu.memory_space<vmem>>, vector<1x32xf32>
    %c2_126 = arith.constant 2 : index
    %c0_127 = arith.constant 0 : index
    %301 = vector.load %arg10[%c2_126, %c0_127] : memref<6x32xf32, #tpu.memory_space<vmem>>, vector<1x32xf32>
    %c3_128 = arith.constant 3 : index
    %c0_129 = arith.constant 0 : index
    %302 = vector.load %arg10[%c3_128, %c0_129] : memref<6x32xf32, #tpu.memory_space<vmem>>, vector<1x32xf32>
    %c4_130 = arith.constant 4 : index
    %c0_131 = arith.constant 0 : index
    %303 = vector.load %arg10[%c4_130, %c0_131] : memref<6x32xf32, #tpu.memory_space<vmem>>, vector<1x32xf32>
    %c5_132 = arith.constant 5 : index
    %c0_133 = arith.constant 0 : index
    %304 = vector.load %arg10[%c5_132, %c0_133] : memref<6x32xf32, #tpu.memory_space<vmem>>, vector<1x32xf32>
    %c2_134 = arith.constant 2 : index
    %c0_135 = arith.constant 0 : index
    %c0_136 = arith.constant 0 : index
    %305 = vector.load %arg9[%c2_134, %c0_135, %c0_136] : memref<3x32x64xbf16, #tpu.memory_space<vmem>>, vector<1x32x64xbf16>
    %306 = vector.shape_cast %305 : vector<1x32x64xbf16> to vector<32x64xbf16>
    %307 = vector.extract_strided_slice %306 {offsets = [0, 0], sizes = [1, 64], strides = [1, 1]} : vector<32x64xbf16> to vector<1x64xbf16>
    %308 = arith.extf %307 : vector<1x64xbf16> to vector<1x64xf32>
    %c0_137 = arith.constant 0 : index
    %c0_138 = arith.constant 0 : index
    %c0_139 = arith.constant 0 : index
    %309 = vector.load %arg8[%c0_137, %c0_138, %c0_139] : memref<2x32x32xbf16, #tpu.memory_space<vmem>>, vector<1x32x32xbf16>
    %310 = vector.shape_cast %309 : vector<1x32x32xbf16> to vector<32x32xbf16>
    %cst_140 = arith.constant dense<0.000000e+00> : vector<64x32xf32>
    %311 = tpu.matmul %298, %310, %cst_140 {dimension_numbers = #tpu.dot_dimension_numbers<[1], [0], [0], [1], [0, 0, 1, 1], [], []>} : vector<64x32xbf16>, vector<32x32xbf16>, vector<64x32xf32> -> vector<64x32xf32>
    %312 = vector.shape_cast %311 : vector<64x32xf32> to vector<4x16x32xf32>
    %313 = arith.truncf %312 : vector<4x16x32xf32> to vector<4x16x32xbf16>
    %314 = vector.shape_cast %298 : vector<64x32xbf16> to vector<4x16x32xbf16>
    "tpu.trace_start"() <{level = 10 : i32, message = "gqd,gkd->gqk"}> : () -> ()
    %cst_141 = arith.constant dense<0.000000e+00> : vector<4x16x16xf32>
    %315 = tpu.matmul %313, %314, %cst_141 {dimension_numbers = #tpu.dot_dimension_numbers<[2], [2], [1], [1], [0, 0, 0, 1, 1, 1], [0], [0]>} : vector<4x16x32xbf16>, vector<4x16x32xbf16>, vector<4x16x16xf32> -> vector<4x16x16xf32>
    "tpu.trace_stop"() : () -> ()
    %cst_142 = arith.constant dense<0xFF800000> : vector<4x16xf32>
    %316 = vector.multi_reduction <maximumf>, %315, %cst_142 [2] : vector<4x16x16xf32> to vector<4x16xf32>
    %317 = vector.shape_cast %316 : vector<4x16xf32> to vector<4x16x1xf32>
    %318 = vector.broadcast %317 : vector<4x16x1xf32> to vector<4x16x16xf32>
    %319 = arith.subf %315, %318 : vector<4x16x16xf32>
    %320 = math.exp %319 : vector<4x16x16xf32>
    %cst_143 = arith.constant dense<0.000000e+00> : vector<4x16xf32>
    %321 = vector.multi_reduction <add>, %320, %cst_143 [2] : vector<4x16x16xf32> to vector<4x16xf32>
    %322 = vector.shape_cast %321 : vector<4x16xf32> to vector<4x16x1xf32>
    %323 = vector.broadcast %322 : vector<4x16x1xf32> to vector<4x16x16xf32>
    %324 = arith.divf %320, %323 : vector<4x16x16xf32>
    %c1_144 = arith.constant 1 : index
    %c0_145 = arith.constant 0 : index
    %c0_146 = arith.constant 0 : index
    %325 = vector.load %arg8[%c1_144, %c0_145, %c0_146] : memref<2x32x32xbf16, #tpu.memory_space<vmem>>, vector<1x32x32xbf16>
    %326 = vector.shape_cast %325 : vector<1x32x32xbf16> to vector<32x32xbf16>
    %cst_147 = arith.constant dense<0.000000e+00> : vector<64x32xf32>
    %327 = tpu.matmul %298, %326, %cst_147 {dimension_numbers = #tpu.dot_dimension_numbers<[1], [0], [0], [1], [0, 0, 1, 1], [], []>} : vector<64x32xbf16>, vector<32x32xbf16>, vector<64x32xf32> -> vector<64x32xf32>
    %328 = arith.truncf %324 : vector<4x16x16xf32> to vector<4x16x16xbf16>
    %329 = vector.shape_cast %327 : vector<64x32xf32> to vector<4x16x32xf32>
    %330 = arith.truncf %329 : vector<4x16x32xf32> to vector<4x16x32xbf16>
    "tpu.trace_start"() <{level = 10 : i32, message = "gqk,gkd->gqd"}> : () -> ()
    %cst_148 = arith.constant dense<0.000000e+00> : vector<4x16x32xf32>
    %331 = tpu.matmul %328, %330, %cst_148 {dimension_numbers = #tpu.dot_dimension_numbers<[2], [1], [1], [2], [0, 0, 0, 1, 1, 2], [0], [0]>} : vector<4x16x16xbf16>, vector<4x16x32xbf16>, vector<4x16x32xf32> -> vector<4x16x32xf32>
    "tpu.trace_stop"() : () -> ()
    %332 = vector.shape_cast %331 : vector<4x16x32xf32> to vector<64x32xf32>
    %333 = arith.addf %297, %332 : vector<64x32xf32>
    %334 = vector.broadcast %299 : vector<1x32xf32> to vector<64x32xf32>
    %335 = arith.addf %333, %334 : vector<64x32xf32>
    %cst_149 = arith.constant dense<0.000000e+00> : vector<64xf32>
    %336 = vector.multi_reduction <add>, %335, %cst_149 [1] : vector<64x32xf32> to vector<64xf32>
    %337 = vector.shape_cast %336 : vector<64xf32> to vector<64x1xf32>
    %cst_150 = arith.constant 3.200000e+01 : f32
    %338 = vector.broadcast %cst_150 : f32 to vector<64x1xf32>
    %339 = arith.divf %337, %338 : vector<64x1xf32>
    %340 = vector.broadcast %339 : vector<64x1xf32> to vector<64x32xf32>
    %341 = arith.subf %335, %340 : vector<64x32xf32>
    %342 = arith.mulf %341, %341 : vector<64x32xf32>
    %cst_151 = arith.constant dense<0.000000e+00> : vector<64xf32>
    %343 = vector.multi_reduction <add>, %342, %cst_151 [1] : vector<64x32xf32> to vector<64xf32>
    %344 = vector.shape_cast %343 : vector<64xf32> to vector<64x1xf32>
    %cst_152 = arith.constant 3.200000e+01 : f32
    %345 = vector.broadcast %cst_152 : f32 to vector<64x1xf32>
    %346 = arith.divf %344, %345 : vector<64x1xf32>
    %cst_153 = arith.constant 9.99999974E-6 : f32
    %347 = vector.broadcast %cst_153 : f32 to vector<64x1xf32>
    %348 = arith.addf %346, %347 : vector<64x1xf32>
    %349 = math.rsqrt %348 : vector<64x1xf32>
    %350 = vector.broadcast %349 : vector<64x1xf32> to vector<64x32xf32>
    %351 = arith.mulf %341, %350 : vector<64x32xf32>
    %352 = vector.broadcast %301 : vector<1x32xf32> to vector<64x32xf32>
    %353 = arith.mulf %351, %352 : vector<64x32xf32>
    %354 = vector.broadcast %302 : vector<1x32xf32> to vector<64x32xf32>
    %355 = arith.addf %353, %354 : vector<64x32xf32>
    %356 = arith.truncf %355 : vector<64x32xf32> to vector<64x32xbf16>
    %c0_154 = arith.constant 0 : index
    %c0_155 = arith.constant 0 : index
    %c0_156 = arith.constant 0 : index
    %357 = vector.load %arg9[%c0_154, %c0_155, %c0_156] : memref<3x32x64xbf16, #tpu.memory_space<vmem>>, vector<1x32x64xbf16>
    %358 = vector.shape_cast %357 : vector<1x32x64xbf16> to vector<32x64xbf16>
    %cst_157 = arith.constant dense<0.000000e+00> : vector<64x64xf32>
    %359 = tpu.matmul %356, %358, %cst_157 {dimension_numbers = #tpu.dot_dimension_numbers<[1], [0], [0], [1], [0, 0, 1, 1], [], []>} : vector<64x32xbf16>, vector<32x64xbf16>, vector<64x64xf32> -> vector<64x64xf32>
    %360 = vector.broadcast %308 : vector<1x64xf32> to vector<64x64xf32>
    %361 = arith.addf %359, %360 : vector<64x64xf32>
    %cst_158 = arith.constant 0.000000e+00 : f32
    %362 = vector.broadcast %cst_158 : f32 to vector<64x64xf32>
    %363 = arith.maximumf %361, %362 : vector<64x64xf32>
    %364 = arith.truncf %363 : vector<64x64xf32> to vector<64x64xbf16>
    %c1_159 = arith.constant 1 : index
    %c0_160 = arith.constant 0 : index
    %c0_161 = arith.constant 0 : index
    %365 = vector.load %arg9[%c1_159, %c0_160, %c0_161] : memref<3x32x64xbf16, #tpu.memory_space<vmem>>, vector<1x32x64xbf16>
    %366 = vector.shape_cast %365 : vector<1x32x64xbf16> to vector<32x64xbf16>
    %cst_162 = arith.constant dense<0.000000e+00> : vector<64x32xf32>
    %367 = tpu.matmul %364, %366, %cst_162 {dimension_numbers = #tpu.dot_dimension_numbers<[1], [1], [0], [0], [0, 0, 1, 0], [], []>} : vector<64x64xbf16>, vector<32x64xbf16>, vector<64x32xf32> -> vector<64x32xf32>
    %368 = vector.broadcast %300 : vector<1x32xf32> to vector<64x32xf32>
    %369 = arith.addf %367, %368 : vector<64x32xf32>
    %370 = arith.addf %355, %369 : vector<64x32xf32>
    %cst_163 = arith.constant dense<0.000000e+00> : vector<64xf32>
    %371 = vector.multi_reduction <add>, %370, %cst_163 [1] : vector<64x32xf32> to vector<64xf32>
    %372 = vector.shape_cast %371 : vector<64xf32> to vector<64x1xf32>
    %cst_164 = arith.constant 3.200000e+01 : f32
    %373 = vector.broadcast %cst_164 : f32 to vector<64x1xf32>
    %374 = arith.divf %372, %373 : vector<64x1xf32>
    %375 = vector.broadcast %374 : vector<64x1xf32> to vector<64x32xf32>
    %376 = arith.subf %370, %375 : vector<64x32xf32>
    %377 = arith.mulf %376, %376 : vector<64x32xf32>
    %cst_165 = arith.constant dense<0.000000e+00> : vector<64xf32>
    %378 = vector.multi_reduction <add>, %377, %cst_165 [1] : vector<64x32xf32> to vector<64xf32>
    %379 = vector.shape_cast %378 : vector<64xf32> to vector<64x1xf32>
    %cst_166 = arith.constant 3.200000e+01 : f32
    %380 = vector.broadcast %cst_166 : f32 to vector<64x1xf32>
    %381 = arith.divf %379, %380 : vector<64x1xf32>
    %cst_167 = arith.constant 9.99999974E-6 : f32
    %382 = vector.broadcast %cst_167 : f32 to vector<64x1xf32>
    %383 = arith.addf %381, %382 : vector<64x1xf32>
    %384 = math.rsqrt %383 : vector<64x1xf32>
    %385 = vector.broadcast %384 : vector<64x1xf32> to vector<64x32xf32>
    %386 = arith.mulf %376, %385 : vector<64x32xf32>
    %387 = vector.broadcast %303 : vector<1x32xf32> to vector<64x32xf32>
    %388 = arith.mulf %386, %387 : vector<64x32xf32>
    %389 = vector.broadcast %304 : vector<1x32xf32> to vector<64x32xf32>
    %390 = arith.addf %388, %389 : vector<64x32xf32>
    %391 = vector.shape_cast %390 : vector<64x32xf32> to vector<4x16x32xf32>
    %392 = arith.addf %296, %132 : vector<4x16x32xf32>
    %393 = arith.addf %392, %272 : vector<4x16x32xf32>
    %394 = arith.addf %393, %391 : vector<4x16x32xf32>
    %cst_168 = arith.constant dense<0.000000e+00> : vector<4x16xf32>
    %395 = vector.multi_reduction <add>, %394, %cst_168 [2] : vector<4x16x32xf32> to vector<4x16xf32>
    %396 = vector.shape_cast %395 : vector<4x16xf32> to vector<4x16x1xf32>
    %cst_169 = arith.constant 3.200000e+01 : f32
    %397 = vector.broadcast %cst_169 : f32 to vector<4x16x1xf32>
    %398 = arith.divf %396, %397 : vector<4x16x1xf32>
    %399 = vector.broadcast %398 : vector<4x16x1xf32> to vector<4x16x32xf32>
    %400 = arith.subf %394, %399 : vector<4x16x32xf32>
    %401 = arith.mulf %400, %400 : vector<4x16x32xf32>
    %cst_170 = arith.constant dense<0.000000e+00> : vector<4x16xf32>
    %402 = vector.multi_reduction <add>, %401, %cst_170 [2] : vector<4x16x32xf32> to vector<4x16xf32>
    %403 = vector.shape_cast %402 : vector<4x16xf32> to vector<4x16x1xf32>
    %cst_171 = arith.constant 3.200000e+01 : f32
    %404 = vector.broadcast %cst_171 : f32 to vector<4x16x1xf32>
    %405 = arith.divf %403, %404 : vector<4x16x1xf32>
    %cst_172 = arith.constant 9.99999974E-6 : f32
    %406 = vector.broadcast %cst_172 : f32 to vector<4x16x1xf32>
    %407 = arith.addf %405, %406 : vector<4x16x1xf32>
    %408 = math.rsqrt %407 : vector<4x16x1xf32>
    %409 = vector.broadcast %408 : vector<4x16x1xf32> to vector<4x16x32xf32>
    %410 = arith.mulf %400, %409 : vector<4x16x32xf32>
    %411 = vector.shape_cast %137 : vector<1x32xf32> to vector<1x1x32xf32>
    %412 = vector.broadcast %411 : vector<1x1x32xf32> to vector<4x16x32xf32>
    %413 = arith.mulf %410, %412 : vector<4x16x32xf32>
    %414 = vector.shape_cast %138 : vector<1x32xf32> to vector<1x1x32xf32>
    %415 = vector.broadcast %414 : vector<1x1x32xf32> to vector<4x16x32xf32>
    %416 = arith.addf %413, %415 : vector<4x16x32xf32>
    %417 = arith.negf %416 : vector<4x16x32xf32>
    %418 = math.exp %417 : vector<4x16x32xf32>
    %cst_173 = arith.constant 1.000000e+00 : f32
    %419 = vector.broadcast %cst_173 : f32 to vector<4x16x32xf32>
    %420 = arith.addf %419, %418 : vector<4x16x32xf32>
    %421 = arith.divf %419, %420 : vector<4x16x32xf32>
    %cst_174 = arith.constant 2.500000e-01 : f32
    %422 = vector.broadcast %cst_174 : f32 to vector<4x16x32xf32>
    %423 = arith.cmpf ogt, %421, %422 : vector<4x16x32xf32>
    %cst_175 = arith.constant 0.000000e+00 : f32
    %424 = vector.broadcast %cst_175 : f32 to vector<4x16x32xf32>
    %425 = arith.select %423, %421, %424 : vector<4x16x32xi1>, vector<4x16x32xf32>
    %c0_176 = arith.constant 0 : index
    %c0_177 = arith.constant 0 : index
    %c0_178 = arith.constant 0 : index
    %426 = vector.load %arg13[%c0_176, %c0_177, %c0_178] : memref<4x16x32xf32, #tpu.memory_space<vmem>>, vector<4x16x32xf32>
    tpu.vector_store %arg13[%c0_176, %c0_177, %c0_178], %425 {strides = array<i32>} : memref<4x16x32xf32, #tpu.memory_space<vmem>>, vector<4x16x32xf32>,
    return
  }
  func.func @transform_0(%arg0: i32) -> (i32, i32, i32, i32) {
    %c0_i32 = arith.constant 0 : i32
    %c0_i32_0 = arith.constant 0 : i32
    %c0_i32_1 = arith.constant 0 : i32
    %c0_i32_2 = arith.constant 0 : i32
    return %arg0, %c0_i32, %c0_i32_0, %c0_i32_1 : i32, i32, i32, i32
  }
  func.func @transform_1(%arg0: i32) -> (i32, i32, i32) {
    %c0_i32 = arith.constant 0 : i32
    %c0_i32_0 = arith.constant 0 : i32
    %c0_i32_1 = arith.constant 0 : i32
    %c0_i32_2 = arith.constant 0 : i32
    return %c0_i32, %c0_i32_0, %c0_i32_1 : i32, i32, i32
  }
  func.func @transform_2(%arg0: i32) -> (i32, i32, i32) {
    %c0_i32 = arith.constant 0 : i32
    %c0_i32_0 = arith.constant 0 : i32
    %c0_i32_1 = arith.constant 0 : i32
    %c0_i32_2 = arith.constant 0 : i32
    return %c0_i32, %c0_i32_0, %c0_i32_1 : i32, i32, i32
  }
  func.func @transform_3(%arg0: i32) -> (i32, i32) {
    %c0_i32 = arith.constant 0 : i32
    %c0_i32_0 = arith.constant 0 : i32
    %c0_i32_1 = arith.constant 0 : i32
    return %c0_i32, %c0_i32_0 : i32, i32
  }
  func.func @transform_4(%arg0: i32) -> (i32, i32, i32) {
    %c0_i32 = arith.constant 0 : i32
    %c0_i32_0 = arith.constant 0 : i32
    %c0_i32_1 = arith.constant 0 : i32
    %c0_i32_2 = arith.constant 0 : i32
    return %c0_i32, %c0_i32_0, %c0_i32_1 : i32, i32, i32
  }
  func.func @transform_5(%arg0: i32) -> (i32, i32, i32) {
    %c0_i32 = arith.constant 0 : i32
    %c0_i32_0 = arith.constant 0 : i32
    %c0_i32_1 = arith.constant 0 : i32
    %c0_i32_2 = arith.constant 0 : i32
    return %c0_i32, %c0_i32_0, %c0_i32_1 : i32, i32, i32
  }
  func.func @transform_6(%arg0: i32) -> (i32, i32) {
    %c0_i32 = arith.constant 0 : i32
    %c0_i32_0 = arith.constant 0 : i32
    %c0_i32_1 = arith.constant 0 : i32
    return %c0_i32, %c0_i32_0 : i32, i32
  }
  func.func @transform_7(%arg0: i32) -> (i32, i32, i32) {
    %c0_i32 = arith.constant 0 : i32
    %c0_i32_0 = arith.constant 0 : i32
    %c0_i32_1 = arith.constant 0 : i32
    %c0_i32_2 = arith.constant 0 : i32
    return %c0_i32, %c0_i32_0, %c0_i32_1 : i32, i32, i32
  }
  func.func @transform_8(%arg0: i32) -> (i32, i32, i32) {
    %c0_i32 = arith.constant 0 : i32
    %c0_i32_0 = arith.constant 0 : i32
    %c0_i32_1 = arith.constant 0 : i32
    %c0_i32_2 = arith.constant 0 : i32
    return %c0_i32, %c0_i32_0, %c0_i32_1 : i32, i32, i32
  }
  func.func @transform_9(%arg0: i32) -> (i32, i32) {
    %c0_i32 = arith.constant 0 : i32
    %c0_i32_0 = arith.constant 0 : i32
    %c0_i32_1 = arith.constant 0 : i32
    return %c0_i32, %c0_i32_0 : i32, i32
  }
  func.func @transform_10(%arg0: i32) -> (i32, i32) {
    %c0_i32 = arith.constant 0 : i32
    %c0_i32_0 = arith.constant 0 : i32
    %c0_i32_1 = arith.constant 0 : i32
    return %c0_i32, %c0_i32_0 : i32, i32
  }
  func.func @transform_11(%arg0: i32) -> (i32, i32) {
    %c0_i32 = arith.constant 0 : i32
    %c0_i32_0 = arith.constant 0 : i32
    %c0_i32_1 = arith.constant 0 : i32
    return %c0_i32, %c0_i32_0 : i32, i32
  }
  func.func @transform_12(%arg0: i32) -> (i32, i32, i32) {
    %c0_i32 = arith.constant 0 : i32
    %c0_i32_0 = arith.constant 0 : i32
    %c0_i32_1 = arith.constant 0 : i32
    return %arg0, %c0_i32, %c0_i32_0 : i32, i32, i32
  }
}

</mosaic_0001>

<bundles_post_ra>
// kernel: vit_object_detection_forward.1
= control target key start
LH: loop header
LB: loop body
LE: loop exit
PB: predicated region body
PF: predicated region fallthrough
CT: control target
= control target key end

     0   :  { %s13824_s0 = inlined_call_operand.hbm [shape: f32[8,3,16,32], index: 0, kind: input, shape index: {}]   ;;  %s13825_s1 = inlined_call_operand.hbm [shape: bf16[2,32,32], index: 1, kind: input, shape index: {}]   ;;  %s13826_s2 = inlined_call_operand.hbm [shape: bf16[3,32,16], index: 2, kind: input, shape index: {}]   ;;  %s13827_s3 = inlined_call_operand.hbm [shape: f32[6,32], index: 3, kind: input, shape index: {}, may-alias: {3,9}]   ;;  %s13828_s4 = inlined_call_operand.hbm [shape: bf16[2,16,16], index: 4, kind: input, shape index: {}]   ;;  %s13829_s5 = inlined_call_operand.hbm [shape: bf16[3,16,32], index: 5, kind: input, shape index: {}]   ;;  %s13830_s6 = inlined_call_operand.hbm [shape: f32[6,16], index: 6, kind: input, shape index: {}]   ;;  %s13831_s7 = inlined_call_operand.hbm [shape: bf16[2,32,32], index: 7, kind: input, shape index: {}]   ;;  %s13832_s8 = inlined_call_operand.hbm [shape: bf16[3,32,64], index: 8, kind: input, shape index: {}]   ;;  %s13833_s9 = inlined_call_operand.hbm [shape: f32[6,32], index: 9, kind: input, shape index: {}, may-alias: {3,9}]   ;;  %s13834_s10 = inlined_call_operand.vmem [shape: f32[6,32], index: 10, kind: input, shape index: {}]   ;;  %s13835_s11 = inlined_call_operand.hbm [shape: f32[4,1], index: 11, kind: input, shape index: {}]   ;;  %s13836_s12 = inlined_call_operand.hbm [shape: f32[8,16,32], index: 12, kind: output, shape index: {}]  }
   0x1   :  { %13851 = sst [smem:[#allocation37_spill]] %s13825_s1 }
   0x2   :  { %13852 = sst [smem:[#allocation38_spill]] %s13826_s2 }
   0x3   :  { %13853 = sst [smem:[#allocation39_spill]] %s13827_s3 }
   0x4   :  { %13854 = sst [smem:[#allocation40_spill]] %s13828_s4 }
   0x5   :  { %13855 = sst [smem:[#allocation41_spill]] %s13829_s5 }
   0x6   :  { %13856 = sst [smem:[#allocation42_spill]] %s13830_s6 }
   0x7   :  { %13857 = sst [smem:[#allocation43_spill]] %s13831_s7 }
   0x8   :  { %13858 = sst [smem:[#allocation44_spill]] %s13832_s8 }
   0x9   :  { %17 = vsyncpa [#allocation3], 0 }
   0xa   :  { %19 = vsyncpa [#allocation3 + $0x1], 0 }
   0xb   :  { %20 = vsyncpa [#allocation6], 0 }
   0xc   :  { %21 = vsyncpa [#allocation9], 0 }
   0xd   :  { %22 = vsyncpa [#allocation12], 0 }
   0xe   :  { %23 = vsyncpa [#allocation15], 0 }
   0xf   :  { %24 = vsyncpa [#allocation18], 0 }
  0x10   :  { %25 = vsyncpa [#allocation4], 0 }
  0x11   :  { %27 = vsyncpa [#allocation4 + $0x1], 0  ;;  %s9784_s21 = smov 0   ;;  %s9786_s22 = smov 0  }
  0x12   :  { %s9788_s23 = smov 0   ;;  %s9790_s24 = smov 0  }
  0x13 LB: > { %s13859_s1 = sld [smem:[#allocation37_spill]]  ;;  %s9808_s28 = sadd.s32 4294967295, %s9698_s24   ;;  %s9698_s24 = sphi %s9790_s24, %s13927_s24   ;;  %s9694_s23 = sphi %s9788_s23, %s13926_s23   ;;  %s9690_s22 = sphi %s9786_s22, %s13925_s22   ;;  %s9686_s21 = sphi %s9784_s21, %s13924_s21  }
  0x14   : > { %p8213_p0 = scmp.ge.s32.totalorder %s9698_s24, 1  ;;  %p54_p1 = scmp.eq.s32.totalorder %s9808_s28, 0 }
  0x15   : > { %p321_p2 = scmp.lt.s32.totalorder %s9698_s24, 3  ;;  %s9700_s30 = smov [#allocation5]  }
  0x16   : > { %s334_s13 = sshll.u32 %s9700_s30, 4  ;;  %s13861_s3 = sld [smem:[#allocation39_spill]]  ;;  %s335_s13 = int_to_ptr.vmem [resolvable:$true] %s334_s13 }
  0x17   : > { %p9813_p3 = pnand %p8213_p0, %p321_p2  ;;  %s13863_s5 = sld [smem:[#allocation41_spill]] }
  0x18   : > { %s9701_s25 = smov [#allocation8]   ;;  %s9702_s30 = smov 64  }
  0x19   : > { %s332_s27 = sshll.u32 %s13859_s1, 4  ;;  %p8609_p4 = pneg %p9813_p3  ;;  %s333_s27 = int_to_ptr.hbm [resolvable:$true] %s332_s27 }
  0x1a   : > { %s363_s26 = sshll.u32 %s9701_s25, 4  ;;  %s9703_s1 = smov 4   ;;  %s364_s26 = int_to_ptr.vmem [resolvable:$true] %s363_s26 }
  0x1b   : > { %p9825_p6 = pnand %p8609_p4, %p54_p1  ;;  %s13864_s7 = sld [smem:[#allocation43_spill]] }
  0x1c   : > { %s361_s16 = sshll.u32 %s13861_s3, 4  ;;  %s9704_s18 = smov [#allocation11]   ;;  %s362_s16 = int_to_ptr.hbm [resolvable:$true] %s361_s16 }
  0x1d   : > { %s386_s20 = sshll.u32 %s13863_s5, 4  ;;  %s388_s19 = sshll.u32 %s9704_s18, 4  ;;  %s387_s20 = int_to_ptr.hbm [resolvable:$true] %s386_s20  ;;  %s389_s19 = int_to_ptr.vmem [resolvable:$true] %s388_s19 }
  0x1e   : > { %8612 = dma.hbm_to_vmem [thread:$0]  (!%p9825_p6), %s333_s27, 512, %s335_s13, [#allocation6], %s9702_s30, %s9702_s30, %s9703_s1  }
  0x1f   : > { %8618 = dma.hbm_to_vmem [thread:$0]  (!%p9825_p6), %s362_s16, 128, %s364_s26, [#allocation9]  }
  0x20   : > { %8624 = dma.hbm_to_vmem [thread:$0]  (!%p9825_p6), %s387_s20, 384, %s389_s19, [#allocation12], %s9702_s30, %s9702_s30, %s9703_s1  }
  0x21   : > { %s412_s3 = sshll.u32 %s13864_s7, 4  ;;  %s9705_s25 = smov [#allocation14]   ;;  %s413_s3 = int_to_ptr.hbm [resolvable:$true] %s412_s3 }
  0x22   : > { %s414_s27 = sshll.u32 %s9705_s25, 4  ;;  %s441_s16 = sshll.u32 %s13833_s9, 4  ;;  %s415_s27 = int_to_ptr.vmem [resolvable:$true] %s414_s27  ;;  %s442_s16 = int_to_ptr.hbm [resolvable:$true] %s441_s16 }
  0x23   : > { %8630 = dma.hbm_to_vmem [thread:$0]  (!%p9825_p6), %s413_s3, 512, %s415_s27, [#allocation15], %s9702_s30, %s9702_s30, %s9703_s1  }
  0x24   : > { %s13865_s2 = sld [smem:[#allocation38_spill]]  ;;  %s9706_s18 = smov [#allocation17]  }
  0x25   : > { %s443_s20 = sshll.u32 %s9706_s18, 4  ;;  %s9707_s5 = smov [#allocation7]   ;;  %s444_s20 = int_to_ptr.vmem [resolvable:$true] %s443_s20 }
  0x26   : > { %8636 = dma.hbm_to_vmem [thread:$0]  (!%p9825_p6), %s442_s16, 128, %s444_s20, [#allocation18]  }
  0x27   : > { %s348_s19 = sshll.u32 %s9707_s5, 4  ;;  %s13866_s4 = sld [smem:[#allocation40_spill]]  ;;  %s349_s19 = int_to_ptr.vmem [resolvable:$true] %s348_s19 }
  0x28   : > { %s13867_s6 = sld [smem:[#allocation42_spill]]  ;;  %s9708_s14 = smov [#allocation10]  }
  0x29   : > { %s374_s16 = sshll.u32 %s9708_s14, 4  ;;  %s9709_s18 = smov [#allocation13]   ;;  %s375_s16 = int_to_ptr.vmem [resolvable:$true] %s374_s16 }
  0x2a   : > { %s346_s15 = sshll.u32 %s13865_s2, 4  ;;  %s403_s20 = sshll.u32 %s9709_s18, 4  ;;  %s347_s15 = int_to_ptr.hbm [resolvable:$true] %s346_s15  ;;  %s404_s20 = int_to_ptr.vmem [resolvable:$true] %s403_s20 }
  0x2b   : > { %8615 = dma.hbm_to_vmem [thread:$0]  (!%p9825_p6), %s347_s15, 768, %s349_s19, [#allocation6], %s9702_s30, %s9702_s30, %s9703_s1  }
  0x2c   : > { %s13868_s8 = sld [smem:[#allocation44_spill]]  ;;  %s9710_s3 = smov [#allocation16]  }
  0x2d   : > { %s372_s7 = sshll.u32 %s13866_s4, 4  ;;  %s428_s27 = sshll.u32 %s9710_s3, 4  ;;  %s373_s7 = int_to_ptr.hbm [resolvable:$true] %s372_s7  ;;  %s429_s27 = int_to_ptr.vmem [resolvable:$true] %s428_s27 }
  0x2e   : > { %s401_s26 = sshll.u32 %s13867_s6, 4  ;;  %s9893_s18 = sadd.s32 1, %s9698_s24   ;;  %s402_s26 = int_to_ptr.hbm [resolvable:$true] %s401_s26 }
  0x2f   : > { %8621 = dma.hbm_to_vmem [thread:$0]  (!%p9825_p6), %s373_s7, 256, %s375_s16, [#allocation9], %s9702_s30, %s9702_s30, %s9703_s1  }
  0x30   : > { %8627 = dma.hbm_to_vmem [thread:$0]  (!%p9825_p6), %s402_s26, 128, %s404_s20, [#allocation12]  }
  0x31   : > { %s456_s7 = sshll.u32 %s13835_s11, 4  ;;  %s9711_s26 = smov [#allocation19]   ;;  %s457_s7 = int_to_ptr.hbm [resolvable:$true] %s456_s7 }
  0x32   : > { %s426_s19 = sshll.u32 %s13868_s8, 4  ;;  %s458_s14 = sshll.u32 %s9711_s26, 4  ;;  %s427_s19 = int_to_ptr.hbm [resolvable:$true] %s426_s19  ;;  %s459_s14 = int_to_ptr.vmem [resolvable:$true] %s458_s14 }
  0x33   : > { %8633 = dma.hbm_to_vmem [thread:$0]  (!%p9825_p6), %s427_s19, 768, %s429_s27, [#allocation15], %s9702_s30, %s9702_s30, %s9703_s1  }
  0x34   : > { %8639 = dma.hbm_to_vmem [thread:$0]  (!%p9825_p6), %s457_s7, 64, %s459_s14, [#allocation18]  }
  0x35   : > { %s8212_s16 = sadd.s32 4294967294, %s9698_s24   ;;  %s37_s20 = ssub.s32 %s9698_s24, %s9893_s18 }
  0x36   : > { %s40_s5 = sadd.s32 1, %s9694_s23  ;;  %p38_p7 = scmp.eq.s32.totalorder %s37_s20, 0 }
  0x37   : > { %p47_p8 = scmp.ne.s32.totalorder %s9694_s23, %s9690_s22  ;;  %p48_p9 = scmp.eq.s32.totalorder %s9698_s24, 0 }
  0x38   : > { %p53_p10 = scmp.ne.s32.totalorder %s9690_s22, %s9686_s21  ;;  %p308_p13 = scmp.eq.s32.totalorder %s9808_s28, 1 }
  0x39   : > { %s9904_s1 = scalar_select %p38_p7, %s9694_s23, %s40_s5  }
  0x3a   : > { %p49_p11 = por %p48_p9, %p47_p8  ;;  %p9908_p12 = por %p54_p1, %p53_p10 }
  0x3b   : > { %p314_p0 = scmp.eq.s32.totalorder %s8212_s16, 1  ;;  %p8658_p2 = scmp.lt.s32.totalorder %s9698_s24, 2 }
  0x3c   : > { %s469_s17 = sand.u32 1, %s9694_s23   ;;  %p9915_p4 = por %p308_p13, %p47_p8 }
  0x3d   : > { %p9919_p6 = por %p314_p0, %p53_p10  ;;  %s8554_s25 = smul.u32 192, %s469_s17 }
  0x3e   : > { %s8555_s13 = smul.u32 192, %s9698_s24  ;;  %p9924_p7 = pnand %p8658_p2, %p49_p11 }
  0x3f   : > { %s473_s14 = scalar_lea.vmem [#allocation2], %s8554_s25  ;;  %s470_s5 = scalar_lea.sflag [#allocation3], %s469_s17 }
  0x40   : > { %s479_s26 = scalar_lea.hbm %s13824_s0, %s8555_s13  ;;  %s482_s16 = sshll.u32 %s473_s14, 4  ;;  %s483_s16 = int_to_ptr.vmem [resolvable:$true] %s482_s16 }
  0x41   : > { %s480_s20 = sshll.u32 %s479_s26, 4  ;;  %p9586_p9 = pneg %p9924_p7  ;;  %s481_s20 = int_to_ptr.hbm [resolvable:$true] %s480_s20 }
  0x42   : > { %s9582_s2 = sshra.s32 %s481_s20, 4  ;;  %s9589_s3 = scalar_lea.hbm %s13824_s0, 384  ;;  %s9583_s2 = int_to_ptr.hbm [resolvable:$true] %s9582_s2 }
  0x43   : > { %s9584_s4 = scalar_lea.hbm %s9583_s2, 192  ;;  %p9590_p13 = scmp.lt.s32.totalorder %s9583_s2, %s13824_s0 }
  0x44   : > { %p9585_p8 = scmp.ne.s32.totalorder %s9583_s2, %s9584_s4  ;;  %p9591_p0 = scmp.lt.s32.totalorder %s9589_s3, %s9584_s4 }
  0x46   : > { %p9587_p10 = pnand %p9586_p9, %p9585_p8  ;;  %p9592_p2 = por %p9591_p0, %p9590_p13 }
  0x48   : > { %p9588_p11 = pneg %p9587_p10 }
  0x4a   : > { %p9593_p5 = pnand %p9592_p2, %p9588_p11 }
  0x4c   : > { %9596 = shalt.err (!%p9593_p5)
}
  0x4d   : > { %s9712_s17 = smov 128   ;;  %s9713_s25 = smov 8  }
  0x4e   : > { %8643 = dma.hbm_to_vmem [thread:$0]  (!%p9924_p7), %s481_s20, 3072, %s483_s16, %s470_s5, %s9712_s17, %s9712_s17, %s9713_s25  }
  0x4f   : > { %494 = sbr.rel (%p9813_p3) target bundleno = 6283 (0x188b), region = 68 }
  0x54   : > { %s9944_s6 = sand.u32 1, %s9690_s22  }
  0x55   : > { %s8556_s8 = smul.u32 192, %s9944_s6  ;;  %s497_s2 = scalar_lea.sflag [#allocation3], %s9944_s6 }
  0x57   : > { %s9948_s4 = scalar_lea.vmem [#allocation2], %s8556_s8 }
  0x58   : > { %9657 = dma.done.wait (%p9908_p12), %s497_s2, 3072  }
  0x59   : > { %9659 = vsyncadd (%p9908_p12), %s497_s2, 4294964224 }
  0x5a   : > { %9661 = dma.done.wait (%p54_p1), [#allocation6], 1280  }
  0x5b   : > { %9663 = vsyncadd (%p54_p1), [#allocation6], 4294966016 }
  0x5c   : > { %9665 = dma.done.wait (%p54_p1), [#allocation9], 384  }
  0x5d   : > { %9667 = vsyncadd (%p54_p1), [#allocation9], 4294966912 }
  0x5e   : > { %9669 = dma.done.wait (%p54_p1), [#allocation12], 512  }
  0x5f   : > { %9671 = vsyncadd (%p54_p1), [#allocation12], 4294966784 }
  0x60   : > { %9673 = dma.done.wait (%p54_p1), [#allocation15], 1280  }
  0x61   : > { %9675 = vsyncadd (%p54_p1), [#allocation15], 4294966016 }
  0x62   : > { %9677 = dma.done.wait (%p54_p1), [#allocation18], 192  }
  0x63   : > { %9679 = vsyncadd (%p54_p1), [#allocation18], 4294967104  ;;  %v8531_v0 = vld [vmem:[#allocation5 + $0x8] sm:$0xff]  ;;  %v595_v1 = vld [vmem:[%s9948_s4] sm:$0xff]  ;;  %vm728_vm0 = vcmask 261120   ;;  %vm1122_vm1 = vcmask 130048  }
  0x64   : > { %v596_v2 = vld [vmem:[%s9948_s4 + $0x8] sm:$0xff]  ;;  %v619_v3 = vpack.c.bf16 %v595_v1, %v595_v1  ;;  %771 = vmatpush.bf16.msra.mxu0 %v8531_v0  ;;  %v8530_v4 = vld [vmem:[#allocation5] sm:$0xff]  ;;  %8552 = vmatpush.bf16.msra.mxu1 %v8531_v0  ;;  %v597_v9 = vld [vmem:[%s9948_s4 + $0x10] sm:$0xff]  ;;  %s8028_s5 = scalar_lea.sflag [#allocation4], %s9944_s6  ;;  %s9632_s25 = scalar_lea.hbm %s13836_s12, 128 }
  0x65   : > { %v620_v5 = vpack.c.bf16 %v596_v2, %v596_v2  ;;  %v598_v10 = vld [vmem:[%s9948_s4 + $0x18] sm:$0xff]  ;;  %v621_v11 = vpack.c.bf16 %v597_v9, %v597_v9  ;;  %v599_v16 = vld [vmem:[%s9948_s4 + $0x20] sm:$0xff]  ;;  %v600_v17 = vld [vmem:[%s9948_s4 + $0x28] sm:$0xff] }
  0x66   : > { %v680_v6 = vunpack.c.l.b16 %v619_v3  ;;  %v622_v12 = vpack.c.bf16 %v598_v10, %v598_v10  ;;  %v623_v18 = vpack.c.bf16 %v599_v16, %v599_v16  ;;  %v624_v19 = vpack.c.bf16 %v600_v17, %v600_v17  ;;  %v601_v23 = vld [vmem:[%s9948_s4 + $0x30] sm:$0xff]  ;;  %v602_v24 = vld [vmem:[%s9948_s4 + $0x38] sm:$0xff]  ;;  %v603_v30 = vld [vmem:[%s9948_s4 + $0x40] sm:$0xff] }
  0x67   : > { %v681_v7 = vunpack.c.l.b16 %v620_v5  ;;  %v682_v13 = vunpack.c.l.b16 %v621_v11  ;;  %v625_v25 = vpack.c.bf16 %v601_v23, %v601_v23  ;;  %v626_v26 = vpack.c.bf16 %v602_v24, %v602_v24  ;;  %v604_v31 = vld [vmem:[%s9948_s4 + $0x48] sm:$0xff]  ;;  %v615_v37 = vld [vmem:[%s9948_s4 + $0xa0] sm:$0xff]  ;;  %v605_v39 = vld [vmem:[%s9948_s4 + $0x50] sm:$0xff] }
  0x68   : > { %772 = vmatpush.bf16.msra.mxu0 %v8530_v4  ;;  %8553 = vmatpush.bf16.msra.mxu1 %v8530_v4  ;;  %v683_v14 = vunpack.c.l.b16 %v622_v12  ;;  %v684_v20 = vunpack.c.l.b16 %v623_v18  ;;  %v685_v21 = vunpack.c.l.b16 %v624_v19  ;;  %v627_v32 = vpack.c.bf16 %v603_v30, %v603_v30  ;;  %v616_v38 = vld [vmem:[%s9948_s4 + $0xa8] sm:$0xff]  ;;  %v606_v40 = vld [vmem:[%s9948_s4 + $0x58] sm:$0xff]  ;;  %v617_v51 = vld [vmem:[%s9948_s4 + $0xb0] sm:$0xff] }
  0x69   : > { %v9976_v8 = vpack.c.b16 %v681_v7, %v680_v6  ;;  %v686_v27 = vunpack.c.l.b16 %v625_v25  ;;  %v687_v28 = vunpack.c.l.b16 %v626_v26  ;;  %v628_v33 = vpack.c.bf16 %v604_v31, %v604_v31  ;;  %v618_v52 = vld [vmem:[%s9948_s4 + $0xb8] sm:$0xff]  ;;  %v607_v53 = vld [vmem:[%s9948_s4 + $0x60] sm:$0xff]  ;;  %v608_v54 = vld [vmem:[%s9948_s4 + $0x68] sm:$0xff] }
  0x6a   : > { %v9982_v15 = vpack.c.b16 %v683_v14, %v682_v13  ;;  %v9988_v22 = vpack.c.b16 %v685_v21, %v684_v20  ;;  %v688_v34 = vunpack.c.l.b16 %v627_v32  ;;  %v639_v41 = vpack.c.bf16 %v615_v37, %v615_v37  ;;  %v609_v1 = vld [vmem:[%s9948_s4 + $0x70] sm:$0xff]  ;;  %v610_v2 = vld [vmem:[%s9948_s4 + $0x78] sm:$0xff]  ;;  %v611_v10 = vld [vmem:[%s9948_s4 + $0x80] sm:$0xff] }
  0x6b   : > { %8248 = vmatmul.msk.bf16.vlgmr.msra.gmra.mxu0 %vm728_vm0, %v9976_v8  ;;  %v9994_v29 = vpack.c.b16 %v687_v28, %v686_v27  ;;  %v689_v35 = vunpack.c.l.b16 %v628_v33  ;;  %v640_v42 = vpack.c.bf16 %v616_v38, %v616_v38  ;;  %v629_v45 = vpack.c.bf16 %v605_v39, %v605_v39  ;;  %v612_v11 = vld [vmem:[%s9948_s4 + $0x88] sm:$0xff] }
  0x6c   : > { %v700_v43 = vunpack.c.l.b16 %v639_v41  ;;  %v630_v46 = vpack.c.bf16 %v606_v40, %v606_v40  ;;  %v641_v55 = vpack.c.bf16 %v617_v51, %v617_v51  ;;  %v642_v56 = vpack.c.bf16 %v618_v52, %v618_v52 }
  0x6d   : > { %v10000_v36 = vpack.c.b16 %v689_v35, %v688_v34  ;;  %v701_v44 = vunpack.c.l.b16 %v640_v42  ;;  %v690_v48 = vunpack.c.l.b16 %v629_v45  ;;  %v631_v59 = vpack.c.bf16 %v607_v53, %v607_v53 }
  0x6e   : > { %v691_v49 = vunpack.c.l.b16 %v630_v46  ;;  %v702_v57 = vunpack.c.l.b16 %v641_v55  ;;  %v703_v58 = vunpack.c.l.b16 %v642_v56  ;;  %v632_v60 = vpack.c.bf16 %v608_v54, %v608_v54 }
  0x6f   : > { %v10008_v47 = vpack.c.b16 %v701_v44, %v700_v43  ;;  %v692_v62 = vunpack.c.l.b16 %v631_v59  ;;  %v633_v3 = vpack.c.bf16 %v609_v1, %v609_v1  ;;  %v634_v4 = vpack.c.bf16 %v610_v2, %v610_v2 }
  0x70   : > { %v10012_v50 = vpack.c.b16 %v691_v49, %v690_v48  ;;  %v10020_v61 = vpack.c.b16 %v703_v58, %v702_v57  ;;  %v693_v63 = vunpack.c.l.b16 %v632_v60  ;;  %v730_v5 = vsel %vm728_vm0, %v9976_v8, 0  ;;  %v613_v48 = vld [vmem:[%s9948_s4 + $0x90] sm:$0xff]  ;;  %v614_v49 = vld [vmem:[%s9948_s4 + $0x98] sm:$0xff] }
  0x71   : > { %8258 = vmatmul.msk.bf16.vlgmr.msra.gmra.mxu1 %vm728_vm0, %v10008_v47  ;;  %v694_v6 = vunpack.c.l.b16 %v633_v3  ;;  %v695_v7 = vunpack.c.l.b16 %v634_v4  ;;  %v635_v12 = vpack.c.bf16 %v611_v10, %v611_v10  ;;  %v636_v13 = vpack.c.bf16 %v612_v11, %v612_v11 }
  0x72   : > { %v10024_v0 = vpack.c.b16 %v693_v63, %v692_v62  ;;  %873 = vmatpush.bf16.xpose.msrb.mxu1 %v730_v5  ;;  %v733_v14 = vsel %vm728_vm0, %v9982_v15, 0  ;;  %v736_v21 = vsel %vm728_vm0, %v9988_v22, 0  ;;  %v739_v31 = vsel %vm728_vm0, %v9994_v29, 0 }
  0x73   : > { %v10032_v9 = vpack.c.b16 %v695_v7, %v694_v6  ;;  %895 = vmatpush.bf16.xpose.msra.mxu3 %v733_v14  ;;  %v696_v16 = vunpack.c.l.b16 %v635_v12  ;;  %v697_v17 = vunpack.c.l.b16 %v636_v13  ;;  %v742_v40 = vsel %vm728_vm0, %v10000_v36, 0 }
  0x74   : > { %961 = vmatpush.bf16.xpose.msra.mxu2 %v742_v40  ;;  %v637_v51 = vpack.c.bf16 %v613_v48, %v613_v48  ;;  %v638_v52 = vpack.c.bf16 %v614_v49, %v614_v49  ;;  %v745_v11 = vsel %vm728_vm0, %v10012_v50, 0 }
  0x75   : > { %v10040_v18 = vpack.c.b16 %v697_v17, %v696_v16  ;;  %v751_v12 = vsel %vm728_vm0, %v10032_v9, 0 }
  0x76   : > { %v698_v54 = vunpack.c.l.b16 %v637_v51  ;;  %v699_v55 = vunpack.c.l.b16 %v638_v52 }
  0x78   : > { %v10055_v56 = vpack.c.b16 %v699_v55, %v698_v54 }
  0x7a   : > { %939 = vmatpush.bf16.xpose.msra.mxu1 %v739_v31 }
  0x7b   : > { %8249 = vmatmul.msk.bf16.gmra.mxu0 %vm728_vm0, %v9982_v15  ;;  %917 = vmatpush.bf16.xpose.msrb.mxu3 %v736_v21 }
  0x7c   : > { %1027 = vmatpush.bf16.xpose.msrb.mxu2 %v751_v12 }
  0x81   : > { %8259 = vmatmul.msk.bf16.gmra.mxu1 %vm728_vm0, %v10020_v61 }
  0x8b   : > { %8250 = vmatmul.msk.bf16.gmra.mxu0 %vm728_vm0, %v9988_v22 }
  0x9b   : > { %8251 = vmatmul.msk.bf16.gmra.mxu0 %vm728_vm0, %v9994_v29 }
  0xab   : > { %8252 = vmatmul.msk.bf16.gmra.mxu0 %vm728_vm0, %v10000_v36 }
  0xbb   : > { %8253 = vmatmul.msk.bf16.gmra.mxu0 %vm728_vm0, %v10012_v50 }
  0xcb   : > { %8254 = vmatmul.msk.bf16.gmra.mxu0 %vm728_vm0, %v10024_v0 }
  0xdb   : > { %8255 = vmatmul.msk.bf16.gmra.mxu0 %vm728_vm0, %v10032_v9 }
  0xe8   : > { %v774_v19 = vpop.f32.mrf.mxu0 }
  0xe9   : > { %v834_v20 = vpack.c.bf16 %v774_v19, %v774_v19 }
  0xeb   : > { %8256 = vmatmul.msk.bf16.gmra.mxu0 %vm728_vm0, %v10040_v18  ;;  %v860_v25 = vunpack.c.l.b16 %v834_v20 }
  0xee   : > { %v824_v21 = vpop.f32.mrf.mxu1 }
  0xf0   : > { %v776_v23 = vpop.f32.mrf.mxu0 }
  0xf1   : > { %v835_v24 = vpack.c.bf16 %v776_v23, %v776_v23  ;;  %v754_v23 = vsel %vm728_vm0, %v10040_v18, 0 }
  0xf3   : > { %v861_v26 = vunpack.c.l.b16 %v835_v24  ;;  %v760_v24 = vsel %vm728_vm0, %v10008_v47, 0 }
  0xf5   : > { %v862_v27 = vpack.c.b16 %v861_v26, %v860_v25 }
  0xf7   : > { %8260 = vmatmul.msk.bf16.vlgmr.msrb.gmra.mxu1 %vm728_vm0, %v862_v27  ;;  %v826_v27 = vpop.f32.mrf.mxu1 }
  0xf8   : > { %v779_v28 = vpop.f32.mrf.mxu0  ;;  %v855_v48 = vpack.c.bf16 %v826_v27, %v826_v27 }
  0xf9   : > { %v836_v30 = vpack.c.bf16 %v779_v28, %v779_v28 }
  0xfb   : > { %v882_v34 = vunpack.c.l.b16 %v836_v30  ;;  %8257 = vmatmul.msk.bf16.gmra.mxu0 %vm728_vm0, %v10055_v56 }
 0x100   : > { %v781_v32 = vpop.f32.mrf.mxu0 }
 0x101   : > { %v837_v33 = vpack.c.bf16 %v781_v32, %v781_v32 }
 0x103   : > { %v883_v35 = vunpack.c.l.b16 %v837_v33 }
 0x105   : > { %v884_v37 = vpack.c.b16 %v883_v35, %v882_v34  ;;  %v763_v34 = vsel %vm728_vm0, %v10020_v61, 0  ;;  %v748_v35 = vsel %vm728_vm0, %v10024_v0, 0 }
 0x106   : > { %1005 = vmatpush.bf16.xpose.msrb.mxu1 %v748_v35  ;;  %v8533_v35 = vld [vmem:[#allocation5 + $0x18] sm:$0xff] }
 0x107   : > { %8261 = vmatmul.msk.bf16.vlgmr.msra.gmra.mxu3 %vm728_vm0, %v884_v37 }
 0x108   : > { %v784_v38 = vpop.f32.mrf.mxu0  ;;  %983 = vmatpush.bf16.xpose.msra.mxu3 %v745_v11 }
 0x109   : > { %v838_v39 = vpack.c.bf16 %v784_v38, %v784_v38 }
 0x10b   : > { %v904_v42 = vunpack.c.l.b16 %v838_v39 }
 0x110   : > { %v786_v41 = vpop.f32.mrf.mxu0 }
 0x111   : > { %v839_v43 = vpack.c.bf16 %v786_v41, %v786_v41  ;;  %v829_v41 = vpop.f32.mrf.mxu1 }
 0x113   : > { %v905_v44 = vunpack.c.l.b16 %v839_v43 }
 0x115   : > { %v906_v45 = vpack.c.b16 %v905_v44, %v904_v42 }
 0x117   : > { %8262 = vmatmul.msk.bf16.vlgmr.msrb.gmra.mxu3 %vm728_vm0, %v906_v45 }
 0x118   : > { %v789_v46 = vpop.f32.mrf.mxu0  ;;  %1049 = vmatpush.bf16.xpose.msrb.mxu3 %v754_v23 }
 0x119   : > { %v840_v53 = vpack.c.bf16 %v789_v46, %v789_v46  ;;  %v831_v45 = vpop.f32.mrf.mxu1  ;;  %v854_v46 = vpack.c.bf16 %v824_v21, %v824_v21 }
 0x11b   : > { %v926_v58 = vunpack.c.l.b16 %v840_v53  ;;  %v1080_v52 = vunpack.c.l.b16 %v854_v46  ;;  %v1081_v53 = vunpack.c.l.b16 %v855_v48 }
 0x120   : > { %v791_v57 = vpop.f32.mrf.mxu0 }
 0x121   : > { %v841_v59 = vpack.c.bf16 %v791_v57, %v791_v57 }
 0x123   : > { %v927_v60 = vunpack.c.l.b16 %v841_v59  ;;  %v1082_v59 = vpack.c.b16 %v1081_v53, %v1080_v52 }
 0x125   : > { %v928_v62 = vpack.c.b16 %v927_v60, %v926_v58 }
 0x127   : > { %8263 = vmatmul.msk.bf16.vlgmr.msra.gmra.mxu1 %vm728_vm0, %v928_v62 }
 0x128   : > { %v794_v63 = vpop.f32.mrf.mxu0 }
 0x129   : > { %v842_v1 = vpack.c.bf16 %v794_v63, %v794_v63 }
 0x12b   : > { %v948_v3 = vunpack.c.l.b16 %v842_v1  ;;  %v856_v1 = vpack.c.bf16 %v829_v41, %v829_v41 }
 0x130   : > { %v796_v2 = vpop.f32.mrf.mxu0 }
 0x131   : > { %v843_v4 = vpack.c.bf16 %v796_v2, %v796_v2  ;;  %v857_v2 = vpack.c.bf16 %v831_v45, %v831_v45 }
 0x133   : > { %v949_v5 = vunpack.c.l.b16 %v843_v4  ;;  %v1102_v4 = vunpack.c.l.b16 %v856_v1 }
 0x135   : > { %v950_v6 = vpack.c.b16 %v949_v5, %v948_v3  ;;  %v1103_v5 = vunpack.c.l.b16 %v857_v2 }
 0x137   : > { %8264 = vmatmul.msk.bf16.vlgmr.msra.gmra.mxu2 %vm728_vm0, %v950_v6  ;;  %v1104_v6 = vpack.c.b16 %v1103_v5, %v1102_v4 }
 0x138   : > { %v799_v7 = vpop.f32.mrf.mxu0  ;;  %1093 = vmatpush.bf16.xpose.msra.mxu2 %v760_v24 }
 0x139   : > { %v844_v10 = vpack.c.bf16 %v799_v7, %v799_v7 }
 0x13b   : > { %v970_v14 = vunpack.c.l.b16 %v844_v10 }
 0x140   : > { %v801_v13 = vpop.f32.mrf.mxu0 }
 0x141   : > { %v845_v16 = vpack.c.bf16 %v801_v13, %v801_v13 }
 0x143   : > { %v971_v17 = vunpack.c.l.b16 %v845_v16  ;;  %v757_v16 = vsel %vm728_vm0, %v10055_v56, 0 }
 0x144   : > { %1071 = vmatpush.bf16.xpose.msra.mxu1 %v757_v16 }
 0x145   : > { %v972_v19 = vpack.c.b16 %v971_v17, %v970_v14 }
 0x147   : > { %8265 = vmatmul.msk.bf16.vlgmr.msra.gmra.mxu3 %vm728_vm0, %v972_v19 }
 0x148   : > { %v804_v20 = vpop.f32.mrf.mxu0  ;;  %1115 = vmatpush.bf16.xpose.msra.mxu3 %v763_v34 }
 0x149   : > { %v846_v28 = vpack.c.bf16 %v804_v20, %v804_v20 }
 0x14b   : > { %v992_v32 = vunpack.c.l.b16 %v846_v28 }
 0x150   : > { %v806_v25 = vpop.f32.mrf.mxu0 }
 0x151   : > { %v847_v30 = vpack.c.bf16 %v806_v25, %v806_v25 }
 0x153   : > { %v993_v33 = vunpack.c.l.b16 %v847_v30 }
 0x155   : > { %v994_v40 = vpack.c.b16 %v993_v33, %v992_v32 }
 0x157   : > { %8266 = vmatmul.msk.bf16.vlgmr.msrb.gmra.mxu1 %vm728_vm0, %v994_v40 }
 0x158   : > { %v809_v26 = vpop.f32.mrf.mxu0  ;;  %1722 = vmatpush.bf16.msrb.mxu1 %v8533_v35 }
 0x159   : > { %v848_v31 = vpack.c.bf16 %v809_v26, %v809_v26 }
 0x15b   : > { %v1014_v38 = vunpack.c.l.b16 %v848_v31 }
 0x160   : > { %v811_v37 = vpop.f32.mrf.mxu0 }
 0x161   : > { %v849_v39 = vpack.c.bf16 %v811_v37, %v811_v37  ;;  %v8532_v37 = vld [vmem:[#allocation5 + $0x10] sm:$0xff] }
 0x162   : > { %1723 = vmatpush.bf16.msrb.mxu1 %v8532_v37 }
 0x163   : > { %v1015_v42 = vunpack.c.l.b16 %v849_v39 }
 0x165   : > { %v1016_v43 = vpack.c.b16 %v1015_v42, %v1014_v38 }
 0x167   : > { %8267 = vmatmul.msk.bf16.vlgmr.msrb.gmra.mxu2 %vm728_vm0, %v1016_v43 }
 0x168   : > { %v814_v44 = vpop.f32.mrf.mxu0 }
 0x169   : > { %v850_v49 = vpack.c.bf16 %v814_v44, %v814_v44 }
 0x16b   : > { %v1036_v54 = vunpack.c.l.b16 %v850_v49 }
 0x170   : > { %v816_v51 = vpop.f32.mrf.mxu0 }
 0x171   : > { %v851_v55 = vpack.c.bf16 %v816_v51, %v816_v51 }
 0x173   : > { %v1037_v57 = vunpack.c.l.b16 %v851_v55 }
 0x174   : > { %v875_v58 = vpop.f32.mrf.mxu1 }
 0x175   : > { %v1038_v60 = vpack.c.b16 %v1037_v57, %v1036_v54  ;;  %v1123_v62 = vsel %vm1122_vm1, %v875_v58, -inf }
 0x176   : > { %1124 = vmax.xlane.f32.xlu0 %v1123_v62 }
 0x177   : > { %8268 = vmatmul.msk.bf16.vlgmr.msrb.gmra.mxu3 %vm728_vm0, %v1038_v60  ;;  %8270 = vmatmul.msk.bf16.vlgmr.msra.gmra.mxu2 %vm728_vm0, %v1082_v59 }
 0x178   : > { %v819_v17 = vpop.f32.mrf.mxu0 }
 0x179   : > { %v852_v21 = vpack.c.bf16 %v819_v17, %v819_v17 }
 0x17b   : > { %v1058_v26 = vunpack.c.l.b16 %v852_v21 }
 0x17c   : > { %v877_v63 = vpop.f32.mrf.mxu1 }
 0x17d   : > { %v1126_v3 = vsel %vm1122_vm1, %v877_v63, -inf }
 0x17e   : > { %1127 = vmax.xlane.f32.xlu0 %v1126_v3 }
 0x180   : > { %v821_v25 = vpop.f32.mrf.mxu0 }
 0x181   : > { %v853_v27 = vpack.c.bf16 %v821_v25, %v821_v25 }
 0x183   : > { %v1059_v28 = vunpack.c.l.b16 %v853_v27 }
 0x185   : > { %v1060_v30 = vpack.c.b16 %v1059_v28, %v1058_v26 }
 0x187   : > { %8271 = vmatmul.msk.bf16.vlgmr.msra.gmra.mxu3 %vm728_vm0, %v1104_v6  ;;  %8269 = vmatmul.msk.bf16.vlgmr.msra.gmra.mxu1 %vm728_vm0, %v1060_v30 }
 0x18a   : > { %v897_v7 = vpop.f32.mrf.mxu3 }
 0x18b   : > { %v1129_v10 = vsel %vm1122_vm1, %v897_v7, -inf }
 0x18c   : > { %1130 = vmax.xlane.f32.xlu1 %v1129_v10 }
 0x192   : > { %v899_v11 = vpop.f32.mrf.mxu3 }
 0x193   : > { %v1132_v12 = vsel %vm1122_vm1, %v899_v11, -inf }
 0x194   : > { %1133 = vmax.xlane.f32.xlu1 %v1132_v12 }
 0x197   : > { %8280 = vmatmul.msk.bf16.vlgmr.msrb.gmra.mxu1 %vm728_vm0, %v9976_v8 }
 0x19a   : > { %v10083_v13 = vpop.f32.mrf.mxu3 }
 0x19b   : > { %v1135_v14 = vsel %vm1122_vm1, %v10083_v13, -inf }
 0x19c   : > { %1136 = vmax.xlane.f32.xlu2 %v1135_v14 }
 0x1a2   : > { %v10089_v19 = vpop.f32.mrf.mxu3 }
 0x1a3   : > { %v1138_v20 = vsel %vm1122_vm1, %v10089_v19, -inf }
 0x1a4   : > { %1139 = vmax.xlane.f32.xlu2 %v1138_v20  ;;  %v10093_v23 = vpop.f32.mrf.mxu1 }
 0x1a5   : > { %v1141_v24 = vsel %vm1122_vm1, %v10093_v23, -inf }
 0x1a6   : > { %1142 = vmax.xlane.f32.xlu0 %v1141_v24 }
 0x1a7   : > { %8281 = vmatmul.msk.bf16.gmra.mxu1 %vm728_vm0, %v9982_v15 }
 0x1ac   : > { %v10097_v31 = vpop.f32.mrf.mxu1 }
 0x1ad   : > { %v1144_v32 = vsel %vm1122_vm1, %v10097_v31, -inf }
 0x1ae   : > { %1145 = vmax.xlane.f32.xlu1 %v1144_v32 }
 0x1b7   : > { %8282 = vmatmul.msk.bf16.gmra.mxu1 %vm728_vm0, %v9988_v22 }
 0x1ba   : > { %v10102_v33 = vpop.f32.mrf.mxu2 }
 0x1bb   : > { %v1147_v34 = vsel %vm1122_vm1, %v10102_v33, -inf }
 0x1bc   : > { %1148 = vmax.xlane.f32.xlu1 %v1147_v34 }
 0x1c2   : > { %v10116_v8 = vpop.f32.mrf.mxu2 }
 0x1c3   : > { %v1150_v15 = vsel %vm1122_vm1, %v10116_v8, -inf }
 0x1c7   : > { %8283 = vmatmul.msk.bf16.gmra.mxu1 %vm728_vm0, %v9994_v29 }
 0x1ca   : > { %v10124_v53 = vpop.f32.mrf.mxu3 }
 0x1cb   : > { %v1153_v54 = vsel %vm1122_vm1, %v10124_v53, -inf }
 0x1d2   : > { %v10137_v1 = vpop.f32.mrf.mxu3 }
 0x1d3   : > { %v1156_v3 = vsel %vm1122_vm1, %v10137_v1, -inf }
 0x1d4   : > { %v10143_v5 = vpop.f32.mrf.mxu1 }
 0x1d5   : > { %v1159_v14 = vsel %vm1122_vm1, %v10143_v5, -inf }
 0x1d7   : > { %8284 = vmatmul.msk.bf16.gmra.mxu1 %vm728_vm0, %v10000_v36 }
 0x1dc   : > { %v10155_v17 = vpop.f32.mrf.mxu1 }
 0x1dd   : > { %v1162_v24 = vsel %vm1122_vm1, %v10155_v17, -inf }
 0x1e7   : > { %8285 = vmatmul.msk.bf16.gmra.mxu1 %vm728_vm0, %v10012_v50 }
 0x1e9   : > { %v1125_v38 = vpop.xlane.xlu0 %1124 }
 0x1ea   : > { %v1195_v39 = vsub.f32 %v875_v58, %v1125_v38  ;;  %v10164_v26 = vpop.f32.mrf.mxu2 }
 0x1eb   : > { %v1165_v27 = vsel %vm1122_vm1, %v10164_v26, -inf }
 0x1ec   : > { %v1219_v40 = vmul.f32 1.442695, %v1195_v39 }
 0x1ee   : > { %8745 = vpow2.f32 %v1219_v40 }
 0x1f1   : > { %v1128_v41 = vpop.xlane.xlu0 %1127 }
 0x1f2   : > { %v1196_v42 = vsub.f32 %v877_v63, %v1128_v41  ;;  %v10178_v34 = vpop.f32.mrf.mxu2 }
 0x1f3   : > { %v1168_v37 = vsel %vm1122_vm1, %v10178_v34, -inf }
 0x1f4   : > { %v10110_v43 = vpop.eup %8745  ;;  %v1221_v44 = vmul.f32 1.442695, %v1196_v42 }
 0x1f5   : > { %v1267_v45 = vsel %vm1122_vm1, %v10110_v43, 0.0 }
 0x1f6   : > { %8747 = vpow2.f32 %v1221_v44  ;;  %1268 = vadd.xlane.f32.xlu2 %v1267_v45 }
 0x1f7   : > { %8286 = vmatmul.msk.bf16.gmra.mxu1 %vm728_vm0, %v10024_v0 }
 0x1fa   : > { %v10183_v39 = vpop.f32.mrf.mxu3 }
 0x1fb   : > { %v1171_v40 = vsel %vm1122_vm1, %v10183_v39, -inf }
 0x1fc   : > { %v10114_v46 = vpop.eup %8747 }
 0x1fd   : > { %v1270_v48 = vsel %vm1122_vm1, %v10114_v46, 0.0 }
 0x1fe   : > { %1151 = vmax.xlane.f32.xlu2 %v1150_v15  ;;  %1271 = vadd.xlane.f32.xlu0 %v1270_v48 }
 0x1ff   : > { %v1131_v49 = vpop.xlane.xlu1 %1130 }
 0x200   : > { %v1197_v51 = vsub.f32 %v897_v7, %v1131_v49 }
 0x202   : > { %v1223_v52 = vmul.f32 1.442695, %v1197_v51 }
 0x204   : > { %8749 = vpow2.f32 %v1223_v52  ;;  %v10197_v44 = vpop.f32.mrf.mxu1 }
 0x205   : > { %v1177_v45 = vsel %vm1122_vm1, %v10197_v44, -inf }
 0x206   : > { %1154 = vmax.xlane.f32.xlu2 %v1153_v54 }
 0x207   : > { %v1134_v55 = vpop.xlane.xlu1 %1133  ;;  %8287 = vmatmul.msk.bf16.gmra.mxu1 %vm728_vm0, %v10032_v9 }
 0x208   : > { %v1198_v22 = vsub.f32 %v899_v11, %v1134_v55 }
 0x20a   : > { %v10128_v57 = vpop.eup %8749  ;;  %v1225_v58 = vmul.f32 1.442695, %v1198_v22 }
 0x20b   : > { %v1273_v59 = vsel %vm1122_vm1, %v10128_v57, 0.0 }
 0x20c   : > { %8751 = vpow2.f32 %v1225_v58  ;;  %1274 = vadd.xlane.f32.xlu0 %v1273_v59  ;;  %v10203_v15 = vpop.f32.mrf.mxu1 }
 0x20f   : > { %v1137_v60 = vpop.xlane.xlu2 %1136 }
 0x210   : > { %v1199_v62 = vsub.f32 %v10083_v13, %v1137_v60 }
 0x212   : > { %v10135_v63 = vpop.eup %8751  ;;  %v1227_v2 = vmul.f32 1.442695, %v1199_v62 }
 0x213   : > { %v1276_v4 = vsel %vm1122_vm1, %v10135_v63, 0.0 }
 0x214   : > { %8753 = vpow2.f32 %v1227_v2  ;;  %1157 = vmax.xlane.f32.xlu0 %v1156_v3  ;;  %1277 = vadd.xlane.f32.xlu1 %v1276_v4  ;;  %v1725_v48 = vpop.f32.mrf.mxu1 }
 0x215   : > { %v1809_v0 = vpack.c.bf16 %v1725_v48, %v1725_v48 }
 0x217   : > { %v1140_v29 = vpop.xlane.xlu2 %1139  ;;  %8288 = vmatmul.msk.bf16.gmra.mxu1 %vm728_vm0, %v10040_v18  ;;  %v1840_v52 = vunpack.c.l.b16 %v1809_v0 }
 0x218   : > { %v1200_v6 = vsub.f32 %v10089_v19, %v1140_v29 }
 0x219   : > { %v1143_v7 = vpop.xlane.xlu0 %1142 }
 0x21a   : > { %v10146_v10 = vpop.eup %8753  ;;  %v1229_v11 = vmul.f32 1.442695, %v1200_v6  ;;  %v1201_v12 = vsub.f32 %v10093_v23, %v1143_v7 }
 0x21b   : > { %v1279_v13 = vsel %vm1122_vm1, %v10146_v10, 0.0 }
 0x21c   : > { %8755 = vpow2.f32 %v1229_v11  ;;  %1280 = vadd.xlane.f32.xlu1 %v1279_v13  ;;  %1160 = vmax.xlane.f32.xlu0 %v1159_v14  ;;  %v1231_v16 = vmul.f32 1.442695, %v1201_v12  ;;  %v1727_v49 = vpop.f32.mrf.mxu1 }
 0x21d   : > { %v1810_v51 = vpack.c.bf16 %v1727_v49, %v1727_v49 }
 0x21e   : > { %8757 = vpow2.f32 %v1231_v16 }
 0x21f   : > { %v1841_v54 = vunpack.c.l.b16 %v1810_v51 }
 0x221   : > { %v1146_v19 = vpop.xlane.xlu1 %1145  ;;  %v1842_v55 = vpack.c.b16 %v1841_v54, %v1840_v52 }
 0x222   : > { %v10157_v20 = vpop.eup %8755  ;;  %v1202_v21 = vsub.f32 %v10097_v31, %v1146_v19 }
 0x223   : > { %v1282_v23 = vsel %vm1122_vm1, %v10157_v20, 0.0  ;;  %1854 = vmatpush.bf16.msrb.mxu2 %v1842_v55 }
 0x224   : > { %v1233_v25 = vmul.f32 1.442695, %v1202_v21  ;;  %1283 = vadd.xlane.f32.xlu2 %v1282_v23  ;;  %1163 = vmax.xlane.f32.xlu1 %v1162_v24  ;;  %v10166_v36 = vpop.eup %8757  ;;  %v1730_v58 = vpop.f32.mrf.mxu1 }
 0x225   : > { %v1285_v28 = vsel %vm1122_vm1, %v10166_v36, 0.0 }
 0x226   : > { %8759 = vpow2.f32 %v1233_v25 }
 0x227   : > { %8289 = vmatmul.msk.bf16.gmra.mxu1 %vm728_vm0, %v10055_v56  ;;  %v1811_v56 = vpack.c.bf16 %v1730_v58, %v1730_v58 }
 0x229   : > { %v1868_v23 = vunpack.c.l.b16 %v1811_v56 }
 0x22c   : > { %v10172_v30 = vpop.eup %8759  ;;  %1286 = vadd.xlane.f32.xlu2 %v1285_v28  ;;  %1166 = vmax.xlane.f32.xlu1 %v1165_v27  ;;  %v1732_v18 = vpop.f32.mrf.mxu1 }
 0x22d   : > { %v1288_v31 = vsel %vm1122_vm1, %v10172_v30, 0.0  ;;  %v1812_v19 = vpack.c.bf16 %v1732_v18, %v1732_v18 }
 0x22e   : > { %1289 = vadd.xlane.f32.xlu0 %v1288_v31 }
 0x22f   : > { %v1149_v32 = vpop.xlane.xlu1 %1148  ;;  %v1869_v27 = vunpack.c.l.b16 %v1812_v19 }
 0x230   : > { %v1203_v35 = vsub.f32 %v10102_v33, %v1149_v32  ;;  %v10193_v33 = vpop.f32.mrf.mxu3 }
 0x231   : > { %v1174_v42 = vsel %vm1122_vm1, %v10193_v33, -inf }
 0x232   : > { %v1235_v38 = vmul.f32 1.442695, %v1203_v35 }
 0x234   : > { %8761 = vpow2.f32 %v1235_v38  ;;  %1169 = vmax.xlane.f32.xlu2 %v1168_v37  ;;  %v1735_v24 = vpop.f32.mrf.mxu1 }
 0x237   : > { %8290 = vmatmul.msk.bf16.gmra.mxu1 %vm728_vm0, %v10008_v47 }
 0x23a   : > { %v10187_v41 = vpop.eup %8761 }
 0x23b   : > { %v1291_v50 = vsel %vm1122_vm1, %v10187_v41, 0.0 }
 0x23c   : > { %1172 = vmax.xlane.f32.xlu2 %v1171_v40  ;;  %1292 = vadd.xlane.f32.xlu0 %v1291_v50  ;;  %v1870_v50 = vpack.c.b16 %v1869_v27, %v1868_v23  ;;  %v1737_v51 = vpop.f32.mrf.mxu1 }
 0x23e   : > { %1882 = vmatpush.bf16.msrb.mxu3 %v1870_v50 }
 0x244   : > { %1175 = vmax.xlane.f32.xlu0 %v1174_v42 }
 0x247   : > { %8291 = vmatmul.msk.bf16.gmra.mxu1 %vm728_vm0, %v10020_v61  ;;  %v10242_v61 = vpop.f32.mrf.mxu2 }
 0x24c   : > { %1178 = vmax.xlane.f32.xlu0 %v1177_v45 }
 0x269   : > { %v1269_v22 = vpop.xlane.xlu2 %1268 }
 0x26a   : > { %8763 = vrcp.f32 %v1269_v22  ;;  %v1350_v6 = vand.u32 2147483648, %v1269_v22  ;;  %vm1344_vm3 = vweird.f32 %v1269_v22  ;;  %v1348_v11 = vand.u32 2147483647, %v1269_v22 }
 0x26c   : > { %v1351_v21 = vor.u32 1.1754944e-38, %v1350_v6  ;;  %vm1349_vm5 = vcmp.eq.f32.partialorder %v1348_v11, 8.507059e+37  ;;  %v1740_v6 = vpop.f32.mrf.mxu1 }
 0x26d   : > { %v1815_v50 = vpack.c.bf16 %v1740_v6, %v1740_v6 }
 0x270   : > { %v8764_v9 = vpop.eup %8763 }
 0x271   : > { %v1340_v59 = vmul.f32 %v8764_v9, %v1269_v22  ;;  %v1152_v60 = vpop.xlane.xlu2 %1151  ;;  %v1272_v62 = vpop.xlane.xlu0 %1271  ;;  %vm1345_vm2 = vweird.f32 %v8764_v9 }
 0x272   : > { %v1204_v2 = vsub.f32 %v10116_v8, %v1152_v60  ;;  %8765 = vrcp.f32 %v1272_v62  ;;  %vm1346_vm4 = vmor %vm1344_vm3, %vm1345_vm2  ;;  %v1363_v32 = vand.u32 2147483647, %v1272_v62  ;;  %v1365_v35 = vand.u32 2147483648, %v1272_v62 }
 0x273   : > { %v1341_v3 = vsub.f32 1.0, %v1340_v59  ;;  %vm1359_vm7 = vweird.f32 %v1272_v62 }
 0x274   : > { %v1237_v4 = vmul.f32 1.442695, %v1204_v2  ;;  %v1366_v48 = vor.u32 1.1754944e-38, %v1365_v35  ;;  %vm1364_vm9 = vcmp.eq.f32.partialorder %v1363_v32, 8.507059e+37 }
 0x275   : > { %v1342_v29 = vmul.f32 %v8764_v9, %v1341_v3  ;;  %v1813_v3 = vpack.c.bf16 %v1735_v24, %v1735_v24 }
 0x276   : > { %8767 = vpow2.f32 %v1237_v4 }
 0x277   : > { %v1343_v7 = vadd.f32 %v8764_v9, %v1342_v29  ;;  %v1814_v29 = vpack.c.bf16 %v1737_v51, %v1737_v51  ;;  %v1896_v11 = vunpack.c.l.b16 %v1813_v3 }
 0x278   : > { %v8766_v12 = vpop.eup %8765 }
 0x279   : > { %v1347_v13 = vsel %vm1346_vm4, %v8764_v9, %v1343_v7  ;;  %v1355_v14 = vmul.f32 %v8766_v12, %v1272_v62  ;;  %v1155_v16 = vpop.xlane.xlu2 %1154  ;;  %vm1360_vm6 = vweird.f32 %v8766_v12  ;;  %v1897_v56 = vunpack.c.l.b16 %v1814_v29 }
 0x27a   : > { %v1205_v8 = vsub.f32 %v10124_v53, %v1155_v16  ;;  %v1352_v31 = vsel %vm1349_vm5, %v1351_v21, %v1347_v13  ;;  %vm1361_vm8 = vmor %vm1359_vm7, %vm1360_vm6 }
 0x27b   : > { %v1356_v25 = vsub.f32 1.0, %v1355_v14  ;;  %v1353_v45 = vmul.f32 %v10110_v43, %v1352_v31  ;;  %v1898_v21 = vpack.c.b16 %v1897_v56, %v1896_v11 }
 0x27c   : > { %v10211_v28 = vpop.eup %8767  ;;  %v1239_v37 = vmul.f32 1.442695, %v1205_v8 }
 0x27d   : > { %v1357_v38 = vmul.f32 %v8766_v12, %v1356_v25  ;;  %v1294_v40 = vsel %vm1122_vm1, %v10211_v28, 0.0  ;;  %v1785_v54 = vpack.c.bf16 %v1353_v45, %v1353_v45  ;;  %1910 = vmatpush.bf16.msra.mxu2 %v1898_v21 }
 0x27e   : > { %8769 = vpow2.f32 %v1239_v37  ;;  %1295 = vadd.xlane.f32.xlu1 %v1294_v40 }
 0x27f   : > { %v1358_v53 = vadd.f32 %v8766_v12, %v1357_v38  ;;  %v1275_v42 = vpop.xlane.xlu0 %1274  ;;  %v1835_v60 = vunpack.c.l.b16 %v1785_v54 }
 0x280   : > { %8771 = vrcp.f32 %v1275_v42  ;;  %vm1374_vm11 = vweird.f32 %v1275_v42  ;;  %v1378_v14 = vand.u32 2147483647, %v1275_v42 }
 0x281   : > { %v1362_v0 = vsel %vm1361_vm8, %v8766_v12, %v1358_v53  ;;  %v1380_v12 = vand.u32 2147483648, %v1275_v42  ;;  %v1742_v53 = vpop.f32.mrf.mxu1 }
 0x282   : > { %v1367_v49 = vsel %vm1364_vm9, %v1366_v48, %v1362_v0  ;;  %vm1379_vm13 = vcmp.eq.f32.partialorder %v1378_v14, 8.507059e+37  ;;  %v1183_v0 = vsel %vm1122_vm1, %v10242_v61, -inf }
 0x283   : > { %v1368_v52 = vmul.f32 %v10114_v46, %v1367_v49  ;;  %v1381_v27 = vor.u32 1.1754944e-38, %v1380_v12 }
 0x284   : > { %v10219_v55 = vpop.eup %8769 }
 0x285   : > { %v1297_v47 = vsel %vm1122_vm1, %v10219_v55, 0.0  ;;  %v1786_v22 = vpack.c.bf16 %v1368_v52, %v1368_v52 }
 0x286   : > { %v8772_v58 = vpop.eup %8771  ;;  %1298 = vadd.xlane.f32.xlu1 %v1297_v47  ;;  %v1924_v47 = vunpack.c.l.b16 %v1815_v50 }
 0x287   : > { %v1370_v43 = vmul.f32 %v8772_v58, %v1275_v42  ;;  %v1158_v9 = vpop.xlane.xlu0 %1157  ;;  %v10223_v59 = vpop.xlane.xlu1 %1277  ;;  %v1836_v62 = vunpack.c.l.b16 %v1786_v22  ;;  %vm1375_vm10 = vweird.f32 %v8772_v58 }
 0x288   : > { %v1206_v2 = vsub.f32 %v10137_v1, %v1158_v9  ;;  %8773 = vrcp.f32 %v10223_v59  ;;  %v1180_v1 = vsel %vm1122_vm1, %v10203_v15, -inf  ;;  %vm10232_vm12 = vmor %vm1374_vm11, %vm1375_vm10  ;;  %v1393_v38 = vand.u32 2147483647, %v10223_v59 }
 0x289   : > { %v1371_v46 = vsub.f32 1.0, %v1370_v43  ;;  %v1837_v18 = vpack.c.b16 %v1836_v62, %v1835_v60  ;;  %v1395_v40 = vand.u32 2147483648, %v10223_v59  ;;  %vm1389_vm15 = vweird.f32 %v10223_v59 }
 0x28a   : > { %v1241_v4 = vmul.f32 1.442695, %v1206_v2  ;;  %vm1394_vm3 = vcmp.eq.f32.partialorder %v1393_v38, 8.507059e+37 }
 0x28b   : > { %v1372_v7 = vmul.f32 %v8772_v58, %v1371_v46  ;;  %8292 = vmatmul.msk.bf16.vlgmr.msrb.gmra.mxu2 %vm1122_vm1, %v1837_v18  ;;  %v1396_v54 = vor.u32 1.1754944e-38, %v1395_v40 }
 0x28c   : > { %8775 = vpow2.f32 %v1241_v4 }
 0x28d   : > { %v1373_v13 = vadd.f32 %v8772_v58, %v1372_v7 }
 0x28e   : > { %v8774_v16 = vpop.eup %8773  ;;  %1181 = vmax.xlane.f32.xlu1 %v1180_v1 }
 0x28f   : > { %v1377_v8 = vsel %vm10232_vm12, %v8772_v58, %v1373_v13  ;;  %v1385_v23 = vmul.f32 %v8774_v16, %v10223_v59  ;;  %v10239_v24 = vpop.xlane.xlu1 %1280  ;;  %v1161_v25 = vpop.xlane.xlu0 %1160  ;;  %vm1390_vm14 = vweird.f32 %v8774_v16 }
 0x290   : > { %8777 = vrcp.f32 %v10239_v24  ;;  %v1207_v32 = vsub.f32 %v10143_v5, %v1161_v25  ;;  %v1382_v37 = vsel %vm1379_vm13, %v1381_v27, %v1377_v8  ;;  %v1816_v5 = vpack.c.bf16 %v1742_v53, %v1742_v53  ;;  %vm1391_vm2 = vmor %vm1389_vm15, %vm1390_vm14 }
 0x291   : > { %v1386_v31 = vsub.f32 1.0, %v1385_v23  ;;  %v1383_v51 = vmul.f32 %v10128_v57, %v1382_v37  ;;  %v1410_v18 = vand.u32 2147483648, %v10239_v24  ;;  %vm1404_vm5 = vweird.f32 %v10239_v24  ;;  %v10268_v23 = vpop.f32.mrf.mxu2 }
 0x292   : > { %v10245_v35 = vpop.eup %8775  ;;  %v1243_v45 = vmul.f32 1.442695, %v1207_v32  ;;  %v1925_v22 = vunpack.c.l.b16 %v1816_v5  ;;  %v1408_v11 = vand.u32 2147483647, %v10239_v24  ;;  %v1186_v53 = vsel %vm1122_vm1, %v10268_v23, -inf }
 0x293   : > { %v1387_v42 = vmul.f32 %v8774_v16, %v1386_v31  ;;  %v1300_v48 = vsel %vm1122_vm1, %v10245_v35, 0.0  ;;  %v1787_v57 = vpack.c.bf16 %v1383_v51, %v1383_v51  ;;  %v1411_v1 = vor.u32 1.1754944e-38, %v1410_v18 }
 0x294   : > { %1301 = vadd.xlane.f32.xlu2 %v1300_v48  ;;  %8779 = vpow2.f32 %v1243_v45  ;;  %v1926_v3 = vpack.c.b16 %v1925_v22, %v1924_v47  ;;  %vm1409_vm7 = vcmp.eq.f32.partialorder %v1408_v11, 8.507059e+37  ;;  %v10282_v45 = vpop.f32.mrf.mxu3 }
 0x295   : > { %v1388_v49 = vadd.f32 %v8774_v16, %v1387_v42 }
 0x296   : > { %v8778_v52 = vpop.eup %8777  ;;  %1184 = vmax.xlane.f32.xlu1 %v1183_v0  ;;  %1938 = vmatpush.bf16.msra.mxu3 %v1926_v3 }
 0x297   : > { %v1392_v58 = vsel %vm1391_vm2, %v8774_v16, %v1388_v49  ;;  %v1400_v43 = vmul.f32 %v8778_v52, %v10239_v24  ;;  %v1284_v9 = vpop.xlane.xlu2 %1283  ;;  %v1164_v60 = vpop.xlane.xlu1 %1163  ;;  %vm1405_vm4 = vweird.f32 %v8778_v52 }
 0x298   : > { %v1397_v62 = vsel %vm1394_vm3, %v1396_v54, %v1392_v58  ;;  %8781 = vrcp.f32 %v1284_v9  ;;  %v1208_v59 = vsub.f32 %v10155_v17, %v1164_v60  ;;  %vm1406_vm6 = vmor %vm1404_vm5, %vm1405_vm4  ;;  %v1425_v32 = vand.u32 2147483648, %v1284_v9 }
 0x299   : > { %v1401_v2 = vsub.f32 1.0, %v1400_v43  ;;  %v1398_v46 = vmul.f32 %v10135_v63, %v1397_v62  ;;  %v1863_v63 = vunpack.c.l.b16 %v1787_v57  ;;  %v1423_v40 = vand.u32 2147483647, %v1284_v9 }
 0x29a   : > { %v10259_v4 = vpop.eup %8779  ;;  %v1245_v6 = vmul.f32 1.442695, %v1208_v59  ;;  %vm1419_vm9 = vweird.f32 %v1284_v9  ;;  %v1426_v5 = vor.u32 1.1754944e-38, %v1425_v32 }
 0x29b   : > { %v1402_v29 = vmul.f32 %v8778_v52, %v1401_v2  ;;  %v1788_v7 = vpack.c.bf16 %v1398_v46, %v1398_v46  ;;  %v1303_v12 = vsel %vm1122_vm1, %v10259_v4, 0.0  ;;  %vm1424_vm11 = vcmp.eq.f32.partialorder %v1423_v40, 8.507059e+37 }
 0x29c   : > { %8783 = vpow2.f32 %v1245_v6  ;;  %1304 = vadd.xlane.f32.xlu2 %v1303_v12 }
 0x29d   : > { %v1403_v17 = vadd.f32 %v8778_v52, %v1402_v29  ;;  %v1864_v56 = vunpack.c.l.b16 %v1788_v7 }
 0x29e   : > { %v8782_v13 = vpop.eup %8781 }
 0x29f   : > { %v1407_v14 = vsel %vm1406_vm6, %v8778_v52, %v1403_v17  ;;  %v1415_v16 = vmul.f32 %v8782_v13, %v1284_v9  ;;  %v10265_v19 = vpop.xlane.xlu2 %1286  ;;  %v1167_v21 = vpop.xlane.xlu1 %1166  ;;  %v1865_v8 = vpack.c.b16 %v1864_v56, %v1863_v63  ;;  %vm1420_vm8 = vweird.f32 %v8782_v13 }
 0x2a0   : > { %8785 = vrcp.f32 %v10265_v19  ;;  %v1412_v24 = vsel %vm1409_vm7, %v1411_v1, %v1407_v14  ;;  %v1209_v27 = vsub.f32 %v10164_v26, %v1167_v21  ;;  %vm1421_vm10 = vmor %vm1419_vm9, %vm1420_vm8  ;;  %v1438_v9 = vand.u32 2147483647, %v10265_v19 }
 0x2a1   : > { %v1416_v25 = vsub.f32 1.0, %v1415_v16  ;;  %v10271_v31 = vpop.xlane.xlu0 %1289  ;;  %8293 = vmatmul.msk.bf16.vlgmr.msrb.gmra.mxu3 %vm1122_vm1, %v1865_v8  ;;  %v1413_v26 = vmul.f32 %v10146_v10, %v1412_v24  ;;  %v1189_v10 = vsel %vm1122_vm1, %v10282_v45, -inf  ;;  %vm1434_vm12 = vweird.f32 %v10265_v19  ;;  %v10305_v24 = vpop.f32.mrf.mxu3 }
 0x2a2   : > { %8787 = vrcp.f32 %v10271_v31  ;;  %v10275_v37 = vpop.eup %8783  ;;  %v1247_v50 = vmul.f32 1.442695, %v1209_v27  ;;  %v1440_v2 = vand.u32 2147483648, %v10265_v19  ;;  %v1453_v59 = vand.u32 2147483647, %v10271_v31 }
 0x2a3   : > { %v1417_v38 = vmul.f32 %v8782_v13, %v1416_v25  ;;  %v1306_v42 = vsel %vm1122_vm1, %v10275_v37, 0.0  ;;  %v1789_v58 = vpack.c.bf16 %v1413_v26, %v1413_v26  ;;  %v1455_v29 = vand.u32 2147483648, %v10271_v31 }
 0x2a4   : > { %8789 = vpow2.f32 %v1247_v50  ;;  %1187 = vmax.xlane.f32.xlu2 %v1186_v53  ;;  %1307 = vadd.xlane.f32.xlu0 %v1306_v42  ;;  %vm1439_vm2 = vcmp.eq.f32.partialorder %v1438_v9, 8.507059e+37  ;;  %v1441_v17 = vor.u32 1.1754944e-38, %v1440_v2  ;;  %vm1449_vm3 = vweird.f32 %v10271_v31 }
 0x2a5   : > { %v1418_v48 = vadd.f32 %v8782_v13, %v1417_v38  ;;  %v1456_v21 = vor.u32 1.1754944e-38, %v1455_v29  ;;  %vm1454_vm5 = vcmp.eq.f32.partialorder %v1453_v59, 8.507059e+37 }
 0x2a6   : > { %v8786_v0 = vpop.eup %8785 }
 0x2a7   : > { %v1422_v49 = vsel %vm1421_vm10, %v8782_v13, %v1418_v48  ;;  %v1430_v51 = vmul.f32 %v8786_v0, %v10265_v19  ;;  %v1170_v52 = vpop.xlane.xlu2 %1169  ;;  %vm1435_vm13 = vweird.f32 %v8786_v0 }
 0x2a8   : > { %v8788_v54 = vpop.eup %8787  ;;  %v1427_v47 = vsel %vm1424_vm11, %v1426_v5, %v1422_v49  ;;  %v1210_v22 = vsub.f32 %v10178_v34, %v1170_v52  ;;  %vm1436_vm15 = vmor %vm1434_vm12, %vm1435_vm13 }
 0x2a9   : > { %v1431_v43 = vsub.f32 1.0, %v1430_v51  ;;  %v1445_v60 = vmul.f32 %v8788_v54, %v10271_v31  ;;  %v1428_v62 = vmul.f32 %v10157_v20, %v1427_v47  ;;  %v1891_v20 = vunpack.c.l.b16 %v1789_v58  ;;  %v1745_v58 = vpop.f32.mrf.mxu1 }
 0x2aa   : > { %v1249_v46 = vmul.f32 1.442695, %v1210_v22  ;;  %v10294_v57 = vpop.eup %8789  ;;  %vm1450_vm14 = vweird.f32 %v8788_v54  ;;  %v1817_v9 = vpack.c.bf16 %v1745_v58, %v1745_v58 }
 0x2ab   : > { %v1432_v34 = vmul.f32 %v8786_v0, %v1431_v43  ;;  %v1446_v18 = vsub.f32 1.0, %v1445_v60  ;;  %v1790_v3 = vpack.c.bf16 %v1428_v62, %v1428_v62  ;;  %v1309_v6 = vsel %vm1122_vm1, %v10294_v57, 0.0  ;;  %vm1451_vm4 = vmor %vm1449_vm3, %vm1450_vm14 }
 0x2ac   : > { %8791 = vpow2.f32 %v1249_v46  ;;  %1190 = vmax.xlane.f32.xlu2 %v1189_v10  ;;  %1310 = vadd.xlane.f32.xlu0 %v1309_v6  ;;  %v1952_v60 = vunpack.c.l.b16 %v1817_v9 }
 0x2ad   : > { %v1433_v7 = vadd.f32 %v8786_v0, %v1432_v34  ;;  %v1447_v11 = vmul.f32 %v8788_v54, %v1446_v18  ;;  %v1892_v12 = vunpack.c.l.b16 %v1790_v3 }
 0x2af   : > { %v1437_v63 = vsel %vm1436_vm15, %v8786_v0, %v1433_v7  ;;  %v1448_v56 = vadd.f32 %v8788_v54, %v1447_v11  ;;  %v1173_v13 = vpop.xlane.xlu2 %1172  ;;  %v10302_v14 = vpop.xlane.xlu0 %1292  ;;  %v1893_v1 = vpack.c.b16 %v1892_v12, %v1891_v20 }
 0x2b0   : > { %v1442_v16 = vsel %vm1439_vm2, %v1441_v17, %v1437_v63  ;;  %v1211_v8 = vsub.f32 %v10183_v39, %v1173_v13  ;;  %v1192_v39 = vsel %vm1122_vm1, %v10305_v24, -inf  ;;  %v1470_v20 = vand.u32 2147483648, %v10302_v14 }
 0x2b1   : > { %v1452_v25 = vsel %vm1451_vm4, %v8788_v54, %v1448_v56  ;;  %8294 = vmatmul.msk.bf16.vlgmr.msra.gmra.mxu2 %vm1122_vm1, %v1893_v1  ;;  %v1443_v19 = vmul.f32 %v10166_v36, %v1442_v16  ;;  %v1747_v43 = vpop.f32.mrf.mxu1  ;;  %vm1464_vm7 = vweird.f32 %v10302_v14  ;;  %v1468_v7 = vand.u32 2147483647, %v10302_v14 }
 0x2b2   : > { %v10309_v27 = vpop.eup %8791  ;;  %v1457_v31 = vsel %vm1454_vm5, %v1456_v21, %v1452_v25  ;;  %v1251_v32 = vmul.f32 1.442695, %v1211_v8  ;;  %v1471_v13 = vor.u32 1.1754944e-38, %v1470_v20 }
 0x2b3   : > { %v1312_v38 = vsel %vm1122_vm1, %v10309_v27, 0.0  ;;  %v1458_v40 = vmul.f32 %v10172_v30, %v1457_v31  ;;  %v1791_v50 = vpack.c.bf16 %v1443_v19, %v1443_v19  ;;  %vm1469_vm9 = vcmp.eq.f32.partialorder %v1468_v7, 8.507059e+37 }
 0x2b4   : > { %8793 = vpow2.f32 %v1251_v32  ;;  %1313 = vadd.xlane.f32.xlu1 %v1312_v38  ;;  %1193 = vmax.xlane.f32.xlu0 %v1192_v39 }
 0x2b5   : > { %v1792_v53 = vpack.c.bf16 %v1458_v40, %v1458_v40  ;;  %v1919_v26 = vunpack.c.l.b16 %v1791_v50 }
 0x2b7   : > { %v1176_v42 = vpop.xlane.xlu0 %1175  ;;  %v1920_v36 = vunpack.c.l.b16 %v1792_v53 }
 0x2b8   : > { %v1212_v48 = vsub.f32 %v10193_v33, %v1176_v42 }
 0x2b9   : > { %v1921_v0 = vpack.c.b16 %v1920_v36, %v1919_v26  ;;  %v1750_v29 = vpop.f32.mrf.mxu1 }
 0x2ba   : > { %v10317_v5 = vpop.eup %8793  ;;  %v1253_v49 = vmul.f32 1.442695, %v1212_v48  ;;  %v1819_v16 = vpack.c.bf16 %v1750_v29, %v1750_v29 }
 0x2bb   : > { %8295 = vmatmul.msk.bf16.vlgmr.msra.gmra.mxu3 %vm1122_vm1, %v1921_v0  ;;  %v1315_v30 = vsel %vm1122_vm1, %v10317_v5, 0.0 }
 0x2bc   : > { %8795 = vpow2.f32 %v1253_v49  ;;  %1316 = vadd.xlane.f32.xlu1 %v1315_v30 }
 0x2bf   : > { %v1179_v51 = vpop.xlane.xlu0 %1178 }
 0x2c0   : > { %v1213_v52 = vsub.f32 %v10197_v44, %v1179_v51  ;;  %v1818_v44 = vpack.c.bf16 %v1747_v43, %v1747_v43 }
 0x2c1   : > { %v1752_v56 = vpop.f32.mrf.mxu1 }
 0x2c2   : > { %v10323_v54 = vpop.eup %8795  ;;  %v1255_v47 = vmul.f32 1.442695, %v1213_v52  ;;  %v1953_v62 = vunpack.c.l.b16 %v1818_v44  ;;  %v1820_v21 = vpack.c.bf16 %v1752_v56, %v1752_v56 }
 0x2c3   : > { %v1318_v33 = vsel %vm1122_vm1, %v10323_v54, 0.0 }
 0x2c4   : > { %8797 = vpow2.f32 %v1255_v47  ;;  %1319 = vadd.xlane.f32.xlu2 %v1318_v33  ;;  %v1954_v59 = vpack.c.b16 %v1953_v62, %v1952_v60  ;;  %v1981_v32 = vunpack.c.l.b16 %v1820_v21 }
 0x2c5   : > { %8799 = vrcp.f32 %v10302_v14 }
 0x2c6   : > { %1966 = vmatpush.bf16.msrb.mxu2 %v1954_v59 }
 0x2c9   : > { %v1755_v48 = vpop.f32.mrf.mxu1 }
 0x2ca   : > { %v10327_v22 = vpop.eup %8797 }
 0x2cb   : > { %v1321_v10 = vsel %vm1122_vm1, %v10327_v22, 0.0  ;;  %v8800_v2 = vpop.eup %8799 }
 0x2cc   : > { %1322 = vadd.xlane.f32.xlu0 %v1321_v10  ;;  %v1460_v46 = vmul.f32 %v8800_v2, %v10302_v14  ;;  %vm1465_vm6 = vweird.f32 %v8800_v2  ;;  %v1980_v14 = vunpack.c.l.b16 %v1819_v16 }
 0x2cd   : > { %vm1466_vm8 = vmor %vm1464_vm7, %vm1465_vm6 }
 0x2ce   : > { %v1461_v34 = vsub.f32 1.0, %v1460_v46  ;;  %v1982_v39 = vpack.c.b16 %v1981_v32, %v1980_v14 }
 0x2d0   : > { %v1462_v18 = vmul.f32 %v8800_v2, %v1461_v34  ;;  %1994 = vmatpush.bf16.msrb.mxu3 %v1982_v39 }
 0x2d1   : > { %v1757_v60 = vpop.f32.mrf.mxu1 }
 0x2d2   : > { %v1463_v6 = vadd.f32 %v8800_v2, %v1462_v18 }
 0x2d4   : > { %v1467_v12 = vsel %vm1466_vm8, %v8800_v2, %v1463_v6  ;;  %v1822_v2 = vpack.c.bf16 %v1757_v60, %v1757_v60 }
 0x2d5   : > { %v1472_v8 = vsel %vm1469_vm9, %v1471_v13, %v1467_v12 }
 0x2d6   : > { %v1473_v40 = vmul.f32 %v10187_v41, %v1472_v8  ;;  %v2009_v29 = vunpack.c.l.b16 %v1822_v2 }
 0x2d8   : > { %v1793_v51 = vpack.c.bf16 %v1473_v40, %v1473_v40 }
 0x2d9   : > { %v1760_v13 = vpop.f32.mrf.mxu1 }
 0x2da   : > { %v1947_v10 = vunpack.c.l.b16 %v1793_v51 }
 0x2f1   : > { %v1296_v3 = vpop.xlane.xlu1 %1295 }
 0x2f2   : > { %8801 = vrcp.f32 %v1296_v3  ;;  %v1483_v25 = vand.u32 2147483647, %v1296_v3  ;;  %v1485_v19 = vand.u32 2147483648, %v1296_v3  ;;  %vm1479_vm11 = vweird.f32 %v1296_v3 }
 0x2f4   : > { %v1486_v53 = vor.u32 1.1754944e-38, %v1485_v19  ;;  %vm1484_vm13 = vcmp.eq.f32.partialorder %v1483_v25, 8.507059e+37 }
 0x2f8   : > { %v8802_v11 = vpop.eup %8801 }
 0x2f9   : > { %v1475_v17 = vmul.f32 %v8802_v11, %v1296_v3  ;;  %v10336_v63 = vpop.xlane.xlu1 %1298  ;;  %vm1480_vm10 = vweird.f32 %v8802_v11 }
 0x2fa   : > { %8803 = vrcp.f32 %v10336_v63  ;;  %vm1481_vm12 = vmor %vm1479_vm11, %vm1480_vm10  ;;  %v1500_v34 = vand.u32 2147483648, %v10336_v63  ;;  %vm1494_vm15 = vweird.f32 %v10336_v63 }
 0x2fb   : > { %v1476_v1 = vsub.f32 1.0, %v1475_v17 }
 0x2fc   : > { %v1501_v17 = vor.u32 1.1754944e-38, %v1500_v34 }
 0x2fd   : > { %v1477_v31 = vmul.f32 %v8802_v11, %v1476_v1 }
 0x2ff   : > { %v1478_v38 = vadd.f32 %v8802_v11, %v1477_v31 }
 0x300   : > { %v8804_v50 = vpop.eup %8803 }
 0x301   : > { %v1482_v42 = vsel %vm1481_vm12, %v8802_v11, %v1478_v38  ;;  %v1490_v26 = vmul.f32 %v8804_v50, %v10336_v63  ;;  %v1182_v36 = vpop.xlane.xlu1 %1181  ;;  %vm1495_vm14 = vweird.f32 %v8804_v50 }
 0x302   : > { %v1487_v0 = vsel %vm1484_vm13, %v1486_v53, %v1482_v42  ;;  %v1214_v49 = vsub.f32 %v10203_v15, %v1182_v36  ;;  %v1821_v15 = vpack.c.bf16 %v1755_v48, %v1755_v48  ;;  %vm1496_vm2 = vmor %vm1494_vm15, %vm1495_vm14  ;;  %v1823_v42 = vpack.c.bf16 %v1760_v13, %v1760_v13  ;;  %v1762_v48 = vpop.f32.mrf.mxu1 }
 0x303   : > { %v1488_v30 = vmul.f32 %v10211_v28, %v1487_v0  ;;  %v1491_v52 = vsub.f32 1.0, %v1490_v26 }
 0x304   : > { %v1257_v47 = vmul.f32 1.442695, %v1214_v49  ;;  %v2008_v3 = vunpack.c.l.b16 %v1821_v15  ;;  %v2036_v51 = vunpack.c.l.b16 %v1823_v42 }
 0x305   : > { %v1794_v41 = vpack.c.bf16 %v1488_v30, %v1488_v30  ;;  %v1492_v43 = vmul.f32 %v8804_v50, %v1491_v52  ;;  %v1824_v52 = vpack.c.bf16 %v1762_v48, %v1762_v48 }
 0x306   : > { %8805 = vpow2.f32 %v1257_v47  ;;  %v2010_v12 = vpack.c.b16 %v2009_v29, %v2008_v3  ;;  %v9229_v3 = vld [vmem:[%s9948_s4] sm:$0xff] }
 0x307   : > { %v1302_v33 = vpop.xlane.xlu2 %1301  ;;  %v1948_v58 = vunpack.c.l.b16 %v1794_v41  ;;  %v1493_v59 = vadd.f32 %v8804_v50, %v1492_v43 }
 0x308   : > { %8807 = vrcp.f32 %v1302_v33  ;;  %v1515_v1 = vand.u32 2147483648, %v1302_v33  ;;  %2022 = vmatpush.bf16.msra.mxu2 %v2010_v12  ;;  %vm1509_vm5 = vweird.f32 %v1302_v33 }
 0x309   : > { %v1185_v9 = vpop.xlane.xlu1 %1184  ;;  %v1949_v44 = vpack.c.b16 %v1948_v58, %v1947_v10  ;;  %v1497_v7 = vsel %vm1496_vm2, %v8804_v50, %v1493_v59 }
 0x30a   : > { %v1215_v62 = vsub.f32 %v10242_v61, %v1185_v9  ;;  %v1498_v61 = vand.u32 2147483647, %v10336_v63  ;;  %v1513_v63 = vand.u32 2147483647, %v1302_v33  ;;  %v1516_v31 = vor.u32 1.1754944e-38, %v1515_v1 }
 0x30b   : > { %8296 = vmatmul.msk.bf16.vlgmr.msrb.gmra.mxu2 %vm1122_vm1, %v1949_v44 }
 0x30c   : > { %v10345_v28 = vpop.eup %8805  ;;  %v1259_v46 = vmul.f32 1.442695, %v1215_v62  ;;  %vm1499_vm3 = vcmp.eq.f32.partialorder %v1498_v61, 8.507059e+37  ;;  %vm1514_vm7 = vcmp.eq.f32.partialorder %v1513_v63, 8.507059e+37 }
 0x30d   : > { %v1324_v18 = vsel %vm1122_vm1, %v10345_v28, 0.0  ;;  %v1502_v16 = vsel %vm1499_vm3, %v1501_v17, %v1497_v7 }
 0x30e   : > { %v8808_v6 = vpop.eup %8807  ;;  %8809 = vpow2.f32 %v1259_v46  ;;  %1325 = vadd.xlane.f32.xlu1 %v1324_v18  ;;  %v1503_v14 = vmul.f32 %v10219_v55, %v1502_v16  ;;  %v1856_v26 = vpop.f32.mrf.mxu2 }
 0x30f   : > { %v1505_v20 = vmul.f32 %v8808_v6, %v1302_v33  ;;  %v10352_v11 = vpop.xlane.xlu2 %1304  ;;  %vm1510_vm4 = vweird.f32 %v8808_v6  ;;  %v2037_v33 = vunpack.c.l.b16 %v1824_v52  ;;  %v1765_v18 = vpop.f32.mrf.mxu1  ;;  %v2169_v29 = vadd.f32 %v9229_v3, %v1856_v26 }
 0x310   : > { %8811 = vrcp.f32 %v10352_v11  ;;  %vm1511_vm6 = vmor %vm1509_vm5, %vm1510_vm4  ;;  %v1795_v55 = vpack.c.bf16 %v1503_v14, %v1503_v14  ;;  %v1530_v58 = vand.u32 2147483648, %v10352_v11  ;;  %vm1524_vm9 = vweird.f32 %v10352_v11 }
 0x311   : > { %v1506_v56 = vsub.f32 1.0, %v1505_v20  ;;  %v2038_v44 = vpack.c.b16 %v2037_v33, %v2036_v51  ;;  %v10382_v20 = vld [vmem:[#allocation8] ss:$0 sm:$0xff]  ;;  %v1825_v51 = vpack.c.bf16 %v1765_v18, %v1765_v18 }
 0x312   : > { %v1975_v43 = vunpack.c.l.b16 %v1795_v55 }
 0x313   : > { %v1507_v21 = vmul.f32 %v8808_v6, %v1506_v56  ;;  %2050 = vmatpush.bf16.msra.mxu3 %v2038_v44 }
 0x314   : > { %v10355_v8 = vpop.eup %8809 }
 0x315   : > { %v1508_v25 = vadd.f32 %v8808_v6, %v1507_v21  ;;  %v1327_v19 = vsel %vm1122_vm1, %v10355_v8, 0.0  ;;  %v9230_v21 = vld [vmem:[%s9948_s4 + $0x8] sm:$0xff] }
 0x316   : > { %1328 = vadd.xlane.f32.xlu2 %v1327_v19  ;;  %v8812_v32 = vpop.eup %8811  ;;  %v10395_v19 = vadd.f32 %v10382_v20, %v2169_v29 }
 0x317   : > { %v1512_v38 = vsel %vm1511_vm6, %v8808_v6, %v1508_v25  ;;  %v1520_v39 = vmul.f32 %v8812_v32, %v10352_v11  ;;  %v1188_v50 = vpop.xlane.xlu2 %1187  ;;  %v10361_v53 = vpop.xlane.xlu0 %1307  ;;  %vm1525_vm8 = vweird.f32 %v8812_v32  ;;  %v1531_v6 = vor.u32 1.1754944e-38, %v1530_v58 }
 0x318   : > { %v1517_v40 = vsel %vm1514_vm7, %v1516_v31, %v1512_v38  ;;  %v1216_v36 = vsub.f32 %v10268_v23, %v1188_v50  ;;  %8813 = vrcp.f32 %v10361_v53  ;;  %vm10369_vm10 = vmor %vm1524_vm9, %vm1525_vm8  ;;  %v1543_v12 = vand.u32 2147483647, %v10361_v53  ;;  %v1767_v26 = vpop.f32.mrf.mxu1 }
 0x319   : > { %v1521_v0 = vsub.f32 1.0, %v1520_v39  ;;  %v1518_v49 = vmul.f32 %v10245_v35, %v1517_v40  ;;  %v1528_v35 = vand.u32 2147483647, %v10352_v11  ;;  %v1858_v11 = vpop.f32.mrf.mxu2  ;;  %vm1539_vm13 = vweird.f32 %v10361_v53 }
 0x31a   : > { %v1261_v30 = vmul.f32 1.442695, %v1216_v36  ;;  %v2170_v63 = vadd.f32 %v9230_v21, %v1858_v11  ;;  %vm1544_vm15 = vcmp.eq.f32.partialorder %v1543_v12, 8.507059e+37  ;;  %v2218_v48 = vsel %vm728_vm0, %v10395_v19, 0.0 }
 0x31b   : > { %v1522_v47 = vmul.f32 %v8812_v32, %v1521_v0  ;;  %v1796_v41 = vpack.c.bf16 %v1518_v49, %v1518_v49  ;;  %vm1529_vm11 = vcmp.eq.f32.partialorder %v1528_v35, 8.507059e+37  ;;  %v1826_v52 = vpack.c.bf16 %v1767_v26, %v1767_v26 }
 0x31c   : > { %8815 = vpow2.f32 %v1261_v30  ;;  %v2064_v58 = vunpack.c.l.b16 %v1825_v51 }
 0x31d   : > { %v1523_v10 = vadd.f32 %v8812_v32, %v1522_v47  ;;  %v1976_v23 = vunpack.c.l.b16 %v1796_v41 }
 0x31e   : > { %v8814_v9 = vpop.eup %8813 }
 0x31f   : > { %v1535_v62 = vmul.f32 %v8814_v9, %v10361_v53  ;;  %v1191_v15 = vpop.xlane.xlu2 %1190  ;;  %v10374_v2 = vpop.xlane.xlu0 %1310  ;;  %v1977_v59 = vpack.c.b16 %v1976_v23, %v1975_v43  ;;  %v1527_v46 = vsel %vm10369_vm10, %v8812_v32, %v1523_v10  ;;  %vm1540_vm12 = vweird.f32 %v8814_v9  ;;  %v9231_v10 = vld [vmem:[%s9948_s4 + $0x18] sm:$0xff] }
 0x320   : > { %v1217_v34 = vsub.f32 %v10282_v45, %v1191_v15  ;;  %8817 = vrcp.f32 %v10374_v2  ;;  %v1545_v45 = vand.u32 2147483648, %v10361_v53  ;;  %v1532_v56 = vsel %vm1529_vm11, %v1531_v6, %v1527_v46  ;;  %vm1541_vm14 = vmor %vm1539_vm13, %vm1540_vm12 }
 0x321   : > { %v1536_v61 = vsub.f32 1.0, %v1535_v62  ;;  %8297 = vmatmul.msk.bf16.vlgmr.msrb.gmra.mxu3 %vm1122_vm1, %v1977_v59  ;;  %v1533_v38 = vmul.f32 %v10259_v4, %v1532_v56  ;;  %v10407_v4 = vadd.f32 %v10382_v20, %v2170_v63  ;;  %v2065_v43 = vunpack.c.l.b16 %v1826_v52 }
 0x322   : > { %v10384_v7 = vpop.eup %8815  ;;  %v1263_v17 = vmul.f32 1.442695, %v1217_v34  ;;  %v1546_v14 = vor.u32 1.1754944e-38, %v1545_v45  ;;  %vm1554_vm3 = vweird.f32 %v10374_v2  ;;  %v1560_v35 = vand.u32 2147483648, %v10374_v2 }
 0x323   : > { %v1537_v13 = vmul.f32 %v8814_v9, %v1536_v61  ;;  %v1330_v1 = vsel %vm1122_vm1, %v10384_v7, 0.0  ;;  %v1797_v30 = vpack.c.bf16 %v1533_v38, %v1533_v38  ;;  %v1558_v60 = vand.u32 2147483647, %v10374_v2 }
 0x324   : > { %v10390_v16 = vpop.f32.mrf.mxu3  ;;  %8819 = vpow2.f32 %v1263_v17  ;;  %1331 = vadd.xlane.f32.xlu0 %v1330_v1  ;;  %v2066_v46 = vpack.c.b16 %v2065_v43, %v2064_v58  ;;  %v1561_v6 = vor.u32 1.1754944e-38, %v1560_v35  ;;  %v2221_v11 = vsel %vm728_vm0, %v10407_v4, 0.0 }
 0x325   : > { %v1538_v25 = vadd.f32 %v8814_v9, %v1537_v13  ;;  %v2003_v59 = vunpack.c.l.b16 %v1797_v30  ;;  %vm1559_vm5 = vcmp.eq.f32.partialorder %v1558_v60, 8.507059e+37  ;;  %v9232_v13 = vld [vmem:[%s9948_s4 + $0x10] sm:$0xff] }
 0x326   : > { %v8818_v31 = vpop.eup %8817  ;;  %2078 = vmatpush.bf16.msrb.mxu2 %v2066_v46  ;;  %v2171_v1 = vadd.f32 %v9232_v13, %v10390_v16 }
 0x327   : > { %v10397_v32 = vpop.xlane.xlu1 %1313  ;;  %v1542_v40 = vsel %vm1541_vm14, %v8814_v9, %v1538_v25  ;;  %v1550_v39 = vmul.f32 %v8818_v31, %v10374_v2  ;;  %v1194_v50 = vpop.xlane.xlu0 %1193  ;;  %vm1555_vm2 = vweird.f32 %v8818_v31 }
 0x328   : > { %8821 = vrcp.f32 %v10397_v32  ;;  %v1547_v42 = vsel %vm1544_vm15, %v1546_v14, %v1542_v40  ;;  %v1218_v53 = vsub.f32 %v10305_v24, %v1194_v50  ;;  %vm10421_vm4 = vmor %vm1554_vm3, %vm1555_vm2  ;;  %v1575_v61 = vand.u32 2147483648, %v10397_v32  ;;  %v9233_v14 = vld [vmem:[%s9948_s4 + $0x20] sm:$0xff] }
 0x329   : > { %v1551_v36 = vsub.f32 1.0, %v1550_v39  ;;  %v1548_v0 = vmul.f32 %v10275_v37, %v1547_v42  ;;  %v1573_v17 = vand.u32 2147483647, %v10397_v32  ;;  %vm1569_vm7 = vweird.f32 %v10397_v32 }
 0x32a   : > { %v10409_v49 = vpop.eup %8819  ;;  %v1265_v55 = vmul.f32 1.442695, %v1218_v53  ;;  %v1576_v39 = vor.u32 1.1754944e-38, %v1575_v61 }
 0x32b   : > { %v1552_v47 = vmul.f32 %v8818_v31, %v1551_v36  ;;  %v1333_v41 = vsel %vm1122_vm1, %v10409_v49, 0.0  ;;  %v1798_v33 = vpack.c.bf16 %v1548_v0, %v1548_v0  ;;  %vm1574_vm9 = vcmp.eq.f32.partialorder %v1573_v17, 8.507059e+37 }
 0x32c   : > { %v1886_v24 = vpop.f32.mrf.mxu3  ;;  %8823 = vpow2.f32 %v1265_v55  ;;  %2219 = vadd.xlane.f32.xlu0 %v2218_v48  ;;  %1334 = vadd.xlane.f32.xlu1 %v1333_v41  ;;  %v10453_v36 = vadd.f32 %v10382_v20, %v2171_v1 }
 0x32d   : > { %v2172_v37 = vadd.f32 %v9231_v10, %v1886_v24  ;;  %v1553_v9 = vadd.f32 %v8818_v31, %v1552_v47  ;;  %v2004_v44 = vunpack.c.l.b16 %v1798_v33  ;;  %v9234_v10 = vld [vmem:[%s9948_s4 + $0x28] sm:$0xff] }
 0x32e   : > { %v8822_v23 = vpop.eup %8821  ;;  %v2224_v24 = vsel %vm728_vm0, %v10453_v36, 0.0 }
 0x32f   : > { %v1565_v62 = vmul.f32 %v8822_v23, %v10397_v32  ;;  %v10418_v15 = vpop.xlane.xlu1 %1316  ;;  %v10427_v18 = vadd.f32 %v10382_v20, %v2172_v37  ;;  %v1557_v2 = vsel %vm10421_vm4, %v8818_v31, %v1553_v9  ;;  %v2005_v29 = vpack.c.b16 %v2004_v44, %v2003_v59 }
 0x330   : > { %8825 = vrcp.f32 %v10418_v15  ;;  %vm1570_vm6 = vweird.f32 %v8822_v23  ;;  %v1562_v56 = vsel %vm1559_vm5, %v1561_v6, %v1557_v2  ;;  %vm1584_vm11 = vweird.f32 %v10418_v15 }
 0x331   : > { %v1566_v3 = vsub.f32 1.0, %v1565_v62  ;;  %8298 = vmatmul.msk.bf16.vlgmr.msra.gmra.mxu2 %vm1122_vm1, %v2005_v29  ;;  %v2227_v21 = vsel %vm728_vm0, %v10427_v18, 0.0  ;;  %vm1571_vm8 = vmor %vm1569_vm7, %vm1570_vm6  ;;  %v1563_v53 = vmul.f32 %v10294_v57, %v1562_v56  ;;  %v1590_v57 = vand.u32 2147483648, %v10418_v15  ;;  %v9235_v29 = vld [vmem:[%s9948_s4 + $0x30] sm:$0xff] }
 0x332   : > { %v10434_v12 = vpop.eup %8823  ;;  %v1588_v33 = vand.u32 2147483647, %v10418_v15 }
 0x333   : > { %v1567_v45 = vmul.f32 %v8822_v23, %v1566_v3  ;;  %v1336_v25 = vsel %vm1122_vm1, %v10434_v12, 0.0  ;;  %v1799_v30 = vpack.c.bf16 %v1563_v53, %v1563_v53  ;;  %v1591_v35 = vor.u32 1.1754944e-38, %v1590_v57 }
 0x334   : > { %v1912_v63 = vpop.f32.mrf.mxu2  ;;  %2228 = vadd.xlane.f32.xlu0 %v2227_v21  ;;  %2222 = vadd.xlane.f32.xlu1 %v2221_v11  ;;  %vm1589_vm13 = vcmp.eq.f32.partialorder %v1588_v33, 8.507059e+37 }
 0x335   : > { %v1568_v31 = vadd.f32 %v8822_v23, %v1567_v45  ;;  %v2173_v38 = vadd.f32 %v9233_v14, %v1912_v63  ;;  %1337 = vadd.xlane.f32.xlu2 %v1336_v25  ;;  %v2031_v9 = vunpack.c.l.b16 %v1799_v30 }
 0x336   : > { %v8826_v40 = vpop.eup %8825 }
 0x337   : > { %v1572_v16 = vsel %vm1571_vm8, %v8822_v23, %v1568_v31  ;;  %v1580_v50 = vmul.f32 %v8826_v40, %v10418_v15  ;;  %v1320_v42 = vpop.xlane.xlu2 %1319  ;;  %v10450_v32 = vadd.f32 %v10382_v20, %v2173_v38  ;;  %vm1585_vm10 = vweird.f32 %v8826_v40  ;;  %v1770_v38 = vpop.f32.mrf.mxu1 }
 0x338   : > { %v1577_v26 = vsel %vm1574_vm9, %v1576_v39, %v1572_v16  ;;  %8827 = vrcp.f32 %v1320_v42  ;;  %vm1586_vm12 = vmor %vm1584_vm11, %vm1585_vm10  ;;  %v1605_v59 = vand.u32 2147483648, %v1320_v42  ;;  %v1603_v2 = vand.u32 2147483647, %v1320_v42 }
 0x339   : > { %v1581_v48 = vsub.f32 1.0, %v1580_v50  ;;  %v1578_v0 = vmul.f32 %v10309_v27, %v1577_v26  ;;  %v2230_v47 = vsel %vm728_vm0, %v10450_v32, 0.0  ;;  %vm1599_vm15 = vweird.f32 %v1320_v42 }
 0x33a   : > { %v1606_v45 = vor.u32 1.1754944e-38, %v1605_v59  ;;  %vm1604_vm3 = vcmp.eq.f32.partialorder %v1603_v2, 8.507059e+37  ;;  %v1827_v39 = vpack.c.bf16 %v1770_v38, %v1770_v38 }
 0x33b   : > { %v1582_v55 = vmul.f32 %v8826_v40, %v1581_v48  ;;  %v1800_v51 = vpack.c.bf16 %v1578_v0, %v1578_v0 }
 0x33c   : > { %v1914_v52 = vpop.f32.mrf.mxu2  ;;  %2231 = vadd.xlane.f32.xlu1 %v2230_v47  ;;  %v2092_v50 = vunpack.c.l.b16 %v1827_v39 }
 0x33d   : > { %v1583_v41 = vadd.f32 %v8826_v40, %v1582_v55  ;;  %v2174_v27 = vadd.f32 %v9234_v10, %v1914_v52  ;;  %v2032_v37 = vunpack.c.l.b16 %v1800_v51  ;;  %2225 = vadd.xlane.f32.xlu2 %v2224_v24  ;;  %v9714_v52 = vmov 32.0  }
 0x33e   : > { %v8828_v58 = vpop.eup %8827  ;;  %v1940_v46 = vpop.f32.mrf.mxu3 }
 0x33f   : > { %v1587_v43 = vsel %vm1586_vm12, %v8826_v40, %v1583_v41  ;;  %v1595_v23 = vmul.f32 %v8828_v58, %v1320_v42  ;;  %v2033_v60 = vpack.c.b16 %v2032_v37, %v2031_v9  ;;  %v10466_v62 = vadd.f32 %v10382_v20, %v2174_v27  ;;  %v1323_v40 = vpop.xlane.xlu0 %1322  ;;  %v1772_v16 = vpop.f32.mrf.mxu1 }
 0x340   : > { %v1592_v15 = vsel %vm1589_vm13, %v1591_v35, %v1587_v43  ;;  %vm1600_vm14 = vweird.f32 %v8828_v58  ;;  %v2175_v6 = vadd.f32 %v9235_v29, %v1940_v46  ;;  %8829 = vrcp.f32 %v1323_v40 }
 0x341   : > { %v1596_v44 = vsub.f32 1.0, %v1595_v23  ;;  %8299 = vmatmul.msk.bf16.vlgmr.msra.gmra.mxu3 %vm1122_vm1, %v2033_v60  ;;  %v2233_v61 = vsel %vm728_vm0, %v10466_v62, 0.0  ;;  %v1593_v11 = vmul.f32 %v10317_v5, %v1592_v15  ;;  %vm1601_vm2 = vmor %vm1599_vm15, %vm1600_vm14  ;;  %v1828_v42 = vpack.c.bf16 %v1772_v16, %v1772_v16 }
 0x342   : > { %v10474_v13 = vadd.f32 %v10382_v20, %v2175_v6  ;;  %v1620_v47 = vand.u32 2147483648, %v1323_v40  ;;  %vm1614_vm5 = vweird.f32 %v1323_v40  ;;  %v1618_v24 = vand.u32 2147483647, %v1323_v40 }
 0x343   : > { %v1597_v34 = vmul.f32 %v8828_v58, %v1596_v44  ;;  %v1801_v21 = vpack.c.bf16 %v1593_v11, %v1593_v11 }
 0x344   : > { %v2236_v25 = vsel %vm728_vm0, %v10474_v13, 0.0  ;;  %v1621_v43 = vor.u32 1.1754944e-38, %v1620_v47  ;;  %vm1619_vm7 = vcmp.eq.f32.partialorder %v1618_v24, 8.507059e+37 }
 0x345   : > { %v1598_v3 = vadd.f32 %v8828_v58, %v1597_v34  ;;  %2234 = vadd.xlane.f32.xlu2 %v2233_v61  ;;  %v2059_v31 = vunpack.c.l.b16 %v1801_v21 }
 0x346   : > { %v8830_v53 = vpop.eup %8829 }
 0x347   : > { %v1602_v17 = vsel %vm1601_vm2, %v8828_v58, %v1598_v3  ;;  %v1610_v48 = vmul.f32 %v8830_v53, %v1323_v40  ;;  %v1775_v51 = vpop.f32.mrf.mxu1  ;;  %vm1615_vm4 = vweird.f32 %v8830_v53 }
 0x348   : > { %v1607_v56 = vsel %vm1604_vm3, %v1606_v45, %v1602_v17  ;;  %vm1616_vm6 = vmor %vm1614_vm5, %vm1615_vm4  ;;  %v1829_v37 = vpack.c.bf16 %v1775_v51, %v1775_v51 }
 0x349   : > { %v1608_v1 = vmul.f32 %v10323_v54, %v1607_v56  ;;  %v2093_v54 = vunpack.c.l.b16 %v1828_v42  ;;  %v1611_v0 = vsub.f32 1.0, %v1610_v48 }
 0x34a   : > { %v2120_v35 = vunpack.c.l.b16 %v1829_v37 }
 0x34b   : > { %v1802_v63 = vpack.c.bf16 %v1608_v1, %v1608_v1  ;;  %v2094_v26 = vpack.c.b16 %v2093_v54, %v2092_v50  ;;  %v1612_v55 = vmul.f32 %v8830_v53, %v1611_v0 }
 0x34d   : > { %v2060_v14 = vunpack.c.l.b16 %v1802_v63  ;;  %2237 = vadd.xlane.f32.xlu2 %v2236_v25  ;;  %2106 = vmatpush.bf16.msrb.mxu3 %v2094_v26  ;;  %v1613_v57 = vadd.f32 %v8830_v53, %v1612_v55 }
 0x34f   : > { %v2061_v5 = vpack.c.b16 %v2060_v14, %v2059_v31  ;;  %v1617_v33 = vsel %vm1616_vm6, %v8830_v53, %v1613_v57  ;;  %v1777_v58 = vpop.f32.mrf.mxu1 }
 0x350   : > { %v1830_v44 = vpack.c.bf16 %v1777_v58, %v1777_v58  ;;  %v1622_v60 = vsel %vm1619_vm7, %v1621_v43, %v1617_v33  ;;  %v9236_v43 = vld [vmem:[%s9948_s4 + $0x38] sm:$0xff] }
 0x351   : > { %8300 = vmatmul.msk.bf16.vlgmr.msrb.gmra.mxu2 %vm1122_vm1, %v2061_v5  ;;  %v1623_v11 = vmul.f32 %v10327_v22, %v1622_v60 }
 0x352   : > { %v2121_v34 = vunpack.c.l.b16 %v1830_v44 }
 0x353   : > { %v1803_v25 = vpack.c.bf16 %v1623_v11, %v1623_v11 }
 0x354   : > { %v2122_v29 = vpack.c.b16 %v2121_v34, %v2120_v35 }
 0x355   : > { %v2087_v39 = vunpack.c.l.b16 %v1803_v25 }
 0x356   : > { %2134 = vmatpush.bf16.msra.mxu2 %v2122_v29 }
 0x357   : > { %v1780_v21 = vpop.f32.mrf.mxu1 }
 0x358   : > { %v1831_v42 = vpack.c.bf16 %v1780_v21, %v1780_v21 }
 0x35a   : > { %v2148_v26 = vunpack.c.l.b16 %v1831_v42 }
 0x35f   : > { %v1782_v53 = vpop.f32.mrf.mxu1 }
 0x360   : > { %v1832_v54 = vpack.c.bf16 %v1782_v53, %v1782_v53 }
 0x362   : > { %v2149_v48 = vunpack.c.l.b16 %v1832_v54 }
 0x364   : > { %v2150_v57 = vpack.c.b16 %v2149_v48, %v2148_v26 }
 0x366   : > { %2162 = vmatpush.bf16.msra.mxu3 %v2150_v57 }
 0x381   : > { %v1326_v30 = vpop.xlane.xlu1 %1325 }
 0x382   : > { %8831 = vrcp.f32 %v1326_v30  ;;  %v1635_v15 = vand.u32 2147483648, %v1326_v30  ;;  %v1633_v46 = vand.u32 2147483647, %v1326_v30  ;;  %vm1629_vm9 = vweird.f32 %v1326_v30 }
 0x383   : > { %8833 = vrcp.f32 %v9714_v52 }
 0x384   : > { %v1636_v61 = vor.u32 1.1754944e-38, %v1635_v15  ;;  %vm1634_vm11 = vcmp.eq.f32.partialorder %v1633_v46, 8.507059e+37 }
 0x388   : > { %v8832_v41 = vpop.eup %8831 }
 0x389   : > { %v1625_v10 = vmul.f32 %v8832_v41, %v1326_v30  ;;  %v10480_v27 = vpop.xlane.xlu2 %1328  ;;  %v8834_v23 = vpop.eup %8833  ;;  %vm1630_vm8 = vweird.f32 %v8832_v41 }
 0x38a   : > { %8835 = vrcp.f32 %v10480_v27  ;;  %v2291_v2 = vmul.f32 32.0, %v8834_v23  ;;  %vm1631_vm10 = vmor %vm1629_vm9, %vm1630_vm8  ;;  %vm2295_vm12 = vweird.f32 %v8834_v23  ;;  %v1942_v30 = vpop.f32.mrf.mxu3  ;;  %v1650_v51 = vand.u32 2147483648, %v10480_v27 }
 0x38b   : > { %v1626_v9 = vsub.f32 1.0, %v1625_v10  ;;  %vm1644_vm14 = vweird.f32 %v10480_v27  ;;  %v1648_v52 = vand.u32 2147483647, %v10480_v27 }
 0x38c   : > { %v2292_v1 = vsub.f32 1.0, %v2291_v2 }
 0x38d   : > { %v1627_v59 = vmul.f32 %v8832_v41, %v1626_v9  ;;  %vm1649_vm2 = vcmp.eq.f32.partialorder %v1648_v52, 8.507059e+37 }
 0x38e   : > { %v2293_v5 = vmul.f32 %v8834_v23, %v2292_v1 }
 0x38f   : > { %v1628_v3 = vadd.f32 %v8832_v41, %v1627_v59 }
 0x390   : > { %v8836_v6 = vpop.eup %8835  ;;  %v2294_v50 = vadd.f32 %v8834_v23, %v2293_v5 }
 0x391   : > { %v1632_v45 = vsel %vm1631_vm10, %v8832_v41, %v1628_v3  ;;  %v1640_v56 = vmul.f32 %v8836_v6, %v10480_v27  ;;  %vm1645_vm13 = vweird.f32 %v8836_v6  ;;  %v1651_v27 = vor.u32 1.1754944e-38, %v1650_v51 }
 0x392   : > { %v1637_v17 = vsel %vm1634_vm11, %v1636_v61, %v1632_v45  ;;  %v10487_v0 = vsel %vm2295_vm12, %v8834_v23, %v2294_v50  ;;  %vm10494_vm15 = vmor %vm1644_vm14, %vm1645_vm13  ;;  %v2176_v23 = vadd.f32 %v9236_v43, %v1942_v30 }
 0x393   : > { %v1638_v63 = vmul.f32 %v10345_v28, %v1637_v17  ;;  %v1641_v14 = vsub.f32 1.0, %v1640_v56  ;;  %13879 = vst [vmem:[#allocation28_spill] sm:$0xff] %v10487_v0  ;;  %v1968_v17 = vpop.f32.mrf.mxu2 }
 0x394   : > { %v10510_v29 = vadd.f32 %v10382_v20, %v2176_v23 }
 0x395   : > { %v1804_v31 = vpack.c.bf16 %v1638_v63, %v1638_v63  ;;  %v1642_v16 = vmul.f32 %v8836_v6, %v1641_v14 }
 0x397   : > { %v2088_v38 = vunpack.c.l.b16 %v1804_v31  ;;  %v1332_v40 = vpop.xlane.xlu0 %1331  ;;  %v1643_v28 = vadd.f32 %v8836_v6, %v1642_v16 }
 0x398   : > { %8837 = vrcp.f32 %v1332_v40  ;;  %v1665_v9 = vand.u32 2147483648, %v1332_v40  ;;  %v1663_v60 = vand.u32 2147483647, %v1332_v40  ;;  %vm1659_vm4 = vweird.f32 %v1332_v40 }
 0x399   : > { %v2089_v22 = vpack.c.b16 %v2088_v38, %v2087_v39  ;;  %v1647_v37 = vsel %vm10494_vm15, %v8836_v6, %v1643_v28 }
 0x39a   : > { %v1652_v15 = vsel %vm1649_vm2, %v1651_v27, %v1647_v37  ;;  %v1666_v2 = vor.u32 1.1754944e-38, %v1665_v9  ;;  %vm1664_vm6 = vcmp.eq.f32.partialorder %v1663_v60, 8.507059e+37 }
 0x39b   : > { %8301 = vmatmul.msk.bf16.vlgmr.msrb.gmra.mxu3 %vm1122_vm1, %v2089_v22  ;;  %v1653_v45 = vmul.f32 %v10355_v8, %v1652_v15 }
 0x39d   : > { %v1805_v39 = vpack.c.bf16 %v1653_v45, %v1653_v45 }
 0x39e   : > { %v8838_v55 = vpop.eup %8837 }
 0x39f   : > { %v1655_v47 = vmul.f32 %v8838_v55, %v1332_v40  ;;  %v2220_v24 = vpop.xlane.xlu0 %2219  ;;  %v10492_v41 = vpop.xlane.xlu1 %1334  ;;  %vm1660_vm3 = vweird.f32 %v8838_v55  ;;  %v2239_v40 = vsel %vm728_vm0, %v10510_v29, 0.0  ;;  %v2115_v51 = vunpack.c.l.b16 %v1805_v39 }
 0x3a0   : > { %v2297_v10 = vmul.f32 %v10487_v0, %v2220_v24  ;;  %8839 = vrcp.f32 %v10492_v41  ;;  %vm1661_vm5 = vmor %vm1659_vm4, %vm1660_vm3  ;;  %vm1674_vm8 = vweird.f32 %v10492_v41 }
 0x3a1   : > { %v1656_v58 = vsub.f32 1.0, %v1655_v47 }
 0x3a2   : > { %v10504_v35 = vsub.f32 %v10395_v19, %v2297_v10 }
 0x3a3   : > { %v1657_v44 = vmul.f32 %v8838_v55, %v1656_v58  ;;  %v1970_v58 = vpop.f32.mrf.mxu2 }
 0x3a4   : > { %v2345_v59 = vmul.f32 %v10504_v35, %v10504_v35  ;;  %v10518_v31 = vpop.f32.mrf.mxu3 }
 0x3a5   : > { %v1658_v46 = vadd.f32 %v8838_v55, %v1657_v44 }
 0x3a6   : > { %v8840_v34 = vpop.eup %8839  ;;  %v2369_v3 = vsel %vm728_vm0, %v2345_v59, 0.0 }
 0x3a7   : > { %v1662_v19 = vsel %vm1661_vm5, %v8838_v55, %v1658_v46  ;;  %v1670_v6 = vmul.f32 %v8840_v34, %v10492_v41  ;;  %2370 = vadd.xlane.f32.xlu0 %v2369_v3  ;;  %v2229_v61 = vpop.xlane.xlu0 %2228  ;;  %v2223_v11 = vpop.xlane.xlu1 %2222  ;;  %vm1675_vm7 = vweird.f32 %v8840_v34 }
 0x3a8   : > { %v1667_v56 = vsel %vm1664_vm6, %v1666_v2, %v1662_v19  ;;  %v2300_v1 = vmul.f32 %v10487_v0, %v2229_v61  ;;  %v10515_v21 = vpop.xlane.xlu2 %1337  ;;  %v2298_v63 = vmul.f32 %v10487_v0, %v2223_v11  ;;  %vm10540_vm9 = vmor %vm1674_vm8, %vm1675_vm7  ;;  %v9239_v61 = vld [vmem:[%s9948_s4 + $0x48] sm:$0xff] }
 0x3a9   : > { %v1671_v25 = vsub.f32 1.0, %v1670_v6  ;;  %8841 = vrcp.f32 %v10515_v21  ;;  %v1668_v8 = vmul.f32 %v10384_v7, %v1667_v56  ;;  %v1680_v7 = vand.u32 2147483648, %v10492_v41 }
 0x3aa   : > { %v10522_v14 = vsub.f32 %v10427_v18, %v2300_v1  ;;  %v10525_v5 = vsub.f32 %v10407_v4, %v2298_v63  ;;  %v9237_v18 = vld [vmem:[%s9948_s4 + $0x40] sm:$0xff]  ;;  %v1678_v4 = vand.u32 2147483647, %v10492_v41  ;;  %v1695_v9 = vand.u32 2147483648, %v10515_v21 }
 0x3ab   : > { %v1672_v38 = vmul.f32 %v8840_v34, %v1671_v25  ;;  %v1806_v50 = vpack.c.bf16 %v1668_v8, %v1668_v8  ;;  %v2177_v42 = vadd.f32 %v9237_v18, %v1968_v17  ;;  %v1681_v41 = vor.u32 1.1754944e-38, %v1680_v7 }
 0x3ac   : > { %v2348_v16 = vmul.f32 %v10522_v14, %v10522_v14  ;;  %v2346_v22 = vmul.f32 %v10525_v5, %v10525_v5  ;;  %vm1679_vm10 = vcmp.eq.f32.partialorder %v1678_v4, 8.507059e+37  ;;  %v1998_v44 = vpop.f32.mrf.mxu3  ;;  %v1693_v59 = vand.u32 2147483647, %v10515_v21  ;;  %v9241_v4 = vld [vmem:[%s9948_s4 + $0x50] sm:$0xff] }
 0x3ad   : > { %v1673_v53 = vadd.f32 %v8840_v34, %v1672_v38  ;;  %v2116_v48 = vunpack.c.l.b16 %v1806_v50  ;;  %v10550_v37 = vadd.f32 %v10382_v20, %v2177_v42  ;;  %vm1689_vm12 = vweird.f32 %v10515_v21  ;;  %v9240_v50 = vld [vmem:[%s9948_s4 + $0x60] sm:$0xff] }
 0x3ae   : > { %v2378_v54 = vsel %vm728_vm0, %v2348_v16, 0.0  ;;  %v2372_v26 = vsel %vm728_vm0, %v2346_v22, 0.0  ;;  %v2178_v11 = vadd.f32 %v9239_v61, %v1970_v58  ;;  %v1696_v45 = vor.u32 1.1754944e-38, %v1695_v9  ;;  %v9243_v58 = vld [vmem:[%s9948_s4 + $0x70] sm:$0xff] }
 0x3af   : > { %v8842_v28 = vpop.eup %8841  ;;  %2240 = vadd.xlane.f32.xlu0 %v2239_v40  ;;  %2379 = vadd.xlane.f32.xlu2 %v2378_v54  ;;  %v2232_v30 = vpop.xlane.xlu1 %2231  ;;  %v1677_v57 = vsel %vm10540_vm9, %v8840_v34, %v1673_v53  ;;  %v2117_v10 = vpack.c.b16 %v2116_v48, %v2115_v51  ;;  %vm1694_vm14 = vcmp.eq.f32.partialorder %v1693_v59, 8.507059e+37 }
 0x3b0   : > { %v1685_v52 = vmul.f32 %v8842_v28, %v10515_v21  ;;  %v2226_v47 = vpop.xlane.xlu2 %2225  ;;  %2373 = vadd.xlane.f32.xlu1 %v2372_v26  ;;  %v2301_v24 = vmul.f32 %v10487_v0, %v2232_v30  ;;  %v1682_v27 = vsel %vm1679_vm10, %v1681_v41, %v1677_v57  ;;  %vm1690_vm11 = vweird.f32 %v8842_v28 }
 0x3b1   : > { %v2299_v33 = vmul.f32 %v10487_v0, %v2226_v47  ;;  %8302 = vmatmul.msk.bf16.vlgmr.msra.gmra.mxu2 %vm1122_vm1, %v2117_v10  ;;  %v1683_v6 = vmul.f32 %v10409_v49, %v1682_v27  ;;  %vm1691_vm13 = vmor %vm1689_vm12, %vm1690_vm11  ;;  %v10582_v39 = vadd.f32 %v10382_v20, %v2178_v11  ;;  %v9242_v47 = vld [vmem:[%s9948_s4 + $0x68] sm:$0xff] }
 0x3b2   : > { %v1686_v43 = vsub.f32 1.0, %v1685_v52  ;;  %v10553_v23 = vsub.f32 %v10450_v32, %v2301_v24  ;;  %v2242_v32 = vsel %vm728_vm0, %v10550_v37, 0.0 }
 0x3b3   : > { %v10557_v60 = vsub.f32 %v10453_v36, %v2299_v33  ;;  %v9238_v36 = vld [vmem:[%s9948_s4 + $0x58] sm:$0xff]  ;;  %v1807_v38 = vpack.c.bf16 %v1683_v6, %v1683_v6  ;;  %v2245_v54 = vsel %vm728_vm0, %v10582_v39, 0.0 }
 0x3b4   : > { %v1687_v15 = vmul.f32 %v8842_v28, %v1686_v43  ;;  %v2349_v46 = vmul.f32 %v10553_v23, %v10553_v23  ;;  %v2180_v3 = vadd.f32 %v9238_v36, %v1998_v44  ;;  %v2024_v25 = vpop.f32.mrf.mxu2 }
 0x3b5   : > { %v2347_v34 = vmul.f32 %v10557_v60, %v10557_v60  ;;  %v2181_v18 = vadd.f32 %v9240_v50, %v2024_v25  ;;  %v2143_v53 = vunpack.c.l.b16 %v1807_v38 }
 0x3b6   : > { %v1688_v2 = vadd.f32 %v8842_v28, %v1687_v15  ;;  %v2381_v19 = vsel %vm728_vm0, %v2349_v46, 0.0  ;;  %v10575_v49 = vadd.f32 %v10382_v20, %v2180_v3  ;;  %v8535_v46 = vld [vmem:[#allocation7 + $0x8] sm:$0xff] }
 0x3b7   : > { %2243 = vadd.xlane.f32.xlu0 %v2242_v32  ;;  %v2375_v17 = vsel %vm728_vm0, %v2347_v34, 0.0  ;;  %2382 = vadd.xlane.f32.xlu2 %v2381_v19  ;;  %v10597_v55 = vadd.f32 %v10382_v20, %v2181_v18  ;;  %v8534_v34 = vld [vmem:[#allocation7] sm:$0xff] }
 0x3b8   : > { %v1692_v56 = vsel %vm1691_vm13, %v8842_v28, %v1688_v2  ;;  %v2235_v1 = vpop.xlane.xlu2 %2234  ;;  %2376 = vadd.xlane.f32.xlu1 %v2375_v17  ;;  %v2251_v42 = vsel %vm728_vm0, %v10575_v49, 0.0  ;;  %2874 = vmatpush.bf16.msrb.mxu2 %v8535_v46 }
 0x3b9   : > { %v1697_v21 = vsel %vm1694_vm14, %v1696_v45, %v1692_v56  ;;  %v2302_v63 = vmul.f32 %v10487_v0, %v2235_v1  ;;  %v2254_v52 = vsel %vm728_vm0, %v10597_v55, 0.0 }
 0x3ba   : > { %v1698_v8 = vmul.f32 %v10434_v12, %v1697_v21  ;;  %v2179_v12 = vadd.f32 %v9241_v4, %v10518_v31 }
 0x3bb   : > { %v10579_v40 = vsub.f32 %v10466_v62, %v2302_v63 }
 0x3bc   : > { %v1808_v16 = vpack.c.bf16 %v1698_v8, %v1698_v8  ;;  %v10603_v30 = vadd.f32 %v10382_v20, %v2179_v12  ;;  %v2026_v51 = vpop.f32.mrf.mxu2  ;;  %2875 = vmatpush.bf16.msrb.mxu2 %v8534_v34 }
 0x3bd   : > { %v2350_v22 = vmul.f32 %v10579_v40, %v10579_v40  ;;  %v2182_v24 = vadd.f32 %v9242_v47, %v2026_v51 }
 0x3be   : > { %v2144_v7 = vunpack.c.l.b16 %v1808_v16  ;;  %v2248_v33 = vsel %vm728_vm0, %v10603_v30, 0.0 }
 0x3bf   : > { %v2384_v62 = vsel %vm728_vm0, %v2350_v22, 0.0  ;;  %2252 = vadd.xlane.f32.xlu2 %v2251_v42 }
 0x3c0   : > { %2385 = vadd.xlane.f32.xlu0 %v2384_v62  ;;  %v2238_v26 = vpop.xlane.xlu2 %2237  ;;  %2246 = vadd.xlane.f32.xlu1 %v2245_v54  ;;  %v2145_v48 = vpack.c.b16 %v2144_v7, %v2143_v53 }
 0x3c1   : > { %v2303_v28 = vmul.f32 %v10487_v0, %v2238_v26 }
 0x3c2   : > { %8303 = vmatmul.msk.bf16.vlgmr.msra.gmra.mxu3 %vm1122_vm1, %v2145_v48 }
 0x3c3   : > { %v10600_v31 = vsub.f32 %v10474_v13, %v2303_v28  ;;  %v10614_v13 = vadd.f32 %v10382_v20, %v2182_v24 }
 0x3c4   : > { %v2052_v10 = vpop.f32.mrf.mxu3 }
 0x3c5   : > { %v2351_v57 = vmul.f32 %v10600_v31, %v10600_v31  ;;  %v2183_v43 = vadd.f32 %v9243_v58, %v2052_v10  ;;  %v2257_v27 = vsel %vm728_vm0, %v10614_v13, 0.0 }
 0x3c7   : > { %v2387_v41 = vsel %vm728_vm0, %v2351_v57, 0.0  ;;  %2255 = vadd.xlane.f32.xlu2 %v2254_v52  ;;  %v10620_v9 = vadd.f32 %v10382_v20, %v2183_v43 }
 0x3c8   : > { %2388 = vadd.xlane.f32.xlu0 %v2387_v41  ;;  %2249 = vadd.xlane.f32.xlu1 %v2248_v33 }
 0x3c9   : > { %v2260_v44 = vsel %vm728_vm0, %v10620_v9, 0.0 }
 0x3cc   : > { %v2054_v4 = vpop.f32.mrf.mxu3 }
 0x3d0   : > { %2258 = vadd.xlane.f32.xlu0 %v2257_v27 }
 0x3d4   : > { %v2080_v27 = vpop.f32.mrf.mxu2 }
 0x3d8   : > { %2261 = vadd.xlane.f32.xlu0 %v2260_v44 }
 0x3dc   : > { %v2082_v24 = vpop.f32.mrf.mxu2 }
 0x41a   : > { %v2371_v15 = vpop.xlane.xlu0 %2370 }
 0x41b   : > { %v2441_v59 = vmul.f32 %v2371_v15, %v10487_v0 }
 0x41d   : > { %v2465_v32 = vadd.f32 1e-05, %v2441_v59 }
 0x41f   : > { %8843 = vrsqrt.f32 %v2465_v32  ;;  %vm2495_vm2 = vweird.f32 %v2465_v32 }
 0x422   : > { %v2241_v2 = vpop.xlane.xlu0 %2240  ;;  %v2380_v36 = vpop.xlane.xlu2 %2379 }
 0x423   : > { %v2304_v3 = vmul.f32 %v10487_v0, %v2241_v2  ;;  %v2444_v19 = vmul.f32 %v2380_v36, %v10487_v0  ;;  %v2374_v6 = vpop.xlane.xlu1 %2373  ;;  %v10671_v36 = vpop.f32.mrf.mxu3 }
 0x424   : > { %v2442_v61 = vmul.f32 %v2374_v6, %v10487_v0  ;;  %v10679_v6 = vld [vmem:[#allocation8 + $0x2] ss:$0 sm:$0xff] }
 0x425   : > { %v8844_v11 = vpop.eup %8843  ;;  %v10629_v45 = vsub.f32 %v10510_v29, %v2304_v3  ;;  %v10631_v17 = vadd.f32 1e-05, %v2444_v19 }
 0x426   : > { %v2490_v56 = vmul.f32 %v8844_v11, %v2465_v32  ;;  %v2466_v1 = vadd.f32 1e-05, %v2442_v61  ;;  %vm2496_vm15 = vweird.f32 %v8844_v11 }
 0x427   : > { %8845 = vrsqrt.f32 %v10631_v17  ;;  %v2352_v21 = vmul.f32 %v10629_v45, %v10629_v45  ;;  %vm10655_vm3 = vmor %vm2495_vm2, %vm2496_vm15  ;;  %vm2525_vm11 = vweird.f32 %v10631_v17 }
 0x428   : > { %v2491_v63 = vmul.f32 %v8844_v11, %v2490_v56  ;;  %8847 = vrsqrt.f32 %v2466_v1  ;;  %vm2505_vm5 = vweird.f32 %v2466_v1 }
 0x429   : > { %v2390_v25 = vsel %vm728_vm0, %v2352_v21, 0.0 }
 0x42a   : > { %v2492_v8 = vmul.f32 0.5, %v2491_v63  ;;  %v2244_v38 = vpop.xlane.xlu0 %2243  ;;  %2391 = vadd.xlane.f32.xlu1 %v2390_v25  ;;  %v2383_v16 = vpop.xlane.xlu2 %2382 }
 0x42b   : > { %v2305_v29 = vmul.f32 %v10487_v0, %v2244_v38  ;;  %v2377_v22 = vpop.xlane.xlu1 %2376  ;;  %v2445_v12 = vmul.f32 %v2383_v16, %v10487_v0 }
 0x42c   : > { %v2493_v50 = vsub.f32 1.5, %v2492_v8  ;;  %v2443_v18 = vmul.f32 %v2377_v22, %v10487_v0  ;;  %v9245_v8 = vld [vmem:[%s9948_s4 + $0x80] sm:$0xff] }
 0x42d   : > { %v10639_v42 = vpop.eup %8845  ;;  %v10642_v53 = vsub.f32 %v10550_v37, %v2305_v29  ;;  %v9244_v37 = vld [vmem:[%s9948_s4 + $0x78] sm:$0xff]  ;;  %v10653_v52 = vadd.f32 1e-05, %v2445_v12  ;;  %v2185_v38 = vadd.f32 %v9245_v8, %v2080_v27 }
 0x42e   : > { %v8848_v7 = vpop.eup %8847  ;;  %v10645_v62 = vadd.f32 1e-05, %v2443_v18  ;;  %v2494_v26 = vmul.f32 %v8844_v11, %v2493_v50  ;;  %v2520_v48 = vmul.f32 %v10639_v42, %v10631_v17  ;;  %v2184_v57 = vadd.f32 %v9244_v37, %v2054_v4 }
 0x42f   : > { %v2500_v54 = vmul.f32 %v8848_v7, %v2466_v1  ;;  %v2353_v51 = vmul.f32 %v10642_v53, %v10642_v53  ;;  %vm2506_vm4 = vweird.f32 %v8848_v7  ;;  %vm2526_vm8 = vweird.f32 %v10639_v42 }
 0x430   : > { %8849 = vrsqrt.f32 %v10645_v62  ;;  %v2498_v44 = vsel %vm10655_vm3, %v8844_v11, %v2494_v26  ;;  %v2521_v15 = vmul.f32 %v10639_v42, %v2520_v48  ;;  %v10677_v19 = vadd.f32 %v10382_v20, %v2184_v57  ;;  %vm2507_vm6 = vmor %vm2505_vm5, %vm2506_vm4 }
 0x431   : > { %v2501_v28 = vmul.f32 %v8848_v7, %v2500_v54  ;;  %v2393_v10 = vsel %vm728_vm0, %v2353_v51, 0.0  ;;  %8851 = vrsqrt.f32 %v10653_v52  ;;  %v2729_v61 = vmul.f32 %v2498_v44, %v10504_v35  ;;  %v10702_v54 = vld [vmem:[#allocation8 + $0x3] ss:$0 sm:$0xff]  ;;  %v2110_v44 = vpop.f32.mrf.mxu3  ;;  %vm10751_vm12 = vmor %vm2525_vm11, %vm2526_vm8 }
 0x432   : > { %v2253_v47 = vpop.xlane.xlu2 %2252  ;;  %2394 = vadd.xlane.f32.xlu1 %v2393_v10  ;;  %v2522_v21 = vmul.f32 0.5, %v2521_v15  ;;  %v2263_v16 = vsel %vm728_vm0, %v10677_v19, 0.0  ;;  %vm2515_vm9 = vweird.f32 %v10645_v62  ;;  %vm2535_vm3 = vweird.f32 %v10653_v52 }
 0x433   : > { %v2502_v41 = vmul.f32 0.5, %v2501_v28  ;;  %v2386_v33 = vpop.xlane.xlu0 %2385  ;;  %v2308_v58 = vmul.f32 %v10487_v0, %v2253_v47  ;;  %v2247_v43 = vpop.xlane.xlu1 %2246  ;;  %v2754_v22 = vmul.f32 %v10679_v6, %v2729_v61  ;;  %v9246_v61 = vld [vmem:[%s9948_s4 + $0x88] sm:$0xff] }
 0x434   : > { %v2446_v59 = vmul.f32 %v2386_v33, %v10487_v0  ;;  %v2306_v46 = vmul.f32 %v10487_v0, %v2247_v43  ;;  %v2523_v26 = vsub.f32 1.5, %v2522_v21  ;;  %v10719_v33 = vadd.f32 %v10382_v20, %v2185_v38  ;;  %v9247_v21 = vld [vmem:[%s9948_s4 + $0x98] sm:$0xff] }
 0x435   : > { %v2503_v32 = vsub.f32 1.5, %v2502_v41  ;;  %v10667_v34 = vsub.f32 %v10575_v49, %v2308_v58  ;;  %v10728_v43 = vadd.f32 %v10702_v54, %v2754_v22 }
 0x436   : > { %v10669_v2 = vpop.eup %8849  ;;  %v10674_v3 = vadd.f32 1e-05, %v2446_v59  ;;  %v10685_v56 = vsub.f32 %v10582_v39, %v2306_v46  ;;  %v2524_v27 = vmul.f32 %v10639_v42, %v2523_v26 }
 0x437   : > { %v2504_v11 = vmul.f32 %v8848_v7, %v2503_v32  ;;  %v2510_v49 = vmul.f32 %v10669_v2, %v10645_v62  ;;  %v2356_v25 = vmul.f32 %v10667_v34, %v10667_v34  ;;  %vm2516_vm7 = vweird.f32 %v10669_v2 }
 0x438   : > { %8853 = vrsqrt.f32 %v10674_v3  ;;  %v2354_v39 = vmul.f32 %v10685_v56, %v10685_v56  ;;  %vm10735_vm10 = vmor %vm2515_vm9, %vm2516_vm7  ;;  %vm2545_vm15 = vweird.f32 %v10674_v3 }
 0x439   : > { %v2508_v1 = vsel %vm2507_vm6, %v8848_v7, %v2504_v11  ;;  %v2511_v63 = vmul.f32 %v10669_v2, %v2510_v49  ;;  %v2402_v7 = vsel %vm728_vm0, %v2356_v25, 0.0  ;;  %v2186_v11 = vadd.f32 %v9246_v61, %v2082_v24 }
 0x43a   : > { %v2730_v35 = vmul.f32 %v2508_v1, %v10525_v5  ;;  %v2256_v29 = vpop.xlane.xlu2 %2255  ;;  %v10704_v5 = vpop.eup %8851  ;;  %2264 = vadd.xlane.f32.xlu1 %v2263_v16  ;;  %2403 = vadd.xlane.f32.xlu0 %v2402_v7  ;;  %v2396_v28 = vsel %vm728_vm0, %v2354_v39, 0.0  ;;  %v2188_v1 = vadd.f32 %v9247_v21, %v2110_v44  ;;  %v2528_v25 = vsel %vm10751_vm12, %v10639_v42, %v2524_v27 }
 0x43b   : > { %v2512_v50 = vmul.f32 0.5, %v2511_v63  ;;  %v10698_v18 = vpop.xlane.xlu0 %2388  ;;  %v2309_v4 = vmul.f32 %v10487_v0, %v2256_v29  ;;  %v2250_v12 = vpop.xlane.xlu1 %2249  ;;  %2397 = vadd.xlane.f32.xlu2 %v2396_v28  ;;  %v2530_v20 = vmul.f32 %v10704_v5, %v10653_v52  ;;  %v2266_v63 = vsel %vm728_vm0, %v10719_v33, 0.0  ;;  %v9249_v28 = vld [vmem:[%s9948_s4 + $0x90] sm:$0xff] }
 0x43c   : > { %v2755_v48 = vmul.f32 %v10679_v6, %v2730_v35  ;;  %v2307_v57 = vmul.f32 %v10487_v0, %v2250_v12  ;;  %v2136_v39 = vpop.f32.mrf.mxu2  ;;  %v2732_v7 = vmul.f32 %v2528_v25, %v10522_v14  ;;  %vm2536_vm14 = vweird.f32 %v10704_v5 }
 0x43d   : > { %v2513_v51 = vsub.f32 1.5, %v2512_v50  ;;  %v10709_v37 = vsub.f32 %v10597_v55, %v2309_v4  ;;  %v2531_v8 = vmul.f32 %v10704_v5, %v2530_v20  ;;  %v10770_v50 = vld [vmem:[#allocation8] ss:$0 sm:$0xff]  ;;  %vm2537_vm4 = vmor %vm2535_vm3, %vm2536_vm14 }
 0x43e   : > { %v10712_v47 = vpop.eup %8853  ;;  %v10716_v41 = vadd.f32 %v10702_v54, %v2755_v48  ;;  %v10725_v58 = vsub.f32 %v10603_v30, %v2307_v57  ;;  %v10773_v42 = vadd.f32 %v10770_v50, %v2188_v1  ;;  %v10779_v26 = vadd.f32 %v10770_v50, %v2186_v11  ;;  %v9250_v57 = vld [vmem:[%s9948_s4 + $0xa0] sm:$0xff]  ;;  %v9251_v1 = vld [vmem:[%s9948_s4 + $0xa8] sm:$0xff] }
 0x43f   : > { %v2514_v10 = vmul.f32 %v10669_v2, %v2513_v51  ;;  %v2540_v55 = vmul.f32 %v10712_v47, %v10674_v3  ;;  %v2357_v59 = vmul.f32 %v10709_v37, %v10709_v37  ;;  %v2532_v4 = vmul.f32 0.5, %v2531_v8 }
 0x440   : > { %v2803_v30 = vpack.c.bf16 %v10716_v41, %v10728_v43  ;;  %v2355_v62 = vmul.f32 %v10725_v58, %v10725_v58  ;;  %v2187_v51 = vadd.f32 %v9249_v28, %v10671_v36  ;;  %v2189_v24 = vadd.f32 %v9250_v57, %v2136_v39 }
 0x441   : > { %v2518_v46 = vsel %vm10735_vm10, %v10669_v2, %v2514_v10  ;;  %v2541_v32 = vmul.f32 %v10712_v47, %v2540_v55  ;;  %v2405_v2 = vsel %vm728_vm0, %v2357_v59, 0.0  ;;  %v2275_v14 = vsel %vm728_vm0, %v10773_v42, 0.0 }
 0x442   : > { %8312 = vmatmul.msk.bf16.vlgmr.msrb.gmra.mxu2 %vm728_vm0, %v2803_v30  ;;  %2267 = vadd.xlane.f32.xlu1 %v2266_v63  ;;  %v2399_v35 = vsel %vm728_vm0, %v2355_v62, 0.0  ;;  %v2731_v16 = vmul.f32 %v2518_v46, %v10557_v60  ;;  %v2757_v55 = vmul.f32 %v10679_v6, %v2732_v7  ;;  %v2533_v27 = vsub.f32 1.5, %v2532_v4 }
 0x443   : > { %v2259_v17 = vpop.xlane.xlu0 %2258  ;;  %2406 = vadd.xlane.f32.xlu0 %v2405_v2  ;;  %2400 = vadd.xlane.f32.xlu2 %v2399_v35  ;;  %v2542_v29 = vmul.f32 0.5, %v2541_v32  ;;  %v2269_v20 = vsel %vm728_vm0, %v10779_v26, 0.0  ;;  %vm2546_vm13 = vweird.f32 %v10712_v47  ;;  %v10804_v46 = vadd.f32 %v10770_v50, %v2189_v24  ;;  %v9252_v35 = vld [vmem:[%s9948_s4 + $0xb0] sm:$0xff] }
 0x444   : > { %v2310_v38 = vmul.f32 %v10487_v0, %v2259_v17  ;;  %v2756_v60 = vmul.f32 %v10679_v6, %v2731_v16  ;;  %v10801_v59 = vadd.f32 %v10702_v54, %v2757_v55  ;;  %v10807_v32 = vadd.f32 %v10770_v50, %v2187_v51  ;;  %v2138_v61 = vpop.f32.mrf.mxu2  ;;  %vm2547_vm2 = vmor %vm2545_vm15, %vm2546_vm13  ;;  %v8537_v55 = vld [vmem:[#allocation7 + $0x18] sm:$0xff] }
 0x445   : > { %v2543_v48 = vsub.f32 1.5, %v2542_v29  ;;  %v2534_v62 = vmul.f32 %v10704_v5, %v2533_v27  ;;  %v2190_v17 = vadd.f32 %v9251_v1, %v2138_v61  ;;  %v2278_v3 = vsel %vm728_vm0, %v10804_v46, 0.0  ;;  %v2164_v8 = vpop.f32.mrf.mxu3 }
 0x446   : > { %v10768_v22 = vsub.f32 %v10614_v13, %v2310_v38  ;;  %v10793_v15 = vadd.f32 %v10702_v54, %v2756_v60  ;;  %v2272_v52 = vsel %vm728_vm0, %v10807_v32, 0.0  ;;  %v2191_v16 = vadd.f32 %v9252_v35, %v2164_v8 }
 0x447   : > { %v2544_v36 = vmul.f32 %v10712_v47, %v2543_v48  ;;  %v2538_v63 = vsel %vm2537_vm4, %v10704_v5, %v2534_v62  ;;  %v10828_v2 = vadd.f32 %v10770_v50, %v2190_v17 }
 0x448   : > { %v2358_v12 = vmul.f32 %v10768_v22, %v10768_v22  ;;  %v2804_v11 = vpack.c.bf16 %v10801_v59, %v10793_v15  ;;  %v2733_v25 = vmul.f32 %v2538_v63, %v10553_v23  ;;  %v10843_v7 = vadd.f32 %v10770_v50, %v2191_v16 }
 0x449   : > { %v2548_v49 = vsel %vm2547_vm2, %v10712_v47, %v2544_v36  ;;  %v2281_v5 = vsel %vm728_vm0, %v10828_v2, 0.0  ;;  %v3029_v36 = vsel %vm1122_vm1, %v8537_v55, 0 }
 0x44a   : > { %v2408_v13 = vsel %vm728_vm0, %v2358_v12, 0.0  ;;  %v2734_v47 = vmul.f32 %v2548_v49, %v10579_v40  ;;  %v2758_v29 = vmul.f32 %v10679_v6, %v2733_v25  ;;  %v2284_v4 = vsel %vm728_vm0, %v10843_v7, 0.0  ;;  %3037 = vmatpush.bf16.xpose.msrb.mxu3 %v3029_v36 }
 0x44b   : > { %v2262_v10 = vpop.xlane.xlu0 %2261  ;;  %2409 = vadd.xlane.f32.xlu1 %v2408_v13  ;;  %2276 = vadd.xlane.f32.xlu0 %v2275_v14  ;;  %v2447_v12 = vmul.f32 %v10698_v18, %v10487_v0 }
 0x44c   : > { %v2311_v44 = vmul.f32 %v10487_v0, %v2262_v10  ;;  %2270 = vadd.xlane.f32.xlu2 %v2269_v20  ;;  %v2759_v38 = vmul.f32 %v10679_v6, %v2734_v47  ;;  %v10840_v40 = vadd.f32 %v10702_v54, %v2758_v29 }
 0x44d   : > { %v2471_v60 = vadd.f32 1e-05, %v2447_v12  ;;  %v2166_v36 = vpop.f32.mrf.mxu3 }
 0x44e   : > { %v10798_v30 = vsub.f32 %v10620_v9, %v2311_v44  ;;  %v10837_v39 = vadd.f32 %v10702_v54, %v2759_v38 }
 0x44f   : > { %8855 = vrsqrt.f32 %v2471_v60  ;;  %vm2555_vm6 = vweird.f32 %v2471_v60 }
 0x450   : > { %v2359_v9 = vmul.f32 %v10798_v30, %v10798_v30  ;;  %v2805_v23 = vpack.c.bf16 %v10837_v39, %v10840_v40 }
 0x452   : > { %v2411_v21 = vsel %vm728_vm0, %v2359_v9, 0.0  ;;  %8313 = vmatmul.msk.bf16.gmra.mxu2 %vm728_vm0, %v2804_v11 }
 0x453   : > { %2412 = vadd.xlane.f32.xlu1 %v2411_v21  ;;  %2279 = vadd.xlane.f32.xlu0 %v2278_v3 }
 0x454   : > { %2273 = vadd.xlane.f32.xlu2 %v2272_v52 }
 0x455   : > { %v8856_v48 = vpop.eup %8855 }
 0x456   : > { %v2550_v13 = vmul.f32 %v8856_v48, %v2471_v60  ;;  %vm2556_vm5 = vweird.f32 %v8856_v48 }
 0x457   : > { %vm2557_vm7 = vmor %vm2555_vm6, %vm2556_vm5 }
 0x458   : > { %v2551_v28 = vmul.f32 %v8856_v48, %v2550_v13 }
 0x45a   : > { %v2552_v10 = vmul.f32 0.5, %v2551_v28 }
 0x45b   : > { %2282 = vadd.xlane.f32.xlu1 %v2281_v5 }
 0x45c   : > { %v2553_v14 = vsub.f32 1.5, %v2552_v10 }
 0x45e   : > { %v2554_v18 = vmul.f32 %v8856_v48, %v2553_v14 }
 0x460   : > { %v2558_v11 = vsel %vm2557_vm7, %v8856_v48, %v2554_v18 }
 0x461   : > { %v2735_v3 = vmul.f32 %v2558_v11, %v10600_v31 }
 0x462   : > { %8314 = vmatmul.msk.bf16.gmra.mxu2 %vm728_vm0, %v2805_v23  ;;  %v8536_v23 = vld [vmem:[#allocation7 + $0x10] sm:$0xff] }
 0x463   : > { %2285 = vadd.xlane.f32.xlu1 %v2284_v4  ;;  %v2760_v60 = vmul.f32 %v10679_v6, %v2735_v3 }
 0x465   : > { %v10885_v14 = vadd.f32 %v10702_v54, %v2760_v60 }
 0x49d   : > { %v2392_v51 = vpop.xlane.xlu1 %2391 }
 0x49e   : > { %v2448_v57 = vmul.f32 %v2392_v51, %v10487_v0 }
 0x4a0   : > { %v2472_v24 = vadd.f32 1e-05, %v2448_v57 }
 0x4a2   : > { %8857 = vrsqrt.f32 %v2472_v24  ;;  %vm2565_vm9 = vweird.f32 %v2472_v24 }
 0x4a5   : > { %v2395_v27 = vpop.xlane.xlu1 %2394 }
 0x4a6   : > { %v2449_v20 = vmul.f32 %v2395_v27, %v10487_v0 }
 0x4a8   : > { %v8858_v44 = vpop.eup %8857  ;;  %v10855_v61 = vadd.f32 1e-05, %v2449_v20 }
 0x4a9   : > { %v2560_v62 = vmul.f32 %v8858_v44, %v2472_v24  ;;  %vm2566_vm8 = vweird.f32 %v8858_v44 }
 0x4aa   : > { %8859 = vrsqrt.f32 %v10855_v61  ;;  %vm2567_vm10 = vmor %vm2565_vm9, %vm2566_vm8  ;;  %vm2575_vm12 = vweird.f32 %v10855_v61 }
 0x4ab   : > { %v2561_v9 = vmul.f32 %v8858_v44, %v2560_v62 }
 0x4ad   : > { %v2562_v49 = vmul.f32 0.5, %v2561_v9  ;;  %v2404_v1 = vpop.xlane.xlu0 %2403  ;;  %v2265_v17 = vpop.xlane.xlu1 %2264 }
 0x4ae   : > { %v2452_v63 = vmul.f32 %v2404_v1, %v10487_v0  ;;  %v2398_v52 = vpop.xlane.xlu2 %2397  ;;  %v2312_v47 = vmul.f32 %v10487_v0, %v2265_v17  ;;  %v9253_v17 = vld [vmem:[%s9948_s4 + $0xb8] sm:$0xff] }
 0x4af   : > { %v2563_v21 = vsub.f32 1.5, %v2562_v49  ;;  %v2450_v8 = vmul.f32 %v2398_v52, %v10487_v0  ;;  %v2192_v3 = vadd.f32 %v9253_v17, %v2166_v36 }
 0x4b0   : > { %v10862_v38 = vpop.eup %8859  ;;  %v10864_v35 = vadd.f32 1e-05, %v2452_v63  ;;  %v10867_v16 = vsub.f32 %v10677_v19, %v2312_v47  ;;  %v3026_v19 = vsel %vm1122_vm1, %v8536_v23, 0 }
 0x4b1   : > { %v2564_v25 = vmul.f32 %v8858_v44, %v2563_v21  ;;  %v2570_v31 = vmul.f32 %v10862_v38, %v10855_v61  ;;  %v10871_v29 = vadd.f32 1e-05, %v2450_v8  ;;  %3038 = vmatpush.bf16.xpose.msrb.mxu3 %v3026_v19  ;;  %vm2576_vm11 = vweird.f32 %v10862_v38 }
 0x4b2   : > { %8861 = vrsqrt.f32 %v10864_v35  ;;  %v2360_v12 = vmul.f32 %v10867_v16, %v10867_v16  ;;  %vm10915_vm13 = vmor %vm2575_vm12, %vm2576_vm11  ;;  %vm2605_vm6 = vweird.f32 %v10864_v35 }
 0x4b3   : > { %v2568_v5 = vsel %vm2567_vm10, %v8858_v44, %v2564_v25  ;;  %v2571_v48 = vmul.f32 %v10862_v38, %v2570_v31  ;;  %8863 = vrsqrt.f32 %v10871_v29  ;;  %vm2585_vm15 = vweird.f32 %v10871_v29 }
 0x4b4   : > { %v2736_v4 = vmul.f32 %v2568_v5, %v10629_v45  ;;  %v2414_v13 = vsel %vm728_vm0, %v2360_v12, 0.0 }
 0x4b5   : > { %v2572_v51 = vmul.f32 0.5, %v2571_v48  ;;  %2415 = vadd.xlane.f32.xlu2 %v2414_v13  ;;  %v2268_v57 = vpop.xlane.xlu1 %2267  ;;  %v10927_v13 = vadd.f32 %v10770_v50, %v2192_v3 }
 0x4b6   : > { %v2761_v28 = vmul.f32 %v10679_v6, %v2736_v4  ;;  %v2407_v45 = vpop.xlane.xlu0 %2406  ;;  %v2401_v24 = vpop.xlane.xlu2 %2400  ;;  %v2313_v10 = vmul.f32 %v10487_v0, %v2268_v57  ;;  %v650_v57 = vld [vmem:[#allocation7 + $0x20] sm:$0xf] }
 0x4b7   : > { %v2573_v27 = vsub.f32 1.5, %v2572_v51  ;;  %v2451_v44 = vmul.f32 %v2401_v24, %v10487_v0  ;;  %v2453_v49 = vmul.f32 %v2407_v45, %v10487_v0  ;;  %v2287_v3 = vsel %vm728_vm0, %v10927_v13, 0.0 }
 0x4b8   : > { %v10888_v55 = vadd.f32 %v10702_v54, %v2761_v28  ;;  %v10891_v20 = vpop.eup %8861  ;;  %v10894_v18 = vsub.f32 %v10719_v33, %v2313_v10 }
 0x4b9   : > { %v8864_v9 = vpop.eup %8863  ;;  %v2600_v11 = vmul.f32 %v10891_v20, %v10864_v35  ;;  %v10901_v21 = vadd.f32 1e-05, %v2451_v44  ;;  %v2574_v33 = vmul.f32 %v10862_v38, %v2573_v27  ;;  %v10913_v25 = vadd.f32 1e-05, %v2453_v49 }
 0x4ba   : > { %v2806_v62 = vpack.c.bf16 %v10888_v55, %v10885_v14  ;;  %v2580_v1 = vmul.f32 %v8864_v9, %v10871_v29  ;;  %v2361_v52 = vmul.f32 %v10894_v18, %v10894_v18  ;;  %vm2586_vm14 = vweird.f32 %v8864_v9 }
 0x4bb   : > { %8865 = vrsqrt.f32 %v10901_v21  ;;  %v2601_v47 = vmul.f32 %v10891_v20, %v2600_v11  ;;  %v2578_v61 = vsel %vm10915_vm13, %v10862_v38, %v2574_v33  ;;  %vm2587_vm2 = vmor %vm2585_vm15, %vm2586_vm14  ;;  %v651_v44 = vunpack.c.l.bf16 %v650_v57 }
 0x4bc   : > { %8315 = vmatmul.msk.bf16.gmra.mxu2 %vm728_vm0, %v2806_v62  ;;  %v2581_v63 = vmul.f32 %v8864_v9, %v2580_v1  ;;  %v2417_v60 = vsel %vm728_vm0, %v2361_v52, 0.0  ;;  %8867 = vrsqrt.f32 %v10913_v25  ;;  %v2737_v50 = vmul.f32 %v2578_v61, %v10642_v53 }
 0x4bd   : > { %2418 = vadd.xlane.f32.xlu2 %v2417_v60  ;;  %v2602_v10 = vmul.f32 0.5, %v2601_v47  ;;  %vm2606_vm3 = vweird.f32 %v10891_v20  ;;  %vm2595_vm4 = vweird.f32 %v10901_v21  ;;  %vm2615_vm13 = vweird.f32 %v10913_v25 }
 0x4be   : > { %v2277_v8 = vpop.xlane.xlu0 %2276  ;;  %v2410_v5 = vpop.xlane.xlu1 %2409  ;;  %v2582_v23 = vmul.f32 0.5, %v2581_v63  ;;  %vm2607_vm8 = vmor %vm2605_vm6, %vm2606_vm3 }
 0x4bf   : > { %v2316_v4 = vmul.f32 %v10487_v0, %v2277_v8  ;;  %v2271_v12 = vpop.xlane.xlu2 %2270  ;;  %v2454_v48 = vmul.f32 %v2410_v5, %v10487_v0  ;;  %v2603_v49 = vsub.f32 1.5, %v2602_v10  ;;  %v2762_v8 = vmul.f32 %v10679_v6, %v2737_v50 }
 0x4c0   : > { %v2314_v19 = vmul.f32 %v10487_v0, %v2271_v12  ;;  %v2583_v28 = vsub.f32 1.5, %v2582_v23 }
 0x4c1   : > { %v10930_v51 = vsub.f32 %v10773_v42, %v2316_v4  ;;  %v10932_v45 = vadd.f32 1e-05, %v2454_v48  ;;  %v10934_v24 = vpop.eup %8865  ;;  %v10981_v57 = vadd.f32 %v10702_v54, %v2762_v8 }
 0x4c2   : > { %v10939_v38 = vsub.f32 %v10779_v26, %v2314_v19  ;;  %v2584_v27 = vmul.f32 %v8864_v9, %v2583_v28  ;;  %v2590_v42 = vmul.f32 %v10934_v24, %v10901_v21  ;;  %v10959_v5 = vpop.eup %8867  ;;  %vm2596_vm5 = vweird.f32 %v10934_v24 }
 0x4c3   : > { %8869 = vrsqrt.f32 %v10932_v45  ;;  %v2364_v36 = vmul.f32 %v10930_v51, %v10930_v51  ;;  %v2604_v19 = vmul.f32 %v10891_v20, %v2603_v49  ;;  %v2610_v21 = vmul.f32 %v10959_v5, %v10913_v25  ;;  %vm10994_vm7 = vmor %vm2595_vm4, %vm2596_vm5 }
 0x4c4   : > { %v2588_v62 = vsel %vm2587_vm2, %v8864_v9, %v2584_v27  ;;  %v2591_v29 = vmul.f32 %v10934_v24, %v2590_v42  ;;  %v2362_v26 = vmul.f32 %v10939_v38, %v10939_v38  ;;  %vm2616_vm10 = vweird.f32 %v10959_v5 }
 0x4c5   : > { %v2877_v11 = vpop.f32.mrf.mxu2  ;;  %v2738_v53 = vmul.f32 %v2588_v62, %v10685_v56  ;;  %v2426_v1 = vsel %vm728_vm0, %v2364_v36, 0.0  ;;  %v10961_v56 = vperm.slane %v651_v44, 0  ;;  %2288 = vadd.xlane.f32.xlu2 %v2287_v3  ;;  %vm2625_vm11 = vweird.f32 %v10932_v45  ;;  %vm2617_vm14 = vmor %vm2615_vm13, %vm2616_vm10 }
 0x4c6   : > { %v2280_v17 = vpop.xlane.xlu0 %2279  ;;  %v10954_v33 = vpop.xlane.xlu1 %2412  ;;  %v2592_v63 = vmul.f32 0.5, %v2591_v29  ;;  %2427 = vadd.xlane.f32.xlu1 %v2426_v1  ;;  %v2420_v52 = vsel %vm728_vm0, %v2362_v26, 0.0 }
 0x4c7   : > { %v2317_v9 = vmul.f32 %v10487_v0, %v2280_v17  ;;  %v2274_v47 = vpop.xlane.xlu2 %2273  ;;  %2421 = vadd.xlane.f32.xlu0 %v2420_v52  ;;  %v2763_v23 = vmul.f32 %v10679_v6, %v2738_v53  ;;  %v2878_v10 = vadd.f32 %v2877_v11, %v10961_v56  ;;  %v2608_v53 = vsel %vm2607_vm8, %v10891_v20, %v2604_v19 }
 0x4c8   : > { %v2315_v31 = vmul.f32 %v10487_v0, %v2274_v47  ;;  %v2593_v12 = vsub.f32 1.5, %v2592_v63  ;;  %v2740_v47 = vmul.f32 %v2608_v53, %v10667_v34 }
 0x4c9   : > { %v10965_v4 = vpop.eup %8869  ;;  %v10969_v60 = vsub.f32 %v10804_v46, %v2317_v9  ;;  %v10984_v46 = vadd.f32 %v10702_v54, %v2763_v23  ;;  %v2937_v1 = vmax.f32 %v2878_v10, 0.0 }
 0x4ca   : > { %v2620_v48 = vmul.f32 %v10965_v4, %v10932_v45  ;;  %v10976_v61 = vsub.f32 %v10807_v32, %v2315_v31  ;;  %v2594_v28 = vmul.f32 %v10934_v24, %v2593_v12  ;;  %v2765_v19 = vmul.f32 %v10679_v6, %v2740_v47 }
 0x4cb   : > { %v2365_v32 = vmul.f32 %v10969_v60, %v10969_v60  ;;  %v2807_v44 = vpack.c.bf16 %v10984_v46, %v10981_v57  ;;  %vm2626_vm9 = vweird.f32 %v10965_v4 }
 0x4cc   : > { %v2363_v50 = vmul.f32 %v10976_v61, %v10976_v61  ;;  %v2598_v36 = vsel %vm10994_vm7, %v10934_v24, %v2594_v28  ;;  %v2621_v62 = vmul.f32 %v10965_v4, %v2620_v48  ;;  %v2611_v24 = vmul.f32 %v10959_v5, %v2610_v21  ;;  %vm2627_vm12 = vmor %vm2625_vm11, %vm2626_vm9 }
 0x4cd   : > { %v2879_v42 = vpop.f32.mrf.mxu2  ;;  %8316 = vmatmul.msk.bf16.gmra.mxu2 %vm728_vm0, %v2807_v44  ;;  %v2429_v35 = vsel %vm728_vm0, %v2365_v32, 0.0  ;;  %v2739_v3 = vmul.f32 %v2598_v36, %v10725_v58 }
 0x4ce   : > { %v2880_v29 = vadd.f32 %v2879_v42, %v10961_v56  ;;  %v2423_v11 = vsel %vm728_vm0, %v2363_v50, 0.0  ;;  %v2283_v26 = vpop.xlane.xlu1 %2282  ;;  %2430 = vadd.xlane.f32.xlu2 %v2429_v35  ;;  %v2622_v9 = vmul.f32 0.5, %v2621_v62  ;;  %v2612_v31 = vmul.f32 0.5, %v2611_v24 }
 0x4cf   : > { %v2318_v49 = vmul.f32 %v10487_v0, %v2283_v26  ;;  %2424 = vadd.xlane.f32.xlu0 %v2423_v11  ;;  %v2764_v12 = vmul.f32 %v10679_v6, %v2739_v3  ;;  %v11034_v50 = vadd.f32 %v10702_v54, %v2765_v19 }
 0x4d0   : > { %v2938_v17 = vmax.f32 %v2880_v29, 0.0  ;;  %v2623_v48 = vsub.f32 1.5, %v2622_v9  ;;  %v2613_v28 = vsub.f32 1.5, %v2612_v31 }
 0x4d1   : > { %v11015_v63 = vsub.f32 %v10828_v2, %v2318_v49  ;;  %v11029_v21 = vadd.f32 %v10702_v54, %v2764_v12 }
 0x4d2   : > { %v2961_v52 = vpack.c.bf16 %v2938_v17, %v2937_v1  ;;  %v2624_v10 = vmul.f32 %v10965_v4, %v2623_v48  ;;  %v2614_v27 = vmul.f32 %v10959_v5, %v2613_v28 }
 0x4d3   : > { %v2366_v8 = vmul.f32 %v11015_v63, %v11015_v63  ;;  %v2808_v44 = vpack.c.bf16 %v11034_v50, %v11029_v21 }
 0x4d4   : > { %8332 = vmatmul.msk.bf16.vlgmr.msrb.gmra.mxu3 %vm1122_vm1, %v2961_v52  ;;  %v2628_v62 = vsel %vm2627_vm12, %v10965_v4, %v2624_v10  ;;  %v2618_v45 = vsel %vm2617_vm14, %v10959_v5, %v2614_v27 }
 0x4d5   : > { %v2882_v20 = vpop.f32.mrf.mxu2  ;;  %v2432_v23 = vsel %vm728_vm0, %v2366_v8, 0.0  ;;  %v2742_v35 = vmul.f32 %v2628_v62, %v10768_v22  ;;  %v2741_v53 = vmul.f32 %v2618_v45, %v10709_v37  ;;  %v2455_v8 = vmul.f32 %v10954_v33, %v10487_v0 }
 0x4d6   : > { %v2286_v58 = vpop.xlane.xlu1 %2285 }
 0x4d7   : > { %v2319_v2 = vmul.f32 %v10487_v0, %v2286_v58  ;;  %2433 = vadd.xlane.f32.xlu0 %v2432_v23  ;;  %v2767_v4 = vmul.f32 %v10679_v6, %v2742_v35  ;;  %v2766_v24 = vmul.f32 %v10679_v6, %v2741_v53  ;;  %v2479_v31 = vadd.f32 1e-05, %v2455_v8 }
 0x4d9   : > { %v11026_v34 = vsub.f32 %v10843_v7, %v2319_v2  ;;  %v2883_v7 = vadd.f32 %v2882_v20, %v10961_v56  ;;  %v11056_v1 = vadd.f32 %v10702_v54, %v2767_v4  ;;  %v11059_v17 = vadd.f32 %v10702_v54, %v2766_v24 }
 0x4da   : > { %8871 = vrsqrt.f32 %v2479_v31  ;;  %vm2635_vm2 = vweird.f32 %v2479_v31 }
 0x4db   : > { %v2367_v32 = vmul.f32 %v11026_v34, %v11026_v34  ;;  %v2939_v11 = vmax.f32 %v2883_v7, 0.0  ;;  %v2809_v22 = vpack.c.bf16 %v11056_v1, %v11059_v17 }
 0x4dd   : > { %v2884_v42 = vpop.f32.mrf.mxu2  ;;  %v2435_v36 = vsel %vm728_vm0, %v2367_v32, 0.0  ;;  %8317 = vmatmul.msk.bf16.gmra.mxu2 %vm728_vm0, %v2808_v44 }
 0x4de   : > { %v2885_v29 = vadd.f32 %v2884_v42, %v10961_v56  ;;  %2436 = vadd.xlane.f32.xlu1 %v2435_v36 }
 0x4e0   : > { %v2940_v26 = vmax.f32 %v2885_v29, 0.0  ;;  %v8872_v20 = vpop.eup %8871 }
 0x4e1   : > { %v2630_v23 = vmul.f32 %v8872_v20, %v2479_v31  ;;  %vm2636_vm15 = vweird.f32 %v8872_v20 }
 0x4e2   : > { %v2962_v49 = vpack.c.bf16 %v2940_v26, %v2939_v11  ;;  %vm2637_vm4 = vmor %vm2635_vm2, %vm2636_vm15 }
 0x4e3   : > { %v2631_v2 = vmul.f32 %v8872_v20, %v2630_v23 }
 0x4e4   : > { %8333 = vmatmul.msk.bf16.gmra.mxu3 %vm1122_vm1, %v2962_v49 }
 0x4e5   : > { %v2887_v25 = vpop.f32.mrf.mxu2  ;;  %v2632_v19 = vmul.f32 0.5, %v2631_v2 }
 0x4e6   : > { %v2888_v5 = vadd.f32 %v2887_v25, %v10961_v56 }
 0x4e7   : > { %v2633_v27 = vsub.f32 1.5, %v2632_v19 }
 0x4e8   : > { %v2941_v9 = vmax.f32 %v2888_v5, 0.0 }
 0x4e9   : > { %v2634_v33 = vmul.f32 %v8872_v20, %v2633_v27 }
 0x4eb   : > { %v2638_v53 = vsel %vm2637_vm4, %v8872_v20, %v2634_v33 }
 0x4ed   : > { %v2889_v3 = vpop.f32.mrf.mxu2  ;;  %8318 = vmatmul.msk.bf16.gmra.mxu2 %vm728_vm0, %v2809_v22 }
 0x4ee   : > { %v2890_v37 = vadd.f32 %v2889_v3, %v10961_v56 }
 0x4f0   : > { %v2942_v52 = vmax.f32 %v2890_v37, 0.0 }
 0x4f2   : > { %v2963_v47 = vpack.c.bf16 %v2942_v52, %v2941_v9  ;;  %v2743_v52 = vmul.f32 %v2638_v53, %v10798_v30 }
 0x4f4   : > { %8334 = vmatmul.msk.bf16.gmra.mxu3 %vm1122_vm1, %v2963_v47  ;;  %v2768_v2 = vmul.f32 %v10679_v6, %v2743_v52 }
 0x528   : > { %v2416_v12 = vpop.xlane.xlu2 %2415 }
 0x529   : > { %v2456_v48 = vmul.f32 %v2416_v12, %v10487_v0 }
 0x52b   : > { %v2480_v58 = vadd.f32 1e-05, %v2456_v48 }
 0x52d   : > { %8873 = vrsqrt.f32 %v2480_v58  ;;  %vm2645_vm5 = vweird.f32 %v2480_v58 }
 0x530   : > { %v2419_v28 = vpop.xlane.xlu2 %2418 }
 0x531   : > { %v2457_v32 = vmul.f32 %v2419_v28, %v10487_v0 }
 0x533   : > { %v8874_v10 = vpop.eup %8873  ;;  %v2481_v42 = vadd.f32 1e-05, %v2457_v32 }
 0x534   : > { %v2640_v7 = vmul.f32 %v8874_v10, %v2480_v58  ;;  %vm2646_vm3 = vweird.f32 %v8874_v10 }
 0x535   : > { %8875 = vrsqrt.f32 %v2481_v42  ;;  %vm2647_vm6 = vmor %vm2645_vm5, %vm2646_vm3  ;;  %vm2655_vm8 = vweird.f32 %v2481_v42 }
 0x536   : > { %v2641_v44 = vmul.f32 %v8874_v10, %v2640_v7 }
 0x538   : > { %v2642_v36 = vmul.f32 0.5, %v2641_v44  ;;  %v2289_v11 = vpop.xlane.xlu2 %2288 }
 0x539   : > { %v2428_v62 = vpop.xlane.xlu1 %2427  ;;  %v2320_v49 = vmul.f32 %v10487_v0, %v2289_v11 }
 0x53a   : > { %v2643_v29 = vsub.f32 1.5, %v2642_v36  ;;  %v2422_v45 = vpop.xlane.xlu0 %2421  ;;  %v2460_v26 = vmul.f32 %v2428_v62, %v10487_v0  ;;  %v11097_v62 = vadd.f32 %v10702_v54, %v2768_v2 }
 0x53b   : > { %v2458_v35 = vmul.f32 %v2422_v45, %v10487_v0  ;;  %v8876_v24 = vpop.eup %8875  ;;  %v11077_v3 = vsub.f32 %v10927_v13, %v2320_v49 }
 0x53c   : > { %v2644_v25 = vmul.f32 %v8874_v10, %v2643_v29  ;;  %v11074_v4 = vadd.f32 1e-05, %v2460_v26  ;;  %v2650_v9 = vmul.f32 %v8876_v24, %v2481_v42  ;;  %vm2656_vm7 = vweird.f32 %v8876_v24 }
 0x53d   : > { %v2482_v5 = vadd.f32 1e-05, %v2458_v35  ;;  %v2368_v31 = vmul.f32 %v11077_v3, %v11077_v3  ;;  %vm2657_vm9 = vmor %vm2655_vm8, %vm2656_vm7 }
 0x53e   : > { %v2648_v37 = vsel %vm2647_vm6, %v8874_v10, %v2644_v25  ;;  %8877 = vrsqrt.f32 %v11074_v4  ;;  %v2651_v8 = vmul.f32 %v8876_v24, %v2650_v9  ;;  %vm2685_vm3 = vweird.f32 %v11074_v4 }
 0x53f   : > { %v2892_v22 = vpop.f32.mrf.mxu2  ;;  %v2744_v47 = vmul.f32 %v2648_v37, %v10867_v16  ;;  %8879 = vrsqrt.f32 %v2482_v5  ;;  %v2438_v13 = vsel %vm728_vm0, %v2368_v31, 0.0  ;;  %vm2665_vm11 = vweird.f32 %v2482_v5 }
 0x540   : > { %v2652_v23 = vmul.f32 0.5, %v2651_v8  ;;  %2439 = vadd.xlane.f32.xlu2 %v2438_v13  ;;  %v2893_v19 = vadd.f32 %v2892_v22, %v10961_v56 }
 0x541   : > { %v2769_v20 = vmul.f32 %v10679_v6, %v2744_v47  ;;  %v2431_v58 = vpop.xlane.xlu2 %2430 }
 0x542   : > { %v2425_v12 = vpop.xlane.xlu0 %2424  ;;  %v2653_v16 = vsub.f32 1.5, %v2652_v23  ;;  %v2461_v33 = vmul.f32 %v2431_v58, %v10487_v0  ;;  %v2943_v11 = vmax.f32 %v2893_v19, 0.0 }
 0x543   : > { %v2459_v48 = vmul.f32 %v2425_v12, %v10487_v0  ;;  %v11092_v27 = vadd.f32 %v10702_v54, %v2769_v20 }
 0x544   : > { %v11088_v30 = vpop.eup %8877  ;;  %v2654_v7 = vmul.f32 %v8876_v24, %v2653_v16  ;;  %v11104_v25 = vadd.f32 1e-05, %v2461_v33 }
 0x545   : > { %v8880_v28 = vpop.eup %8879  ;;  %v2483_v10 = vadd.f32 1e-05, %v2459_v48  ;;  %v2680_v45 = vmul.f32 %v11088_v30, %v11074_v4  ;;  %v2810_v35 = vpack.c.bf16 %v11092_v27, %v11097_v62  ;;  %vm2686_vm14 = vweird.f32 %v11088_v30 }
 0x546   : > { %v2660_v44 = vmul.f32 %v8880_v28, %v2482_v5  ;;  %v2658_v49 = vsel %vm2657_vm9, %v8876_v24, %v2654_v7  ;;  %vm2666_vm10 = vweird.f32 %v8880_v28  ;;  %vm2687_vm4 = vmor %vm2685_vm3, %vm2686_vm14  ;;  %vm2695_vm9 = vweird.f32 %v11104_v25 }
 0x547   : > { %v2894_v32 = vpop.f32.mrf.mxu2  ;;  %8881 = vrsqrt.f32 %v2483_v10  ;;  %8319 = vmatmul.msk.bf16.gmra.mxu2 %vm728_vm0, %v2810_v35  ;;  %v2681_v52 = vmul.f32 %v11088_v30, %v2680_v45  ;;  %v2745_v8 = vmul.f32 %v2658_v49, %v10894_v18  ;;  %vm2667_vm12 = vmor %vm2665_vm11, %vm2666_vm10  ;;  %vm2675_vm15 = vweird.f32 %v2483_v10 }
 0x548   : > { %v2895_v36 = vadd.f32 %v2894_v32, %v10961_v56  ;;  %v2661_v29 = vmul.f32 %v8880_v28, %v2660_v44  ;;  %8883 = vrsqrt.f32 %v11104_v25 }
 0x549   : > { %v2682_v12 = vmul.f32 0.5, %v2681_v52  ;;  %v2770_v2 = vmul.f32 %v10679_v6, %v2745_v8  ;;  %v11144_v8 = vld [vmem:[#allocation8 + $0x1] ss:$0 sm:$0xff] }
 0x54a   : > { %v2944_v26 = vmax.f32 %v2895_v36, 0.0  ;;  %v2662_v53 = vmul.f32 0.5, %v2661_v29  ;;  %v2434_v22 = vpop.xlane.xlu0 %2433 }
 0x54b   : > { %v2462_v37 = vmul.f32 %v2434_v22, %v10487_v0  ;;  %v2683_v5 = vsub.f32 1.5, %v2682_v12  ;;  %v11123_v44 = vadd.f32 %v10702_v54, %v2770_v2 }
 0x54c   : > { %v2964_v42 = vpack.c.bf16 %v2944_v26, %v2943_v11  ;;  %v2663_v9 = vsub.f32 1.5, %v2662_v53 }
 0x54d   : > { %v8882_v47 = vpop.eup %8881  ;;  %v11111_v31 = vadd.f32 1e-05, %v2462_v37  ;;  %v2684_v45 = vmul.f32 %v11088_v30, %v2683_v5 }
 0x54e   : > { %8335 = vmatmul.msk.bf16.gmra.mxu3 %vm1122_vm1, %v2964_v42  ;;  %v2664_v24 = vmul.f32 %v8880_v28, %v2663_v9  ;;  %v2670_v20 = vmul.f32 %v8882_v47, %v2483_v10  ;;  %v11118_v19 = vpop.eup %8883  ;;  %vm2676_vm13 = vweird.f32 %v8882_v47 }
 0x54f   : > { %8885 = vrsqrt.f32 %v11111_v31  ;;  %v2690_v11 = vmul.f32 %v11118_v19, %v11104_v25  ;;  %vm2677_vm2 = vmor %vm2675_vm15, %vm2676_vm13  ;;  %v2688_v22 = vsel %vm2687_vm4, %v11088_v30, %v2684_v45  ;;  %vm2696_vm6 = vweird.f32 %v11118_v19 }
 0x550   : > { %v2668_v23 = vsel %vm2667_vm12, %v8880_v28, %v2664_v24  ;;  %v2671_v13 = vmul.f32 %v8882_v47, %v2670_v20  ;;  %v2897_v58 = vpop.f32.mrf.mxu2  ;;  %v2748_v20 = vmul.f32 %v2688_v22, %v10930_v51  ;;  %vm2705_vm7 = vweird.f32 %v11111_v31  ;;  %vm2697_vm10 = vmor %vm2695_vm9, %vm2696_vm6 }
 0x551   : > { %v2746_v48 = vmul.f32 %v2668_v23, %v10939_v38  ;;  %v2898_v26 = vadd.f32 %v2897_v58, %v10961_v56  ;;  %v2691_v10 = vmul.f32 %v11118_v19, %v2690_v11 }
 0x552   : > { %v2672_v16 = vmul.f32 0.5, %v2671_v13 }
 0x553   : > { %v2771_v18 = vmul.f32 %v10679_v6, %v2746_v48  ;;  %v2945_v37 = vmax.f32 %v2898_v26, 0.0  ;;  %v2692_v12 = vmul.f32 0.5, %v2691_v10 }
 0x554   : > { %v2673_v32 = vsub.f32 1.5, %v2672_v16  ;;  %v11156_v16 = vld [vmem:[#allocation8 + $0x2] ss:$0 sm:$0xff] }
 0x555   : > { %v11120_v7 = vpop.eup %8885  ;;  %v11126_v28 = vadd.f32 %v10702_v54, %v2771_v18  ;;  %v2773_v51 = vmul.f32 %v11156_v16, %v2748_v20  ;;  %v2693_v18 = vsub.f32 1.5, %v2692_v12 }
 0x556   : > { %v2674_v33 = vmul.f32 %v8882_v47, %v2673_v32  ;;  %v2700_v38 = vmul.f32 %v11120_v7, %v11111_v31  ;;  %vm2706_vm5 = vweird.f32 %v11120_v7 }
 0x557   : > { %v3040_v36 = vpop.f32.mrf.mxu3  ;;  %v2811_v29 = vpack.c.bf16 %v11126_v28, %v11123_v44  ;;  %v11165_v32 = vadd.f32 %v10702_v54, %v2773_v51  ;;  %vm2707_vm8 = vmor %vm2705_vm7, %vm2706_vm5 }
 0x558   : > { %v2899_v35 = vpop.f32.mrf.mxu2  ;;  %v2678_v49 = vsel %vm2677_vm2, %v8882_v47, %v2674_v33  ;;  %v2701_v53 = vmul.f32 %v11120_v7, %v2700_v38  ;;  %v2694_v38 = vmul.f32 %v11118_v19, %v2693_v18 }
 0x559   : > { %v2900_v42 = vadd.f32 %v2899_v35, %v10961_v56  ;;  %8320 = vmatmul.msk.bf16.gmra.mxu2 %vm728_vm0, %v2811_v29  ;;  %v2747_v52 = vmul.f32 %v2678_v49, %v10976_v61  ;;  %v3041_v61 = vadd.f32 %v11144_v8, %v3040_v36 }
 0x55a   : > { %v2702_v24 = vmul.f32 0.5, %v2701_v53  ;;  %v2698_v31 = vsel %vm2697_vm10, %v11118_v19, %v2694_v38 }
 0x55b   : > { %v2946_v9 = vmax.f32 %v2900_v42, 0.0  ;;  %v2772_v48 = vmul.f32 %v10679_v6, %v2747_v52  ;;  %v11168_v33 = vadd.f32 %v3041_v61, %v10728_v43  ;;  %v2749_v25 = vmul.f32 %v2698_v31, %v10969_v60  ;;  %v9255_v52 = vld [vmem:[#allocation8 + $0x3] ss:$0 sm:$0xff] }
 0x55c   : > { %v2703_v58 = vsub.f32 1.5, %v2702_v24 }
 0x55d   : > { %v2965_v4 = vpack.c.bf16 %v2946_v9, %v2945_v37  ;;  %v11160_v5 = vadd.f32 %v10702_v54, %v2772_v48  ;;  %v3124_v11 = vsel %vm728_vm0, %v11168_v33, 0.0 }
 0x55f   : > { %v3042_v47 = vpop.f32.mrf.mxu3  ;;  %8336 = vmatmul.msk.bf16.gmra.mxu3 %vm1122_vm1, %v2965_v4  ;;  %v2812_v45 = vpack.c.bf16 %v11165_v32, %v11160_v5 }
 0x560   : > { %v3043_v23 = vadd.f32 %v11144_v8, %v3042_v47  ;;  %v2902_v13 = vpop.f32.mrf.mxu2 }
 0x561   : > { %v2903_v36 = vadd.f32 %v2902_v13, %v10961_v56 }
 0x562   : > { %v11150_v30 = vadd.f32 %v3043_v23, %v10716_v41  ;;  %v2704_v41 = vmul.f32 %v11120_v7, %v2703_v58 }
 0x563   : > { %v2947_v26 = vmax.f32 %v2903_v36, 0.0  ;;  %v2437_v36 = vpop.xlane.xlu1 %2436 }
 0x564   : > { %v3127_v2 = vsel %vm728_vm0, %v11150_v30, 0.0  ;;  %v2708_v54 = vsel %vm2707_vm8, %v11120_v7, %v2704_v41 }
 0x565   : > { %3128 = vadd.xlane.f32.xlu0 %v3127_v2  ;;  %v2750_v49 = vmul.f32 %v2708_v54, %v11015_v63  ;;  %v2774_v63 = vmul.f32 %v11156_v16, %v2749_v25 }
 0x567   : > { %v3045_v6 = vpop.f32.mrf.mxu3  ;;  %v2775_v37 = vmul.f32 %v11156_v16, %v2750_v49  ;;  %v11197_v4 = vadd.f32 %v9255_v52, %v2774_v63 }
 0x568   : > { %v2904_v29 = vpop.f32.mrf.mxu2  ;;  %v3046_v19 = vadd.f32 %v11144_v8, %v3045_v6 }
 0x569   : > { %v2905_v43 = vadd.f32 %v2904_v29, %v10961_v56  ;;  %8321 = vmatmul.msk.bf16.gmra.mxu2 %vm728_vm0, %v2812_v45  ;;  %v11195_v60 = vadd.f32 %v9255_v52, %v2775_v37  ;;  %v2463_v29 = vmul.f32 %v2437_v36, %v10487_v0 }
 0x56a   : > { %v11200_v47 = vadd.f32 %v3046_v19, %v10793_v15 }
 0x56b   : > { %v2948_v35 = vmax.f32 %v2905_v43, 0.0  ;;  %v2813_v23 = vpack.c.bf16 %v11195_v60, %v11197_v4  ;;  %v2487_v45 = vadd.f32 1e-05, %v2463_v29 }
 0x56c   : > { %v3130_v13 = vsel %vm728_vm0, %v11200_v47, 0.0 }
 0x56d   : > { %3125 = vadd.xlane.f32.xlu0 %v3124_v11  ;;  %v2966_v53 = vpack.c.bf16 %v2948_v35, %v2947_v26  ;;  %8887 = vrsqrt.f32 %v2487_v45  ;;  %vm2715_vm12 = vweird.f32 %v2487_v45 }
 0x56f   : > { %v3047_v42 = vpop.f32.mrf.mxu3  ;;  %8337 = vmatmul.msk.bf16.gmra.mxu3 %vm1122_vm1, %v2966_v53 }
 0x570   : > { %v3048_v7 = vadd.f32 %v11144_v8, %v3047_v42  ;;  %v2907_v22 = vpop.f32.mrf.mxu2 }
 0x572   : > { %v11188_v10 = vadd.f32 %v3048_v7, %v10801_v59  ;;  %v2908_v59 = vadd.f32 %v2907_v22, %v10961_v56 }
 0x574   : > { %v3133_v9 = vsel %vm728_vm0, %v11188_v10, 0.0  ;;  %v2949_v48 = vmax.f32 %v2908_v59, 0.0 }
 0x575   : > { %3134 = vadd.xlane.f32.xlu1 %v3133_v9 }
 0x577   : > { %v3050_v24 = vpop.f32.mrf.mxu3 }
 0x578   : > { %v2909_v20 = vpop.f32.mrf.mxu2  ;;  %v3051_v18 = vadd.f32 %v11144_v8, %v3050_v24 }
 0x579   : > { %v2910_v12 = vadd.f32 %v2909_v20, %v10961_v56  ;;  %8322 = vmatmul.msk.bf16.gmra.mxu2 %vm728_vm0, %v2813_v23 }
 0x57a   : > { %v11218_v6 = vadd.f32 %v3051_v18, %v10840_v40 }
 0x57b   : > { %v2950_v58 = vmax.f32 %v2910_v12, 0.0 }
 0x57c   : > { %v3136_v38 = vsel %vm728_vm0, %v11218_v6, 0.0 }
 0x57d   : > { %3131 = vadd.xlane.f32.xlu1 %v3130_v13  ;;  %v2967_v61 = vpack.c.bf16 %v2950_v58, %v2949_v48 }
 0x57f   : > { %v3052_v2 = vpop.f32.mrf.mxu3  ;;  %8338 = vmatmul.msk.bf16.gmra.mxu3 %vm1122_vm1, %v2967_v61 }
 0x580   : > { %v3053_v15 = vadd.f32 %v11144_v8, %v3052_v2 }
 0x582   : > { %v11212_v51 = vadd.f32 %v3053_v15, %v10837_v39  ;;  %v8888_v39 = vpop.eup %8887 }
 0x583   : > { %v2710_v54 = vmul.f32 %v8888_v39, %v2487_v45  ;;  %vm2716_vm11 = vweird.f32 %v8888_v39 }
 0x584   : > { %v3139_v41 = vsel %vm728_vm0, %v11212_v51, 0.0  ;;  %vm2717_vm13 = vmor %vm2715_vm12, %vm2716_vm11 }
 0x585   : > { %3140 = vadd.xlane.f32.xlu2 %v3139_v41  ;;  %v2711_v43 = vmul.f32 %v8888_v39, %v2710_v54 }
 0x587   : > { %v2712_v35 = vmul.f32 0.5, %v2711_v43 }
 0x589   : > { %v2713_v40 = vsub.f32 1.5, %v2712_v35 }
 0x58b   : > { %v2714_v53 = vmul.f32 %v8888_v39, %v2713_v40 }
 0x58d   : > { %3137 = vadd.xlane.f32.xlu2 %v3136_v38  ;;  %v2718_v7 = vsel %vm2717_vm13, %v8888_v39, %v2714_v53 }
 0x58e   : > { %v2751_v19 = vmul.f32 %v2718_v7, %v11026_v34 }
 0x590   : > { %v2776_v59 = vmul.f32 %v11156_v16, %v2751_v19 }
 0x592   : > { %v11228_v13 = vadd.f32 %v9255_v52, %v2776_v59 }
 0x5b3   : > { %v2440_v11 = vpop.xlane.xlu2 %2439 }
 0x5b4   : > { %v2464_v31 = vmul.f32 %v2440_v11, %v10487_v0 }
 0x5b6   : > { %v2488_v26 = vadd.f32 1e-05, %v2464_v31 }
 0x5b8   : > { %8889 = vrsqrt.f32 %v2488_v26  ;;  %vm2725_vm15 = vweird.f32 %v2488_v26 }
 0x5be   : > { %v8890_v49 = vpop.eup %8889 }
 0x5bf   : > { %v2720_v42 = vmul.f32 %v8890_v49, %v2488_v26  ;;  %vm2726_vm14 = vweird.f32 %v8890_v49 }
 0x5c0   : > { %vm2727_vm2 = vmor %vm2725_vm15, %vm2726_vm14 }
 0x5c1   : > { %v2721_v25 = vmul.f32 %v8890_v49, %v2720_v42 }
 0x5c3   : > { %v2722_v22 = vmul.f32 0.5, %v2721_v25 }
 0x5c5   : > { %v2723_v37 = vsub.f32 1.5, %v2722_v22 }
 0x5c7   : > { %v2724_v9 = vmul.f32 %v8890_v49, %v2723_v37 }
 0x5c9   : > { %v2728_v63 = vsel %vm2727_vm2, %v8890_v49, %v2724_v9 }
 0x5ca   : > { %v2752_v24 = vmul.f32 %v2728_v63, %v11077_v3  ;;  %v2912_v20 = vpop.f32.mrf.mxu2 }
 0x5cb   : > { %v2913_v34 = vadd.f32 %v2912_v20, %v10961_v56 }
 0x5cc   : > { %v2777_v12 = vmul.f32 %v11156_v16, %v2752_v24 }
 0x5cd   : > { %v2951_v18 = vmax.f32 %v2913_v34, 0.0 }
 0x5ce   : > { %v11230_v48 = vadd.f32 %v9255_v52, %v2777_v12 }
 0x5d0   : > { %v2814_v58 = vpack.c.bf16 %v11230_v48, %v11228_v13 }
 0x5d1   : > { %v3055_v23 = vpop.f32.mrf.mxu3 }
 0x5d2   : > { %8323 = vmatmul.msk.bf16.gmra.mxu2 %vm728_vm0, %v2814_v58  ;;  %v2914_v61 = vpop.f32.mrf.mxu2  ;;  %v3056_v36 = vadd.f32 %v11144_v8, %v3055_v23 }
 0x5d3   : > { %v2915_v3 = vadd.f32 %v2914_v61, %v10961_v56 }
 0x5d4   : > { %v11247_v54 = vadd.f32 %v3056_v36, %v10885_v14 }
 0x5d5   : > { %v2952_v41 = vmax.f32 %v2915_v3, 0.0 }
 0x5d6   : > { %v3142_v11 = vsel %vm728_vm0, %v11247_v54, 0.0 }
 0x5d7   : > { %v2968_v52 = vpack.c.bf16 %v2952_v41, %v2951_v18 }
 0x5d8   : > { %v3129_v38 = vpop.xlane.xlu0 %3128 }
 0x5d9   : > { %v3057_v2 = vpop.f32.mrf.mxu3  ;;  %8339 = vmatmul.msk.bf16.gmra.mxu3 %vm1122_vm1, %v2968_v52  ;;  %v3197_v39 = vmul.f32 %v3129_v38, %v10487_v0  ;;  %v3702_v52 = vld [vmem:[#allocation19] sm:$0x1] }
 0x5da   : > { %v3058_v15 = vadd.f32 %v11144_v8, %v3057_v2  ;;  %8557 = vpush %v3702_v52 }
 0x5dc   : > { %v11239_v16 = vadd.f32 %v3058_v15, %v10888_v55  ;;  %v2917_v45 = vpop.f32.mrf.mxu2  ;;  %v11250_v55 = vsub.f32 %v11150_v30, %v3197_v39 }
 0x5dd   : > { %v2918_v31 = vadd.f32 %v2917_v45, %v10961_v56 }
 0x5de   : > { %v3145_v29 = vsel %vm728_vm0, %v11239_v16, 0.0  ;;  %v3245_v14 = vmul.f32 %v11250_v55, %v11250_v55 }
 0x5df   : > { %3146 = vadd.xlane.f32.xlu0 %v3145_v29  ;;  %v2953_v53 = vmax.f32 %v2918_v31, 0.0 }
 0x5e0   : > { %v3126_v26 = vpop.xlane.xlu0 %3125  ;;  %v3271_v37 = vsel %vm728_vm0, %v3245_v14, 0.0 }
 0x5e1   : > { %v3196_v49 = vmul.f32 %v3126_v26, %v10487_v0 }
 0x5e2   : > { %v3060_v43 = vpop.f32.mrf.mxu3 }
 0x5e3   : > { %v11260_v7 = vsub.f32 %v11168_v33, %v3196_v49  ;;  %v3061_v24 = vadd.f32 %v11144_v8, %v3060_v43 }
 0x5e4   : > { %v2919_v35 = vpop.f32.mrf.mxu2 }
 0x5e5   : > { %v2920_v40 = vadd.f32 %v2919_v35, %v10961_v56  ;;  %v3244_v33 = vmul.f32 %v11260_v7, %v11260_v7  ;;  %v11276_v58 = vadd.f32 %v3061_v24, %v10981_v57 }
 0x5e7   : > { %3143 = vadd.xlane.f32.xlu0 %v3142_v11  ;;  %v2954_v42 = vmax.f32 %v2920_v40, 0.0  ;;  %v3268_v12 = vsel %vm728_vm0, %v3244_v33, 0.0  ;;  %v3148_v2 = vsel %vm728_vm0, %v11276_v58, 0.0 }
 0x5e8   : > { %v3135_v63 = vpop.xlane.xlu1 %3134 }
 0x5e9   : > { %v2969_v25 = vpack.c.bf16 %v2954_v42, %v2953_v53  ;;  %v3199_v23 = vmul.f32 %v3135_v63, %v10487_v0 }
 0x5ea   : > { %v3062_v30 = vpop.f32.mrf.mxu3 }
 0x5eb   : > { %v3063_v22 = vadd.f32 %v11144_v8, %v3062_v30  ;;  %8340 = vmatmul.msk.bf16.gmra.mxu3 %vm1122_vm1, %v2969_v25  ;;  %v11281_v3 = vsub.f32 %v11188_v10, %v3199_v23 }
 0x5ec   : > { %v2922_v19 = vpop.f32.mrf.mxu2 }
 0x5ed   : > { %v11266_v9 = vadd.f32 %v3063_v22, %v10984_v46  ;;  %v2923_v46 = vadd.f32 %v2922_v19, %v10961_v56  ;;  %v3247_v45 = vmul.f32 %v11281_v3, %v11281_v3 }
 0x5ef   : > { %3272 = vadd.xlane.f32.xlu0 %v3271_v37  ;;  %v3151_v59 = vsel %vm728_vm0, %v11266_v9, 0.0  ;;  %v2955_v15 = vmax.f32 %v2923_v46, 0.0  ;;  %v3277_v35 = vsel %vm728_vm0, %v3247_v45, 0.0 }
 0x5f0   : > { %3152 = vadd.xlane.f32.xlu1 %v3151_v59  ;;  %v3132_v18 = vpop.xlane.xlu1 %3131 }
 0x5f1   : > { %v3198_v36 = vmul.f32 %v3132_v18, %v10487_v0 }
 0x5f2   : > { %v3065_v20 = vpop.f32.mrf.mxu3 }
 0x5f3   : > { %v11294_v11 = vsub.f32 %v11200_v47, %v3198_v36  ;;  %v3066_v31 = vadd.f32 %v11144_v8, %v3065_v20  ;;  %v3781_v36 = vld [vmem:[#allocation19 + $0x3] sm:$0x1] }
 0x5f4   : > { %v2924_v34 = vpop.f32.mrf.mxu2 }
 0x5f5   : > { %v2925_v61 = vadd.f32 %v2924_v34, %v10961_v56  ;;  %v11302_v14 = vadd.f32 %v3066_v31, %v11029_v21 }
 0x5f7   : > { %3269 = vadd.xlane.f32.xlu0 %v3268_v12  ;;  %v2956_v41 = vmax.f32 %v2925_v61, 0.0  ;;  %v3154_v30 = vsel %vm728_vm0, %v11302_v14, 0.0 }
 0x5f8   : > { %3149 = vadd.xlane.f32.xlu1 %v3148_v2  ;;  %v3141_v43 = vpop.xlane.xlu2 %3140 }
 0x5f9   : > { %v2970_v57 = vpack.c.bf16 %v2956_v41, %v2955_v15  ;;  %v3201_v49 = vmul.f32 %v3141_v43, %v10487_v0  ;;  %v3723_v15 = vld [vmem:[#allocation19 + $0x1] sm:$0x1] }
 0x5fa   : > { %v3067_v38 = vpop.f32.mrf.mxu3  ;;  %8559 = vpush %v3723_v15 }
 0x5fb   : > { %v3068_v29 = vadd.f32 %v11144_v8, %v3067_v38  ;;  %8341 = vmatmul.msk.bf16.gmra.mxu3 %vm1122_vm1, %v2970_v57  ;;  %v11309_v25 = vsub.f32 %v11212_v51, %v3201_v49  ;;  %v3752_v57 = vld [vmem:[#allocation19 + $0x2] sm:$0x1] }
 0x5fc   : > { %v2927_v10 = vpop.f32.mrf.mxu2  ;;  %8561 = vpush %v3752_v57 }
 0x5fd   : > { %v11291_v39 = vadd.f32 %v3068_v29, %v11034_v50  ;;  %v3246_v50 = vmul.f32 %v11294_v11, %v11294_v11  ;;  %v2928_v47 = vadd.f32 %v2927_v10, %v10961_v56  ;;  %v3249_v51 = vmul.f32 %v11309_v25, %v11309_v25  ;;  %8563 = vpush %v3781_v36 }
 0x5ff   : > { %v3157_v26 = vsel %vm728_vm0, %v11291_v39, 0.0  ;;  %v3274_v22 = vsel %vm728_vm0, %v3246_v50, 0.0  ;;  %v2957_v37 = vmax.f32 %v2928_v47, 0.0  ;;  %v3283_v46 = vsel %vm728_vm0, %v3249_v51, 0.0 }
 0x600   : > { %3158 = vadd.xlane.f32.xlu2 %v3157_v26  ;;  %3278 = vadd.xlane.f32.xlu1 %v3277_v35  ;;  %v3138_v19 = vpop.xlane.xlu2 %3137 }
 0x601   : > { %v3200_v59 = vmul.f32 %v3138_v19, %v10487_v0 }
 0x602   : > { %v3070_v40 = vpop.f32.mrf.mxu3 }
 0x603   : > { %v11323_v23 = vsub.f32 %v11218_v6, %v3200_v59  ;;  %v3071_v12 = vadd.f32 %v11144_v8, %v3070_v40 }
 0x604   : > { %v2929_v53 = vpop.f32.mrf.mxu2 }
 0x605   : > { %v2930_v42 = vadd.f32 %v2929_v53, %v10961_v56  ;;  %v3248_v61 = vmul.f32 %v11323_v23, %v11323_v23  ;;  %v11332_v2 = vadd.f32 %v3071_v12, %v11059_v17 }
 0x607   : > { %v2958_v21 = vmax.f32 %v2930_v42, 0.0  ;;  %v3160_v6 = vsel %vm728_vm0, %v11332_v2, 0.0 }
 0x608   : > { %3155 = vadd.xlane.f32.xlu2 %v3154_v30  ;;  %3275 = vadd.xlane.f32.xlu1 %v3274_v22 }
 0x609   : > { %v2971_v63 = vpack.c.bf16 %v2958_v21, %v2957_v37 }
 0x60a   : > { %v3072_v24 = vpop.f32.mrf.mxu3 }
 0x60b   : > { %v3073_v33 = vadd.f32 %v11144_v8, %v3072_v24  ;;  %8342 = vmatmul.msk.bf16.gmra.mxu3 %vm1122_vm1, %v2971_v63  ;;  %s8558_s29 = spop %8557 }
 0x60d   : > { %v11320_v20 = vadd.f32 %v3073_v33, %v11056_v1  ;;  %v3280_v1 = vsel %vm728_vm0, %v3248_v61, 0.0 }
 0x60f   : > { %v3163_v34 = vsel %vm728_vm0, %v11320_v20, 0.0 }
 0x610   : > { %3284 = vadd.xlane.f32.xlu2 %v3283_v46  ;;  %3164 = vadd.xlane.f32.xlu0 %v3163_v34 }
 0x618   : > { %3281 = vadd.xlane.f32.xlu2 %v3280_v1  ;;  %3161 = vadd.xlane.f32.xlu0 %v3160_v6 }
 0x62b   : > { %s8560_s30 = spop %8559 }
 0x62d   : > { %s8562_s7 = spop %8561 }
 0x62e   : > { %s8564_s26 = spop %8563 }
 0x652   : > { %v3147_v18 = vpop.xlane.xlu0 %3146 }
 0x653   : > { %v3203_v41 = vmul.f32 %v3147_v18, %v10487_v0 }
 0x655   : > { %v11339_v52 = vsub.f32 %v11239_v16, %v3203_v41  ;;  %v2932_v29 = vpop.f32.mrf.mxu2 }
 0x656   : > { %v2933_v31 = vadd.f32 %v2932_v29, %v10961_v56 }
 0x657   : > { %v3251_v17 = vmul.f32 %v11339_v52, %v11339_v52 }
 0x658   : > { %v2959_v50 = vmax.f32 %v2933_v31, 0.0 }
 0x659   : > { %v3289_v38 = vsel %vm728_vm0, %v3251_v17, 0.0 }
 0x65a   : > { %3290 = vadd.xlane.f32.xlu0 %v3289_v38  ;;  %v3144_v45 = vpop.xlane.xlu0 %3143 }
 0x65b   : > { %v3202_v10 = vmul.f32 %v3144_v45, %v10487_v0 }
 0x65c   : > { %v3075_v35 = vpop.f32.mrf.mxu3 }
 0x65d   : > { %v11346_v43 = vsub.f32 %v11247_v54, %v3202_v10  ;;  %v2934_v40 = vpop.f32.mrf.mxu2  ;;  %v3076_v63 = vadd.f32 %v11144_v8, %v3075_v35 }
 0x65e   : > { %v2935_v49 = vadd.f32 %v2934_v40, %v10961_v56 }
 0x65f   : > { %v3250_v16 = vmul.f32 %v11346_v43, %v11346_v43  ;;  %v11366_v51 = vadd.f32 %v3076_v63, %v11097_v62 }
 0x660   : > { %v2960_v47 = vmax.f32 %v2935_v49, 0.0 }
 0x661   : > { %v3286_v26 = vsel %vm728_vm0, %v3250_v16, 0.0  ;;  %v3166_v34 = vsel %vm728_vm0, %v11366_v51, 0.0 }
 0x662   : > { %3287 = vadd.xlane.f32.xlu0 %v3286_v26  ;;  %v2972_v42 = vpack.c.bf16 %v2960_v47, %v2959_v50  ;;  %v3273_v54 = vpop.xlane.xlu0 %3272 }
 0x663   : > { %v3153_v53 = vpop.xlane.xlu1 %3152  ;;  %v3341_v37 = vmul.f32 %v3273_v54, %v10487_v0 }
 0x664   : > { %8343 = vmatmul.msk.bf16.gmra.mxu3 %vm1122_vm1, %v2972_v42  ;;  %v3077_v30 = vpop.f32.mrf.mxu3  ;;  %v3205_v33 = vmul.f32 %v3153_v53, %v10487_v0 }
 0x665   : > { %v3078_v22 = vadd.f32 %v11144_v8, %v3077_v30  ;;  %v11362_v24 = vadd.f32 1e-05, %v3341_v37 }
 0x666   : > { %v11370_v46 = vsub.f32 %v11266_v9, %v3205_v33 }
 0x667   : > { %v11357_v19 = vadd.f32 %v3078_v22, %v11092_v27  ;;  %8891 = vrsqrt.f32 %v11362_v24  ;;  %vm3404_vm7 = vweird.f32 %v11362_v24 }
 0x668   : > { %v3253_v41 = vmul.f32 %v11370_v46, %v11370_v46 }
 0x669   : > { %v3169_v56 = vsel %vm728_vm0, %v11357_v19, 0.0 }
 0x66a   : > { %3170 = vadd.xlane.f32.xlu1 %v3169_v56  ;;  %v3295_v45 = vsel %vm728_vm0, %v3253_v41, 0.0  ;;  %v11400_v40 = vpop.xlane.xlu0 %3269 }
 0x66b   : > { %v3150_v21 = vpop.xlane.xlu1 %3149 }
 0x66c   : > { %v3204_v1 = vmul.f32 %v3150_v21, %v10487_v0 }
 0x66d   : > { %v11376_v18 = vpop.eup %8891 }
 0x66e   : > { %v3080_v59 = vpop.f32.mrf.mxu3  ;;  %v3399_v57 = vmul.f32 %v11376_v18, %v11362_v24  ;;  %v11387_v17 = vsub.f32 %v11276_v58, %v3204_v1  ;;  %vm3405_vm4 = vweird.f32 %v11376_v18 }
 0x66f   : > { %v3081_v36 = vadd.f32 %v11144_v8, %v3080_v59  ;;  %vm3406_vm8 = vmor %vm3404_vm7, %vm3405_vm4 }
 0x670   : > { %v3252_v31 = vmul.f32 %v11387_v17, %v11387_v17 }
 0x671   : > { %v11398_v35 = vadd.f32 %v3081_v36, %v11123_v44 }
 0x672   : > { %3167 = vadd.xlane.f32.xlu1 %v3166_v34  ;;  %v3292_v53 = vsel %vm728_vm0, %v3252_v31, 0.0 }
 0x673   : > { %v3159_v12 = vpop.xlane.xlu2 %3158  ;;  %v3279_v27 = vpop.xlane.xlu1 %3278  ;;  %v3172_v22 = vsel %vm728_vm0, %v11398_v35, 0.0 }
 0x674   : > { %v3343_v61 = vmul.f32 %v3279_v27, %v10487_v0  ;;  %v3207_v58 = vmul.f32 %v3159_v12, %v10487_v0 }
 0x676   : > { %v3367_v6 = vadd.f32 1e-05, %v3343_v61  ;;  %v3082_v15 = vpop.f32.mrf.mxu3  ;;  %v11404_v42 = vsub.f32 %v11291_v39, %v3207_v58 }
 0x677   : > { %v3083_v62 = vadd.f32 %v11144_v8, %v3082_v15 }
 0x678   : > { %8893 = vrsqrt.f32 %v3367_v6  ;;  %v3255_v39 = vmul.f32 %v11404_v42, %v11404_v42  ;;  %vm3424_vm5 = vweird.f32 %v3367_v6 }
 0x679   : > { %v11382_v9 = vadd.f32 %v3083_v62, %v11126_v28  ;;  %v3400_v28 = vmul.f32 %v11376_v18, %v3399_v57 }
 0x67a   : > { %3296 = vadd.xlane.f32.xlu1 %v3295_v45  ;;  %v3301_v15 = vsel %vm728_vm0, %v3255_v39, 0.0 }
 0x67b   : > { %v3156_v38 = vpop.xlane.xlu2 %3155  ;;  %v3175_v29 = vsel %vm728_vm0, %v11382_v9, 0.0  ;;  %v3401_v50 = vmul.f32 0.5, %v3400_v28 }
 0x67c   : > { %3176 = vadd.xlane.f32.xlu2 %v3175_v29  ;;  %v3206_v56 = vmul.f32 %v3156_v38, %v10487_v0 }
 0x67d   : > { %v3402_v21 = vsub.f32 1.5, %v3401_v50 }
 0x67e   : > { %v8894_v10 = vpop.eup %8893  ;;  %v3085_v16 = vpop.f32.mrf.mxu3  ;;  %v11419_v61 = vsub.f32 %v11302_v14, %v3206_v56  ;;  %v11459_v56 = vstv %s8558_s29  ;;  %s8239_s29 = sshll.u32 %s9944_s6, 6 }
 0x67f   : > { %v3419_v26 = vmul.f32 %v8894_v10, %v3367_v6  ;;  %vm3425_vm3 = vweird.f32 %v8894_v10  ;;  %v3403_v34 = vmul.f32 %v11376_v18, %v3402_v21  ;;  %v3086_v1 = vadd.f32 %v11144_v8, %v3085_v16 }
 0x680   : > { %vm3426_vm6 = vmor %vm3424_vm5, %vm3425_vm3  ;;  %v3254_v29 = vmul.f32 %v11419_v61, %v11419_v61 }
 0x681   : > { %v3420_v49 = vmul.f32 %v8894_v10, %v3419_v26  ;;  %v3407_v6 = vsel %vm3406_vm8, %v11376_v18, %v3403_v34  ;;  %v11432_v45 = vadd.f32 %v3086_v1, %v11160_v5 }
 0x682   : > { %3293 = vadd.xlane.f32.xlu1 %v3292_v53  ;;  %v3629_v28 = vmul.f32 %v3407_v6, %v11250_v55  ;;  %v11480_v6 = vstv %s8564_s26 }
 0x683   : > { %v3285_v47 = vpop.xlane.xlu2 %3284  ;;  %v3421_v54 = vmul.f32 0.5, %v3420_v49  ;;  %v3165_v12 = vpop.xlane.xlu0 %3164  ;;  %v3178_v26 = vsel %vm728_vm0, %v11432_v45, 0.0  ;;  %v11444_v49 = vld [vmem:[#allocation8 + $0x5] ss:$0 sm:$0xff] }
 0x684   : > { %v3345_v30 = vmul.f32 %v3285_v47, %v10487_v0  ;;  %3173 = vadd.xlane.f32.xlu2 %v3172_v22  ;;  %v3209_v14 = vmul.f32 %v3165_v12, %v10487_v0 }
 0x685   : > { %v3422_v44 = vsub.f32 1.5, %v3421_v54 }
 0x686   : > { %v3369_v37 = vadd.f32 1e-05, %v3345_v30  ;;  %v3087_v63 = vpop.f32.mrf.mxu3  ;;  %v11438_v18 = vsub.f32 %v11320_v20, %v3209_v14  ;;  %v9257_v14 = vld [vmem:[%s9948_s4 + $0x18] sm:$0xff] }
 0x687   : > { %v3088_v59 = vadd.f32 %v11144_v8, %v3087_v63  ;;  %v3423_v33 = vmul.f32 %v8894_v10, %v3422_v44  ;;  %v11452_v44 = vstv %s8560_s30  ;;  %s13757_s30 = scalar_lea.vmem [#allocation20], %s8239_s29 }
 0x688   : > { %8895 = vrsqrt.f32 %v3369_v37  ;;  %vm3444_vm10 = vweird.f32 %v3369_v37  ;;  %v3257_v53 = vmul.f32 %v11438_v18, %v11438_v18  ;;  %s8041_s20 = sshll.u32 %s13757_s30, 4  ;;  %s8042_s20 = int_to_ptr.vmem [resolvable:$true] %s8041_s20 }
 0x689   : > { %v11414_v27 = vadd.f32 %v3088_v59, %v11165_v32  ;;  %v3427_v32 = vsel %vm3426_vm6, %v8894_v10, %v3423_v33  ;;  %v11434_v10 = vld [vmem:[#allocation8 + $0x4] ss:$0 sm:$0xff] }
 0x68a   : > { %v3631_v36 = vmul.f32 %v3427_v32, %v11281_v3  ;;  %v3298_v3 = vsel %vm728_vm0, %v3254_v29, 0.0  ;;  %v3654_v55 = vmul.f32 %v11434_v10, %v3629_v28  ;;  %v3307_v39 = vsel %vm728_vm0, %v3257_v53, 0.0 }
 0x68b   : > { %v3181_v62 = vsel %vm728_vm0, %v11414_v27, 0.0  ;;  %v3162_v58 = vpop.xlane.xlu0 %3161 }
 0x68c   : > { %3302 = vadd.xlane.f32.xlu2 %v3301_v15  ;;  %3182 = vadd.xlane.f32.xlu0 %v3181_v62  ;;  %v3656_v31 = vmul.f32 %v11434_v10, %v3631_v36  ;;  %v3208_v50 = vmul.f32 %v3162_v58, %v10487_v0  ;;  %v3679_v21 = vadd.f32 %v11444_v49, %v3654_v55 }
 0x68e   : > { %v8896_v41 = vpop.eup %8895  ;;  %v3090_v38 = vpop.f32.mrf.mxu3  ;;  %v3681_v54 = vadd.f32 %v11444_v49, %v3656_v31  ;;  %v11462_v59 = vsub.f32 %v11332_v2, %v3208_v50  ;;  %v3708_v2 = vmul.f32 %v11459_v56, %v3679_v21  ;;  %v9258_v31 = vld [vmem:[%s9948_s4 + $0x28] sm:$0xff] }
 0x68f   : > { %v3439_v57 = vmul.f32 %v8896_v41, %v3369_v37  ;;  %vm3445_vm9 = vweird.f32 %v8896_v41  ;;  %v3091_v12 = vadd.f32 %v11144_v8, %v3090_v38 }
 0x690   : > { %vm3446_vm11 = vmor %vm3444_vm10, %vm3445_vm9  ;;  %v3729_v34 = vmul.f32 %v11452_v44, %v3681_v54  ;;  %v3256_v32 = vmul.f32 %v11462_v59, %v11462_v59 }
 0x691   : > { %v3440_v24 = vmul.f32 %v8896_v41, %v3439_v57  ;;  %v9256_v57 = vld [vmem:[%s9948_s4 + $0x8] sm:$0xff] }
 0x692   : > { %v3737_v15 = vadd.f32 %v3729_v34, %v3708_v2  ;;  %v3716_v38 = vadd.f32 %v9257_v14, %v9256_v57 }
 0x693   : > { %v3441_v16 = vmul.f32 0.5, %v3440_v24  ;;  %v3304_v24 = vsel %vm728_vm0, %v3256_v32, 0.0 }
 0x694   : > { %3299 = vadd.xlane.f32.xlu2 %v3298_v3  ;;  %3179 = vadd.xlane.f32.xlu0 %v3178_v26  ;;  %v3745_v58 = vadd.f32 %v9258_v31, %v3716_v38  ;;  %v3340_v26 = vmul.f32 %v11400_v40, %v10487_v0 }
 0x695   : > { %v3442_v5 = vsub.f32 1.5, %v3441_v16  ;;  %v3276_v16 = vpop.xlane.xlu1 %3275 }
 0x696   : > { %v3092_v47 = vpop.f32.mrf.mxu3  ;;  %v3342_v3 = vmul.f32 %v3276_v16, %v10487_v0 }
 0x697   : > { %v3443_v20 = vmul.f32 %v8896_v41, %v3442_v5  ;;  %v3093_v30 = vadd.f32 %v11144_v8, %v3092_v47  ;;  %v3774_v5 = vmul.f32 0.33333334, %v3745_v58  ;;  %v3364_v47 = vadd.f32 1e-05, %v3340_v26 }
 0x698   : > { %v3366_v50 = vadd.f32 1e-05, %v3342_v3 }
 0x699   : > { %v3447_v22 = vsel %vm3446_vm11, %v8896_v41, %v3443_v20  ;;  %v11457_v37 = vadd.f32 %v3093_v30, %v11195_v60  ;;  %v11478_v41 = vadd.f32 %v3091_v12, %v11197_v4  ;;  %v3282_v4 = vpop.xlane.xlu2 %3281  ;;  %vm3394_vm2 = vweird.f32 %v3364_v47 }
 0x69a   : > { %v3633_v63 = vmul.f32 %v3447_v22, %v11309_v25  ;;  %v11470_v25 = vstv %s8562_s7  ;;  %v3344_v55 = vmul.f32 %v3282_v4, %v10487_v0  ;;  %vm3414_vm14 = vweird.f32 %v3366_v50  ;;  %s8551_s7 = sshll.u32 %s9808_s28, 6 }
 0x69b   : > { %v3187_v60 = vsel %vm728_vm0, %v11457_v37, 0.0  ;;  %v3184_v28 = vsel %vm728_vm0, %v11478_v41, 0.0  ;;  %s8040_s16 = scalar_lea.hbm %s13836_s12, %s8551_s7 }
 0x69c   : > { %v3658_v33 = vmul.f32 %v11434_v10, %v3633_v63  ;;  %3308 = vadd.xlane.f32.xlu0 %v3307_v39  ;;  %3188 = vadd.xlane.f32.xlu1 %v3187_v60  ;;  %v3368_v54 = vadd.f32 1e-05, %v3344_v55  ;;  %s8043_s28 = sshll.u32 %s8040_s16, 4  ;;  %s8044_s28 = int_to_ptr.hbm [resolvable:$true] %s8043_s28 }
 0x69d   : > { %s9626_s3 = sshra.s32 %s8044_s28, 4  ;;  %s9627_s3 = int_to_ptr.hbm [resolvable:$true] %s9626_s3 }
 0x69e   : > { %v3683_v1 = vadd.f32 %v11444_v49, %v3658_v33  ;;  %vm3434_vm5 = vweird.f32 %v3368_v54  ;;  %s9628_s27 = scalar_lea.hbm %s9627_s3, 64  ;;  %p9633_p12 = scmp.lt.s32.totalorder %s9627_s3, %s13836_s12 }
 0x69f   : > { %p9629_p1 = scmp.ne.s32.totalorder %s9627_s3, %s9628_s27  ;;  %p9634_p7 = scmp.lt.s32.totalorder %s9632_s25, %s9628_s27 }
 0x6a0   : > { %v3758_v62 = vmul.f32 %v11470_v25, %v3683_v1 }
 0x6a1   : > { %p9630_p3 = pnand %p9629_p1, %p9915_p4  ;;  %p9635_p8 = por %p9634_p7, %p9633_p12 }
 0x6a2   : > { %v3766_v36 = vadd.f32 %v3758_v62, %v3737_v15 }
 0x6a3   : > { %p9631_p5 = pneg %p9630_p3 }
 0x6a4   : > { %v3787_v29 = vadd.f32 %v11480_v6, %v3766_v36  ;;  %3305 = vadd.xlane.f32.xlu0 %v3304_v24  ;;  %3185 = vadd.xlane.f32.xlu1 %v3184_v28 }
 0x6a5   : > { %p9636_p9 = pnand %p9635_p8, %p9631_p5 }
 0x6a6   : > { %8897 = vtanh.f32 %v3787_v29 }
 0x6a7   : > { %8899 = vrsqrt.f32 %v3366_v50 }
 0x6a8   : > { %8901 = vrsqrt.f32 %v3364_v47 }
 0x6a9   : > { %8903 = vrsqrt.f32 %v3368_v54 }
 0x6ac   : > { %v11493_v20 = vpop.eup %8897 }
 0x6ad   : > { %v11496_v53 = vadd.f32 %v11493_v20, %v3774_v5  ;;  %v8900_v22 = vpop.eup %8899 }
 0x6ae   : > { %v8902_v40 = vpop.eup %8901  ;;  %v3409_v63 = vmul.f32 %v8900_v22, %v3366_v50  ;;  %vm3415_vm12 = vweird.f32 %v8900_v22 }
 0x6af   : > { %v3819_v30 = vsel %vm728_vm0, %v11496_v53, 0.0  ;;  %v8904_v21 = vpop.eup %8903  ;;  %v3389_v39 = vmul.f32 %v8902_v40, %v3364_v47  ;;  %vm3395_vm13 = vweird.f32 %v8902_v40  ;;  %vm3416_vm3 = vmor %vm3414_vm14, %vm3415_vm12 }
 0x6b0   : > { %3820 = vadd.xlane.f32.xlu0 %v3819_v30  ;;  %v3429_v33 = vmul.f32 %v8904_v21, %v3368_v54  ;;  %v3410_v12 = vmul.f32 %v8900_v22, %v3409_v63  ;;  %vm3435_vm15 = vweird.f32 %v8904_v21  ;;  %vm3396_vm4 = vmor %vm3394_vm2, %vm3395_vm13 }
 0x6b1   : > { %v3390_v34 = vmul.f32 %v8902_v40, %v3389_v39  ;;  %vm3436_vm6 = vmor %vm3434_vm5, %vm3435_vm15 }
 0x6b2   : > { %v3430_v60 = vmul.f32 %v8904_v21, %v3429_v33  ;;  %v3411_v2 = vmul.f32 0.5, %v3410_v12 }
 0x6b3   : > { %v3391_v1 = vmul.f32 0.5, %v3390_v34  ;;  %v9259_v34 = vld [vmem:[%s9948_s4] sm:$0xff] }
 0x6b4   : > { %v3431_v15 = vmul.f32 0.5, %v3430_v60  ;;  %v3412_v62 = vsub.f32 1.5, %v3411_v2  ;;  %v9260_v60 = vld [vmem:[%s9948_s4 + $0x10] sm:$0xff] }
 0x6b5   : > { %v3392_v32 = vsub.f32 1.5, %v3391_v1  ;;  %v3715_v2 = vadd.f32 %v9260_v60, %v9259_v34 }
 0x6b6   : > { %v3432_v57 = vsub.f32 1.5, %v3431_v15  ;;  %v3413_v14 = vmul.f32 %v8900_v22, %v3412_v62 }
 0x6b7   : > { %v3393_v38 = vmul.f32 %v8902_v40, %v3392_v32 }
 0x6b8   : > { %v3433_v36 = vmul.f32 %v8904_v21, %v3432_v57  ;;  %v3417_v29 = vsel %vm3416_vm3, %v8900_v22, %v3413_v14  ;;  %v9261_v57 = vld [vmem:[%s9948_s4 + $0x20] sm:$0xff] }
 0x6b9   : > { %v3397_v24 = vsel %vm3396_vm4, %v8902_v40, %v3393_v38  ;;  %v3630_v16 = vmul.f32 %v3417_v29, %v11294_v11  ;;  %v3744_v14 = vadd.f32 %v9261_v57, %v3715_v2 }
 0x6ba   : > { %v3437_v28 = vsel %vm3436_vm6, %v8904_v21, %v3433_v36  ;;  %v3628_v31 = vmul.f32 %v3397_v24, %v11260_v7 }
 0x6bb   : > { %v3632_v58 = vmul.f32 %v3437_v28, %v11323_v23  ;;  %v3655_v4 = vmul.f32 %v11434_v10, %v3630_v16  ;;  %v3773_v28 = vmul.f32 0.33333334, %v3744_v14 }
 0x6bc   : > { %v3653_v3 = vmul.f32 %v11434_v10, %v3628_v31 }
 0x6bd   : > { %v3657_v26 = vmul.f32 %v11434_v10, %v3632_v58  ;;  %v3680_v5 = vadd.f32 %v11444_v49, %v3655_v4 }
 0x6be   : > { %v3678_v55 = vadd.f32 %v11444_v49, %v3653_v3 }
 0x6bf   : > { %v3682_v50 = vadd.f32 %v11444_v49, %v3657_v26  ;;  %v3728_v11 = vmul.f32 %v11452_v44, %v3680_v5 }
 0x6c0   : > { %v3707_v7 = vmul.f32 %v11459_v56, %v3678_v55 }
 0x6c1   : > { %v3757_v23 = vmul.f32 %v11470_v25, %v3682_v50 }
 0x6c2   : > { %v3736_v47 = vadd.f32 %v3728_v11, %v3707_v7 }
 0x6c4   : > { %v3765_v22 = vadd.f32 %v3757_v23, %v3736_v47 }
 0x6c6   : > { %v3786_v39 = vadd.f32 %v11480_v6, %v3765_v22 }
 0x6c8   : > { %8905 = vtanh.f32 %v3786_v39 }
 0x6cd   : > { %v3291_v40 = vpop.xlane.xlu0 %3290 }
 0x6ce   : > { %v3347_v33 = vmul.f32 %v3291_v40, %v10487_v0  ;;  %v11535_v16 = vpop.eup %8905 }
 0x6cf   : > { %v11542_v55 = vadd.f32 %v11535_v16, %v3773_v28 }
 0x6d1   : > { %v3816_v47 = vsel %vm728_vm0, %v11542_v55, 0.0 }
 0x6d5   : > { %v3288_v38 = vpop.xlane.xlu0 %3287 }
 0x6d6   : > { %v3346_v29 = vmul.f32 %v3288_v38, %v10487_v0 }
 0x6d8   : > { %v11539_v26 = vadd.f32 1e-05, %v3346_v29 }
 0x6da   : > { %vm3454_vm2 = vweird.f32 %v11539_v26 }
 0x6dd   : > { %v3171_v54 = vpop.xlane.xlu1 %3170 }
 0x6de   : > { %v3211_v30 = vmul.f32 %v3171_v54, %v10487_v0 }
 0x6e0   : > { %v11514_v21 = vsub.f32 %v11357_v19, %v3211_v30  ;;  %v11524_v19 = vadd.f32 1e-05, %v3347_v33 }
 0x6e2   : > { %v3259_v63 = vmul.f32 %v11514_v21, %v11514_v21  ;;  %8907 = vrsqrt.f32 %v11524_v19  ;;  %vm3464_vm11 = vweird.f32 %v11524_v19 }
 0x6e4   : > { %v3313_v12 = vsel %vm728_vm0, %v3259_v63, 0.0 }
 0x6e5   : > { %3314 = vadd.xlane.f32.xlu1 %v3313_v12  ;;  %v3168_v1 = vpop.xlane.xlu1 %3167 }
 0x6e6   : > { %v3210_v15 = vmul.f32 %v3168_v1, %v10487_v0 }
 0x6e7   : > { %v3095_v62 = vpop.f32.mrf.mxu3 }
 0x6e8   : > { %v11527_v32 = vsub.f32 %v11366_v51, %v3210_v15  ;;  %v11547_v11 = vpop.eup %8907  ;;  %v3096_v7 = vadd.f32 %v11144_v8, %v3095_v62 }
 0x6e9   : > { %v3459_v54 = vmul.f32 %v11547_v11, %v11524_v19  ;;  %vm3465_vm8 = vweird.f32 %v11547_v11 }
 0x6ea   : > { %v3258_v36 = vmul.f32 %v11527_v32, %v11527_v32  ;;  %vm3466_vm12 = vmor %vm3464_vm11, %vm3465_vm8 }
 0x6eb   : > { %v3460_v33 = vmul.f32 %v11547_v11, %v3459_v54 }
 0x6ec   : > { %v3310_v24 = vsel %vm728_vm0, %v3258_v36, 0.0 }
 0x6ed   : > { %3311 = vadd.xlane.f32.xlu1 %v3310_v24  ;;  %v3297_v58 = vpop.xlane.xlu1 %3296 }
 0x6ee   : > { %v3349_v51 = vmul.f32 %v3297_v58, %v10487_v0 }
 0x6ef   : > { %v3177_v31 = vpop.xlane.xlu2 %3176  ;;  %v3097_v4 = vpop.f32.mrf.mxu3 }
 0x6f0   : > { %v3098_v3 = vadd.f32 %v11144_v8, %v3097_v4  ;;  %v3373_v5 = vadd.f32 1e-05, %v3349_v51  ;;  %v3213_v22 = vmul.f32 %v3177_v31, %v10487_v0  ;;  %v11560_v8 = vadd.f32 %v3096_v7, %v11228_v13 }
 0x6f1   : > { %v3461_v13 = vmul.f32 0.5, %v3460_v33 }
 0x6f2   : > { %v11545_v50 = vadd.f32 %v3098_v3, %v11230_v48  ;;  %8909 = vrsqrt.f32 %v3373_v5  ;;  %v11568_v60 = vsub.f32 %v11382_v9, %v3213_v22  ;;  %v3190_v1 = vsel %vm728_vm0, %v11560_v8, 0.0 }
 0x6f3   : > { %8911 = vrsqrt.f32 %v11539_v26  ;;  %v3462_v28 = vsub.f32 1.5, %v3461_v13  ;;  %vm3484_vm9 = vweird.f32 %v3373_v5 }
 0x6f4   : > { %v3193_v23 = vsel %vm728_vm0, %v11545_v50, 0.0  ;;  %v3261_v38 = vmul.f32 %v11568_v60, %v11568_v60 }
 0x6f5   : > { %3194 = vadd.xlane.f32.xlu2 %v3193_v23  ;;  %3817 = vadd.xlane.f32.xlu1 %v3816_v47  ;;  %v3294_v48 = vpop.xlane.xlu1 %3293  ;;  %v3463_v47 = vmul.f32 %v11547_v11, %v3462_v28 }
 0x6f6   : > { %v3348_v40 = vmul.f32 %v3294_v48, %v10487_v0  ;;  %v3319_v4 = vsel %vm728_vm0, %v3261_v38, 0.0 }
 0x6f7   : > { %v3174_v30 = vpop.xlane.xlu2 %3173 }
 0x6f8   : > { %v8910_v63 = vpop.eup %8909  ;;  %v11562_v39 = vadd.f32 1e-05, %v3348_v40  ;;  %v3212_v36 = vmul.f32 %v3174_v30, %v10487_v0 }
 0x6f9   : > { %v3479_v12 = vmul.f32 %v8910_v63, %v3373_v5  ;;  %v11565_v34 = vpop.eup %8911  ;;  %vm3485_vm7 = vweird.f32 %v8910_v63  ;;  %v3467_v5 = vsel %vm3466_vm12, %v11547_v11, %v3463_v47 }
 0x6fa   : > { %8913 = vrsqrt.f32 %v11562_v39  ;;  %v3449_v15 = vmul.f32 %v11565_v34, %v11539_v26  ;;  %v11589_v7 = vsub.f32 %v11398_v35, %v3212_v36  ;;  %vm3486_vm10 = vmor %vm3484_vm9, %vm3485_vm7  ;;  %v3635_v38 = vmul.f32 %v3467_v5, %v11339_v52 }
 0x6fb   : > { %v3480_v2 = vmul.f32 %v8910_v63, %v3479_v12  ;;  %vm3455_vm14 = vweird.f32 %v11565_v34  ;;  %vm3474_vm15 = vweird.f32 %v11562_v39 }
 0x6fc   : > { %v3450_v31 = vmul.f32 %v11565_v34, %v3449_v15  ;;  %v3260_v12 = vmul.f32 %v11589_v7, %v11589_v7  ;;  %vm3456_vm5 = vmor %vm3454_vm2, %vm3455_vm14 }
 0x6fd   : > { %3191 = vadd.xlane.f32.xlu2 %v3190_v1  ;;  %v3481_v62 = vmul.f32 0.5, %v3480_v2 }
 0x6fe   : > { %v3451_v54 = vmul.f32 0.5, %v3450_v31 }
 0x6ff   : > { %v3303_v57 = vpop.xlane.xlu2 %3302  ;;  %v3482_v9 = vsub.f32 1.5, %v3481_v62  ;;  %v3183_v51 = vpop.xlane.xlu0 %3182 }
 0x700   : > { %v3351_v14 = vmul.f32 %v3303_v57, %v10487_v0  ;;  %v11579_v29 = vpop.eup %8913  ;;  %v3215_v22 = vmul.f32 %v3183_v51, %v10487_v0  ;;  %v3452_v13 = vsub.f32 1.5, %v3451_v54 }
 0x701   : > { %v3469_v58 = vmul.f32 %v11579_v29, %v11562_v39  ;;  %v3483_v3 = vmul.f32 %v8910_v63, %v3482_v9  ;;  %vm3475_vm13 = vweird.f32 %v11579_v29 }
 0x702   : > { %v11581_v24 = vadd.f32 1e-05, %v3351_v14  ;;  %v11607_v19 = vsub.f32 %v11414_v27, %v3215_v22  ;;  %v3316_v14 = vsel %vm728_vm0, %v3260_v12, 0.0  ;;  %v3453_v9 = vmul.f32 %v11565_v34, %v3452_v13  ;;  %vm11619_vm3 = vmor %vm3474_vm15, %vm3475_vm13 }
 0x703   : > { %v3470_v23 = vmul.f32 %v11579_v29, %v3469_v58  ;;  %v3487_v35 = vsel %vm3486_vm10, %v8910_v63, %v3483_v3 }
 0x704   : > { %8915 = vrsqrt.f32 %v11581_v24  ;;  %v3637_v62 = vmul.f32 %v3487_v35, %v11370_v46  ;;  %v3263_v31 = vmul.f32 %v11607_v19, %v11607_v19  ;;  %vm3504_vm6 = vweird.f32 %v11581_v24 }
 0x705   : > { %3320 = vadd.xlane.f32.xlu2 %v3319_v4  ;;  %v3471_v30 = vmul.f32 0.5, %v3470_v23  ;;  %v3660_v4 = vmul.f32 %v11434_v10, %v3635_v38  ;;  %v3457_v23 = vsel %vm3456_vm5, %v11565_v34, %v3453_v9 }
 0x706   : > { %v3662_v36 = vmul.f32 %v11434_v10, %v3637_v62  ;;  %v3325_v34 = vsel %vm728_vm0, %v3263_v31, 0.0  ;;  %v9263_v31 = vld [vmem:[%s9948_s4 + $0x48] sm:$0xff] }
 0x707   : > { %v3300_v48 = vpop.xlane.xlu2 %3299  ;;  %v3472_v33 = vsub.f32 1.5, %v3471_v30  ;;  %v3180_v11 = vpop.xlane.xlu0 %3179  ;;  %v3685_v35 = vadd.f32 %v11444_v49, %v3660_v4 }
 0x708   : > { %v3350_v40 = vmul.f32 %v3300_v48, %v10487_v0  ;;  %v3214_v51 = vmul.f32 %v3180_v11, %v10487_v0  ;;  %v3687_v54 = vadd.f32 %v11444_v49, %v3662_v36 }
 0x709   : > { %v3473_v63 = vmul.f32 %v11579_v29, %v3472_v33 }
 0x70a   : > { %v8916_v2 = vpop.eup %8915  ;;  %v11601_v1 = vadd.f32 1e-05, %v3350_v40 }
 0x70b   : > { %v3499_v15 = vmul.f32 %v8916_v2, %v11581_v24  ;;  %v3477_v58 = vsel %vm11619_vm3, %v11579_v29, %v3473_v63  ;;  %vm3505_vm4 = vweird.f32 %v8916_v2  ;;  %v3634_v24 = vmul.f32 %v3457_v23, %v11346_v43 }
 0x70c   : > { %8917 = vrsqrt.f32 %v11601_v1  ;;  %v3636_v30 = vmul.f32 %v3477_v58, %v11387_v17  ;;  %vm3506_vm7 = vmor %vm3504_vm6, %vm3505_vm4  ;;  %vm3494_vm9 = vweird.f32 %v11601_v1 }
 0x70d   : > { %v3500_v57 = vmul.f32 %v8916_v2, %v3499_v15  ;;  %3317 = vadd.xlane.f32.xlu2 %v3316_v14  ;;  %v3659_v63 = vmul.f32 %v11434_v10, %v3634_v24 }
 0x70e   : > { %v3661_v13 = vmul.f32 %v11434_v10, %v3636_v30 }
 0x70f   : > { %v3501_v46 = vmul.f32 0.5, %v3500_v57  ;;  %v3189_v27 = vpop.xlane.xlu1 %3188  ;;  %v3684_v58 = vadd.f32 %v11444_v49, %v3659_v63  ;;  %v3309_v63 = vpop.xlane.xlu0 %3308 }
 0x710   : > { %v3217_v52 = vmul.f32 %v3189_v27, %v10487_v0  ;;  %v3686_v9 = vadd.f32 %v11444_v49, %v3661_v13 }
 0x711   : > { %v3502_v39 = vsub.f32 1.5, %v3501_v46 }
 0x712   : > { %v8918_v26 = vpop.eup %8917  ;;  %v11634_v3 = vsub.f32 %v11457_v37, %v3217_v52  ;;  %v11644_v37 = vsub.f32 %v11432_v45, %v3214_v51  ;;  %v9262_v52 = vld [vmem:[%s9948_s4 + $0x38] sm:$0xff]  ;;  %v3730_v4 = vmul.f32 %v11452_v44, %v3686_v9 }
 0x713   : > { %v3503_v47 = vmul.f32 %v8916_v2, %v3502_v39  ;;  %v3489_v29 = vmul.f32 %v8918_v26, %v11601_v1  ;;  %vm3495_vm8 = vweird.f32 %v8918_v26 }
 0x714   : > { %v3265_v48 = vmul.f32 %v11634_v3, %v11634_v3  ;;  %v3262_v43 = vmul.f32 %v11644_v37, %v11644_v37  ;;  %vm3496_vm10 = vmor %vm3494_vm9, %vm3495_vm8 }
 0x715   : > { %v3507_v22 = vsel %vm3506_vm7, %v8916_v2, %v3503_v47  ;;  %v3490_v40 = vmul.f32 %v8918_v26, %v3489_v29  ;;  %3326 = vadd.xlane.f32.xlu2 %v3325_v34  ;;  %v3731_v2 = vmul.f32 %v11452_v44, %v3687_v54  ;;  %v9264_v47 = vld [vmem:[%s9948_s4 + $0x58] sm:$0xff]  ;;  %v3709_v54 = vmul.f32 %v11459_v56, %v3684_v58  ;;  %v9266_v34 = vld [vmem:[%s9948_s4 + $0x40] sm:$0xff] }
 0x716   : > { %v3639_v33 = vmul.f32 %v3507_v22, %v11404_v42  ;;  %v3331_v17 = vsel %vm728_vm0, %v3265_v48, 0.0  ;;  %v3710_v42 = vmul.f32 %v11459_v56, %v3685_v35  ;;  %v3322_v28 = vsel %vm728_vm0, %v3262_v43, 0.0 }
 0x717   : > { %v3491_v12 = vmul.f32 0.5, %v3490_v40  ;;  %3332 = vadd.xlane.f32.xlu0 %v3331_v17  ;;  %v3186_v5 = vpop.xlane.xlu1 %3185  ;;  %v9265_v40 = vld [vmem:[%s9948_s4 + $0x30] sm:$0xff] }
 0x718   : > { %v3664_v45 = vmul.f32 %v11434_v10, %v3639_v33  ;;  %v3216_v15 = vmul.f32 %v3186_v5, %v10487_v0  ;;  %v3739_v11 = vadd.f32 %v3731_v2, %v3710_v42  ;;  %v3717_v35 = vadd.f32 %v9266_v34, %v9265_v40  ;;  %v9267_v5 = vld [vmem:[%s9948_s4 + $0x50] sm:$0xff] }
 0x719   : > { %v3492_v62 = vsub.f32 1.5, %v3491_v12 }
 0x71a   : > { %v3689_v57 = vadd.f32 %v11444_v49, %v3664_v45  ;;  %v11661_v14 = vsub.f32 %v11478_v41, %v3216_v15  ;;  %v3718_v41 = vadd.f32 %v9263_v31, %v9262_v52  ;;  %v3746_v2 = vadd.f32 %v9267_v5, %v3717_v35 }
 0x71b   : > { %v3493_v38 = vmul.f32 %v8918_v26, %v3492_v62 }
 0x71c   : > { %v3760_v46 = vmul.f32 %v11470_v25, %v3689_v57  ;;  %v3264_v27 = vmul.f32 %v11661_v14, %v11661_v14  ;;  %v3747_v29 = vadd.f32 %v9264_v47, %v3718_v41  ;;  %v3775_v45 = vmul.f32 0.33333334, %v3746_v2 }
 0x71d   : > { %v3497_v36 = vsel %vm3496_vm10, %v8918_v26, %v3493_v38  ;;  %3323 = vadd.xlane.f32.xlu2 %v3322_v28  ;;  %v3353_v38 = vmul.f32 %v3309_v63, %v10487_v0 }
 0x71e   : > { %v3768_v39 = vadd.f32 %v3760_v46, %v3739_v11  ;;  %v3638_v1 = vmul.f32 %v3497_v36, %v11419_v61  ;;  %v3328_v51 = vsel %vm728_vm0, %v3264_v27, 0.0  ;;  %v3738_v61 = vadd.f32 %v3730_v4, %v3709_v54  ;;  %v3306_v27 = vpop.xlane.xlu0 %3305 }
 0x71f   : > { %3329 = vadd.xlane.f32.xlu0 %v3328_v51  ;;  %v3776_v22 = vmul.f32 0.33333334, %v3747_v29  ;;  %v11703_v46 = vadd.f32 1e-05, %v3353_v38  ;;  %v3352_v28 = vmul.f32 %v3306_v27, %v10487_v0 }
 0x720   : > { %v3663_v26 = vmul.f32 %v11434_v10, %v3638_v1  ;;  %v3789_v23 = vadd.f32 %v11480_v6, %v3768_v39 }
 0x721   : > { %v11715_v51 = vadd.f32 1e-05, %v3352_v28  ;;  %vm3524_vm15 = vweird.f32 %v11703_v46 }
 0x722   : > { %v3688_v30 = vadd.f32 %v11444_v49, %v3663_v26  ;;  %8919 = vtanh.f32 %v3789_v23 }
 0x723   : > { %vm3514_vm7 = vweird.f32 %v11715_v51 }
 0x724   : > { %v3759_v48 = vmul.f32 %v11470_v25, %v3688_v30 }
 0x726   : > { %v3767_v24 = vadd.f32 %v3759_v48, %v3738_v61  ;;  %v3821_v30 = vpop.xlane.xlu0 %3820 }
 0x727   : > { %v3841_v35 = vmul.f32 %v3821_v30, %v10487_v0 }
 0x728   : > { %v11683_v33 = vpop.eup %8919  ;;  %v3788_v17 = vadd.f32 %v11480_v6, %v3767_v24 }
 0x729   : > { %v11687_v12 = vadd.f32 %v11683_v33, %v3776_v22 }
 0x72a   : > { %8921 = vtanh.f32 %v3788_v17 }
 0x72b   : > { %v3825_v13 = vsel %vm728_vm0, %v11687_v12, 0.0 }
 0x72c   : > { %3826 = vadd.xlane.f32.xlu2 %v3825_v13 }
 0x730   : > { %v11692_v15 = vpop.eup %8921 }
 0x731   : > { %v11695_v62 = vadd.f32 %v11692_v15, %v3775_v45 }
 0x733   : > { %v3822_v43 = vsel %vm728_vm0, %v11695_v62, 0.0 }
 0x734   : > { %3823 = vadd.xlane.f32.xlu0 %v3822_v43  ;;  %v11753_v43 = vsub.f32 %v11496_v53, %v3841_v35 }
 0x736   : > { %v3857_v28 = vmul.f32 %v11753_v43, %v11753_v43 }
 0x758   : > { %v3315_v42 = vpop.xlane.xlu1 %3314 }
 0x759   : > { %v3355_v57 = vmul.f32 %v3315_v42, %v10487_v0 }
 0x75b   : > { %v11701_v11 = vadd.f32 1e-05, %v3355_v57 }
 0x75d   : > { %8923 = vrsqrt.f32 %v11701_v11  ;;  %vm3544_vm13 = vweird.f32 %v11701_v11 }
 0x75e   : > { %8925 = vrsqrt.f32 %v11703_v46 }
 0x760   : > { %v3312_v9 = vpop.xlane.xlu1 %3311 }
 0x761   : > { %v3354_v36 = vmul.f32 %v3312_v9, %v10487_v0 }
 0x763   : > { %v11709_v31 = vadd.f32 1e-05, %v3354_v36  ;;  %v11713_v1 = vpop.eup %8923 }
 0x764   : > { %v11723_v23 = vpop.eup %8925  ;;  %v3539_v29 = vmul.f32 %v11713_v1, %v11701_v11  ;;  %vm3545_vm11 = vweird.f32 %v11713_v1 }
 0x765   : > { %8927 = vrsqrt.f32 %v11709_v31  ;;  %vm3525_vm12 = vweird.f32 %v11723_v23  ;;  %vm3546_vm14 = vmor %vm3544_vm13, %vm3545_vm11  ;;  %vm3534_vm5 = vweird.f32 %v11709_v31 }
 0x766   : > { %8929 = vrsqrt.f32 %v11715_v51  ;;  %v3540_v40 = vmul.f32 %v11713_v1, %v3539_v29  ;;  %vm3526_vm2 = vmor %vm3524_vm15, %vm3525_vm12 }
 0x768   : > { %v3195_v52 = vpop.xlane.xlu2 %3194  ;;  %v3818_v58 = vpop.xlane.xlu1 %3817  ;;  %v3541_v13 = vmul.f32 0.5, %v3540_v40 }
 0x769   : > { %v3219_v41 = vmul.f32 %v3195_v52, %v10487_v0  ;;  %v3840_v39 = vmul.f32 %v3818_v58, %v10487_v0 }
 0x76a   : > { %v3542_v9 = vsub.f32 1.5, %v3541_v13 }
 0x76b   : > { %v11718_v4 = vsub.f32 %v11545_v50, %v3219_v41  ;;  %v11721_v26 = vsub.f32 %v11542_v55, %v3840_v39  ;;  %v3519_v55 = vmul.f32 %v11723_v23, %v11703_v46  ;;  %v11739_v34 = vpop.eup %8927  ;;  %v3867_v39 = vsel %vm728_vm0, %v3857_v28, 0.0 }
 0x76c   : > { %v11746_v5 = vpop.eup %8929  ;;  %v3529_v45 = vmul.f32 %v11739_v34, %v11709_v31  ;;  %v3543_v41 = vmul.f32 %v11713_v1, %v3542_v9  ;;  %vm3535_vm3 = vweird.f32 %v11739_v34 }
 0x76d   : > { %v3267_v47 = vmul.f32 %v11718_v4, %v11718_v4  ;;  %v3856_v54 = vmul.f32 %v11721_v26, %v11721_v26  ;;  %v3520_v17 = vmul.f32 %v11723_v23, %v3519_v55  ;;  %vm3515_vm4 = vweird.f32 %v11746_v5  ;;  %vm3536_vm6 = vmor %vm3534_vm5, %vm3535_vm3 }
 0x76e   : > { %v3530_v27 = vmul.f32 %v11739_v34, %v3529_v45  ;;  %v3547_v55 = vsel %vm3546_vm14, %v11713_v1, %v3543_v41  ;;  %vm3516_vm9 = vmor %vm3514_vm7, %vm3515_vm4 }
 0x76f   : > { %v3337_v50 = vsel %vm728_vm0, %v3267_v47, 0.0  ;;  %v3864_v48 = vsel %vm728_vm0, %v3856_v54, 0.0  ;;  %v3521_v63 = vmul.f32 0.5, %v3520_v17  ;;  %v3643_v17 = vmul.f32 %v3547_v55, %v11514_v21 }
 0x770   : > { %v3192_v61 = vpop.xlane.xlu2 %3191  ;;  %3338 = vadd.xlane.f32.xlu1 %v3337_v50  ;;  %3865 = vadd.xlane.f32.xlu2 %v3864_v48  ;;  %v3531_v58 = vmul.f32 0.5, %v3530_v27 }
 0x771   : > { %v3218_v22 = vmul.f32 %v3192_v61, %v10487_v0  ;;  %v3522_v52 = vsub.f32 1.5, %v3521_v63 }
 0x772   : > { %v3532_v30 = vsub.f32 1.5, %v3531_v58 }
 0x773   : > { %v11743_v24 = vsub.f32 %v11560_v8, %v3218_v22  ;;  %v3509_v8 = vmul.f32 %v11746_v5, %v11715_v51  ;;  %v3523_v47 = vmul.f32 %v11723_v23, %v3522_v52 }
 0x774   : > { %v3533_v11 = vmul.f32 %v11739_v34, %v3532_v30 }
 0x775   : > { %v3266_v2 = vmul.f32 %v11743_v24, %v11743_v24  ;;  %v3510_v53 = vmul.f32 %v11746_v5, %v3509_v8  ;;  %v3527_v22 = vsel %vm3526_vm2, %v11723_v23, %v3523_v47  ;;  %v3668_v23 = vmul.f32 %v11434_v10, %v3643_v17 }
 0x776   : > { %v3641_v46 = vmul.f32 %v3527_v22, %v11438_v18  ;;  %v3537_v21 = vsel %vm3536_vm6, %v11739_v34, %v3533_v11  ;;  %v9269_v22 = vld [vmem:[%s9948_s4 + $0x78] sm:$0xff] }
 0x777   : > { %v3334_v42 = vsel %vm728_vm0, %v3266_v2, 0.0  ;;  %v3511_v29 = vmul.f32 0.5, %v3510_v53  ;;  %v3642_v9 = vmul.f32 %v3537_v21, %v11527_v32 }
 0x778   : > { %v3321_v57 = vpop.xlane.xlu2 %3320  ;;  %3335 = vadd.xlane.f32.xlu1 %v3334_v42  ;;  %v3666_v63 = vmul.f32 %v11434_v10, %v3641_v46 }
 0x779   : > { %v3357_v38 = vmul.f32 %v3321_v57, %v10487_v0  ;;  %v3512_v40 = vsub.f32 1.5, %v3511_v29 }
 0x77a   : > { %v3691_v27 = vadd.f32 %v11444_v49, %v3666_v63 }
 0x77b   : > { %v3381_v36 = vadd.f32 1e-05, %v3357_v38  ;;  %v3513_v1 = vmul.f32 %v11746_v5, %v3512_v40  ;;  %v3693_v38 = vadd.f32 %v11444_v49, %v3668_v23 }
 0x77c   : > { %v3712_v32 = vmul.f32 %v11459_v56, %v3691_v27 }
 0x77d   : > { %8931 = vrsqrt.f32 %v3381_v36  ;;  %v3517_v18 = vsel %vm3516_vm9, %v11746_v5, %v3513_v1  ;;  %vm3564_vm10 = vweird.f32 %v3381_v36  ;;  %v3733_v5 = vmul.f32 %v11452_v44, %v3693_v38  ;;  %v9270_v1 = vld [vmem:[%s9948_s4 + $0x88] sm:$0xff] }
 0x77e   : > { %v3640_v28 = vmul.f32 %v3517_v18, %v11462_v59 }
 0x77f   : > { %v3741_v29 = vadd.f32 %v3733_v5, %v3712_v32 }
 0x780   : > { %v3318_v54 = vpop.xlane.xlu2 %3317  ;;  %3868 = vadd.xlane.f32.xlu1 %v3867_v39  ;;  %v3665_v39 = vmul.f32 %v11434_v10, %v3640_v28  ;;  %v9273_v28 = vld [vmem:[%s9948_s4 + $0x80] sm:$0xff] }
 0x781   : > { %v3356_v50 = vmul.f32 %v3318_v54, %v10487_v0 }
 0x783   : > { %v8932_v61 = vpop.eup %8931  ;;  %v3380_v48 = vadd.f32 1e-05, %v3356_v50 }
 0x784   : > { %v3559_v35 = vmul.f32 %v8932_v61, %v3381_v36  ;;  %vm3565_vm8 = vweird.f32 %v8932_v61  ;;  %v3667_v36 = vmul.f32 %v11434_v10, %v3642_v9 }
 0x785   : > { %8933 = vrsqrt.f32 %v3380_v48  ;;  %vm3566_vm11 = vmor %vm3564_vm10, %vm3565_vm8  ;;  %vm3554_vm13 = vweird.f32 %v3380_v48 }
 0x786   : > { %v3560_v2 = vmul.f32 %v8932_v61, %v3559_v35  ;;  %v3692_v54 = vadd.f32 %v11444_v49, %v3667_v36  ;;  %v3690_v35 = vadd.f32 %v11444_v49, %v3665_v39 }
 0x788   : > { %v3561_v13 = vmul.f32 0.5, %v3560_v2  ;;  %v11785_v31 = vpop.xlane.xlu2 %3326  ;;  %v3732_v11 = vmul.f32 %v11452_v44, %v3692_v54  ;;  %v3711_v23 = vmul.f32 %v11459_v56, %v3690_v35 }
 0x78a   : > { %v3562_v45 = vsub.f32 1.5, %v3561_v13 }
 0x78b   : > { %v8934_v42 = vpop.eup %8933 }
 0x78c   : > { %v3563_v8 = vmul.f32 %v8932_v61, %v3562_v45  ;;  %v3549_v57 = vmul.f32 %v8934_v42, %v3380_v48  ;;  %vm3555_vm12 = vweird.f32 %v8934_v42  ;;  %v3740_v45 = vadd.f32 %v3732_v11, %v3711_v23 }
 0x78d   : > { %vm3556_vm14 = vmor %vm3554_vm13, %vm3555_vm12 }
 0x78e   : > { %v3567_v51 = vsel %vm3566_vm11, %v8932_v61, %v3563_v8  ;;  %v3550_v34 = vmul.f32 %v8934_v42, %v3549_v57  ;;  %v9268_v61 = vld [vmem:[%s9948_s4 + $0x68] sm:$0xff]  ;;  %v9271_v8 = vld [vmem:[%s9948_s4 + $0x60] sm:$0xff]  ;;  %v9272_v57 = vld [vmem:[%s9948_s4 + $0x70] sm:$0xff] }
 0x78f   : > { %v3645_v52 = vmul.f32 %v3567_v51, %v11568_v60  ;;  %v3333_v60 = vpop.xlane.xlu0 %3332  ;;  %v3720_v40 = vadd.f32 %v9269_v22, %v9268_v61  ;;  %v3719_v38 = vadd.f32 %v9272_v57, %v9271_v8 }
 0x790   : > { %v3551_v53 = vmul.f32 0.5, %v3550_v34  ;;  %v3324_v30 = vpop.xlane.xlu2 %3323 }
 0x791   : > { %v3670_v41 = vmul.f32 %v11434_v10, %v3645_v52  ;;  %v3749_v13 = vadd.f32 %v9270_v1, %v3720_v40  ;;  %v3748_v52 = vadd.f32 %v9273_v28, %v3719_v38  ;;  %v3358_v22 = vmul.f32 %v3324_v30, %v10487_v0 }
 0x792   : > { %v3552_v58 = vsub.f32 1.5, %v3551_v53 }
 0x793   : > { %v3695_v47 = vadd.f32 %v11444_v49, %v3670_v41  ;;  %v3382_v35 = vadd.f32 1e-05, %v3358_v22 }
 0x794   : > { %v3553_v59 = vmul.f32 %v8934_v42, %v3552_v58  ;;  %v3777_v58 = vmul.f32 0.33333334, %v3748_v52 }
 0x795   : > { %v3762_v50 = vmul.f32 %v11470_v25, %v3695_v47  ;;  %vm3574_vm9 = vweird.f32 %v3382_v35 }
 0x796   : > { %v3557_v55 = vsel %vm3556_vm14, %v8934_v42, %v3553_v59 }
 0x797   : > { %v3770_v17 = vadd.f32 %v3762_v50, %v3741_v29  ;;  %v3644_v48 = vmul.f32 %v3557_v55, %v11589_v7  ;;  %v3330_v63 = vpop.xlane.xlu0 %3329  ;;  %v3778_v7 = vmul.f32 0.33333334, %v3749_v13  ;;  %v3359_v50 = vmul.f32 %v11785_v31, %v10487_v0 }
 0x798   : > { %v3361_v55 = vmul.f32 %v3333_v60, %v10487_v0  ;;  %v3360_v40 = vmul.f32 %v3330_v63, %v10487_v0 }
 0x799   : > { %v3669_v2 = vmul.f32 %v11434_v10, %v3644_v48  ;;  %v3791_v46 = vadd.f32 %v11480_v6, %v3770_v17 }
 0x79a   : > { %v3385_v61 = vadd.f32 1e-05, %v3361_v55  ;;  %v11848_v48 = vadd.f32 1e-05, %v3360_v40 }
 0x79b   : > { %v3694_v21 = vadd.f32 %v11444_v49, %v3669_v2  ;;  %8935 = vtanh.f32 %v3791_v46 }
 0x79c   : > { %vm3604_vm5 = vweird.f32 %v3385_v61  ;;  %vm3594_vm11 = vweird.f32 %v11848_v48 }
 0x79d   : > { %v3761_v42 = vmul.f32 %v11470_v25, %v3694_v21 }
 0x79f   : > { %v3827_v18 = vpop.xlane.xlu2 %3826  ;;  %v3769_v10 = vadd.f32 %v3761_v42, %v3740_v45 }
 0x7a0   : > { %v3843_v9 = vmul.f32 %v3827_v18, %v10487_v0 }
 0x7a1   : > { %v11814_v51 = vpop.eup %8935  ;;  %v3790_v34 = vadd.f32 %v11480_v6, %v3769_v10 }
 0x7a2   : > { %13896 = vst [vmem:[#allocation29_spill] sm:$0xff] %v11814_v51  ;;  %v11818_v49 = vsub.f32 %v11687_v12, %v3843_v9  ;;  %v11821_v27 = vadd.f32 %v11814_v51, %v3778_v7 }
 0x7a3   : > { %8937 = vtanh.f32 %v3790_v34 }
 0x7a4   : > { %v3831_v53 = vsel %vm728_vm0, %v11821_v27, 0.0  ;;  %v3859_v5 = vmul.f32 %v11818_v49, %v11818_v49 }
 0x7a5   : > { %3832 = vadd.xlane.f32.xlu0 %v3831_v53 }
 0x7a6   : > { %v3873_v41 = vsel %vm728_vm0, %v3859_v5, 0.0 }
 0x7a7   : > { %v3824_v36 = vpop.xlane.xlu0 %3823  ;;  %3874 = vadd.xlane.f32.xlu2 %v3873_v41 }
 0x7a8   : > { %v3842_v12 = vmul.f32 %v3824_v36, %v10487_v0 }
 0x7a9   : > { %v11830_v32 = vpop.eup %8937 }
 0x7aa   : > { %13897 = vst [vmem:[#allocation30_spill] sm:$0xff] %v11830_v32  ;;  %v11833_v39 = vsub.f32 %v11695_v62, %v3842_v12  ;;  %v11836_v47 = vadd.f32 %v11830_v32, %v3777_v58  ;;  %v3383_v62 = vadd.f32 1e-05, %v3359_v50 }
 0x7ac   : > { %v3858_v59 = vmul.f32 %v11833_v39, %v11833_v39  ;;  %v3828_v29 = vsel %vm728_vm0, %v11836_v47, 0.0  ;;  %8939 = vrsqrt.f32 %v3383_v62  ;;  %vm3584_vm2 = vweird.f32 %v3383_v62 }
 0x7ad   : > { %3829 = vadd.xlane.f32.xlu1 %v3828_v29  ;;  %8941 = vrsqrt.f32 %v3385_v61 }
 0x7ae   : > { %v3870_v54 = vsel %vm728_vm0, %v3858_v59, 0.0  ;;  %8943 = vrsqrt.f32 %v3382_v35 }
 0x7af   : > { %3871 = vadd.xlane.f32.xlu0 %v3870_v54  ;;  %8945 = vrsqrt.f32 %v11848_v48 }
 0x7b2   : > { %v8940_v17 = vpop.eup %8939 }
 0x7b3   : > { %v8942_v11 = vpop.eup %8941  ;;  %v3579_v2 = vmul.f32 %v8940_v17, %v3383_v62  ;;  %vm3585_vm15 = vweird.f32 %v8940_v17 }
 0x7b4   : > { %v3599_v31 = vmul.f32 %v8942_v11, %v3385_v61  ;;  %v11851_v60 = vpop.eup %8943  ;;  %vm3605_vm3 = vweird.f32 %v8942_v11  ;;  %vm3586_vm4 = vmor %vm3584_vm2, %vm3585_vm15 }
 0x7b5   : > { %v3580_v46 = vmul.f32 %v8940_v17, %v3579_v2  ;;  %v11853_v13 = vpop.eup %8945  ;;  %v3569_v21 = vmul.f32 %v11851_v60, %v3382_v35  ;;  %vm3606_vm6 = vmor %vm3604_vm5, %vm3605_vm3  ;;  %vm3575_vm7 = vweird.f32 %v11851_v60  ;;  %v11874_v2 = vld [vmem:[#allocation8 + $0x4] ss:$0 sm:$0xff] }
 0x7b6   : > { %v3600_v1 = vmul.f32 %v8942_v11, %v3599_v31  ;;  %v3589_v45 = vmul.f32 %v11853_v13, %v11848_v48  ;;  %vm3595_vm8 = vweird.f32 %v11853_v13  ;;  %vm11877_vm10 = vmor %vm3574_vm9, %vm3575_vm7  ;;  %v9276_v31 = vld [vmem:[%s9948_s4 + $0xa8] sm:$0xff] }
 0x7b7   : > { %v3581_v30 = vmul.f32 0.5, %v3580_v46  ;;  %v3570_v57 = vmul.f32 %v11851_v60, %v3569_v21  ;;  %vm11885_vm12 = vmor %vm3594_vm11, %vm3595_vm8 }
 0x7b8   : > { %v3601_v23 = vmul.f32 0.5, %v3600_v1  ;;  %v3590_v38 = vmul.f32 %v11853_v13, %v3589_v45 }
 0x7b9   : > { %v3582_v42 = vsub.f32 1.5, %v3581_v30  ;;  %v3571_v53 = vmul.f32 0.5, %v3570_v57 }
 0x7ba   : > { %v3602_v8 = vsub.f32 1.5, %v3601_v23  ;;  %v3591_v5 = vmul.f32 0.5, %v3590_v38 }
 0x7bb   : > { %v3583_v34 = vmul.f32 %v8940_v17, %v3582_v42  ;;  %v3572_v59 = vsub.f32 1.5, %v3571_v53 }
 0x7bc   : > { %v3603_v52 = vmul.f32 %v8942_v11, %v3602_v8  ;;  %v3592_v29 = vsub.f32 1.5, %v3591_v5 }
 0x7bd   : > { %v3587_v36 = vsel %vm3586_vm4, %v8940_v17, %v3583_v34  ;;  %v3573_v61 = vmul.f32 %v11851_v60, %v3572_v59 }
 0x7be   : > { %v3607_v12 = vsel %vm3606_vm6, %v8942_v11, %v3603_v52  ;;  %v3647_v50 = vmul.f32 %v3587_v36, %v11607_v19  ;;  %v3593_v17 = vmul.f32 %v11853_v13, %v3592_v29 }
 0x7bf   : > { %v3649_v40 = vmul.f32 %v3607_v12, %v11634_v3  ;;  %v3577_v35 = vsel %vm11877_vm10, %v11851_v60, %v3573_v61 }
 0x7c0   : > { %v3672_v19 = vmul.f32 %v11874_v2, %v3647_v50  ;;  %v3597_v48 = vsel %vm11885_vm12, %v11853_v13, %v3593_v17  ;;  %v3646_v34 = vmul.f32 %v3577_v35, %v11644_v37 }
 0x7c1   : > { %v3674_v30 = vmul.f32 %v11874_v2, %v3649_v40  ;;  %v3648_v60 = vmul.f32 %v3597_v48, %v11661_v14 }
 0x7c3   : > { %v3673_v12 = vmul.f32 %v11874_v2, %v3648_v60  ;;  %v9280_v60 = vld [vmem:[%s9948_s4 + $0x90] sm:$0xff] }
 0x7e3   : > { %v3339_v63 = vpop.xlane.xlu1 %3338  ;;  %v3866_v18 = vpop.xlane.xlu2 %3865 }
 0x7e4   : > { %v3363_v7 = vmul.f32 %v3339_v63, %v10487_v0  ;;  %v3888_v10 = vmul.f32 %v3866_v18, %v10487_v0  ;;  %v9275_v63 = vld [vmem:[#allocation8 + $0x5] ss:$0 sm:$0xff] }
 0x7e5   : > { %v3697_v18 = vadd.f32 %v9275_v63, %v3672_v19  ;;  %v3698_v61 = vadd.f32 %v9275_v63, %v3673_v12 }
 0x7e6   : > { %v3387_v9 = vadd.f32 1e-05, %v3363_v7  ;;  %v11862_v28 = vadd.f32 1e-05, %v3888_v10  ;;  %v3699_v10 = vadd.f32 %v9275_v63, %v3674_v30 }
 0x7e7   : > { %v3714_v5 = vmul.f32 %v11459_v56, %v3697_v18  ;;  %v3734_v35 = vmul.f32 %v11452_v44, %v3698_v61 }
 0x7e8   : > { %8947 = vrsqrt.f32 %v3387_v9  ;;  %vm3624_vm14 = vweird.f32 %v3387_v9  ;;  %vm3910_vm6 = vweird.f32 %v11862_v28 }
 0x7e9   : > { %8949 = vrsqrt.f32 %v11862_v28 }
 0x7eb   : > { %v3336_v41 = vpop.xlane.xlu1 %3335 }
 0x7ec   : > { %v3362_v58 = vmul.f32 %v3336_v41, %v10487_v0 }
 0x7ee   : > { %v8948_v54 = vpop.eup %8947  ;;  %v3386_v55 = vadd.f32 1e-05, %v3362_v58  ;;  %v3735_v58 = vmul.f32 %v11452_v44, %v3699_v10 }
 0x7ef   : > { %v3619_v62 = vmul.f32 %v8948_v54, %v3387_v9  ;;  %v11867_v22 = vpop.eup %8949  ;;  %vm3625_vm13 = vweird.f32 %v8948_v54  ;;  %v3671_v9 = vmul.f32 %v11874_v2, %v3646_v34  ;;  %v9279_v34 = vld [vmem:[%s9948_s4 + $0xa0] sm:$0xff] }
 0x7f0   : > { %8951 = vrsqrt.f32 %v3386_v55  ;;  %v3905_v3 = vmul.f32 %v11867_v22, %v11862_v28  ;;  %vm3626_vm15 = vmor %vm3624_vm14, %vm3625_vm13  ;;  %vm3614_vm3 = vweird.f32 %v3386_v55  ;;  %vm3911_vm5 = vweird.f32 %v11867_v22 }
 0x7f1   : > { %v3620_v11 = vmul.f32 %v8948_v54, %v3619_v62  ;;  %v3743_v62 = vadd.f32 %v3735_v58, %v3714_v5  ;;  %v3696_v40 = vadd.f32 %v9275_v63, %v3671_v9  ;;  %vm11917_vm8 = vmor %vm3910_vm6, %vm3911_vm5  ;;  %v11940_v5 = vld [vmem:[%s13834_s10 + $0x1] ss:$0 sm:$0xff] }
 0x7f2   : > { %v3906_v8 = vmul.f32 %v11867_v22, %v3905_v3  ;;  %v9277_v3 = vld [vmem:[%s9948_s4 + $0x98] sm:$0xff] }
 0x7f3   : > { %v3621_v46 = vmul.f32 0.5, %v3620_v11  ;;  %v3869_v1 = vpop.xlane.xlu1 %3868 }
 0x7f4   : > { %v3889_v21 = vmul.f32 %v3869_v1, %v10487_v0  ;;  %v3907_v36 = vmul.f32 0.5, %v3906_v8 }
 0x7f5   : > { %v3622_v45 = vsub.f32 1.5, %v3621_v46  ;;  %v3722_v46 = vadd.f32 %v9277_v3, %v9276_v31 }
 0x7f6   : > { %v8952_v42 = vpop.eup %8951  ;;  %v3897_v7 = vadd.f32 1e-05, %v3889_v21  ;;  %v3713_v21 = vmul.f32 %v11459_v56, %v3696_v40 }
 0x7f7   : > { %v3623_v57 = vmul.f32 %v8948_v54, %v3622_v45  ;;  %v3609_v38 = vmul.f32 %v8952_v42, %v3386_v55  ;;  %vm3615_vm2 = vweird.f32 %v8952_v42 }
 0x7f8   : > { %8953 = vrsqrt.f32 %v3897_v7  ;;  %vm3616_vm4 = vmor %vm3614_vm3, %vm3615_vm2  ;;  %vm3920_vm9 = vweird.f32 %v3897_v7 }
 0x7f9   : > { %v3627_v52 = vsel %vm3626_vm15, %v8948_v54, %v3623_v57  ;;  %v3610_v13 = vmul.f32 %v8952_v42, %v3609_v38  ;;  %v3908_v54 = vsub.f32 1.5, %v3907_v36 }
 0x7fa   : > { %v3651_v53 = vmul.f32 %v3627_v52, %v11718_v4  ;;  %v3721_v52 = vadd.f32 %v9280_v60, %v9279_v34 }
 0x7fb   : > { %v3611_v41 = vmul.f32 0.5, %v3610_v13  ;;  %v3909_v23 = vmul.f32 %v11867_v22, %v3908_v54 }
 0x7fc   : > { %v3676_v37 = vmul.f32 %v11874_v2, %v3651_v53 }
 0x7fd   : > { %v3612_v14 = vsub.f32 1.5, %v3611_v41  ;;  %v3913_v44 = vsel %vm11917_vm8, %v11867_v22, %v3909_v23  ;;  %v9281_v41 = vld [vmem:[%s9948_s4 + $0xb0] sm:$0xff] }
 0x7fe   : > { %v8954_v59 = vpop.eup %8953  ;;  %v3701_v29 = vadd.f32 %v9275_v63, %v3676_v37  ;;  %v3984_v22 = vmul.f32 %v3913_v44, %v11721_v26  ;;  %v3750_v58 = vadd.f32 %v9281_v41, %v3721_v52 }
 0x7ff   : > { %v3613_v4 = vmul.f32 %v8952_v42, %v3612_v14  ;;  %v3915_v50 = vmul.f32 %v8954_v59, %v3897_v7  ;;  %vm3921_vm7 = vweird.f32 %v8954_v59  ;;  %v11931_v7 = vld [vmem:[%s13834_s10] ss:$0 sm:$0xff] }
 0x800   : > { %v3764_v17 = vmul.f32 %v11470_v25, %v3701_v29  ;;  %vm3922_vm10 = vmor %vm3920_vm9, %vm3921_vm7  ;;  %v3993_v26 = vmul.f32 %v11931_v7, %v3984_v22  ;;  %v3779_v37 = vmul.f32 0.33333334, %v3750_v58 }
 0x801   : > { %v3617_v11 = vsel %vm3616_vm4, %v8952_v42, %v3613_v4  ;;  %v3916_v19 = vmul.f32 %v8954_v59, %v3915_v50 }
 0x802   : > { %v3772_v1 = vadd.f32 %v3764_v17, %v3743_v62  ;;  %v3650_v30 = vmul.f32 %v3617_v11, %v11743_v24  ;;  %v9278_v24 = vld [vmem:[%s9948_s4 + $0xb8] sm:$0xff]  ;;  %v4010_v11 = vlaneseq }
 0x803   : > { %v3917_v55 = vmul.f32 0.5, %v3916_v19  ;;  %v3751_v18 = vadd.f32 %v9278_v24, %v3722_v46 }
 0x804   : > { %v3675_v48 = vmul.f32 %v11874_v2, %v3650_v30  ;;  %v3793_v45 = vadd.f32 %v11480_v6, %v3772_v1  ;;  %v3742_v2 = vadd.f32 %v3734_v35, %v3713_v21  ;;  %v4011_v3 = vshrl.u32 %v4010_v11, 7 }
 0x805   : > { %v3918_v42 = vsub.f32 1.5, %v3917_v55  ;;  %v3780_v38 = vmul.f32 0.33333334, %v3751_v18  ;;  %v4016_v46 = vand.u32 127, %v4010_v11  ;;  %v9715_v21 = vmov 0.0  }
 0x806   : > { %v3700_v57 = vadd.f32 %v9275_v63, %v3675_v48  ;;  %8955 = vtanh.f32 %v3793_v45  ;;  %v4012_v23 = vadd.s32 8, %v4011_v3 }
 0x807   : > { %v3919_v56 = vmul.f32 %v8954_v59, %v3918_v42  ;;  %vm4017_vm11 = vcmp.eq.s32.totalorder %v4011_v3, %v4016_v46 }
 0x808   : > { %v3763_v28 = vmul.f32 %v11470_v25, %v3700_v57  ;;  %v11980_v35 = vsel %vm4017_vm11, 1.0, %v9715_v21  ;;  %vm4018_vm12 = vcmp.eq.s32.totalorder %v4012_v23, %v4016_v46 }
 0x809   : > { %v3923_v10 = vsel %vm3922_vm10, %v8954_v59, %v3919_v56  ;;  %v4013_v56 = vadd.s32 16, %v4011_v3 }
 0x80a   : > { %v3771_v13 = vadd.f32 %v3763_v28, %v3742_v2  ;;  %v3985_v63 = vmul.f32 %v3923_v10, %v11753_v43 }
 0x80b   : > { %vm4019_vm15 = vcmp.eq.s32.totalorder %v4013_v56, %v4016_v46 }
 0x80c   : > { %v11934_v53 = vpop.eup %8955  ;;  %v3994_v25 = vmul.f32 %v11931_v7, %v3985_v63  ;;  %v3792_v36 = vadd.f32 %v11480_v6, %v3771_v13  ;;  %v11956_v6 = vadd.f32 %v11940_v5, %v3993_v26  ;;  %v11992_v13 = vsel %vm4019_vm15, 1.0, %v9715_v21 }
 0x80d   : > { %13904 = vst [vmem:[#allocation31_spill] sm:$0xff] %v11934_v53  ;;  %v11944_v43 = vadd.f32 %v11934_v53, %v3780_v38  ;;  %v4014_v63 = vadd.s32 24, %v4011_v3 }
 0x80e   : > { %v11948_v9 = vadd.f32 %v11940_v5, %v3994_v25  ;;  %8957 = vtanh.f32 %v3792_v36 }
 0x80f   : > { %v3837_v12 = vsel %vm728_vm0, %v11944_v43, 0.0  ;;  %vm4020_vm6 = vcmp.eq.s32.totalorder %v4014_v63, %v4016_v46 }
 0x810   : > { %3838 = vadd.xlane.f32.xlu1 %v3837_v12  ;;  %8348 = vmatpush.xpose.msk.msrb.mxu0 %vm728_vm0, %v11948_v9  ;;  %v12003_v26 = vsel %vm4020_vm6, 1.0, %v9715_v21 }
 0x814   : > { %v11958_v14 = vpop.eup %8957  ;;  %8349 = vmatpush.xpose.msk.msrb.mxu0 %vm728_vm0, %v11956_v6 }
 0x815   : > { %13905 = vst [vmem:[#allocation32_spill] sm:$0xff] %v11958_v14  ;;  %v11963_v59 = vadd.f32 %v11958_v14, %v3779_v37 }
 0x817   : > { %v3834_v29 = vsel %vm728_vm0, %v11963_v59, 0.0  ;;  %8350 = vmatmul.msk.f32.vlgmr.msrb.gmra.mxu0 %vm728_vm0, %v11980_v35 }
 0x818   : > { %v3833_v54 = vpop.xlane.xlu0 %3832  ;;  %3835 = vadd.xlane.f32.xlu2 %v3834_v29 }
 0x819   : > { %v3845_v4 = vmul.f32 %v3833_v54, %v10487_v0 }
 0x81a   : > { %v3875_v50 = vpop.xlane.xlu2 %3874 }
 0x81b   : > { %v11969_v62 = vsub.f32 %v11821_v27, %v3845_v4  ;;  %v3891_v40 = vmul.f32 %v3875_v50, %v10487_v0 }
 0x81d   : > { %v3899_v61 = vadd.f32 1e-05, %v3891_v40  ;;  %v3861_v17 = vmul.f32 %v11969_v62, %v11969_v62 }
 0x81f   : > { %8959 = vrsqrt.f32 %v3899_v61  ;;  %v3879_v19 = vsel %vm728_vm0, %v3861_v17, 0.0  ;;  %vm3940_vm14 = vweird.f32 %v3899_v61 }
 0x820   : > { %3880 = vadd.xlane.f32.xlu0 %v3879_v19  ;;  %v3830_v31 = vpop.xlane.xlu1 %3829 }
 0x821   : > { %v3844_v30 = vmul.f32 %v3830_v31, %v10487_v0 }
 0x822   : > { %v3872_v1 = vpop.xlane.xlu0 %3871 }
 0x823   : > { %v3890_v27 = vmul.f32 %v3872_v1, %v10487_v0  ;;  %v11978_v55 = vsub.f32 %v11836_v47, %v3844_v30  ;;  %v11987_v47 = vsel %vm4018_vm12, 1.0, %v9715_v21 }
 0x824   : > { %8351 = vmatmul.msk.f32.gmra.mxu0 %vm728_vm0, %v11987_v47 }
 0x825   : > { %v3898_v48 = vadd.f32 1e-05, %v3890_v27  ;;  %v8960_v45 = vpop.eup %8959  ;;  %v3860_v42 = vmul.f32 %v11978_v55, %v11978_v55 }
 0x826   : > { %v3935_v24 = vmul.f32 %v8960_v45, %v3899_v61  ;;  %vm3941_vm13 = vweird.f32 %v8960_v45 }
 0x827   : > { %8961 = vrsqrt.f32 %v3898_v48  ;;  %v3876_v18 = vsel %vm728_vm0, %v3860_v42, 0.0  ;;  %vm3942_vm2 = vmor %vm3940_vm14, %vm3941_vm13  ;;  %vm3930_vm4 = vweird.f32 %v3898_v48 }
 0x828   : > { %v3936_v8 = vmul.f32 %v8960_v45, %v3935_v24  ;;  %3877 = vadd.xlane.f32.xlu1 %v3876_v18 }
 0x82a   : > { %v3937_v57 = vmul.f32 0.5, %v3936_v8 }
 0x82c   : > { %v3938_v2 = vsub.f32 1.5, %v3937_v57  ;;  %8352 = vmatmul.msk.f32.gmra.mxu0 %vm728_vm0, %v11992_v13 }
 0x82d   : > { %v8962_v44 = vpop.eup %8961 }
 0x82e   : > { %v3925_v28 = vmul.f32 %v8962_v44, %v3898_v48  ;;  %v3939_v38 = vmul.f32 %v8960_v45, %v3938_v2  ;;  %vm3931_vm3 = vweird.f32 %v8962_v44 }
 0x82f   : > { %vm3932_vm5 = vmor %vm3930_vm4, %vm3931_vm3 }
 0x830   : > { %v3926_v10 = vmul.f32 %v8962_v44, %v3925_v28  ;;  %v3943_v34 = vsel %vm3942_vm2, %v8960_v45, %v3939_v38 }
 0x831   : > { %v3987_v60 = vmul.f32 %v3943_v34, %v11818_v49 }
 0x832   : > { %v3927_v52 = vmul.f32 0.5, %v3926_v10  ;;  %v8539_v10 = vld [vmem:[#allocation10 + $0x8] sm:$0xff] }
 0x833   : > { %v3996_v22 = vmul.f32 %v11931_v7, %v3987_v60  ;;  %4883 = vmatpush.bf16.msra.mxu3 %v8539_v10 }
 0x834   : > { %v3928_v25 = vsub.f32 1.5, %v3927_v52  ;;  %8353 = vmatmul.msk.f32.gmra.mxu0 %vm728_vm0, %v12003_v26 }
 0x835   : > { %v11998_v41 = vadd.f32 %v11940_v5, %v3996_v22 }
 0x836   : > { %v3929_v36 = vmul.f32 %v8962_v44, %v3928_v25 }
 0x837   : > { %8354 = vmatpush.xpose.msk.msra.mxu0 %vm728_vm0, %v11998_v41 }
 0x838   : > { %v3933_v58 = vsel %vm3932_vm5, %v8962_v44, %v3929_v36 }
 0x839   : > { %v3986_v49 = vmul.f32 %v3933_v58, %v11833_v39 }
 0x83b   : > { %v3995_v12 = vmul.f32 %v11931_v7, %v3986_v49 }
 0x83d   : > { %v12007_v37 = vadd.f32 %v11940_v5, %v3995_v12  ;;  %v8538_v12 = vld [vmem:[#allocation10] sm:$0xff] }
 0x83f   : > { %8355 = vmatpush.xpose.msk.msra.mxu0 %vm728_vm0, %v12007_v37 }
 0x842   : > { %8356 = vmatmul.msk.f32.vlgmr.msra.gmra.mxu0 %vm728_vm0, %v11980_v35 }
 0x84a   : > { %8357 = vmatmul.msk.f32.gmra.mxu0 %vm728_vm0, %v11987_v47 }
 0x852   : > { %8358 = vmatmul.msk.f32.gmra.mxu0 %vm728_vm0, %v11992_v13 }
 0x85a   : > { %8359 = vmatmul.msk.f32.gmra.mxu0 %vm728_vm0, %v12003_v26 }
 0x883   : > { %v3839_v39 = vpop.xlane.xlu1 %3838 }
 0x884   : > { %v3847_v29 = vmul.f32 %v3839_v39, %v10487_v0 }
 0x886   : > { %v12023_v54 = vsub.f32 %v11944_v43, %v3847_v29 }
 0x888   : > { %v3863_v4 = vmul.f32 %v12023_v54, %v12023_v54 }
 0x88a   : > { %v3885_v50 = vsel %vm728_vm0, %v3863_v4, 0.0 }
 0x88b   : > { %v3836_v40 = vpop.xlane.xlu2 %3835  ;;  %3886 = vadd.xlane.f32.xlu2 %v3885_v50 }
 0x88c   : > { %v3846_v61 = vmul.f32 %v3836_v40, %v10487_v0 }
 0x88e   : > { %v12030_v17 = vsub.f32 %v11963_v59, %v3846_v61 }
 0x890   : > { %v3862_v11 = vmul.f32 %v12030_v17, %v12030_v17 }
 0x892   : > { %v3882_v19 = vsel %vm728_vm0, %v3862_v11, 0.0 }
 0x893   : > { %v3881_v31 = vpop.xlane.xlu0 %3880  ;;  %3883 = vadd.xlane.f32.xlu0 %v3882_v19 }
 0x894   : > { %v3893_v43 = vmul.f32 %v3881_v31, %v10487_v0  ;;  %v12037_v21 = vpop.f32.mrf.mxu0 }
 0x895   : > { %v4181_v2 = vpack.c.bf16 %v12037_v21, %v12037_v21 }
 0x896   : > { %v3901_v3 = vadd.f32 1e-05, %v3893_v43 }
 0x897   : > { %v4224_v60 = vunpack.c.l.b16 %v4181_v2 }
 0x898   : > { %8963 = vrsqrt.f32 %v3901_v3  ;;  %vm3960_vm8 = vweird.f32 %v3901_v3 }
 0x89b   : > { %v3878_v46 = vpop.xlane.xlu1 %3877 }
 0x89c   : > { %v3892_v1 = vmul.f32 %v3878_v46, %v10487_v0 }
 0x89e   : > { %v8964_v30 = vpop.eup %8963  ;;  %v3900_v27 = vadd.f32 1e-05, %v3892_v1 }
 0x89f   : > { %v3955_v23 = vmul.f32 %v8964_v30, %v3901_v3  ;;  %vm3961_vm7 = vweird.f32 %v8964_v30 }
 0x8a0   : > { %8965 = vrsqrt.f32 %v3900_v27  ;;  %vm3962_vm9 = vmor %vm3960_vm8, %vm3961_vm7  ;;  %vm3950_vm11 = vweird.f32 %v3900_v27 }
 0x8a1   : > { %v3956_v59 = vmul.f32 %v8964_v30, %v3955_v23  ;;  %v12039_v56 = vpop.f32.mrf.mxu0 }
 0x8a2   : > { %v4182_v28 = vpack.c.bf16 %v12039_v56, %v12039_v56 }
 0x8a3   : > { %v3957_v48 = vmul.f32 0.5, %v3956_v59 }
 0x8a4   : > { %v4225_v52 = vunpack.c.l.b16 %v4182_v28 }
 0x8a5   : > { %v3958_v45 = vsub.f32 1.5, %v3957_v48 }
 0x8a6   : > { %v8966_v42 = vpop.eup %8965  ;;  %v12050_v25 = vpack.c.b16 %v4225_v52, %v4224_v60 }
 0x8a7   : > { %v3959_v24 = vmul.f32 %v8964_v30, %v3958_v45  ;;  %v3945_v18 = vmul.f32 %v8966_v42, %v3900_v27  ;;  %vm3951_vm10 = vweird.f32 %v8966_v42 }
 0x8a8   : > { %vm3952_vm12 = vmor %vm3950_vm11, %vm3951_vm10  ;;  %8396 = vmatmul.msk.bf16.vlgmr.msra.gmra.mxu3 %vm1122_vm1, %v12050_v25 }
 0x8a9   : > { %v3963_v8 = vsel %vm3962_vm9, %v8964_v30, %v3959_v24  ;;  %v3946_v57 = vmul.f32 %v8966_v42, %v3945_v18  ;;  %v12065_v29 = vpop.f32.mrf.mxu0 }
 0x8aa   : > { %v3989_v44 = vmul.f32 %v3963_v8, %v11969_v62  ;;  %v4183_v4 = vpack.c.bf16 %v12065_v29, %v12065_v29 }
 0x8ab   : > { %v3947_v38 = vmul.f32 0.5, %v3946_v57 }
 0x8ac   : > { %v3998_v34 = vmul.f32 %v11931_v7, %v3989_v44  ;;  %v4226_v50 = vunpack.c.l.b16 %v4183_v4 }
 0x8ad   : > { %v3948_v63 = vsub.f32 1.5, %v3947_v38 }
 0x8ae   : > { %v12048_v22 = vadd.f32 %v11940_v5, %v3998_v34 }
 0x8af   : > { %v3949_v62 = vmul.f32 %v8966_v42, %v3948_v63 }
 0x8b0   : > { %13906 = vst [vmem:[#allocation33_spill] sm:$0xff] %v12048_v22  ;;  %8360 = vmatpush.xpose.msk.msrb.mxu0 %vm728_vm0, %v12048_v22 }
 0x8b1   : > { %v3953_v36 = vsel %vm3952_vm12, %v8966_v42, %v3949_v62 }
 0x8b2   : > { %v3988_v58 = vmul.f32 %v3953_v36, %v11978_v55  ;;  %v12071_v55 = vpop.f32.mrf.mxu0 }
 0x8b3   : > { %v4184_v40 = vpack.c.bf16 %v12071_v55, %v12071_v55 }
 0x8b4   : > { %v3997_v49 = vmul.f32 %v11931_v7, %v3988_v58 }
 0x8b5   : > { %v4227_v61 = vunpack.c.l.b16 %v4184_v40 }
 0x8b6   : > { %v12059_v39 = vadd.f32 %v11940_v5, %v3997_v49 }
 0x8b7   : > { %v4241_v11 = vpack.c.b16 %v4227_v61, %v4226_v50 }
 0x8b8   : > { %13907 = vst [vmem:[#allocation34_spill] sm:$0xff] %v12059_v39  ;;  %8361 = vmatpush.xpose.msk.msrb.mxu0 %vm728_vm0, %v12059_v39 }
 0x8b9   : > { %8397 = vmatmul.msk.bf16.gmra.mxu3 %vm1122_vm1, %v4241_v11 }
 0x8bb   : > { %8362 = vmatmul.msk.f32.vlgmr.msrb.gmra.mxu0 %vm728_vm0, %v11980_v35 }
 0x8bc   : > { %4285 = vmatpush.bf16.msra.mxu0 %v8538_v12 }
 0x8bf   : > { %v12078_v19 = vpop.f32.mrf.mxu0 }
 0x8c0   : > { %v4185_v31 = vpack.c.bf16 %v12078_v19, %v12078_v19 }
 0x8c2   : > { %v4228_v3 = vunpack.c.l.b16 %v4185_v31 }
 0x8c3   : > { %8363 = vmatmul.msk.f32.gmra.mxu0 %vm728_vm0, %v11987_v47 }
 0x8c7   : > { %v12084_v43 = vpop.f32.mrf.mxu0 }
 0x8c8   : > { %v4186_v46 = vpack.c.bf16 %v12084_v43, %v12084_v43 }
 0x8ca   : > { %v4229_v1 = vunpack.c.l.b16 %v4186_v46 }
 0x8cb   : > { %8364 = vmatmul.msk.f32.gmra.mxu0 %vm728_vm0, %v11992_v13 }
 0x8cc   : > { %v4242_v30 = vpack.c.b16 %v4229_v1, %v4228_v3 }
 0x8ce   : > { %8398 = vmatmul.msk.bf16.gmra.mxu3 %vm1122_vm1, %v4242_v30 }
 0x8cf   : > { %v12091_v27 = vpop.f32.mrf.mxu0 }
 0x8d0   : > { %v4187_v23 = vpack.c.bf16 %v12091_v27, %v12091_v27 }
 0x8d2   : > { %v4230_v48 = vunpack.c.l.b16 %v4187_v23  ;;  %v4258_v23 = vsel %vm1122_vm1, %v4241_v11, 0 }
 0x8d3   : > { %8365 = vmatmul.msk.f32.gmra.mxu0 %vm728_vm0, %v12003_v26 }
 0x8d7   : > { %v12095_v59 = vpop.f32.mrf.mxu0 }
 0x8d8   : > { %v4188_v45 = vpack.c.bf16 %v12095_v59, %v12095_v59 }
 0x8da   : > { %v4231_v42 = vunpack.c.l.b16 %v4188_v45  ;;  %v4255_v45 = vsel %vm1122_vm1, %v12050_v25, 0 }
 0x8db   : > { %8376 = vmatmul.msk.bf16.vlgmr.msra.gmra.mxu0 %vm1122_vm1, %v12050_v25 }
 0x8dc   : > { %v4243_v24 = vpack.c.b16 %v4231_v42, %v4230_v48 }
 0x8de   : > { %8399 = vmatmul.msk.bf16.gmra.mxu3 %vm1122_vm1, %v4243_v24  ;;  %v4264_v48 = vsel %vm1122_vm1, %v4243_v24, 0 }
 0x8eb   : > { %8377 = vmatmul.msk.bf16.gmra.mxu0 %vm1122_vm1, %v4241_v11 }
 0x8fb   : > { %8378 = vmatmul.msk.bf16.gmra.mxu0 %vm1122_vm1, %v4242_v30 }
 0x8fe   : > { %v3887_v18 = vpop.xlane.xlu2 %3886 }
 0x8ff   : > { %v3895_v8 = vmul.f32 %v3887_v18, %v10487_v0 }
 0x901   : > { %v3903_v57 = vadd.f32 1e-05, %v3895_v8 }
 0x903   : > { %8967 = vrsqrt.f32 %v3903_v57  ;;  %vm3980_vm14 = vweird.f32 %v3903_v57 }
 0x906   : > { %v3884_v44 = vpop.xlane.xlu0 %3883 }
 0x907   : > { %v3894_v2 = vmul.f32 %v3884_v44, %v10487_v0 }
 0x909   : > { %v8968_v28 = vpop.eup %8967  ;;  %v3902_v38 = vadd.f32 1e-05, %v3894_v2 }
 0x90a   : > { %v3975_v10 = vmul.f32 %v8968_v28, %v3903_v57  ;;  %vm3981_vm13 = vweird.f32 %v8968_v28 }
 0x90b   : > { %8969 = vrsqrt.f32 %v3902_v38  ;;  %8379 = vmatmul.msk.bf16.gmra.mxu0 %vm1122_vm1, %v4243_v24  ;;  %vm3982_vm15 = vmor %vm3980_vm14, %vm3981_vm13  ;;  %vm3970_vm3 = vweird.f32 %v3902_v38 }
 0x90c   : > { %v3976_v34 = vmul.f32 %v8968_v28, %v3975_v10 }
 0x90e   : > { %v3977_v60 = vmul.f32 0.5, %v3976_v34 }
 0x910   : > { %v3978_v52 = vsub.f32 1.5, %v3977_v60 }
 0x911   : > { %v8970_v63 = vpop.eup %8969 }
 0x912   : > { %v3979_v62 = vmul.f32 %v8968_v28, %v3978_v52  ;;  %v3965_v36 = vmul.f32 %v8970_v63, %v3902_v38  ;;  %vm3971_vm2 = vweird.f32 %v8970_v63 }
 0x913   : > { %vm3972_vm4 = vmor %vm3970_vm3, %vm3971_vm2 }
 0x914   : > { %v3983_v58 = vsel %vm3982_vm15, %v8968_v28, %v3979_v62  ;;  %v3966_v49 = vmul.f32 %v8970_v63, %v3965_v36 }
 0x915   : > { %v3991_v12 = vmul.f32 %v3983_v58, %v12023_v54 }
 0x916   : > { %v3967_v4 = vmul.f32 0.5, %v3966_v49 }
 0x917   : > { %v4000_v50 = vmul.f32 %v11931_v7, %v3991_v12 }
 0x918   : > { %v3968_v40 = vsub.f32 1.5, %v3967_v4 }
 0x919   : > { %v12108_v61 = vadd.f32 %v11940_v5, %v4000_v50 }
 0x91a   : > { %v3969_v31 = vmul.f32 %v8970_v63, %v3968_v40 }
 0x91b   : > { %13908 = vst [vmem:[#allocation35_spill] sm:$0xff] %v12108_v61  ;;  %8366 = vmatpush.xpose.msk.msra.mxu1 %vm728_vm0, %v12108_v61 }
 0x91c   : > { %v3973_v3 = vsel %vm3972_vm4, %v8970_v63, %v3969_v31 }
 0x91d   : > { %v3990_v46 = vmul.f32 %v3973_v3, %v12030_v17 }
 0x91f   : > { %v3999_v1 = vmul.f32 %v11931_v7, %v3990_v46  ;;  %v4261_v7 = vsel %vm1122_vm1, %v4242_v30, 0 }
 0x921   : > { %v12115_v54 = vadd.f32 %v11940_v5, %v3999_v1 }
 0x923   : > { %13909 = vst [vmem:[#allocation36_spill] sm:$0xff] %v12115_v54  ;;  %8367 = vmatpush.xpose.msk.msra.mxu1 %vm728_vm0, %v12115_v54 }
 0x926   : > { %8368 = vmatmul.msk.f32.vlgmr.msra.gmra.mxu1 %vm728_vm0, %v11980_v35 }
 0x927   : > { %4365 = vmatpush.bf16.xpose.msrb.mxu1 %v4258_v23 }
 0x92b   : > { %v4885_v38 = vpop.f32.mrf.mxu3 }
 0x92e   : > { %8369 = vmatmul.msk.f32.gmra.mxu1 %vm728_vm0, %v11987_v47 }
 0x92f   : > { %4366 = vmatpush.bf16.xpose.msrb.mxu1 %v4255_v45 }
 0x933   : > { %v4887_v58 = vpop.f32.mrf.mxu3 }
 0x936   : > { %8370 = vmatmul.msk.f32.gmra.mxu1 %vm728_vm0, %v11992_v13 }
 0x937   : > { %4400 = vmatpush.bf16.xpose.msra.mxu1 %v4264_v48 }
 0x938   : > { %v12130_v5 = vpop.f32.mrf.mxu0 }
 0x939   : > { %v4189_v17 = vpack.c.bf16 %v12130_v5, %v12130_v5 }
 0x93b   : > { %v4232_v42 = vunpack.c.l.b16 %v4189_v17 }
 0x93c   : > { %v4890_v50 = vpop.f32.mrf.mxu3 }
 0x93d   : > { %v4943_v45 = vpack.c.bf16 %v4890_v50, %v4890_v50 }
 0x93e   : > { %8371 = vmatmul.msk.f32.gmra.mxu1 %vm728_vm0, %v12003_v26 }
 0x93f   : > { %4401 = vmatpush.bf16.xpose.msra.mxu1 %v4261_v7 }
 0x940   : > { %v12136_v25 = vpop.f32.mrf.mxu0 }
 0x941   : > { %v4190_v11 = vpack.c.bf16 %v12136_v25, %v12136_v25 }
 0x943   : > { %v4233_v24 = vunpack.c.l.b16 %v4190_v11  ;;  %v4973_v11 = vunpack.c.l.b16 %v4943_v45 }
 0x944   : > { %v4892_v48 = vpop.f32.mrf.mxu3 }
 0x945   : > { %v4244_v30 = vpack.c.b16 %v4233_v24, %v4232_v42  ;;  %v4944_v7 = vpack.c.bf16 %v4892_v48, %v4892_v48 }
 0x947   : > { %8380 = vmatmul.msk.bf16.gmra.mxu0 %vm1122_vm1, %v4244_v30  ;;  %8400 = vmatmul.msk.bf16.gmra.mxu3 %vm1122_vm1, %v4244_v30  ;;  %v4267_v4 = vsel %vm1122_vm1, %v4244_v30, 0  ;;  %v4974_v24 = vunpack.c.l.b16 %v4944_v7  ;;  %v4941_v30 = vpack.c.bf16 %v4885_v38, %v4885_v38 }
 0x948   : > { %v12142_v13 = vpop.f32.mrf.mxu0 }
 0x949   : > { %v4191_v26 = vpack.c.bf16 %v12142_v13, %v12142_v13 }
 0x94b   : > { %v4234_v57 = vunpack.c.l.b16 %v4191_v26 }
 0x950   : > { %v12146_v18 = vpop.f32.mrf.mxu0 }
 0x951   : > { %v4192_v8 = vpack.c.bf16 %v12146_v18, %v12146_v18  ;;  %v4895_v38 = vpop.f32.mrf.mxu3 }
 0x953   : > { %v4235_v44 = vunpack.c.l.b16 %v4192_v8 }
 0x955   : > { %v4245_v2 = vpack.c.b16 %v4235_v44, %v4234_v57  ;;  %v4942_v57 = vpack.c.bf16 %v4887_v58, %v4887_v58 }
 0x957   : > { %8401 = vmatmul.msk.bf16.gmra.mxu3 %vm1122_vm1, %v4245_v2  ;;  %8381 = vmatmul.msk.bf16.gmra.mxu0 %vm1122_vm1, %v4245_v2  ;;  %v4270_v36 = vsel %vm1122_vm1, %v4245_v2, 0  ;;  %v4976_v2 = vpack.c.b16 %v4974_v24, %v4973_v11 }
 0x958   : > { %v4287_v28 = vpop.f32.mrf.mxu0 }
 0x959   : > { %v4327_v10 = vpack.c.bf16 %v4287_v28, %v4287_v28 }
 0x95b   : > { %v4347_v52 = vunpack.c.l.b16 %v4327_v10  ;;  %v4971_v10 = vunpack.c.l.b16 %v4941_v30 }
 0x960   : > { %v4289_v34 = vpop.f32.mrf.mxu0 }
 0x961   : > { %v4328_v60 = vpack.c.bf16 %v4289_v34, %v4289_v34  ;;  %v4972_v34 = vunpack.c.l.b16 %v4942_v57 }
 0x963   : > { %v4348_v63 = vunpack.c.l.b16 %v4328_v60 }
 0x965   : > { %v4351_v62 = vpack.c.b16 %v4348_v63, %v4347_v52  ;;  %v4975_v52 = vpack.c.b16 %v4972_v34, %v4971_v10 }
 0x967   : > { %8384 = vmatmul.msk.bf16.vlgmr.msrb.gmra.mxu1 %vm1122_vm1, %v4351_v62 }
 0x968   : > { %4435 = vmatpush.bf16.xpose.msrb.mxu1 %v4270_v36  ;;  %v4292_v49 = vpop.f32.mrf.mxu0 }
 0x969   : > { %v4329_v12 = vpack.c.bf16 %v4292_v49, %v4292_v49 }
 0x96b   : > { %v4349_v31 = vunpack.c.l.b16 %v4329_v12 }
 0x970   : > { %4436 = vmatpush.bf16.xpose.msrb.mxu1 %v4267_v4  ;;  %v4294_v40 = vpop.f32.mrf.mxu0 }
 0x971   : > { %v4330_v3 = vpack.c.bf16 %v4294_v40, %v4294_v40 }
 0x973   : > { %v4350_v46 = vunpack.c.l.b16 %v4330_v3 }
 0x975   : > { %v4352_v1 = vpack.c.b16 %v4350_v46, %v4349_v31  ;;  %v4897_v31 = vpop.f32.mrf.mxu3 }
 0x976   : > { %v4946_v10 = vpack.c.bf16 %v4897_v31, %v4897_v31 }
 0x977   : > { %8385 = vmatmul.msk.bf16.gmra.mxu1 %vm1122_vm1, %v4352_v1 }
 0x978   : > { %v4297_v23 = vpop.f32.mrf.mxu0 }
 0x979   : > { %v4331_v17 = vpack.c.bf16 %v4297_v23, %v4297_v23 }
 0x97b   : > { %v4382_v26 = vunpack.c.l.b16 %v4331_v17 }
 0x97d   : > { %v4900_v45 = vpop.f32.mrf.mxu3 }
 0x97e   : > { %v4947_v30 = vpack.c.bf16 %v4900_v45, %v4900_v45 }
 0x980   : > { %v4299_v42 = vpop.f32.mrf.mxu0  ;;  %v5020_v34 = vunpack.c.l.b16 %v4947_v30 }
 0x981   : > { %v4332_v8 = vpack.c.bf16 %v4299_v42, %v4299_v42 }
 0x983   : > { %v4383_v44 = vunpack.c.l.b16 %v4332_v8 }
 0x985   : > { %v4386_v28 = vpack.c.b16 %v4383_v44, %v4382_v26  ;;  %v4902_v26 = vpop.f32.mrf.mxu3 }
 0x986   : > { %v4948_v44 = vpack.c.bf16 %v4902_v26, %v4902_v26 }
 0x987   : > { %8386 = vmatmul.msk.bf16.vlgmr.msra.gmra.mxu1 %vm1122_vm1, %v4386_v28  ;;  %v4945_v28 = vpack.c.bf16 %v4895_v38, %v4895_v38 }
 0x988   : > { %v4302_v60 = vpop.f32.mrf.mxu0  ;;  %4991 = vmatpush.bf16.msra.mxu1 %v4976_v2 }
 0x989   : > { %v4333_v63 = vpack.c.bf16 %v4302_v60, %v4302_v60  ;;  %v5021_v60 = vunpack.c.l.b16 %v4948_v44 }
 0x98b   : > { %v4384_v36 = vunpack.c.l.b16 %v4333_v63  ;;  %v5019_v63 = vunpack.c.l.b16 %v4946_v10 }
 0x98c   : > { %4992 = vmatpush.bf16.msra.mxu1 %v4975_v52  ;;  %v5018_v52 = vunpack.c.l.b16 %v4945_v28 }
 0x990   : > { %v4304_v62 = vpop.f32.mrf.mxu0 }
 0x991   : > { %v4334_v49 = vpack.c.bf16 %v4304_v62, %v4304_v62  ;;  %v5023_v62 = vpack.c.b16 %v5021_v60, %v5020_v34 }
 0x993   : > { %v4385_v12 = vunpack.c.l.b16 %v4334_v49 }
 0x995   : > { %v4387_v4 = vpack.c.b16 %v4385_v12, %v4384_v36 }
 0x997   : > { %8387 = vmatmul.msk.bf16.gmra.mxu1 %vm1122_vm1, %v4387_v4 }
 0x9a3   : > { %v12158_v58 = vpop.f32.mrf.mxu1 }
 0x9a4   : > { %v4193_v50 = vpack.c.bf16 %v12158_v58, %v12158_v58 }
 0x9a6   : > { %v4236_v3 = vunpack.c.l.b16 %v4193_v50 }
 0x9ab   : > { %v12162_v40 = vpop.f32.mrf.mxu1 }
 0x9ac   : > { %v4194_v46 = vpack.c.bf16 %v12162_v40, %v12162_v40 }
 0x9ae   : > { %v4237_v1 = vunpack.c.l.b16 %v4194_v46 }
 0x9b0   : > { %v4246_v23 = vpack.c.b16 %v4237_v1, %v4236_v3  ;;  %v5022_v3 = vpack.c.b16 %v5019_v63, %v5018_v52 }
 0x9b2   : > { %8382 = vmatmul.msk.bf16.gmra.mxu0 %vm1122_vm1, %v4246_v23  ;;  %8402 = vmatmul.msk.bf16.gmra.mxu3 %vm1122_vm1, %v4246_v23  ;;  %v4273_v36 = vsel %vm1122_vm1, %v4246_v23, 0 }
 0x9b3   : > { %v12168_v48 = vpop.f32.mrf.mxu1 }
 0x9b4   : > { %v4195_v7 = vpack.c.bf16 %v12168_v48, %v12168_v48 }
 0x9b6   : > { %v4238_v11 = vunpack.c.l.b16 %v4195_v7 }
 0x9bb   : > { %v12172_v17 = vpop.f32.mrf.mxu1 }
 0x9bc   : > { %v4196_v42 = vpack.c.bf16 %v12172_v17, %v12172_v17 }
 0x9be   : > { %v4239_v24 = vunpack.c.l.b16 %v4196_v42 }
 0x9c0   : > { %v4247_v8 = vpack.c.b16 %v4239_v24, %v4238_v11 }
 0x9c2   : > { %8383 = vmatmul.msk.bf16.gmra.mxu0 %vm1122_vm1, %v4247_v8  ;;  %v4276_v57 = vsel %vm1122_vm1, %v4247_v8, 0  ;;  %8403 = vmatmul.msk.bf16.gmra.mxu3 %vm1122_vm1, %v4247_v8 }
 0x9c3   : > { %4470 = vmatpush.bf16.xpose.msra.mxu2 %v4276_v57 }
 0x9c4   : > { %v4307_v2 = vpop.f32.mrf.mxu0 }
 0x9c5   : > { %v4335_v12 = vpack.c.bf16 %v4307_v2, %v4307_v2 }
 0x9c7   : > { %v4417_v46 = vunpack.c.l.b16 %v4335_v12 }
 0x9ca   : > { %v4905_v49 = vpop.f32.mrf.mxu3 }
 0x9cb   : > { %4471 = vmatpush.bf16.xpose.msra.mxu2 %v4273_v36  ;;  %v4949_v10 = vpack.c.bf16 %v4905_v49, %v4905_v49 }
 0x9cc   : > { %v4309_v4 = vpop.f32.mrf.mxu0 }
 0x9cd   : > { %v4336_v50 = vpack.c.bf16 %v4309_v4, %v4309_v4  ;;  %v5065_v36 = vunpack.c.l.b16 %v4949_v10 }
 0x9cf   : > { %v4418_v1 = vunpack.c.l.b16 %v4336_v50 }
 0x9d1   : > { %v4421_v45 = vpack.c.b16 %v4418_v1, %v4417_v46 }
 0x9d2   : > { %v4907_v38 = vpop.f32.mrf.mxu3 }
 0x9d3   : > { %5038 = vmatpush.bf16.msrb.mxu2 %v5023_v62  ;;  %8388 = vmatmul.msk.bf16.vlgmr.msrb.gmra.mxu1 %vm1122_vm1, %v4421_v45  ;;  %v4950_v44 = vpack.c.bf16 %v4907_v38, %v4907_v38 }
 0x9d4   : > { %v4312_v31 = vpop.f32.mrf.mxu0 }
 0x9d5   : > { %v4337_v11 = vpack.c.bf16 %v4312_v31, %v4312_v31  ;;  %v5066_v63 = vunpack.c.l.b16 %v4950_v44 }
 0x9d7   : > { %5039 = vmatpush.bf16.msrb.mxu2 %v5022_v3  ;;  %v4419_v23 = vunpack.c.l.b16 %v4337_v11  ;;  %v5069_v12 = vpack.c.b16 %v5066_v63, %v5065_v36 }
 0x9da   : > { %v4910_v7 = vpop.f32.mrf.mxu3 }
 0x9db   : > { %v4951_v8 = vpack.c.bf16 %v4910_v7, %v4910_v7 }
 0x9dc   : > { %v4314_v42 = vpop.f32.mrf.mxu0 }
 0x9dd   : > { %v4338_v24 = vpack.c.bf16 %v4314_v42, %v4314_v42  ;;  %v5067_v34 = vunpack.c.l.b16 %v4951_v8 }
 0x9df   : > { %v4420_v26 = vunpack.c.l.b16 %v4338_v24 }
 0x9e1   : > { %v4422_v30 = vpack.c.b16 %v4420_v26, %v4419_v23 }
 0x9e2   : > { %v4912_v57 = vpop.f32.mrf.mxu3 }
 0x9e3   : > { %v4952_v2 = vpack.c.bf16 %v4912_v57, %v4912_v57  ;;  %8389 = vmatmul.msk.bf16.gmra.mxu1 %vm1122_vm1, %v4422_v30 }
 0x9e4   : > { %v12182_v28 = vpop.f32.mrf.mxu1 }
 0x9e5   : > { %v4483_v60 = vsel %vm728_vm0, %v12182_v28, -inf  ;;  %v5068_v52 = vunpack.c.l.b16 %v4952_v2 }
 0x9e6   : > { %4484 = vmax.xlane.f32.xlu1 %v4483_v60 }
 0x9e7   : > { %v5070_v62 = vpack.c.b16 %v5068_v52, %v5067_v34 }
 0x9e9   : > { %5085 = vmatpush.bf16.msrb.mxu0 %v5070_v62 }
 0x9ec   : > { %v12186_v4 = vpop.f32.mrf.mxu1 }
 0x9ed   : > { %v4486_v50 = vsel %vm728_vm0, %v12186_v4, -inf  ;;  %5086 = vmatpush.bf16.msrb.mxu0 %v5069_v12 }
 0x9ee   : > { %4487 = vmax.xlane.f32.xlu2 %v4486_v50 }
 0x9f4   : > { %v12190_v3 = vpop.f32.mrf.mxu1 }
 0x9f5   : > { %v4489_v49 = vsel %vm728_vm0, %v12190_v3, -inf }
 0x9f6   : > { %4490 = vmax.xlane.f32.xlu0 %v4489_v49 }
 0x9fc   : > { %v12194_v46 = vpop.f32.mrf.mxu1 }
 0x9fd   : > { %v4492_v1 = vsel %vm728_vm0, %v12194_v46, -inf }
 0x9fe   : > { %4493 = vmax.xlane.f32.xlu1 %v4492_v1 }
 0xa04   : > { %v12198_v45 = vpop.f32.mrf.mxu1 }
 0xa05   : > { %v4495_v38 = vsel %vm728_vm0, %v12198_v45, -inf }
 0xa06   : > { %4496 = vmax.xlane.f32.xlu2 %v4495_v38 }
 0xa0c   : > { %v12202_v31 = vpop.f32.mrf.mxu1 }
 0xa0d   : > { %v4498_v7 = vsel %vm728_vm0, %v12202_v31, -inf }
 0xa0e   : > { %4499 = vmax.xlane.f32.xlu0 %v4498_v7 }
 0xa14   : > { %v12206_v11 = vpop.f32.mrf.mxu1 }
 0xa15   : > { %v4501_v42 = vsel %vm728_vm0, %v12206_v11, -inf }
 0xa16   : > { %4502 = vmax.xlane.f32.xlu1 %v4501_v42 }
 0xa1c   : > { %v12210_v24 = vpop.f32.mrf.mxu1 }
 0xa1d   : > { %v4504_v23 = vsel %vm728_vm0, %v12210_v24, -inf }
 0xa1e   : > { %4505 = vmax.xlane.f32.xlu2 %v4504_v23 }
 0xa2f   : > { %v4317_v26 = vpop.f32.mrf.mxu0 }
 0xa30   : > { %v4339_v8 = vpack.c.bf16 %v4317_v26, %v4317_v26 }
 0xa32   : > { %v4452_v44 = vunpack.c.l.b16 %v4339_v8 }
 0xa35   : > { %v4915_v30 = vpop.f32.mrf.mxu3 }
 0xa36   : > { %v4953_v42 = vpack.c.bf16 %v4915_v30, %v4915_v30 }
 0xa37   : > { %v4319_v57 = vpop.f32.mrf.mxu0 }
 0xa38   : > { %v4340_v2 = vpack.c.bf16 %v4319_v57, %v4319_v57 }
 0xa3a   : > { %v4453_v10 = vunpack.c.l.b16 %v4340_v2 }
 0xa3c   : > { %v4456_v34 = vpack.c.b16 %v4453_v10, %v4452_v44  ;;  %v5112_v10 = vunpack.c.l.b16 %v4953_v42 }
 0xa3d   : > { %v4917_v60 = vpop.f32.mrf.mxu3 }
 0xa3e   : > { %8390 = vmatmul.msk.bf16.vlgmr.msra.gmra.mxu2 %vm1122_vm1, %v4456_v34  ;;  %v4954_v23 = vpack.c.bf16 %v4917_v60, %v4917_v60 }
 0xa3f   : > { %v4322_v52 = vpop.f32.mrf.mxu0 }
 0xa40   : > { %v4341_v63 = vpack.c.bf16 %v4322_v52, %v4322_v52  ;;  %v5113_v34 = vunpack.c.l.b16 %v4954_v23 }
 0xa42   : > { %v4454_v12 = vunpack.c.l.b16 %v4341_v63  ;;  %v5116_v63 = vpack.c.b16 %v5113_v34, %v5112_v10 }
 0xa45   : > { %v4920_v62 = vpop.f32.mrf.mxu3 }
 0xa46   : > { %v4955_v1 = vpack.c.bf16 %v4920_v62, %v4920_v62 }
 0xa47   : > { %v4324_v36 = vpop.f32.mrf.mxu0 }
 0xa48   : > { %v4342_v50 = vpack.c.bf16 %v4324_v36, %v4324_v36  ;;  %v5114_v26 = vunpack.c.l.b16 %v4955_v1 }
 0xa4a   : > { %v4455_v49 = vunpack.c.l.b16 %v4342_v50 }
 0xa4c   : > { %v4457_v38 = vpack.c.b16 %v4455_v49, %v4454_v12 }
 0xa4d   : > { %v4922_v7 = vpop.f32.mrf.mxu3 }
 0xa4e   : > { %8391 = vmatmul.msk.bf16.gmra.mxu2 %vm1122_vm1, %v4457_v38  ;;  %v4956_v8 = vpack.c.bf16 %v4922_v7, %v4922_v7 }
 0xa50   : > { %v12216_v57 = vpop.f32.mrf.mxu1  ;;  %v5115_v44 = vunpack.c.l.b16 %v4956_v8 }
 0xa51   : > { %v4507_v2 = vsel %vm728_vm0, %v12216_v57, -inf }
 0xa52   : > { %4508 = vmax.xlane.f32.xlu2 %v4507_v2  ;;  %v5117_v52 = vpack.c.b16 %v5115_v44, %v5114_v26 }
 0xa54   : > { %5132 = vmatpush.bf16.msrb.mxu1 %v5117_v52 }
 0xa58   : > { %5133 = vmatpush.bf16.msrb.mxu1 %v5116_v63  ;;  %v12227_v42 = vpop.f32.mrf.mxu1 }
 0xa59   : > { %v4485_v62 = vpop.xlane.xlu1 %4484 }
 0xa5a   : > { %v4531_v36 = vsub.f32 %v12182_v28, %v4485_v62 }
 0xa5c   : > { %v4547_v30 = vmul.f32 1.442695, %v4531_v36 }
 0xa5e   : > { %8971 = vpow2.f32 %v4547_v30 }
 0xa61   : > { %v4488_v60 = vpop.xlane.xlu2 %4487 }
 0xa62   : > { %v4532_v12 = vsub.f32 %v12186_v4, %v4488_v60  ;;  %v4510_v4 = vsel %vm728_vm0, %v12227_v42, -inf }
 0xa64   : > { %v12222_v50 = vpop.eup %8971  ;;  %v4549_v49 = vmul.f32 1.442695, %v4532_v12 }
 0xa65   : > { %v4579_v1 = vsel %vm728_vm0, %v12222_v50, 0.0 }
 0xa66   : > { %8973 = vpow2.f32 %v4549_v49  ;;  %4580 = vadd.xlane.f32.xlu0 %v4579_v1 }
 0xa69   : > { %v4491_v38 = vpop.xlane.xlu0 %4490 }
 0xa6a   : > { %v4533_v7 = vsub.f32 %v12190_v3, %v4491_v38 }
 0xa6c   : > { %v12229_v23 = vpop.eup %8973  ;;  %v4551_v28 = vmul.f32 1.442695, %v4533_v7 }
 0xa6d   : > { %v4582_v26 = vsel %vm728_vm0, %v12229_v23, 0.0 }
 0xa6e   : > { %8975 = vpow2.f32 %v4551_v28  ;;  %4583 = vadd.xlane.f32.xlu1 %v4582_v26  ;;  %4511 = vmax.xlane.f32.xlu0 %v4510_v4 }
 0xa71   : > { %v4494_v8 = vpop.xlane.xlu1 %4493 }
 0xa72   : > { %v4534_v44 = vsub.f32 %v12194_v46, %v4494_v8  ;;  %v12245_v46 = vpop.f32.mrf.mxu1 }
 0xa74   : > { %v12236_v2 = vpop.eup %8975  ;;  %v4553_v3 = vmul.f32 1.442695, %v4534_v44 }
 0xa75   : > { %v4585_v10 = vsel %vm728_vm0, %v12236_v2, 0.0 }
 0xa76   : > { %8977 = vpow2.f32 %v4553_v3  ;;  %4586 = vadd.xlane.f32.xlu1 %v4585_v10 }
 0xa79   : > { %v4497_v34 = vpop.xlane.xlu2 %4496 }
 0xa7a   : > { %v4535_v52 = vsub.f32 %v12198_v45, %v4497_v34  ;;  %v4513_v45 = vsel %vm728_vm0, %v12245_v46, -inf  ;;  %v12254_v7 = vpop.f32.mrf.mxu1 }
 0xa7b   : > { %v4516_v8 = vsel %vm728_vm0, %v12254_v7, -inf }
 0xa7c   : > { %v12241_v63 = vpop.eup %8977  ;;  %v4555_v62 = vmul.f32 1.442695, %v4535_v52 }
 0xa7d   : > { %v4588_v36 = vsel %vm728_vm0, %v12241_v63, 0.0 }
 0xa7e   : > { %8979 = vpow2.f32 %v4555_v62  ;;  %4589 = vadd.xlane.f32.xlu2 %v4588_v36 }
 0xa81   : > { %v4500_v30 = vpop.xlane.xlu0 %4499 }
 0xa82   : > { %v4536_v60 = vsub.f32 %v12202_v31, %v4500_v30 }
 0xa84   : > { %v12248_v12 = vpop.eup %8979  ;;  %v4557_v49 = vmul.f32 1.442695, %v4536_v60 }
 0xa85   : > { %v4591_v1 = vsel %vm728_vm0, %v12248_v12, 0.0 }
 0xa86   : > { %8981 = vpow2.f32 %v4557_v49  ;;  %4592 = vadd.xlane.f32.xlu0 %v4591_v1  ;;  %4514 = vmax.xlane.f32.xlu2 %v4513_v45 }
 0xa89   : > { %v4503_v38 = vpop.xlane.xlu1 %4502 }
 0xa8a   : > { %v4537_v28 = vsub.f32 %v12206_v11, %v4503_v38 }
 0xa8c   : > { %v12257_v26 = vpop.eup %8981  ;;  %v4559_v31 = vmul.f32 1.442695, %v4537_v28 }
 0xa8d   : > { %v4594_v4 = vsel %vm728_vm0, %v12257_v26, 0.0 }
 0xa8e   : > { %8983 = vpow2.f32 %v4559_v31  ;;  %4595 = vadd.xlane.f32.xlu1 %v4594_v4  ;;  %4517 = vmax.xlane.f32.xlu0 %v4516_v8 }
 0xa91   : > { %v4506_v44 = vpop.xlane.xlu2 %4505 }
 0xa92   : > { %v4538_v3 = vsub.f32 %v12210_v24, %v4506_v44 }
 0xa94   : > { %v12264_v10 = vpop.eup %8983  ;;  %v4561_v34 = vmul.f32 1.442695, %v4538_v3 }
 0xa95   : > { %v4597_v11 = vsel %vm728_vm0, %v12264_v10, 0.0 }
 0xa96   : > { %8985 = vpow2.f32 %v4561_v34  ;;  %4598 = vadd.xlane.f32.xlu1 %v4597_v11 }
 0xa9c   : > { %v12268_v52 = vpop.eup %8985 }
 0xa9d   : > { %v4600_v62 = vsel %vm728_vm0, %v12268_v52, 0.0 }
 0xa9e   : > { %4601 = vadd.xlane.f32.xlu2 %v4600_v62 }
 0xac1   : > { %v12272_v36 = vpop.f32.mrf.mxu2 }
 0xac2   : > { %v4519_v30 = vsel %vm728_vm0, %v12272_v36, -inf }
 0xac3   : > { %4520 = vmax.xlane.f32.xlu0 %v4519_v30 }
 0xac5   : > { %v4509_v24 = vpop.xlane.xlu2 %4508 }
 0xac6   : > { %v4539_v60 = vsub.f32 %v12216_v57, %v4509_v24 }
 0xac8   : > { %v4563_v49 = vmul.f32 1.442695, %v4539_v60 }
 0xac9   : > { %v12277_v1 = vpop.f32.mrf.mxu2 }
 0xaca   : > { %8987 = vpow2.f32 %v4563_v49  ;;  %v4522_v45 = vsel %vm728_vm0, %v12277_v1, -inf }
 0xacb   : > { %4523 = vmax.xlane.f32.xlu1 %v4522_v45 }
 0xad0   : > { %v12281_v38 = vpop.eup %8987 }
 0xad1   : > { %v12283_v28 = vpop.f32.mrf.mxu2  ;;  %v4603_v31 = vsel %vm728_vm0, %v12281_v38, 0.0 }
 0xad2   : > { %v4525_v4 = vsel %vm728_vm0, %v12283_v28, -inf }
 0xad3   : > { %4604 = vadd.xlane.f32.xlu1 %v4603_v31  ;;  %4526 = vmax.xlane.f32.xlu2 %v4525_v4 }
 0xad9   : > { %v4581_v57 = vpop.xlane.xlu0 %4580  ;;  %v12289_v8 = vpop.f32.mrf.mxu2 }
 0xada   : > { %8989 = vrcp.f32 %v4581_v57  ;;  %v4528_v44 = vsel %vm728_vm0, %v12289_v8, -inf  ;;  %v4638_v45 = vand.u32 2147483648, %v4581_v57  ;;  %vm4632_vm6 = vweird.f32 %v4581_v57 }
 0xadb   : > { %4529 = vmax.xlane.f32.xlu0 %v4528_v44  ;;  %v4636_v4 = vand.u32 2147483647, %v4581_v57 }
 0xadc   : > { %v4639_v54 = vor.u32 1.1754944e-38, %v4638_v45 }
 0xadd   : > { %vm4637_vm8 = vcmp.eq.f32.partialorder %v4636_v4, 8.507059e+37 }
 0xae0   : > { %v8990_v3 = vpop.eup %8989 }
 0xae1   : > { %v4628_v34 = vmul.f32 %v8990_v3, %v4581_v57  ;;  %v4584_v11 = vpop.xlane.xlu1 %4583  ;;  %v4512_v62 = vpop.xlane.xlu0 %4511  ;;  %vm4633_vm5 = vweird.f32 %v8990_v3 }
 0xae2   : > { %8991 = vrcp.f32 %v4584_v11  ;;  %v4540_v24 = vsub.f32 %v12227_v42, %v4512_v62  ;;  %vm4634_vm7 = vmor %vm4632_vm6, %vm4633_vm5  ;;  %v4653_v51 = vand.u32 2147483648, %v4584_v11  ;;  %vm4647_vm10 = vweird.f32 %v4584_v11 }
 0xae3   : > { %v4629_v30 = vsub.f32 1.0, %v4628_v34 }
 0xae4   : > { %v4565_v49 = vmul.f32 1.442695, %v4540_v24 }
 0xae5   : > { %v4630_v60 = vmul.f32 %v8990_v3, %v4629_v30  ;;  %v4651_v30 = vand.u32 2147483647, %v4584_v11 }
 0xae6   : > { %8993 = vpow2.f32 %v4565_v49  ;;  %v4654_v49 = vor.u32 1.1754944e-38, %v4653_v51 }
 0xae7   : > { %v4631_v31 = vadd.f32 %v8990_v3, %v4630_v60  ;;  %vm4652_vm12 = vcmp.eq.f32.partialorder %v4651_v30, 8.507059e+37 }
 0xae8   : > { %v8992_v53 = vpop.eup %8991 }
 0xae9   : > { %v4635_v61 = vsel %vm4634_vm7, %v8990_v3, %v4631_v31  ;;  %v4643_v44 = vmul.f32 %v8992_v53, %v4584_v11  ;;  %v4587_v14 = vpop.xlane.xlu1 %4586  ;;  %vm4648_vm9 = vweird.f32 %v8992_v53 }
 0xaea   : > { %8995 = vrcp.f32 %v4587_v14  ;;  %v4640_v34 = vsel %vm4637_vm8, %v4639_v54, %v4635_v61  ;;  %vm4649_vm11 = vmor %vm4647_vm10, %vm4648_vm9  ;;  %vm4662_vm14 = vweird.f32 %v4587_v14 }
 0xaeb   : > { %v4644_v0 = vsub.f32 1.0, %v4643_v44  ;;  %v4641_v24 = vmul.f32 %v12222_v50, %v4640_v34 }
 0xaec   : > { %v12294_v42 = vpop.eup %8993 }
 0xaed   : > { %v4645_v62 = vmul.f32 %v8992_v53, %v4644_v0  ;;  %v4606_v57 = vsel %vm728_vm0, %v12294_v42, 0.0  ;;  %v4925_v0 = vpack.c.bf16 %v4641_v24, %v4641_v24 }
 0xaee   : > { %4607 = vadd.xlane.f32.xlu2 %v4606_v57  ;;  %v4668_v57 = vand.u32 2147483648, %v4587_v14 }
 0xaef   : > { %v4646_v60 = vadd.f32 %v8992_v53, %v4645_v62  ;;  %v4961_v39 = vunpack.c.l.b16 %v4925_v0  ;;  %v4666_v62 = vand.u32 2147483647, %v4587_v14 }
 0xaf0   : > { %v8996_v3 = vpop.eup %8995 }
 0xaf1   : > { %v4650_v45 = vsel %vm4649_vm11, %v8992_v53, %v4646_v60  ;;  %v4658_v61 = vmul.f32 %v8996_v3, %v4587_v14  ;;  %v4590_v54 = vpop.xlane.xlu2 %4589  ;;  %vm4663_vm13 = vweird.f32 %v8996_v3  ;;  %vm4667_vm2 = vcmp.eq.f32.partialorder %v4666_v62, 8.507059e+37 }
 0xaf2   : > { %v4655_v31 = vsel %vm4652_vm12, %v4654_v49, %v4650_v45  ;;  %8997 = vrcp.f32 %v4590_v54  ;;  %vm4664_vm15 = vmor %vm4662_vm14, %vm4663_vm13  ;;  %v4683_v45 = vand.u32 2147483648, %v4590_v54  ;;  %vm4677_vm4 = vweird.f32 %v4590_v54 }
 0xaf3   : > { %v4656_v4 = vmul.f32 %v12229_v23, %v4655_v31  ;;  %v4659_v44 = vsub.f32 1.0, %v4658_v61  ;;  %v4681_v31 = vand.u32 2147483647, %v4590_v54 }
 0xaf5   : > { %v4926_v22 = vpack.c.bf16 %v4656_v4, %v4656_v4  ;;  %v4660_v32 = vmul.f32 %v8996_v3, %v4659_v44  ;;  %v4684_v4 = vor.u32 1.1754944e-38, %v4683_v45  ;;  %vm4682_vm6 = vcmp.eq.f32.partialorder %v4681_v31, 8.507059e+37 }
 0xaf7   : > { %v4962_v50 = vunpack.c.l.b16 %v4926_v22  ;;  %v4661_v34 = vadd.f32 %v8996_v3, %v4660_v32  ;;  %v4669_v22 = vor.u32 1.1754944e-38, %v4668_v57 }
 0xaf8   : > { %v8998_v11 = vpop.eup %8997 }
 0xaf9   : > { %v4673_v51 = vmul.f32 %v8998_v11, %v4590_v54  ;;  %v4593_v53 = vpop.xlane.xlu0 %4592  ;;  %v4515_v30 = vpop.xlane.xlu2 %4514  ;;  %v4965_v60 = vpack.c.b16 %v4962_v50, %v4961_v39  ;;  %v4665_v49 = vsel %vm4664_vm15, %v8996_v3, %v4661_v34  ;;  %vm4678_vm3 = vweird.f32 %v8998_v11 }
 0xafa   : > { %8999 = vrcp.f32 %v4593_v53  ;;  %v4541_v23 = vsub.f32 %v12245_v46, %v4515_v30  ;;  %v4670_v14 = vsel %vm4667_vm2, %v4669_v22, %v4665_v49  ;;  %vm4679_vm5 = vmor %vm4677_vm4, %vm4678_vm3  ;;  %v4698_v49 = vand.u32 2147483648, %v4593_v53 }
 0xafb   : > { %v4674_v24 = vsub.f32 1.0, %v4673_v51  ;;  %8404 = vmatmul.msk.bf16.vlgmr.msra.gmra.mxu1 %vm728_vm0, %v4965_v60  ;;  %v4671_v51 = vmul.f32 %v12236_v2, %v4670_v14  ;;  %vm4692_vm8 = vweird.f32 %v4593_v53 }
 0xafc   : > { %v4567_v61 = vmul.f32 1.442695, %v4541_v23 }
 0xafd   : > { %v4675_v32 = vmul.f32 %v8998_v11, %v4674_v24  ;;  %v4927_v23 = vpack.c.bf16 %v4671_v51, %v4671_v51 }
 0xafe   : > { %9001 = vpow2.f32 %v4567_v61 }
 0xaff   : > { %v4676_v0 = vadd.f32 %v8998_v11, %v4675_v32  ;;  %v4696_v32 = vand.u32 2147483647, %v4593_v53  ;;  %v4963_v14 = vunpack.c.l.b16 %v4927_v23 }
 0xb00   : > { %v9000_v39 = vpop.eup %8999 }
 0xb01   : > { %v4688_v44 = vmul.f32 %v9000_v39, %v4593_v53  ;;  %v4596_v50 = vpop.xlane.xlu1 %4595  ;;  %v4518_v46 = vpop.xlane.xlu0 %4517  ;;  %v4680_v3 = vsel %vm4679_vm5, %v8998_v11, %v4676_v0  ;;  %vm4693_vm7 = vweird.f32 %v9000_v39  ;;  %v4699_v0 = vor.u32 1.1754944e-38, %v4698_v49 }
 0xb02   : > { %9003 = vrcp.f32 %v4596_v50  ;;  %v4542_v62 = vsub.f32 %v12254_v7, %v4518_v46  ;;  %v4685_v57 = vsel %vm4682_vm6, %v4684_v4, %v4680_v3  ;;  %vm4694_vm9 = vmor %vm4692_vm8, %vm4693_vm7  ;;  %vm4697_vm10 = vcmp.eq.f32.partialorder %v4696_v32, 8.507059e+37 }
 0xb03   : > { %v4689_v34 = vsub.f32 1.0, %v4688_v44  ;;  %v4686_v30 = vmul.f32 %v12241_v63, %v4685_v57  ;;  %v4713_v51 = vand.u32 2147483648, %v4596_v50  ;;  %v4711_v53 = vand.u32 2147483647, %v4596_v50 }
 0xb04   : > { %v12305_v60 = vpop.eup %9001  ;;  %v4569_v24 = vmul.f32 1.442695, %v4542_v62  ;;  %vm4707_vm12 = vweird.f32 %v4596_v50 }
 0xb05   : > { %v4690_v54 = vmul.f32 %v9000_v39, %v4689_v34  ;;  %v4609_v22 = vsel %vm728_vm0, %v12305_v60, 0.0  ;;  %v4928_v2 = vpack.c.bf16 %v4686_v30, %v4686_v30  ;;  %vm4712_vm14 = vcmp.eq.f32.partialorder %v4711_v53, 8.507059e+37 }
 0xb06   : > { %9005 = vpow2.f32 %v4569_v24  ;;  %4610 = vadd.xlane.f32.xlu0 %v4609_v22 }
 0xb07   : > { %v4691_v11 = vadd.f32 %v9000_v39, %v4690_v54  ;;  %v4964_v45 = vunpack.c.l.b16 %v4928_v2  ;;  %v4714_v54 = vor.u32 1.1754944e-38, %v4713_v51 }
 0xb08   : > { %v9004_v7 = vpop.eup %9003 }
 0xb09   : > { %v4695_v63 = vsel %vm4694_vm9, %v9000_v39, %v4691_v11  ;;  %v4703_v61 = vmul.f32 %v9004_v7, %v4596_v50  ;;  %v4599_v31 = vpop.xlane.xlu1 %4598  ;;  %v4966_v44 = vpack.c.b16 %v4964_v45, %v4963_v14  ;;  %vm4708_vm11 = vweird.f32 %v9004_v7 }
 0xb0a   : > { %9007 = vrcp.f32 %v4599_v31  ;;  %v4700_v46 = vsel %vm4697_vm10, %v4699_v0, %v4695_v63  ;;  %vm4709_vm13 = vmor %vm4707_vm12, %vm4708_vm11  ;;  %vm4722_vm2 = vweird.f32 %v4599_v31  ;;  %v4726_v0 = vand.u32 2147483647, %v4599_v31 }
 0xb0b   : > { %v4704_v4 = vsub.f32 1.0, %v4703_v61  ;;  %8405 = vmatmul.msk.bf16.gmra.mxu1 %vm728_vm0, %v4966_v44  ;;  %v4701_v62 = vmul.f32 %v12248_v12, %v4700_v46  ;;  %v4728_v12 = vand.u32 2147483648, %v4599_v31 }
 0xb0c   : > { %v12309_v3 = vpop.eup %9005  ;;  %vm4727_vm4 = vcmp.eq.f32.partialorder %v4726_v0, 8.507059e+37 }
 0xb0d   : > { %v4705_v34 = vmul.f32 %v9004_v7, %v4704_v4  ;;  %v4612_v39 = vsel %vm728_vm0, %v12309_v3, 0.0  ;;  %v4929_v2 = vpack.c.bf16 %v4701_v62, %v4701_v62  ;;  %v4729_v51 = vor.u32 1.1754944e-38, %v4728_v12 }
 0xb0e   : > { %4613 = vadd.xlane.f32.xlu1 %v4612_v39 }
 0xb0f   : > { %v4706_v57 = vadd.f32 %v9004_v7, %v4705_v34  ;;  %v5008_v50 = vunpack.c.l.b16 %v4929_v2 }
 0xb10   : > { %v9008_v30 = vpop.eup %9007 }
 0xb11   : > { %v4710_v24 = vsel %vm4709_vm13, %v9004_v7, %v4706_v57  ;;  %v4718_v23 = vmul.f32 %v9008_v30, %v4599_v31  ;;  %v4602_v49 = vpop.xlane.xlu2 %4601  ;;  %vm4723_vm15 = vweird.f32 %v9008_v30 }
 0xb12   : > { %v4715_v22 = vsel %vm4712_vm14, %v4714_v54, %v4710_v24  ;;  %9009 = vrcp.f32 %v4602_v49  ;;  %vm4724_vm3 = vmor %vm4722_vm2, %vm4723_vm15  ;;  %v4741_v62 = vand.u32 2147483647, %v4602_v49  ;;  %vm4737_vm6 = vweird.f32 %v4602_v49 }
 0xb13   : > { %v4716_v11 = vmul.f32 %v12257_v26, %v4715_v22  ;;  %v4719_v32 = vsub.f32 1.0, %v4718_v23  ;;  %v4743_v26 = vand.u32 2147483648, %v4602_v49 }
 0xb14   : > { %vm4742_vm8 = vcmp.eq.f32.partialorder %v4741_v62, 8.507059e+37 }
 0xb15   : > { %v4930_v45 = vpack.c.bf16 %v4716_v11, %v4716_v11  ;;  %v4720_v63 = vmul.f32 %v9008_v30, %v4719_v32  ;;  %v4744_v31 = vor.u32 1.1754944e-38, %v4743_v26 }
 0xb17   : > { %v5009_v61 = vunpack.c.l.b16 %v4930_v45  ;;  %v4721_v14 = vadd.f32 %v9008_v30, %v4720_v63 }
 0xb18   : > { %v9010_v4 = vpop.eup %9009 }
 0xb19   : > { %v4733_v7 = vmul.f32 %v9010_v4, %v4602_v49  ;;  %v5012_v44 = vpack.c.b16 %v5009_v61, %v5008_v50  ;;  %v4725_v46 = vsel %vm4724_vm3, %v9008_v30, %v4721_v14  ;;  %vm4738_vm5 = vweird.f32 %v9010_v4 }
 0xb1a   : > { %v4730_v53 = vsel %vm4727_vm4, %v4729_v51, %v4725_v46  ;;  %vm4739_vm7 = vmor %vm4737_vm6, %vm4738_vm5 }
 0xb1b   : > { %v4734_v34 = vsub.f32 1.0, %v4733_v7  ;;  %8406 = vmatmul.msk.bf16.vlgmr.msrb.gmra.mxu2 %vm728_vm0, %v5012_v44  ;;  %v4731_v54 = vmul.f32 %v12264_v10, %v4730_v53 }
 0xb1d   : > { %v4735_v39 = vmul.f32 %v9010_v4, %v4734_v34  ;;  %v4931_v22 = vpack.c.bf16 %v4731_v54, %v4731_v54 }
 0xb1f   : > { %v4736_v57 = vadd.f32 %v9010_v4, %v4735_v39  ;;  %v5010_v11 = vunpack.c.l.b16 %v4931_v22 }
 0xb21   : > { %v4740_v24 = vsel %vm4739_vm7, %v9010_v4, %v4736_v57 }
 0xb22   : > { %v4745_v23 = vsel %vm4742_vm8, %v4744_v31, %v4740_v24 }
 0xb23   : > { %v4746_v30 = vmul.f32 %v12268_v52, %v4745_v23 }
 0xb25   : > { %v4932_v2 = vpack.c.bf16 %v4746_v30, %v4746_v30 }
 0xb27   : > { %v5011_v32 = vunpack.c.l.b16 %v4932_v2 }
 0xb29   : > { %v5013_v45 = vpack.c.b16 %v5011_v32, %v5010_v11 }
 0xb2b   : > { %8407 = vmatmul.msk.bf16.gmra.mxu2 %vm728_vm0, %v5013_v45 }
 0xb36   : > { %v4521_v63 = vpop.xlane.xlu0 %4520 }
 0xb37   : > { %v4543_v12 = vsub.f32 %v12272_v36, %v4521_v63 }
 0xb39   : > { %v4571_v49 = vmul.f32 1.442695, %v4543_v12 }
 0xb3b   : > { %9011 = vpow2.f32 %v4571_v49 }
 0xb3e   : > { %v4524_v10 = vpop.xlane.xlu1 %4523 }
 0xb3f   : > { %v4544_v50 = vsub.f32 %v12277_v1, %v4524_v10 }
 0xb41   : > { %v12322_v61 = vpop.eup %9011  ;;  %v4573_v14 = vmul.f32 1.442695, %v4544_v50 }
 0xb42   : > { %v4615_v52 = vsel %vm728_vm0, %v12322_v61, 0.0 }
 0xb43   : > { %9013 = vpow2.f32 %v4573_v14  ;;  %4616 = vadd.xlane.f32.xlu2 %v4615_v52 }
 0xb46   : > { %v4527_v0 = vpop.xlane.xlu2 %4526  ;;  %v4605_v1 = vpop.xlane.xlu1 %4604 }
 0xb47   : > { %v4545_v4 = vsub.f32 %v12283_v28, %v4527_v0  ;;  %v4758_v23 = vand.u32 2147483648, %v4605_v1  ;;  %vm4752_vm10 = vweird.f32 %v4605_v1  ;;  %v4756_v30 = vand.u32 2147483647, %v4605_v1 }
 0xb49   : > { %v12327_v7 = vpop.eup %9013  ;;  %v4575_v44 = vmul.f32 1.442695, %v4545_v4  ;;  %v4759_v32 = vor.u32 1.1754944e-38, %v4758_v23  ;;  %vm4757_vm12 = vcmp.eq.f32.partialorder %v4756_v30, 8.507059e+37 }
 0xb4a   : > { %v4618_v36 = vsel %vm728_vm0, %v12327_v7, 0.0 }
 0xb4b   : > { %4619 = vadd.xlane.f32.xlu0 %v4618_v36  ;;  %9015 = vpow2.f32 %v4575_v44 }
 0xb4c   : > { %9017 = vrcp.f32 %v4605_v1 }
 0xb4e   : > { %v4530_v46 = vpop.xlane.xlu0 %4529 }
 0xb4f   : > { %v4546_v51 = vsub.f32 %v12289_v8, %v4530_v46  ;;  %v12342_v46 = vld [vmem:[#allocation13] ss:$0 sm:$0xff] }
 0xb51   : > { %v12332_v34 = vpop.eup %9015  ;;  %v4577_v26 = vmul.f32 1.442695, %v4546_v51 }
 0xb52   : > { %v4621_v53 = vsel %vm728_vm0, %v12332_v34, 0.0  ;;  %v9018_v28 = vpop.eup %9017 }
 0xb53   : > { %9019 = vpow2.f32 %v4577_v26  ;;  %4622 = vadd.xlane.f32.xlu1 %v4621_v53  ;;  %v4748_v62 = vmul.f32 %v9018_v28, %v4605_v1  ;;  %vm4753_vm9 = vweird.f32 %v9018_v28 }
 0xb54   : > { %vm4754_vm11 = vmor %vm4752_vm10, %vm4753_vm9 }
 0xb55   : > { %v4749_v54 = vsub.f32 1.0, %v4748_v62 }
 0xb57   : > { %v4750_v31 = vmul.f32 %v9018_v28, %v4749_v54 }
 0xb59   : > { %v12336_v39 = vpop.eup %9019  ;;  %v4751_v24 = vadd.f32 %v9018_v28, %v4750_v31 }
 0xb5a   : > { %v4624_v57 = vsel %vm728_vm0, %v12336_v39, 0.0 }
 0xb5b   : > { %4625 = vadd.xlane.f32.xlu2 %v4624_v57  ;;  %v4755_v2 = vsel %vm4754_vm11, %v9018_v28, %v4751_v24 }
 0xb5c   : > { %v4760_v63 = vsel %vm4757_vm12, %v4759_v32, %v4755_v2 }
 0xb5d   : > { %v4761_v50 = vmul.f32 %v12281_v38, %v4760_v63 }
 0xb5f   : > { %v4933_v44 = vpack.c.bf16 %v4761_v50, %v4761_v50 }
 0xb61   : > { %v4608_v8 = vpop.xlane.xlu2 %4607  ;;  %v5055_v51 = vunpack.c.l.b16 %v4933_v44 }
 0xb62   : > { %9021 = vrcp.f32 %v4608_v8  ;;  %v4773_v12 = vand.u32 2147483648, %v4608_v8  ;;  %v4771_v10 = vand.u32 2147483647, %v4608_v8  ;;  %vm4767_vm14 = vweird.f32 %v4608_v8 }
 0xb64   : > { %v4774_v52 = vor.u32 1.1754944e-38, %v4773_v12  ;;  %vm4772_vm2 = vcmp.eq.f32.partialorder %v4771_v10, 8.507059e+37 }
 0xb68   : > { %v9022_v22 = vpop.eup %9021 }
 0xb69   : > { %v4763_v11 = vmul.f32 %v9022_v22, %v4608_v8  ;;  %vm4768_vm13 = vweird.f32 %v9022_v22 }
 0xb6a   : > { %vm4769_vm15 = vmor %vm4767_vm14, %vm4768_vm13 }
 0xb6b   : > { %v4764_v45 = vsub.f32 1.0, %v4763_v11 }
 0xb6d   : > { %v4765_v49 = vmul.f32 %v9022_v22, %v4764_v45 }
 0xb6f   : > { %v4766_v14 = vadd.f32 %v9022_v22, %v4765_v49 }
 0xb71   : > { %v4770_v0 = vsel %vm4769_vm15, %v9022_v22, %v4766_v14 }
 0xb72   : > { %v4775_v4 = vsel %vm4772_vm2, %v4774_v52, %v4770_v0 }
 0xb73   : > { %v4776_v36 = vmul.f32 %v12294_v42, %v4775_v4 }
 0xb75   : > { %v4934_v1 = vpack.c.bf16 %v4776_v36, %v4776_v36 }
 0xb77   : > { %v5056_v26 = vunpack.c.l.b16 %v4934_v1 }
 0xb78   : > { %v4994_v53 = vpop.f32.mrf.mxu1 }
 0xb79   : > { %v5145_v28 = vadd.f32 %v4994_v53, %v12037_v21  ;;  %v4611_v62 = vpop.xlane.xlu0 %4610  ;;  %v5059_v38 = vpack.c.b16 %v5056_v26, %v5055_v51 }
 0xb7a   : > { %9023 = vrcp.f32 %v4611_v62  ;;  %v4788_v11 = vand.u32 2147483648, %v4611_v62  ;;  %vm4782_vm4 = vweird.f32 %v4611_v62  ;;  %v4786_v45 = vand.u32 2147483647, %v4611_v62 }
 0xb7b   : > { %v12346_v57 = vadd.f32 %v12342_v46, %v5145_v28  ;;  %8408 = vmatmul.msk.bf16.vlgmr.msrb.gmra.mxu0 %vm728_vm0, %v5059_v38 }
 0xb7c   : > { %v4789_v10 = vor.u32 1.1754944e-38, %v4788_v11  ;;  %vm4787_vm6 = vcmp.eq.f32.partialorder %v4786_v45, 8.507059e+37 }
 0xb7d   : > { %v5178_v54 = vsel %vm1122_vm1, %v12346_v57, 0.0 }
 0xb7e   : > { %5179 = vadd.xlane.f32.xlu0 %v5178_v54 }
 0xb80   : > { %v4996_v42 = vpop.f32.mrf.mxu1  ;;  %v9024_v31 = vpop.eup %9023 }
 0xb81   : > { %v5146_v8 = vadd.f32 %v4996_v42, %v12039_v56  ;;  %v4778_v24 = vmul.f32 %v9024_v31, %v4611_v62  ;;  %v4614_v23 = vpop.xlane.xlu1 %4613  ;;  %vm4783_vm3 = vweird.f32 %v9024_v31 }
 0xb82   : > { %9025 = vrcp.f32 %v4614_v23  ;;  %vm4784_vm5 = vmor %vm4782_vm4, %vm4783_vm3  ;;  %v4803_v52 = vand.u32 2147483648, %v4614_v23  ;;  %v4801_v36 = vand.u32 2147483647, %v4614_v23  ;;  %vm4797_vm8 = vweird.f32 %v4614_v23 }
 0xb83   : > { %v4779_v21 = vsub.f32 1.0, %v4778_v24  ;;  %v12353_v30 = vadd.f32 %v12342_v46, %v5146_v8 }
 0xb84   : > { %vm4802_vm10 = vcmp.eq.f32.partialorder %v4801_v36, 8.507059e+37 }
 0xb85   : > { %v4780_v22 = vmul.f32 %v9024_v31, %v4779_v21  ;;  %v5181_v2 = vsel %vm1122_vm1, %v12353_v30, 0.0 }
 0xb86   : > { %5182 = vadd.xlane.f32.xlu1 %v5181_v2 }
 0xb87   : > { %v4781_v32 = vadd.f32 %v9024_v31, %v4780_v22 }
 0xb88   : > { %v9026_v63 = vpop.eup %9025  ;;  %v4999_v12 = vpop.f32.mrf.mxu1 }
 0xb89   : > { %v4793_v56 = vmul.f32 %v9026_v63, %v4614_v23  ;;  %v4785_v49 = vsel %vm4784_vm5, %v9024_v31, %v4781_v32  ;;  %v5147_v50 = vadd.f32 %v4999_v12, %v12065_v29  ;;  %vm4798_vm7 = vweird.f32 %v9026_v63 }
 0xb8a   : > { %v4790_v4 = vsel %vm4787_vm6, %v4789_v10, %v4785_v49  ;;  %vm4799_vm9 = vmor %vm4797_vm8, %vm4798_vm7  ;;  %v4804_v29 = vor.u32 1.1754944e-38, %v4803_v52 }
 0xb8b   : > { %v4794_v14 = vsub.f32 1.0, %v4793_v56  ;;  %v12359_v0 = vadd.f32 %v12342_v46, %v5147_v50  ;;  %v4791_v26 = vmul.f32 %v12305_v60, %v4790_v4 }
 0xb8d   : > { %v4795_v44 = vmul.f32 %v9026_v63, %v4794_v14  ;;  %v5184_v1 = vsel %vm1122_vm1, %v12359_v0, 0.0  ;;  %v4935_v42 = vpack.c.bf16 %v4791_v26, %v4791_v26 }
 0xb8e   : > { %5185 = vadd.xlane.f32.xlu2 %v5184_v1 }
 0xb8f   : > { %v4796_v51 = vadd.f32 %v9026_v63, %v4795_v44  ;;  %v5057_v60 = vunpack.c.l.b16 %v4935_v42 }
 0xb90   : > { %v5001_v53 = vpop.f32.mrf.mxu1 }
 0xb91   : > { %v4800_v28 = vsel %vm4799_vm9, %v9026_v63, %v4796_v51  ;;  %v5148_v62 = vadd.f32 %v5001_v53, %v12071_v55 }
 0xb92   : > { %v4805_v38 = vsel %vm4802_vm10, %v4804_v29, %v4800_v28 }
 0xb93   : > { %v4806_v54 = vmul.f32 %v12309_v3, %v4805_v38  ;;  %v12367_v31 = vadd.f32 %v12342_v46, %v5148_v62 }
 0xb95   : > { %v4936_v8 = vpack.c.bf16 %v4806_v54, %v4806_v54  ;;  %v5187_v24 = vsel %vm1122_vm1, %v12367_v31, 0.0 }
 0xb96   : > { %5188 = vadd.xlane.f32.xlu0 %v5187_v24 }
 0xb97   : > { %v5058_v23 = vunpack.c.l.b16 %v4936_v8 }
 0xb99   : > { %v5060_v21 = vpack.c.b16 %v5058_v23, %v5057_v60 }
 0xb9b   : > { %8409 = vmatmul.msk.bf16.gmra.mxu0 %vm728_vm0, %v5060_v21 }
 0xb9e   : > { %v5041_v22 = vpop.f32.mrf.mxu2 }
 0xb9f   : > { %v5149_v55 = vadd.f32 %v5041_v22, %v12078_v19 }
 0xba1   : > { %v12374_v2 = vadd.f32 %v12342_v46, %v5149_v55 }
 0xba3   : > { %v5190_v3 = vsel %vm1122_vm1, %v12374_v2, 0.0 }
 0xba4   : > { %5191 = vadd.xlane.f32.xlu1 %v5190_v3 }
 0xba6   : > { %v5043_v11 = vpop.f32.mrf.mxu2 }
 0xba7   : > { %v5150_v32 = vadd.f32 %v5043_v11, %v12084_v43 }
 0xba9   : > { %v12380_v45 = vadd.f32 %v12342_v46, %v5150_v32 }
 0xbab   : > { %v5193_v63 = vsel %vm1122_vm1, %v12380_v45, 0.0 }
 0xbac   : > { %5194 = vadd.xlane.f32.xlu2 %v5193_v63 }
 0xbae   : > { %v5046_v56 = vpop.f32.mrf.mxu2 }
 0xbaf   : > { %v5151_v19 = vadd.f32 %v5046_v56, %v12091_v27 }
 0xbb1   : > { %v12386_v12 = vadd.f32 %v12342_v46, %v5151_v19 }
 0xbb3   : > { %v5196_v49 = vsel %vm1122_vm1, %v12386_v12, 0.0 }
 0xbb4   : > { %5197 = vadd.xlane.f32.xlu2 %v5196_v49 }
 0xbb6   : > { %v4617_v10 = vpop.xlane.xlu2 %4616 }
 0xbb7   : > { %9027 = vrcp.f32 %v4617_v10  ;;  %v4818_v44 = vand.u32 2147483648, %v4617_v10  ;;  %vm4812_vm12 = vweird.f32 %v4617_v10  ;;  %v4816_v27 = vand.u32 2147483647, %v4617_v10 }
 0xbb9   : > { %v4819_v29 = vor.u32 1.1754944e-38, %v4818_v44  ;;  %vm4817_vm14 = vcmp.eq.f32.partialorder %v4816_v27, 8.507059e+37 }
 0xbbd   : > { %v9028_v43 = vpop.eup %9027 }
 0xbbe   : > { %v4808_v50 = vmul.f32 %v9028_v43, %v4617_v10  ;;  %v4620_v14 = vpop.xlane.xlu0 %4619  ;;  %vm4813_vm11 = vweird.f32 %v9028_v43 }
 0xbbf   : > { %9029 = vrcp.f32 %v4620_v14  ;;  %vm4814_vm13 = vmor %vm4812_vm12, %vm4813_vm11  ;;  %v4833_v38 = vand.u32 2147483648, %v4620_v14  ;;  %v4831_v42 = vand.u32 2147483647, %v4620_v14  ;;  %vm4827_vm2 = vweird.f32 %v4620_v14 }
 0xbc0   : > { %v4809_v52 = vsub.f32 1.0, %v4808_v50 }
 0xbc1   : > { %v4834_v60 = vor.u32 1.1754944e-38, %v4833_v38  ;;  %vm4832_vm4 = vcmp.eq.f32.partialorder %v4831_v42, 8.507059e+37 }
 0xbc2   : > { %v4810_v4 = vmul.f32 %v9028_v43, %v4809_v52 }
 0xbc4   : > { %v4811_v36 = vadd.f32 %v9028_v43, %v4810_v4  ;;  %v9716_v4 = vmov 16.0  }
 0xbc5   : > { %v9030_v1 = vpop.eup %9029 }
 0xbc6   : > { %v4815_v51 = vsel %vm4814_vm13, %v9028_v43, %v4811_v36  ;;  %v4823_v26 = vmul.f32 %v9030_v1, %v4620_v14  ;;  %v4623_v53 = vpop.xlane.xlu1 %4622  ;;  %vm4828_vm15 = vweird.f32 %v9030_v1 }
 0xbc7   : > { %9031 = vrcp.f32 %v4623_v53  ;;  %v4820_v62 = vsel %vm4817_vm14, %v4819_v29, %v4815_v51  ;;  %vm4829_vm3 = vmor %vm4827_vm2, %vm4828_vm15  ;;  %v4848_v10 = vand.u32 2147483648, %v4623_v53  ;;  %vm4842_vm6 = vweird.f32 %v4623_v53 }
 0xbc8   : > { %v4824_v28 = vsub.f32 1.0, %v4823_v26  ;;  %v4821_v8 = vmul.f32 %v12322_v61, %v4820_v62  ;;  %v4846_v50 = vand.u32 2147483647, %v4623_v53 }
 0xbc9   : > { %v4849_v27 = vor.u32 1.1754944e-38, %v4848_v10 }
 0xbca   : > { %v4825_v54 = vmul.f32 %v9030_v1, %v4824_v28  ;;  %v4937_v11 = vpack.c.bf16 %v4821_v8, %v4821_v8  ;;  %vm4847_vm8 = vcmp.eq.f32.partialorder %v4846_v50, 8.507059e+37 }
 0xbcc   : > { %v4826_v24 = vadd.f32 %v9030_v1, %v4825_v54  ;;  %v5102_v49 = vunpack.c.l.b16 %v4937_v11 }
 0xbcd   : > { %v9032_v23 = vpop.eup %9031 }
 0xbce   : > { %v4830_v21 = vsel %vm4829_vm3, %v9030_v1, %v4826_v24  ;;  %v4838_v55 = vmul.f32 %v9032_v23, %v4623_v53  ;;  %v4626_v3 = vpop.xlane.xlu2 %4625  ;;  %vm4843_vm5 = vweird.f32 %v9032_v23 }
 0xbcf   : > { %v4835_v22 = vsel %vm4832_vm4, %v4834_v60, %v4830_v21  ;;  %9033 = vrcp.f32 %v4626_v3  ;;  %vm4844_vm7 = vmor %vm4842_vm6, %vm4843_vm5  ;;  %v4863_v51 = vand.u32 2147483648, %v4626_v3  ;;  %v4861_v29 = vand.u32 2147483647, %v4626_v3 }
 0xbd0   : > { %v4836_v32 = vmul.f32 %v12327_v7, %v4835_v22  ;;  %v4839_v63 = vsub.f32 1.0, %v4838_v55  ;;  %9035 = vrcp.f32 %v9716_v4  ;;  %vm4857_vm10 = vweird.f32 %v4626_v3 }
 0xbd1   : > { %v4864_v38 = vor.u32 1.1754944e-38, %v4863_v51  ;;  %vm4862_vm12 = vcmp.eq.f32.partialorder %v4861_v29, 8.507059e+37 }
 0xbd2   : > { %v4938_v56 = vpack.c.bf16 %v4836_v32, %v4836_v32  ;;  %v4840_v19 = vmul.f32 %v9032_v23, %v4839_v63 }
 0xbd4   : > { %v5103_v61 = vunpack.c.l.b16 %v4938_v56  ;;  %v4841_v43 = vadd.f32 %v9032_v23, %v4840_v19 }
 0xbd5   : > { %v9034_v14 = vpop.eup %9033 }
 0xbd6   : > { %v5106_v52 = vpack.c.b16 %v5103_v61, %v5102_v49  ;;  %v4845_v44 = vsel %vm4844_vm7, %v9032_v23, %v4841_v43  ;;  %v4853_v36 = vmul.f32 %v9034_v14, %v4626_v3  ;;  %vm4858_vm9 = vweird.f32 %v9034_v14  ;;  %v9036_v28 = vpop.eup %9035 }
 0xbd7   : > { %v4850_v1 = vsel %vm4847_vm8, %v4849_v27, %v4845_v44  ;;  %vm4859_vm11 = vmor %vm4857_vm10, %vm4858_vm9  ;;  %v5227_v42 = vmul.f32 16.0, %v9036_v28  ;;  %vm5231_vm13 = vweird.f32 %v9036_v28 }
 0xbd8   : > { %8410 = vmatmul.msk.bf16.vlgmr.msrb.gmra.mxu1 %vm728_vm0, %v5106_v52  ;;  %v4854_v7 = vsub.f32 1.0, %v4853_v36  ;;  %v4851_v53 = vmul.f32 %v12332_v34, %v4850_v1 }
 0xbd9   : > { %v5228_v21 = vsub.f32 1.0, %v5227_v42 }
 0xbda   : > { %v4855_v26 = vmul.f32 %v9034_v14, %v4854_v7  ;;  %v4939_v60 = vpack.c.bf16 %v4851_v53, %v4851_v53 }
 0xbdb   : > { %v5229_v32 = vmul.f32 %v9036_v28, %v5228_v21 }
 0xbdc   : > { %v4856_v62 = vadd.f32 %v9034_v14, %v4855_v26  ;;  %v5104_v22 = vunpack.c.l.b16 %v4939_v60 }
 0xbdd   : > { %v5230_v3 = vadd.f32 %v9036_v28, %v5229_v32 }
 0xbde   : > { %v4860_v54 = vsel %vm4859_vm11, %v9034_v14, %v4856_v62 }
 0xbdf   : > { %v4865_v8 = vsel %vm4862_vm12, %v4864_v38, %v4860_v54  ;;  %v12396_v34 = vsel %vm5231_vm13, %v9036_v28, %v5230_v3 }
 0xbe0   : > { %v4866_v24 = vmul.f32 %v12336_v39, %v4865_v8  ;;  %v5048_v39 = vpop.f32.mrf.mxu2 }
 0xbe1   : > { %v5152_v61 = vadd.f32 %v5048_v39, %v12095_v59 }
 0xbe2   : > { %v4940_v23 = vpack.c.bf16 %v4866_v24, %v4866_v24 }
 0xbe3   : > { %v12408_v14 = vadd.f32 %v12342_v46, %v5152_v61 }
 0xbe4   : > { %v5105_v55 = vunpack.c.l.b16 %v4940_v23 }
 0xbe5   : > { %v5199_v59 = vsel %vm1122_vm1, %v12408_v14, 0.0 }
 0xbe6   : > { %v5107_v11 = vpack.c.b16 %v5105_v55, %v5104_v22 }
 0xbe8   : > { %8411 = vmatmul.msk.bf16.gmra.mxu1 %vm728_vm0, %v5107_v11 }
 0xbf1   : > { %v5180_v63 = vpop.xlane.xlu0 %5179 }
 0xbf2   : > { %v5233_v56 = vmul.f32 %v12396_v34, %v5180_v63 }
 0xbf4   : > { %v12400_v19 = vsub.f32 %v12346_v57, %v5233_v56 }
 0xbf6   : > { %v5265_v49 = vmul.f32 %v12400_v19, %v12400_v19 }
 0xbf8   : > { %v5281_v10 = vsel %vm1122_vm1, %v5265_v49, 0.0  ;;  %v5088_v52 = vpop.f32.mrf.mxu0 }
 0xbf9   : > { %5282 = vadd.xlane.f32.xlu0 %v5281_v10  ;;  %v5183_v43 = vpop.xlane.xlu1 %5182  ;;  %v5153_v44 = vadd.f32 %v5088_v52, %v12130_v5 }
 0xbfa   : > { %v5234_v50 = vmul.f32 %v12396_v34, %v5183_v43 }
 0xbfb   : > { %v12420_v7 = vadd.f32 %v12342_v46, %v5153_v44 }
 0xbfc   : > { %v12411_v4 = vsub.f32 %v12353_v30, %v5234_v50 }
 0xbfd   : > { %v5202_v26 = vsel %vm1122_vm1, %v12420_v7, 0.0 }
 0xbfe   : > { %v5266_v57 = vmul.f32 %v12411_v4, %v12411_v4 }
 0xc00   : > { %v5284_v36 = vsel %vm1122_vm1, %v5266_v57, 0.0  ;;  %v5090_v51 = vpop.f32.mrf.mxu0 }
 0xc01   : > { %5200 = vadd.xlane.f32.xlu0 %v5199_v59  ;;  %5285 = vadd.xlane.f32.xlu1 %v5284_v36  ;;  %v5186_v27 = vpop.xlane.xlu2 %5185  ;;  %v5154_v29 = vadd.f32 %v5090_v51, %v12136_v25 }
 0xc02   : > { %v5235_v1 = vmul.f32 %v12396_v34, %v5186_v27 }
 0xc04   : > { %v12424_v30 = vsub.f32 %v12359_v0, %v5235_v1  ;;  %v12437_v0 = vadd.f32 %v12342_v46, %v5154_v29 }
 0xc06   : > { %v5267_v5 = vmul.f32 %v12424_v30, %v12424_v30  ;;  %v5205_v42 = vsel %vm1122_vm1, %v12437_v0, 0.0 }
 0xc08   : > { %v5287_v28 = vsel %vm1122_vm1, %v5267_v5, 0.0 }
 0xc09   : > { %5203 = vadd.xlane.f32.xlu0 %v5202_v26  ;;  %5288 = vadd.xlane.f32.xlu1 %v5287_v28  ;;  %v5189_v62 = vpop.xlane.xlu0 %5188 }
 0xc0a   : > { %v5236_v53 = vmul.f32 %v12396_v34, %v5189_v62  ;;  %v8540_v62 = vld [vmem:[#allocation11] sm:$0xff] }
 0xc0b   : > { %5619 = vmatpush.bf16.msra.mxu2 %v8540_v62 }
 0xc0c   : > { %v12434_v38 = vsub.f32 %v12367_v31, %v5236_v53 }
 0xc0e   : > { %v5268_v54 = vmul.f32 %v12434_v38, %v12434_v38 }
 0xc10   : > { %v5290_v25 = vsel %vm1122_vm1, %v5268_v54, 0.0 }
 0xc11   : > { %5206 = vadd.xlane.f32.xlu1 %v5205_v42  ;;  %5291 = vadd.xlane.f32.xlu2 %v5290_v25 }
 0xc17   : > { %v5192_v8 = vpop.xlane.xlu1 %5191 }
 0xc18   : > { %v5237_v24 = vmul.f32 %v12396_v34, %v5192_v8  ;;  %v5093_v60 = vpop.f32.mrf.mxu0 }
 0xc19   : > { %v5155_v23 = vadd.f32 %v5093_v60, %v12142_v13 }
 0xc1a   : > { %v12446_v31 = vsub.f32 %v12374_v2, %v5237_v24 }
 0xc1b   : > { %v12450_v21 = vadd.f32 %v12342_v46, %v5155_v23 }
 0xc1c   : > { %v5269_v22 = vmul.f32 %v12446_v31, %v12446_v31 }
 0xc1d   : > { %v5208_v55 = vsel %vm1122_vm1, %v12450_v21, 0.0 }
 0xc1e   : > { %v5293_v11 = vsel %vm1122_vm1, %v5269_v22, 0.0  ;;  %5209 = vadd.xlane.f32.xlu1 %v5208_v55 }
 0xc1f   : > { %v5195_v32 = vpop.xlane.xlu2 %5194  ;;  %5294 = vadd.xlane.f32.xlu2 %v5293_v11 }
 0xc20   : > { %v5238_v3 = vmul.f32 %v12396_v34, %v5195_v32  ;;  %v5095_v2 = vpop.f32.mrf.mxu0 }
 0xc21   : > { %v5156_v13 = vadd.f32 %v5095_v2, %v12146_v18 }
 0xc22   : > { %v12459_v63 = vsub.f32 %v12380_v45, %v5238_v3 }
 0xc23   : > { %v12465_v39 = vadd.f32 %v12342_v46, %v5156_v13 }
 0xc24   : > { %v5270_v56 = vmul.f32 %v12459_v63, %v12459_v63 }
 0xc25   : > { %v5211_v61 = vsel %vm1122_vm1, %v12465_v39, 0.0 }
 0xc26   : > { %v5296_v49 = vsel %vm1122_vm1, %v5270_v56, 0.0 }
 0xc27   : > { %v5198_v10 = vpop.xlane.xlu2 %5197  ;;  %5297 = vadd.xlane.f32.xlu0 %v5296_v49  ;;  %5212 = vadd.xlane.f32.xlu2 %v5211_v61 }
 0xc28   : > { %v5239_v43 = vmul.f32 %v12396_v34, %v5198_v10 }
 0xc2a   : > { %v12472_v45 = vsub.f32 %v12386_v12, %v5239_v43 }
 0xc2c   : > { %v5271_v18 = vmul.f32 %v12472_v45, %v12472_v45 }
 0xc2e   : > { %v5299_v50 = vsel %vm1122_vm1, %v5271_v18, 0.0 }
 0xc2f   : > { %5300 = vadd.xlane.f32.xlu0 %v5299_v50 }
 0xc55   : > { %v5135_v52 = vpop.f32.mrf.mxu1 }
 0xc56   : > { %v5157_v57 = vadd.f32 %v5135_v52, %v12158_v58 }
 0xc58   : > { %v12479_v44 = vadd.f32 %v12342_v46, %v5157_v57 }
 0xc5a   : > { %v5214_v59 = vsel %vm1122_vm1, %v12479_v44, 0.0 }
 0xc5b   : > { %5215 = vadd.xlane.f32.xlu2 %v5214_v59 }
 0xc5d   : > { %v5137_v36 = vpop.f32.mrf.mxu1 }
 0xc5e   : > { %v5158_v12 = vadd.f32 %v5137_v36, %v12162_v40 }
 0xc60   : > { %v12485_v27 = vadd.f32 %v12342_v46, %v5158_v12 }
 0xc62   : > { %v5217_v1 = vsel %vm1122_vm1, %v12485_v27, 0.0 }
 0xc63   : > { %5218 = vadd.xlane.f32.xlu0 %v5217_v1 }
 0xc65   : > { %v5140_v51 = vpop.f32.mrf.mxu1 }
 0xc66   : > { %v5159_v58 = vadd.f32 %v5140_v51, %v12168_v48 }
 0xc68   : > { %v12491_v5 = vadd.f32 %v12342_v46, %v5159_v58 }
 0xc6a   : > { %v5220_v26 = vsel %vm1122_vm1, %v12491_v5, 0.0 }
 0xc6b   : > { %5221 = vadd.xlane.f32.xlu0 %v5220_v26 }
 0xc6c   : > { %v5283_v29 = vpop.xlane.xlu0 %5282 }
 0xc6d   : > { %v5329_v40 = vmul.f32 %v5283_v29, %v12396_v34  ;;  %v5142_v10 = vpop.f32.mrf.mxu1  ;;  %v12515_v29 = vld [vmem:[#allocation13 + $0x2] ss:$0 sm:$0xff] }
 0xc6e   : > { %v5160_v57 = vadd.f32 %v5142_v10, %v12172_v17 }
 0xc6f   : > { %v5345_v28 = vadd.f32 1e-05, %v5329_v40 }
 0xc71   : > { %9037 = vrsqrt.f32 %v5345_v28  ;;  %vm5367_vm15 = vweird.f32 %v5345_v28 }
 0xc74   : > { %v5201_v53 = vpop.xlane.xlu0 %5200  ;;  %v5286_v54 = vpop.xlane.xlu1 %5285 }
 0xc75   : > { %v5240_v42 = vmul.f32 %v12396_v34, %v5201_v53  ;;  %v5330_v48 = vmul.f32 %v5286_v54, %v12396_v34 }
 0xc77   : > { %v9038_v25 = vpop.eup %9037  ;;  %v12499_v8 = vsub.f32 %v12408_v14, %v5240_v42  ;;  %v5346_v60 = vadd.f32 1e-05, %v5330_v48 }
 0xc78   : > { %v5362_v24 = vmul.f32 %v9038_v25, %v5345_v28  ;;  %vm5368_vm14 = vweird.f32 %v9038_v25  ;;  %v12519_v28 = vadd.f32 %v12342_v46, %v5160_v57 }
 0xc79   : > { %v5272_v23 = vmul.f32 %v12499_v8, %v12499_v8  ;;  %9039 = vrsqrt.f32 %v5346_v60  ;;  %vm5369_vm2 = vmor %vm5367_vm15, %vm5368_vm14  ;;  %vm5377_vm4 = vweird.f32 %v5346_v60 }
 0xc7a   : > { %v5363_v22 = vmul.f32 %v9038_v25, %v5362_v24  ;;  %v12526_v24 = vld [vmem:[#allocation13 + $0x3] ss:$0 sm:$0xff] }
 0xc7b   : > { %v5302_v55 = vsel %vm1122_vm1, %v5272_v23, 0.0 }
 0xc7c   : > { %v5364_v11 = vmul.f32 0.5, %v5363_v22  ;;  %5303 = vadd.xlane.f32.xlu1 %v5302_v55  ;;  %v5204_v32 = vpop.xlane.xlu0 %5203  ;;  %v5289_v13 = vpop.xlane.xlu1 %5288 }
 0xc7d   : > { %v5241_v3 = vmul.f32 %v12396_v34, %v5204_v32  ;;  %v5331_v56 = vmul.f32 %v5289_v13, %v12396_v34 }
 0xc7e   : > { %v5365_v2 = vsub.f32 1.5, %v5364_v11 }
 0xc7f   : > { %v12507_v14 = vsub.f32 %v12420_v7, %v5241_v3  ;;  %v9040_v49 = vpop.eup %9039  ;;  %v5347_v18 = vadd.f32 1e-05, %v5331_v56 }
 0xc80   : > { %v5366_v61 = vmul.f32 %v9038_v25, %v5365_v2  ;;  %v5372_v43 = vmul.f32 %v9040_v49, %v5346_v60  ;;  %vm5378_vm3 = vweird.f32 %v9040_v49  ;;  %v5223_v60 = vsel %vm1122_vm1, %v12519_v28, 0.0 }
 0xc81   : > { %v5273_v50 = vmul.f32 %v12507_v14, %v12507_v14  ;;  %9041 = vrsqrt.f32 %v5347_v18  ;;  %vm5379_vm5 = vmor %vm5377_vm4, %vm5378_vm3  ;;  %vm5387_vm7 = vweird.f32 %v5347_v18 }
 0xc82   : > { %v5373_v52 = vmul.f32 %v9040_v49, %v5372_v43  ;;  %v5370_v36 = vsel %vm5369_vm2, %v9038_v25, %v5366_v61 }
 0xc83   : > { %v5305_v59 = vsel %vm1122_vm1, %v5273_v50, 0.0  ;;  %v5521_v40 = vmul.f32 %v5370_v36, %v12400_v19 }
 0xc84   : > { %v5374_v7 = vmul.f32 0.5, %v5373_v52  ;;  %5306 = vadd.xlane.f32.xlu1 %v5305_v59  ;;  %v5207_v12 = vpop.xlane.xlu1 %5206  ;;  %v5292_v1 = vpop.xlane.xlu2 %5291 }
 0xc85   : > { %v5242_v58 = vmul.f32 %v12396_v34, %v5207_v12  ;;  %v5332_v26 = vmul.f32 %v5292_v1, %v12396_v34  ;;  %v5538_v19 = vmul.f32 %v12515_v29, %v5521_v40 }
 0xc86   : > { %v5375_v51 = vsub.f32 1.5, %v5374_v7 }
 0xc87   : > { %v9042_v17 = vpop.eup %9041  ;;  %v12522_v53 = vsub.f32 %v12437_v0, %v5242_v58  ;;  %v5348_v54 = vadd.f32 1e-05, %v5332_v26  ;;  %v12535_v11 = vadd.f32 %v12526_v24, %v5538_v19 }
 0xc88   : > { %v5376_v62 = vmul.f32 %v9040_v49, %v5375_v51  ;;  %v5382_v42 = vmul.f32 %v9042_v17, %v5347_v18  ;;  %vm5388_vm6 = vweird.f32 %v9042_v17 }
 0xc89   : > { %9043 = vrsqrt.f32 %v5348_v54  ;;  %v5274_v25 = vmul.f32 %v12522_v53, %v12522_v53  ;;  %vm5389_vm8 = vmor %vm5387_vm7, %vm5388_vm6  ;;  %vm5397_vm10 = vweird.f32 %v5348_v54 }
 0xc8a   : > { %v5380_v48 = vsel %vm5379_vm5, %v9040_v49, %v5376_v62  ;;  %v5383_v23 = vmul.f32 %v9042_v17, %v5382_v42 }
 0xc8b   : > { %v5522_v46 = vmul.f32 %v5380_v48, %v12411_v4  ;;  %v5308_v0 = vsel %vm1122_vm1, %v5274_v25, 0.0 }
 0xc8c   : > { %5224 = vadd.xlane.f32.xlu1 %v5223_v60  ;;  %v5384_v55 = vmul.f32 0.5, %v5383_v23  ;;  %5309 = vadd.xlane.f32.xlu2 %v5308_v0 }
 0xc8d   : > { %v5539_v22 = vmul.f32 %v12515_v29, %v5522_v46 }
 0xc8e   : > { %v5385_v3 = vsub.f32 1.5, %v5384_v55 }
 0xc8f   : > { %v12538_v32 = vadd.f32 %v12526_v24, %v5539_v22  ;;  %v9044_v2 = vpop.eup %9043 }
 0xc90   : > { %v5386_v13 = vmul.f32 %v9042_v17, %v5385_v3  ;;  %v5392_v56 = vmul.f32 %v9044_v2, %v5348_v54  ;;  %vm5398_vm9 = vweird.f32 %v9044_v2 }
 0xc91   : > { %v5571_v4 = vpack.c.bf16 %v12538_v32, %v12535_v11  ;;  %v5210_v49 = vpop.xlane.xlu1 %5209  ;;  %vm5399_vm11 = vmor %vm5397_vm10, %vm5398_vm9 }
 0xc92   : > { %v5295_v61 = vpop.xlane.xlu2 %5294  ;;  %v5243_v10 = vmul.f32 %v12396_v34, %v5210_v49  ;;  %v5393_v50 = vmul.f32 %v9044_v2, %v5392_v56  ;;  %v5390_v59 = vsel %vm5389_vm8, %v9042_v17, %v5386_v13 }
 0xc93   : > { %v5333_v43 = vmul.f32 %v5295_v61, %v12396_v34  ;;  %8416 = vmatmul.msk.bf16.vlgmr.msra.gmra.mxu2 %vm1122_vm1, %v5571_v4  ;;  %v5523_v1 = vmul.f32 %v5390_v59, %v12424_v30 }
 0xc94   : > { %v12546_v52 = vsub.f32 %v12450_v21, %v5243_v10  ;;  %v5394_v36 = vmul.f32 0.5, %v5393_v50 }
 0xc95   : > { %v5349_v57 = vadd.f32 1e-05, %v5333_v43  ;;  %v5540_v25 = vmul.f32 %v12515_v29, %v5523_v1 }
 0xc96   : > { %v5275_v7 = vmul.f32 %v12546_v52, %v12546_v52  ;;  %v5395_v12 = vsub.f32 1.5, %v5394_v36 }
 0xc97   : > { %9045 = vrsqrt.f32 %v5349_v57  ;;  %v12564_v0 = vadd.f32 %v12526_v24, %v5540_v25  ;;  %vm5407_vm13 = vweird.f32 %v5349_v57 }
 0xc98   : > { %v5311_v18 = vsel %vm1122_vm1, %v5275_v7, 0.0  ;;  %v5396_v51 = vmul.f32 %v9044_v2, %v5395_v12 }
 0xc99   : > { %5312 = vadd.xlane.f32.xlu2 %v5311_v18 }
 0xc9a   : > { %v5213_v58 = vpop.xlane.xlu2 %5212  ;;  %v5298_v26 = vpop.xlane.xlu0 %5297  ;;  %v5400_v17 = vsel %vm5399_vm11, %v9044_v2, %v5396_v51 }
 0xc9b   : > { %v5244_v21 = vmul.f32 %v12396_v34, %v5213_v58  ;;  %v5334_v40 = vmul.f32 %v5298_v26, %v12396_v34  ;;  %v5524_v42 = vmul.f32 %v5400_v17, %v12434_v38 }
 0xc9d   : > { %v9046_v62 = vpop.eup %9045  ;;  %v12556_v48 = vsub.f32 %v12465_v39, %v5244_v21  ;;  %v5350_v30 = vadd.f32 1e-05, %v5334_v40  ;;  %v5541_v46 = vmul.f32 %v12515_v29, %v5524_v42 }
 0xc9e   : > { %v5402_v19 = vmul.f32 %v9046_v62, %v5349_v57  ;;  %vm5408_vm12 = vweird.f32 %v9046_v62 }
 0xc9f   : > { %9047 = vrsqrt.f32 %v5350_v30  ;;  %v5276_v54 = vmul.f32 %v12556_v48, %v12556_v48  ;;  %v12567_v38 = vadd.f32 %v12526_v24, %v5541_v46  ;;  %vm5409_vm14 = vmor %vm5407_vm13, %vm5408_vm12  ;;  %vm5417_vm2 = vweird.f32 %v5350_v30 }
 0xca0   : > { %v5403_v23 = vmul.f32 %v9046_v62, %v5402_v19 }
 0xca1   : > { %v5314_v60 = vsel %vm1122_vm1, %v5276_v54, 0.0  ;;  %v5572_v22 = vpack.c.bf16 %v12567_v38, %v12564_v0 }
 0xca2   : > { %v5404_v39 = vmul.f32 0.5, %v5403_v23  ;;  %5315 = vadd.xlane.f32.xlu0 %v5314_v60 }
 0xca3   : > { %8417 = vmatmul.msk.bf16.gmra.mxu2 %vm1122_vm1, %v5572_v22 }
 0xca4   : > { %v5405_v55 = vsub.f32 1.5, %v5404_v39 }
 0xca5   : > { %v9048_v3 = vpop.eup %9047 }
 0xca6   : > { %v5406_v2 = vmul.f32 %v9046_v62, %v5405_v55  ;;  %v5412_v4 = vmul.f32 %v9048_v3, %v5350_v30  ;;  %vm5418_vm15 = vweird.f32 %v9048_v3 }
 0xca7   : > { %vm5419_vm3 = vmor %vm5417_vm2, %vm5418_vm15 }
 0xca8   : > { %v5413_v13 = vmul.f32 %v9048_v3, %v5412_v4  ;;  %v5410_v56 = vsel %vm5409_vm14, %v9046_v62, %v5406_v2 }
 0xca9   : > { %v5525_v10 = vmul.f32 %v5410_v56, %v12446_v31  ;;  %v5301_v31 = vpop.xlane.xlu0 %5300 }
 0xcaa   : > { %v5414_v49 = vmul.f32 0.5, %v5413_v13  ;;  %v5335_v62 = vmul.f32 %v5301_v31, %v12396_v34 }
 0xcab   : > { %v5542_v36 = vmul.f32 %v12515_v29, %v5525_v10 }
 0xcac   : > { %v5415_v61 = vsub.f32 1.5, %v5414_v49  ;;  %v5351_v30 = vadd.f32 1e-05, %v5335_v62 }
 0xcad   : > { %v12577_v57 = vadd.f32 %v12526_v24, %v5542_v36 }
 0xcae   : > { %v5416_v43 = vmul.f32 %v9048_v3, %v5415_v61  ;;  %9049 = vrsqrt.f32 %v5351_v30  ;;  %vm5427_vm5 = vweird.f32 %v5351_v30 }
 0xcb0   : > { %v5420_v50 = vsel %vm5419_vm3, %v9048_v3, %v5416_v43 }
 0xcb1   : > { %v5526_v59 = vmul.f32 %v5420_v50, %v12459_v63 }
 0xcb3   : > { %v5543_v7 = vmul.f32 %v12515_v29, %v5526_v59 }
 0xcb4   : > { %v9050_v23 = vpop.eup %9049 }
 0xcb5   : > { %v12580_v12 = vadd.f32 %v12526_v24, %v5543_v7  ;;  %v5422_v60 = vmul.f32 %v9050_v23, %v5351_v30  ;;  %vm5428_vm4 = vweird.f32 %v9050_v23  ;;  %v8541_v7 = vld [vmem:[#allocation11 + $0x8] sm:$0xff] }
 0xcb6   : > { %vm5429_vm6 = vmor %vm5427_vm5, %vm5428_vm4 }
 0xcb7   : > { %v5573_v1 = vpack.c.bf16 %v12580_v12, %v12577_v57  ;;  %v5423_v39 = vmul.f32 %v9050_v23, %v5422_v60 }
 0xcb9   : > { %8418 = vmatmul.msk.bf16.gmra.mxu2 %vm1122_vm1, %v5573_v1  ;;  %v5424_v2 = vmul.f32 0.5, %v5423_v39 }
 0xcbb   : > { %v5425_v4 = vsub.f32 1.5, %v5424_v2 }
 0xcbd   : > { %v5426_v49 = vmul.f32 %v9050_v23, %v5425_v4 }
 0xcbf   : > { %v5430_v50 = vsel %vm5429_vm6, %v9050_v23, %v5426_v49 }
 0xcce   : > { %v5216_v18 = vpop.xlane.xlu2 %5215 }
 0xccf   : > { %v5245_v51 = vmul.f32 %v12396_v34, %v5216_v18 }
 0xcd1   : > { %v12587_v63 = vsub.f32 %v12479_v44, %v5245_v51  ;;  %v5527_v51 = vmul.f32 %v5430_v50, %v12472_v45  ;;  %v4204_v50 = vld [vmem:[#allocation11 + $0x10] sm:$0xf] }
 0xcd3   : > { %v5277_v58 = vmul.f32 %v12587_v63, %v12587_v63 }
 0xcd5   : > { %v5317_v26 = vsel %vm1122_vm1, %v5277_v58, 0.0 }
 0xcd6   : > { %5318 = vadd.xlane.f32.xlu1 %v5317_v26  ;;  %v5219_v21 = vpop.xlane.xlu0 %5218  ;;  %v5719_v26 = vsel %vm728_vm0, %v8541_v7, 0 }
 0xcd7   : > { %v5246_v40 = vmul.f32 %v12396_v34, %v5219_v21  ;;  %5728 = vmatpush.bf16.xpose.msra.mxu0 %v5719_v26 }
 0xcd9   : > { %v12594_v17 = vsub.f32 %v12485_v27, %v5246_v40 }
 0xcdb   : > { %v5278_v42 = vmul.f32 %v12594_v17, %v12594_v17 }
 0xcdd   : > { %v5320_v44 = vsel %vm1122_vm1, %v5278_v42, 0.0 }
 0xcde   : > { %5321 = vadd.xlane.f32.xlu2 %v5320_v44  ;;  %v5222_v25 = vpop.xlane.xlu0 %5221 }
 0xcdf   : > { %v5247_v19 = vmul.f32 %v12396_v34, %v5222_v25 }
 0xce1   : > { %v12602_v54 = vsub.f32 %v12491_v5, %v5247_v19 }
 0xce3   : > { %v5279_v27 = vmul.f32 %v12602_v54, %v12602_v54 }
 0xce5   : > { %v5323_v46 = vsel %vm1122_vm1, %v5279_v27, 0.0  ;;  %v5544_v27 = vmul.f32 %v12515_v29, %v5527_v51 }
 0xce6   : > { %5324 = vadd.xlane.f32.xlu0 %v5323_v46 }
 0xce7   : > { %v12623_v39 = vadd.f32 %v12526_v24, %v5544_v27 }
 0xcef   : > { %v5304_v22 = vpop.xlane.xlu1 %5303 }
 0xcf0   : > { %v5336_v55 = vmul.f32 %v5304_v22, %v12396_v34 }
 0xcf2   : > { %v5352_v3 = vadd.f32 1e-05, %v5336_v55 }
 0xcf4   : > { %9051 = vrsqrt.f32 %v5352_v3  ;;  %vm5437_vm8 = vweird.f32 %v5352_v3 }
 0xcf7   : > { %v5307_v13 = vpop.xlane.xlu1 %5306 }
 0xcf8   : > { %v5337_v5 = vmul.f32 %v5307_v13, %v12396_v34 }
 0xcfa   : > { %v9052_v56 = vpop.eup %9051  ;;  %v5353_v10 = vadd.f32 1e-05, %v5337_v5 }
 0xcfb   : > { %v5432_v61 = vmul.f32 %v9052_v56, %v5352_v3  ;;  %vm5438_vm7 = vweird.f32 %v9052_v56 }
 0xcfc   : > { %9053 = vrsqrt.f32 %v5353_v10  ;;  %vm5439_vm9 = vmor %vm5437_vm8, %vm5438_vm7  ;;  %vm5447_vm11 = vweird.f32 %v5353_v10 }
 0xcfd   : > { %v5433_v43 = vmul.f32 %v9052_v56, %v5432_v61 }
 0xcff   : > { %v5434_v59 = vmul.f32 0.5, %v5433_v43  ;;  %v5225_v36 = vpop.xlane.xlu1 %5224  ;;  %v5310_v31 = vpop.xlane.xlu2 %5309 }
 0xd00   : > { %v5248_v18 = vmul.f32 %v12396_v34, %v5225_v36  ;;  %v5338_v58 = vmul.f32 %v5310_v31, %v12396_v34  ;;  %v4205_v31 = vunpack.c.l.bf16 %v4204_v50 }
 0xd01   : > { %v5435_v1 = vsub.f32 1.5, %v5434_v59 }
 0xd02   : > { %v9054_v21 = vpop.eup %9053  ;;  %v12614_v62 = vsub.f32 %v12519_v28, %v5248_v18  ;;  %v5354_v44 = vadd.f32 1e-05, %v5338_v58 }
 0xd03   : > { %v5436_v40 = vmul.f32 %v9052_v56, %v5435_v1  ;;  %v5442_v42 = vmul.f32 %v9054_v21, %v5353_v10  ;;  %vm5448_vm10 = vweird.f32 %v9054_v21 }
 0xd04   : > { %v5280_v25 = vmul.f32 %v12614_v62, %v12614_v62  ;;  %9055 = vrsqrt.f32 %v5354_v44  ;;  %vm5449_vm12 = vmor %vm5447_vm11, %vm5448_vm10  ;;  %vm5457_vm14 = vweird.f32 %v5354_v44 }
 0xd05   : > { %v5440_v30 = vsel %vm5439_vm9, %v9052_v56, %v5436_v40  ;;  %v5443_v19 = vmul.f32 %v9054_v21, %v5442_v42  ;;  %v12636_v42 = vperm.slane %v4205_v31, 0 }
 0xd06   : > { %v5528_v45 = vmul.f32 %v5440_v30, %v12499_v8  ;;  %v5326_v46 = vsel %vm1122_vm1, %v5280_v25, 0.0 }
 0xd07   : > { %v5444_v23 = vmul.f32 0.5, %v5443_v19  ;;  %5327 = vadd.xlane.f32.xlu1 %v5326_v46 }
 0xd08   : > { %v5545_v28 = vmul.f32 %v12515_v29, %v5528_v45 }
 0xd09   : > { %v5445_v60 = vsub.f32 1.5, %v5444_v23 }
 0xd0a   : > { %v12626_v22 = vadd.f32 %v12526_v24, %v5545_v28  ;;  %v9056_v55 = vpop.eup %9055 }
 0xd0b   : > { %v5446_v3 = vmul.f32 %v9054_v21, %v5445_v60  ;;  %v5452_v2 = vmul.f32 %v9056_v55, %v5354_v44  ;;  %vm5458_vm13 = vweird.f32 %v9056_v55 }
 0xd0c   : > { %v5574_v8 = vpack.c.bf16 %v12626_v22, %v12623_v39  ;;  %v5313_v4 = vpop.xlane.xlu2 %5312  ;;  %vm5459_vm15 = vmor %vm5457_vm14, %vm5458_vm13 }
 0xd0d   : > { %v5339_v13 = vmul.f32 %v5313_v4, %v12396_v34  ;;  %v5453_v5 = vmul.f32 %v9056_v55, %v5452_v2  ;;  %v5450_v49 = vsel %vm5449_vm12, %v9054_v21, %v5446_v3 }
 0xd0e   : > { %8419 = vmatmul.msk.bf16.gmra.mxu2 %vm1122_vm1, %v5574_v8  ;;  %v5529_v59 = vmul.f32 %v5450_v49, %v12507_v14 }
 0xd0f   : > { %v5355_v56 = vadd.f32 1e-05, %v5339_v13  ;;  %v5454_v61 = vmul.f32 0.5, %v5453_v5 }
 0xd10   : > { %v5546_v21 = vmul.f32 %v12515_v29, %v5529_v59 }
 0xd11   : > { %9057 = vrsqrt.f32 %v5355_v56  ;;  %v5455_v43 = vsub.f32 1.5, %v5454_v61  ;;  %vm5467_vm3 = vweird.f32 %v5355_v56 }
 0xd12   : > { %v12640_v30 = vadd.f32 %v12526_v24, %v5546_v21 }
 0xd13   : > { %v5456_v36 = vmul.f32 %v9056_v55, %v5455_v43 }
 0xd15   : > { %v5316_v7 = vpop.xlane.xlu0 %5315  ;;  %v5460_v18 = vsel %vm5459_vm15, %v9056_v55, %v5456_v36 }
 0xd16   : > { %v5340_v1 = vmul.f32 %v5316_v7, %v12396_v34  ;;  %v5621_v10 = vpop.f32.mrf.mxu2  ;;  %v5530_v58 = vmul.f32 %v5460_v18, %v12522_v53 }
 0xd17   : > { %v9058_v51 = vpop.eup %9057  ;;  %v5622_v19 = vadd.f32 %v5621_v10, %v12636_v42 }
 0xd18   : > { %v5356_v26 = vadd.f32 1e-05, %v5340_v1  ;;  %v5462_v40 = vmul.f32 %v9058_v51, %v5355_v56  ;;  %v5547_v14 = vmul.f32 %v12515_v29, %v5530_v58  ;;  %vm5468_vm2 = vweird.f32 %v9058_v51 }
 0xd19   : > { %v5661_v8 = vmax.f32 %v5622_v19, 0.0  ;;  %vm5469_vm4 = vmor %vm5467_vm3, %vm5468_vm2 }
 0xd1a   : > { %9059 = vrsqrt.f32 %v5356_v26  ;;  %v5463_v44 = vmul.f32 %v9058_v51, %v5462_v40  ;;  %v12643_v25 = vadd.f32 %v12526_v24, %v5547_v14  ;;  %vm5477_vm6 = vweird.f32 %v5356_v26 }
 0xd1c   : > { %v5464_v45 = vmul.f32 0.5, %v5463_v44  ;;  %v5575_v53 = vpack.c.bf16 %v12643_v25, %v12640_v30 }
 0xd1e   : > { %v5465_v27 = vsub.f32 1.5, %v5464_v45  ;;  %v5623_v46 = vpop.f32.mrf.mxu2  ;;  %8420 = vmatmul.msk.bf16.gmra.mxu2 %vm1122_vm1, %v5575_v53 }
 0xd1f   : > { %v5624_v28 = vadd.f32 %v5623_v46, %v12636_v42 }
 0xd20   : > { %v9060_v23 = vpop.eup %9059  ;;  %v5466_v60 = vmul.f32 %v9058_v51, %v5465_v27 }
 0xd21   : > { %v5472_v55 = vmul.f32 %v9060_v23, %v5356_v26  ;;  %v5662_v3 = vmax.f32 %v5624_v28, 0.0  ;;  %vm5478_vm5 = vweird.f32 %v9060_v23 }
 0xd22   : > { %v5470_v13 = vsel %vm5469_vm4, %v9058_v51, %v5466_v60  ;;  %vm5479_vm7 = vmor %vm5477_vm6, %vm5478_vm5 }
 0xd23   : > { %v5473_v2 = vmul.f32 %v9060_v23, %v5472_v55  ;;  %v5677_v4 = vpack.c.bf16 %v5662_v3, %v5661_v8  ;;  %v5531_v61 = vmul.f32 %v5470_v13, %v12546_v52 }
 0xd25   : > { %v5474_v5 = vmul.f32 0.5, %v5473_v2  ;;  %8428 = vmatmul.msk.bf16.vlgmr.msra.gmra.mxu0 %vm728_vm0, %v5677_v4  ;;  %v5548_v56 = vmul.f32 %v12515_v29, %v5531_v61 }
 0xd26   : > { %v5626_v43 = vpop.f32.mrf.mxu2 }
 0xd27   : > { %v5475_v49 = vsub.f32 1.5, %v5474_v5  ;;  %v5627_v1 = vadd.f32 %v5626_v43, %v12636_v42  ;;  %v12657_v18 = vadd.f32 %v12526_v24, %v5548_v56 }
 0xd29   : > { %v5476_v50 = vmul.f32 %v9060_v23, %v5475_v49  ;;  %v5663_v58 = vmax.f32 %v5627_v1, 0.0 }
 0xd2b   : > { %v5480_v59 = vsel %vm5479_vm7, %v9060_v23, %v5476_v50 }
 0xd2c   : > { %v5532_v36 = vmul.f32 %v5480_v59, %v12556_v48 }
 0xd2e   : > { %v5549_v7 = vmul.f32 %v12515_v29, %v5532_v36  ;;  %v5628_v31 = vpop.f32.mrf.mxu2 }
 0xd2f   : > { %v5629_v52 = vadd.f32 %v5628_v31, %v12636_v42 }
 0xd30   : > { %v12660_v10 = vadd.f32 %v12526_v24, %v5549_v7 }
 0xd31   : > { %v5664_v48 = vmax.f32 %v5629_v52, 0.0 }
 0xd32   : > { %v5576_v51 = vpack.c.bf16 %v12660_v10, %v12657_v18 }
 0xd33   : > { %v5678_v26 = vpack.c.bf16 %v5664_v48, %v5663_v58 }
 0xd34   : > { %8421 = vmatmul.msk.bf16.gmra.mxu2 %vm1122_vm1, %v5576_v51 }
 0xd35   : > { %8429 = vmatmul.msk.bf16.gmra.mxu0 %vm728_vm0, %v5678_v26 }
 0xd3c   : > { %v5631_v21 = vpop.f32.mrf.mxu2 }
 0xd3d   : > { %v5632_v40 = vadd.f32 %v5631_v21, %v12636_v42 }
 0xd3f   : > { %v5665_v45 = vmax.f32 %v5632_v40, 0.0 }
 0xd44   : > { %v5633_v14 = vpop.f32.mrf.mxu2 }
 0xd45   : > { %v5634_v44 = vadd.f32 %v5633_v14, %v12636_v42 }
 0xd47   : > { %v5666_v19 = vmax.f32 %v5634_v44, 0.0 }
 0xd49   : > { %v5679_v53 = vpack.c.bf16 %v5666_v19, %v5665_v45  ;;  %v5319_v27 = vpop.xlane.xlu1 %5318 }
 0xd4a   : > { %v5341_v46 = vmul.f32 %v5319_v27, %v12396_v34 }
 0xd4b   : > { %8430 = vmatmul.msk.bf16.gmra.mxu0 %vm728_vm0, %v5679_v53 }
 0xd4c   : > { %v5357_v23 = vadd.f32 1e-05, %v5341_v46 }
 0xd4e   : > { %9061 = vrsqrt.f32 %v5357_v23  ;;  %vm5487_vm9 = vweird.f32 %v5357_v23 }
 0xd51   : > { %v5322_v28 = vpop.xlane.xlu2 %5321 }
 0xd52   : > { %v5342_v60 = vmul.f32 %v5322_v28, %v12396_v34 }
 0xd54   : > { %v9062_v55 = vpop.eup %9061  ;;  %v5358_v8 = vadd.f32 1e-05, %v5342_v60 }
 0xd55   : > { %v5482_v3 = vmul.f32 %v9062_v55, %v5357_v23  ;;  %vm5488_vm8 = vweird.f32 %v9062_v55 }
 0xd56   : > { %9063 = vrsqrt.f32 %v5358_v8  ;;  %vm5489_vm10 = vmor %vm5487_vm9, %vm5488_vm8  ;;  %vm5497_vm12 = vweird.f32 %v5358_v8 }
 0xd57   : > { %v5483_v2 = vmul.f32 %v9062_v55, %v5482_v3 }
 0xd59   : > { %v5484_v4 = vmul.f32 0.5, %v5483_v2  ;;  %v5325_v56 = vpop.xlane.xlu0 %5324 }
 0xd5a   : > { %v5343_v31 = vmul.f32 %v5325_v56, %v12396_v34 }
 0xd5b   : > { %v5485_v13 = vsub.f32 1.5, %v5484_v4 }
 0xd5c   : > { %v9064_v5 = vpop.eup %9063  ;;  %v5359_v48 = vadd.f32 1e-05, %v5343_v31 }
 0xd5d   : > { %v5486_v49 = vmul.f32 %v9062_v55, %v5485_v13  ;;  %v5492_v61 = vmul.f32 %v9064_v5, %v5358_v8  ;;  %vm5498_vm11 = vweird.f32 %v9064_v5 }
 0xd5e   : > { %vm5499_vm13 = vmor %vm5497_vm12, %vm5498_vm11  ;;  %9065 = vrsqrt.f32 %v5359_v48  ;;  %vm5507_vm15 = vweird.f32 %v5359_v48 }
 0xd5f   : > { %v5493_v43 = vmul.f32 %v9064_v5, %v5492_v61  ;;  %v5490_v50 = vsel %vm5489_vm10, %v9062_v55, %v5486_v49 }
 0xd60   : > { %v5533_v7 = vmul.f32 %v5490_v50, %v12587_v63 }
 0xd61   : > { %v5494_v59 = vmul.f32 0.5, %v5493_v43 }
 0xd62   : > { %v5550_v58 = vmul.f32 %v12515_v29, %v5533_v7 }
 0xd63   : > { %v5495_v36 = vsub.f32 1.5, %v5494_v59 }
 0xd64   : > { %v12678_v21 = vadd.f32 %v12526_v24, %v5550_v58  ;;  %v9066_v14 = vpop.eup %9065  ;;  %v12704_v58 = vld [vmem:[#allocation13 + $0x1] ss:$0 sm:$0xff] }
 0xd65   : > { %v5496_v1 = vmul.f32 %v9064_v5, %v5495_v36  ;;  %v5502_v44 = vmul.f32 %v9066_v14, %v5359_v48  ;;  %vm5508_vm14 = vweird.f32 %v9066_v14 }
 0xd66   : > { %vm5509_vm2 = vmor %vm5507_vm15, %vm5508_vm14 }
 0xd67   : > { %v5500_v52 = vsel %vm5499_vm13, %v9064_v5, %v5496_v1 }
 0xd68   : > { %v5534_v51 = vmul.f32 %v5500_v52, %v12594_v17  ;;  %v5503_v17 = vmul.f32 %v9066_v14, %v5502_v44 }
 0xd6a   : > { %v5551_v26 = vmul.f32 %v12515_v29, %v5534_v51  ;;  %v5504_v27 = vmul.f32 0.5, %v5503_v17 }
 0xd6c   : > { %v12681_v40 = vadd.f32 %v12526_v24, %v5551_v26  ;;  %v5505_v46 = vsub.f32 1.5, %v5504_v27 }
 0xd6e   : > { %v5577_v63 = vpack.c.bf16 %v12681_v40, %v12678_v21  ;;  %v5506_v28 = vmul.f32 %v9066_v14, %v5505_v46 }
 0xd70   : > { %8422 = vmatmul.msk.bf16.gmra.mxu2 %vm1122_vm1, %v5577_v63  ;;  %v5510_v8 = vsel %vm5509_vm2, %v9066_v14, %v5506_v28 }
 0xd71   : > { %v5535_v4 = vmul.f32 %v5510_v8, %v12602_v54 }
 0xd73   : > { %v5552_v43 = vmul.f32 %v12515_v29, %v5535_v4 }
 0xd75   : > { %v12692_v59 = vadd.f32 %v12526_v24, %v5552_v43 }
 0xd7a   : > { %v5328_v45 = vpop.xlane.xlu1 %5327 }
 0xd7b   : > { %v5344_v19 = vmul.f32 %v5328_v45, %v12396_v34 }
 0xd7d   : > { %v5360_v53 = vadd.f32 1e-05, %v5344_v19 }
 0xd7f   : > { %9067 = vrsqrt.f32 %v5360_v53  ;;  %vm5517_vm4 = vweird.f32 %v5360_v53 }
 0xd85   : > { %v9068_v23 = vpop.eup %9067 }
 0xd86   : > { %v5512_v60 = vmul.f32 %v9068_v23, %v5360_v53  ;;  %vm5518_vm3 = vweird.f32 %v9068_v23 }
 0xd87   : > { %vm5519_vm5 = vmor %vm5517_vm4, %vm5518_vm3 }
 0xd88   : > { %v5513_v55 = vmul.f32 %v9068_v23, %v5512_v60 }
 0xd8a   : > { %v5514_v3 = vmul.f32 0.5, %v5513_v55 }
 0xd8c   : > { %v5515_v2 = vsub.f32 1.5, %v5514_v3 }
 0xd8e   : > { %v5516_v13 = vmul.f32 %v9068_v23, %v5515_v2 }
 0xd90   : > { %v5520_v5 = vsel %vm5519_vm5, %v9068_v23, %v5516_v13 }
 0xd91   : > { %v5636_v49 = vpop.f32.mrf.mxu2  ;;  %v5536_v61 = vmul.f32 %v5520_v5, %v12614_v62 }
 0xd92   : > { %v5637_v56 = vadd.f32 %v5636_v49, %v12636_v42 }
 0xd93   : > { %v5553_v50 = vmul.f32 %v12515_v29, %v5536_v61 }
 0xd94   : > { %v5667_v62 = vmax.f32 %v5637_v56, 0.0 }
 0xd95   : > { %v12695_v36 = vadd.f32 %v12526_v24, %v5553_v50 }
 0xd97   : > { %v5578_v54 = vpack.c.bf16 %v12695_v36, %v12692_v59 }
 0xd99   : > { %v5638_v7 = vpop.f32.mrf.mxu2  ;;  %8423 = vmatmul.msk.bf16.gmra.mxu2 %vm1122_vm1, %v5578_v54 }
 0xd9a   : > { %v5639_v1 = vadd.f32 %v5638_v7, %v12636_v42 }
 0xd9c   : > { %v5668_v31 = vmax.f32 %v5639_v1, 0.0 }
 0xd9e   : > { %v5680_v52 = vpack.c.bf16 %v5668_v31, %v5667_v62 }
 0xda0   : > { %8431 = vmatmul.msk.bf16.gmra.mxu0 %vm728_vm0, %v5680_v52 }
 0xda1   : > { %v5641_v29 = vpop.f32.mrf.mxu2 }
 0xda2   : > { %v5730_v51 = vpop.f32.mrf.mxu0  ;;  %v5642_v24 = vadd.f32 %v5641_v29, %v12636_v42 }
 0xda3   : > { %v5731_v13 = vadd.f32 %v12704_v58, %v5730_v51 }
 0xda4   : > { %v5669_v44 = vmax.f32 %v5642_v24, 0.0 }
 0xda5   : > { %v12730_v43 = vadd.f32 %v5731_v13, %v12535_v11 }
 0xda9   : > { %v5643_v48 = vpop.f32.mrf.mxu2 }
 0xdaa   : > { %v5732_v26 = vpop.f32.mrf.mxu0  ;;  %v5644_v63 = vadd.f32 %v5643_v48, %v12636_v42 }
 0xdab   : > { %v5733_v14 = vadd.f32 %v12704_v58, %v5732_v26 }
 0xdac   : > { %v5670_v17 = vmax.f32 %v5644_v63, 0.0 }
 0xdad   : > { %v12709_v45 = vadd.f32 %v5733_v14, %v12538_v32 }
 0xdae   : > { %v5681_v19 = vpack.c.bf16 %v5670_v17, %v5669_v44 }
 0xdaf   : > { %v5789_v53 = vsel %vm1122_vm1, %v12709_v45, 0.0 }
 0xdb0   : > { %5790 = vadd.xlane.f32.xlu1 %v5789_v53  ;;  %8432 = vmatmul.msk.bf16.gmra.mxu0 %vm728_vm0, %v5681_v19 }
 0xdb2   : > { %v5735_v27 = vpop.f32.mrf.mxu0 }
 0xdb3   : > { %v5736_v46 = vadd.f32 %v12704_v58, %v5735_v27 }
 0xdb5   : > { %v12716_v23 = vadd.f32 %v5736_v46, %v12564_v0 }
 0xdb7   : > { %v5646_v28 = vpop.f32.mrf.mxu2  ;;  %v5792_v60 = vsel %vm1122_vm1, %v12716_v23, 0.0 }
 0xdb8   : > { %5793 = vadd.xlane.f32.xlu0 %v5792_v60  ;;  %v5647_v8 = vadd.f32 %v5646_v28, %v12636_v42 }
 0xdba   : > { %v5737_v32 = vpop.f32.mrf.mxu0  ;;  %v5671_v5 = vmax.f32 %v5647_v8, 0.0 }
 0xdbb   : > { %v5738_v55 = vadd.f32 %v12704_v58, %v5737_v32 }
 0xdbd   : > { %v12723_v3 = vadd.f32 %v5738_v55, %v12567_v38  ;;  %v5786_v38 = vsel %vm1122_vm1, %v12730_v43, 0.0 }
 0xdbf   : > { %v5648_v2 = vpop.f32.mrf.mxu2  ;;  %v5795_v0 = vsel %vm1122_vm1, %v12723_v3, 0.0 }
 0xdc0   : > { %v5649_v4 = vadd.f32 %v5648_v2, %v12636_v42  ;;  %5796 = vadd.xlane.f32.xlu2 %v5795_v0 }
 0xdc2   : > { %v5672_v49 = vmax.f32 %v5649_v4, 0.0 }
 0xdc4   : > { %v5682_v61 = vpack.c.bf16 %v5672_v49, %v5671_v5 }
 0xdc6   : > { %8433 = vmatmul.msk.bf16.gmra.mxu0 %vm728_vm0, %v5682_v61 }
 0xdc8   : > { %v5740_v50 = vpop.f32.mrf.mxu0  ;;  %5787 = vadd.xlane.f32.xlu2 %v5786_v38 }
 0xdd0   : > { %v5742_v56 = vpop.f32.mrf.mxu0 }
 0xdd1   : > { %v5743_v54 = vadd.f32 %v12704_v58, %v5742_v56 }
 0xdd3   : > { %v12737_v7 = vadd.f32 %v5743_v54, %v12580_v12 }
 0xdd5   : > { %v5801_v1 = vsel %vm1122_vm1, %v12737_v7, 0.0 }
 0xdd6   : > { %5802 = vadd.xlane.f32.xlu2 %v5801_v1 }
 0xdf3   : > { %v5651_v62 = vpop.f32.mrf.mxu2 }
 0xdf4   : > { %v5652_v11 = vadd.f32 %v5651_v62, %v12636_v42 }
 0xdf6   : > { %v5673_v29 = vmax.f32 %v5652_v11, 0.0 }
 0xdfb   : > { %v5653_v31 = vpop.f32.mrf.mxu2 }
 0xdfc   : > { %v5654_v52 = vadd.f32 %v5653_v31, %v12636_v42 }
 0xdfe   : > { %v5674_v51 = vmax.f32 %v5654_v52, 0.0 }
 0xe00   : > { %v5683_v24 = vpack.c.bf16 %v5674_v51, %v5673_v29 }
 0xe02   : > { %8434 = vmatmul.msk.bf16.gmra.mxu0 %vm728_vm0, %v5683_v24 }
 0xe1c   : > { %v5656_v48 = vpop.f32.mrf.mxu2 }
 0xe1d   : > { %v5745_v26 = vpop.f32.mrf.mxu0  ;;  %v5657_v44 = vadd.f32 %v5656_v48, %v12636_v42 }
 0xe1e   : > { %v5746_v12 = vadd.f32 %v12704_v58, %v5745_v26 }
 0xe1f   : > { %v5675_v46 = vmax.f32 %v5657_v44, 0.0 }
 0xe20   : > { %v12746_v63 = vadd.f32 %v5746_v12, %v12623_v39  ;;  %v5741_v39 = vadd.f32 %v12704_v58, %v5740_v50 }
 0xe22   : > { %v5804_v14 = vsel %vm1122_vm1, %v12746_v63, 0.0  ;;  %v12761_v8 = vadd.f32 %v5741_v39, %v12577_v57 }
 0xe23   : > { %5805 = vadd.xlane.f32.xlu1 %v5804_v14  ;;  %v5791_v49 = vpop.xlane.xlu1 %5790 }
 0xe24   : > { %v5658_v17 = vpop.f32.mrf.mxu2  ;;  %v5798_v4 = vsel %vm1122_vm1, %v12761_v8, 0.0  ;;  %v5835_v57 = vmul.f32 %v5791_v49, %v12396_v34 }
 0xe25   : > { %v5747_v19 = vpop.f32.mrf.mxu0  ;;  %v5659_v53 = vadd.f32 %v5658_v17, %v12636_v42 }
 0xe26   : > { %v5748_v27 = vadd.f32 %v12704_v58, %v5747_v19  ;;  %v12777_v50 = vsub.f32 %v12709_v45, %v5835_v57 }
 0xe27   : > { %v5676_v28 = vmax.f32 %v5659_v53, 0.0 }
 0xe28   : > { %v12754_v60 = vadd.f32 %v5748_v27, %v12626_v22  ;;  %v5867_v1 = vmul.f32 %v12777_v50, %v12777_v50 }
 0xe29   : > { %v5684_v32 = vpack.c.bf16 %v5676_v28, %v5675_v46 }
 0xe2a   : > { %v5807_v55 = vsel %vm1122_vm1, %v12754_v60, 0.0  ;;  %v5885_v45 = vsel %vm1122_vm1, %v5867_v1, 0.0 }
 0xe2b   : > { %5808 = vadd.xlane.f32.xlu0 %v5807_v55  ;;  %8435 = vmatmul.msk.bf16.gmra.mxu0 %vm728_vm0, %v5684_v32  ;;  %v5794_v62 = vpop.xlane.xlu0 %5793 }
 0xe2c   : > { %v5836_v31 = vmul.f32 %v5794_v62, %v12396_v34 }
 0xe2d   : > { %v5750_v42 = vpop.f32.mrf.mxu0 }
 0xe2e   : > { %v5751_v2 = vadd.f32 %v12704_v58, %v5750_v42 }
 0xe30   : > { %v12767_v22 = vadd.f32 %v5751_v2, %v12640_v30 }
 0xe32   : > { %v5810_v5 = vsel %vm1122_vm1, %v12767_v22, 0.0 }
 0xe33   : > { %5799 = vadd.xlane.f32.xlu0 %v5798_v4  ;;  %v5797_v24 = vpop.xlane.xlu2 %5796 }
 0xe34   : > { %v5837_v48 = vmul.f32 %v5797_v24, %v12396_v34 }
 0xe35   : > { %v5752_v13 = vpop.f32.mrf.mxu0 }
 0xe36   : > { %v5753_v0 = vadd.f32 %v12704_v58, %v5752_v13  ;;  %v12804_v12 = vsub.f32 %v12723_v3, %v5837_v48 }
 0xe38   : > { %v12774_v61 = vadd.f32 %v5753_v0, %v12643_v25 }
 0xe3a   : > { %v5813_v30 = vsel %vm1122_vm1, %v12774_v61, 0.0 }
 0xe3b   : > { %5811 = vadd.xlane.f32.xlu0 %v5810_v5  ;;  %v5788_v44 = vpop.xlane.xlu2 %5787 }
 0xe43   : > { %5814 = vadd.xlane.f32.xlu0 %v5813_v30  ;;  %v5755_v38 = vpop.f32.mrf.mxu0 }
 0xe44   : > { %v5756_v56 = vadd.f32 %v12704_v58, %v5755_v38 }
 0xe46   : > { %v12783_v54 = vadd.f32 %v5756_v56, %v12657_v18  ;;  %v12796_v18 = vsub.f32 %v12716_v23, %v5836_v31 }
 0xe48   : > { %v5816_v25 = vsel %vm1122_vm1, %v12783_v54, 0.0  ;;  %v5868_v26 = vmul.f32 %v12796_v18, %v12796_v18 }
 0xe49   : > { %5817 = vadd.xlane.f32.xlu2 %v5816_v25  ;;  %v5803_v17 = vpop.xlane.xlu2 %5802 }
 0xe4a   : > { %v5888_v14 = vsel %vm1122_vm1, %v5868_v26, 0.0  ;;  %v5839_v53 = vmul.f32 %v5803_v17, %v12396_v34 }
 0xe4b   : > { %5886 = vadd.xlane.f32.xlu0 %v5885_v45  ;;  %v5757_v11 = vpop.f32.mrf.mxu0 }
 0xe4c   : > { %v5758_v52 = vadd.f32 %v12704_v58, %v5757_v11  ;;  %v12816_v3 = vsub.f32 %v12737_v7, %v5839_v53 }
 0xe4e   : > { %v12793_v29 = vadd.f32 %v5758_v52, %v12660_v10  ;;  %v5869_v10 = vmul.f32 %v12804_v12, %v12804_v12  ;;  %v5871_v55 = vmul.f32 %v12816_v3, %v12816_v3 }
 0xe50   : > { %v5819_v51 = vsel %vm1122_vm1, %v12793_v29, 0.0  ;;  %v5891_v23 = vsel %vm1122_vm1, %v5869_v10, 0.0  ;;  %v5897_v2 = vsel %vm1122_vm1, %v5871_v55, 0.0 }
 0xe51   : > { %5820 = vadd.xlane.f32.xlu1 %v5819_v51  ;;  %v5834_v51 = vmul.f32 %v5788_v44, %v12396_v34 }
 0xe53   : > { %v12863_v10 = vsub.f32 %v12730_v43, %v5834_v51 }
 0xe59   : > { %5889 = vadd.xlane.f32.xlu1 %v5888_v14 }
 0xe61   : > { %5892 = vadd.xlane.f32.xlu1 %v5891_v23 }
 0xe7f   : > { %v5760_v19 = vpop.f32.mrf.mxu0 }
 0xe80   : > { %v5761_v27 = vadd.f32 %v12704_v58, %v5760_v19  ;;  %v5866_v19 = vmul.f32 %v12863_v10, %v12863_v10 }
 0xe82   : > { %v12813_v46 = vadd.f32 %v5761_v27, %v12678_v21 }
 0xe84   : > { %v5822_v28 = vsel %vm1122_vm1, %v12813_v46, 0.0 }
 0xe85   : > { %5823 = vadd.xlane.f32.xlu0 %v5822_v28 }
 0xe87   : > { %v5762_v39 = vpop.f32.mrf.mxu0 }
 0xe88   : > { %v5763_v32 = vadd.f32 %v12704_v58, %v5762_v39  ;;  %v5882_v39 = vsel %vm1122_vm1, %v5866_v19, 0.0 }
 0xe8a   : > { %v12824_v42 = vadd.f32 %v5763_v32, %v12681_v40 }
 0xe8c   : > { %v5825_v21 = vsel %vm1122_vm1, %v12824_v42, 0.0 }
 0xe8d   : > { %5898 = vadd.xlane.f32.xlu0 %v5897_v2  ;;  %5826 = vadd.xlane.f32.xlu1 %v5825_v21 }
 0xe96   : > { %v5806_v48 = vpop.xlane.xlu1 %5805 }
 0xe97   : > { %v5840_v17 = vmul.f32 %v5806_v48, %v12396_v34 }
 0xe9e   : > { %v5809_v7 = vpop.xlane.xlu0 %5808 }
 0xe9f   : > { %v5841_v4 = vmul.f32 %v5809_v7, %v12396_v34 }
 0xea1   : > { %v12831_v13 = vsub.f32 %v12754_v60, %v5841_v4 }
 0xea3   : > { %v5873_v0 = vmul.f32 %v12831_v13, %v12831_v13 }
 0xea5   : > { %v5903_v5 = vsel %vm1122_vm1, %v5873_v0, 0.0 }
 0xea6   : > { %5904 = vadd.xlane.f32.xlu1 %v5903_v5  ;;  %v5800_v40 = vpop.xlane.xlu0 %5799 }
 0xea7   : > { %v5838_v49 = vmul.f32 %v5800_v40, %v12396_v34 }
 0xea8   : > { %v5765_v30 = vpop.f32.mrf.mxu0 }
 0xea9   : > { %v12838_v57 = vsub.f32 %v12761_v8, %v5838_v49  ;;  %v5766_v45 = vadd.f32 %v12704_v58, %v5765_v30 }
 0xeab   : > { %v5870_v38 = vmul.f32 %v12838_v57, %v12838_v57  ;;  %v12856_v24 = vadd.f32 %v5766_v45, %v12692_v59 }
 0xead   : > { %v5894_v56 = vsel %vm1122_vm1, %v5870_v38, 0.0 }
 0xeae   : > { %5895 = vadd.xlane.f32.xlu1 %v5894_v56  ;;  %v5812_v60 = vpop.xlane.xlu0 %5811 }
 0xeaf   : > { %v5842_v23 = vmul.f32 %v5812_v60, %v12396_v34 }
 0xeb0   : > { %v5767_v1 = vpop.f32.mrf.mxu0 }
 0xeb1   : > { %v5768_v25 = vadd.f32 %v12704_v58, %v5767_v1  ;;  %v12877_v43 = vsub.f32 %v12767_v22, %v5842_v23 }
 0xeb3   : > { %v12845_v62 = vadd.f32 %v5768_v25, %v12695_v36  ;;  %v5874_v55 = vmul.f32 %v12877_v43, %v12877_v43 }
 0xeb5   : > { %v5831_v8 = vsel %vm1122_vm1, %v12845_v62, 0.0  ;;  %v5906_v7 = vsel %vm1122_vm1, %v5874_v55, 0.0 }
 0xeb6   : > { %v5815_v11 = vpop.xlane.xlu0 %5814  ;;  %5832 = vadd.xlane.f32.xlu2 %v5831_v8 }
 0xeb7   : > { %v5843_v31 = vmul.f32 %v5815_v11, %v12396_v34 }
 0xeb9   : > { %v12852_v52 = vsub.f32 %v12774_v61, %v5843_v31  ;;  %v5828_v61 = vsel %vm1122_vm1, %v12856_v24, 0.0 }
 0xebb   : > { %v5875_v36 = vmul.f32 %v12852_v52, %v12852_v52 }
 0xebc   : > { %v5818_v58 = vpop.xlane.xlu2 %5817 }
 0xebd   : > { %v5844_v26 = vmul.f32 %v5818_v58, %v12396_v34  ;;  %v5909_v14 = vsel %vm1122_vm1, %v5875_v36, 0.0 }
 0xebe   : > { %5910 = vadd.xlane.f32.xlu1 %v5909_v14  ;;  %5829 = vadd.xlane.f32.xlu2 %v5828_v61  ;;  %v5887_v27 = vpop.xlane.xlu0 %5886 }
 0xebf   : > { %v12869_v59 = vsub.f32 %v12783_v54, %v5844_v26  ;;  %v12881_v54 = vsub.f32 %v12746_v63, %v5840_v17  ;;  %v5931_v32 = vmul.f32 %v5887_v27, %v12396_v34 }
 0xec1   : > { %v5876_v44 = vmul.f32 %v12869_v59, %v12869_v59  ;;  %v5872_v22 = vmul.f32 %v12881_v54, %v12881_v54  ;;  %v5947_v21 = vadd.f32 1e-05, %v5931_v32 }
 0xec3   : > { %v5912_v53 = vsel %vm1122_vm1, %v5876_v44, 0.0  ;;  %v5900_v5 = vsel %vm1122_vm1, %v5872_v22, 0.0  ;;  %9069 = vrsqrt.f32 %v5947_v21  ;;  %vm5978_vm13 = vweird.f32 %v5947_v21  ;;  %v12905_v22 = vld [vmem:[#allocation13 + $0x5] ss:$0 sm:$0xff] }
 0xec4   : > { %v5821_v28 = vpop.xlane.xlu1 %5820  ;;  %5913 = vadd.xlane.f32.xlu0 %v5912_v53 }
 0xec5   : > { %v5845_v2 = vmul.f32 %v5821_v28, %v12396_v34 }
 0xec6   : > { %5883 = vadd.xlane.f32.xlu2 %v5882_v39  ;;  %v12901_v39 = vld [vmem:[#allocation13 + $0x4] ss:$0 sm:$0xff] }
 0xec7   : > { %v12893_v0 = vsub.f32 %v12793_v29, %v5845_v2 }
 0xec9   : > { %v5877_v49 = vmul.f32 %v12893_v0, %v12893_v0  ;;  %v9070_v38 = vpop.eup %9069 }
 0xeca   : > { %v5973_v29 = vmul.f32 %v9070_v38, %v5947_v21  ;;  %vm5979_vm9 = vweird.f32 %v9070_v38 }
 0xecb   : > { %v5915_v60 = vsel %vm1122_vm1, %v5877_v49, 0.0  ;;  %vm5980_vm14 = vmor %vm5978_vm13, %vm5979_vm9 }
 0xecc   : > { %v5890_v4 = vpop.xlane.xlu1 %5889  ;;  %5907 = vadd.xlane.f32.xlu0 %v5906_v7  ;;  %v5974_v11 = vmul.f32 %v9070_v38, %v5973_v29 }
 0xecd   : > { %v5932_v63 = vmul.f32 %v5890_v4, %v12396_v34 }
 0xece   : > { %5901 = vadd.xlane.f32.xlu2 %v5900_v5  ;;  %v5975_v36 = vmul.f32 0.5, %v5974_v11 }
 0xecf   : > { %v5948_v40 = vadd.f32 1e-05, %v5932_v63 }
 0xed0   : > { %v5976_v14 = vsub.f32 1.5, %v5975_v36 }
 0xed1   : > { %9071 = vrsqrt.f32 %v5948_v40  ;;  %vm5988_vm7 = vweird.f32 %v5948_v40 }
 0xed2   : > { %v5977_v17 = vmul.f32 %v9070_v38, %v5976_v14 }
 0xed4   : > { %v5893_v30 = vpop.xlane.xlu1 %5892  ;;  %v5981_v55 = vsel %vm5980_vm14, %v9070_v38, %v5977_v17 }
 0xed5   : > { %v5933_v56 = vmul.f32 %v5893_v30, %v12396_v34  ;;  %v6123_v7 = vmul.f32 %v5981_v55, %v12777_v50 }
 0xed6   : > { %5916 = vadd.xlane.f32.xlu2 %v5915_v60 }
 0xed7   : > { %v9072_v1 = vpop.eup %9071  ;;  %v5949_v25 = vadd.f32 1e-05, %v5933_v56 }
 0xed8   : > { %v5983_v45 = vmul.f32 %v9072_v1, %v5948_v40  ;;  %vm5989_vm6 = vweird.f32 %v9072_v1 }
 0xed9   : > { %9073 = vrsqrt.f32 %v5949_v25  ;;  %vm5990_vm10 = vmor %vm5988_vm7, %vm5989_vm6  ;;  %vm5998_vm11 = vweird.f32 %v5949_v25 }
 0xeda   : > { %v5984_v8 = vmul.f32 %v9072_v1, %v5983_v45 }
 0xedc   : > { %v5985_v31 = vmul.f32 0.5, %v5984_v8 }
 0xede   : > { %v5986_v48 = vsub.f32 1.5, %v5985_v31 }
 0xedf   : > { %v9074_v51 = vpop.eup %9073 }
 0xee0   : > { %v5993_v58 = vmul.f32 %v9074_v51, %v5949_v25  ;;  %v5987_v61 = vmul.f32 %v9072_v1, %v5986_v48  ;;  %vm5999_vm8 = vweird.f32 %v9074_v51 }
 0xee1   : > { %vm6000_vm12 = vmor %vm5998_vm11, %vm5999_vm8 }
 0xee2   : > { %v5994_v26 = vmul.f32 %v9074_v51, %v5993_v58  ;;  %v5991_v19 = vsel %vm5990_vm10, %v9072_v1, %v5987_v61 }
 0xee3   : > { %v6124_v28 = vmul.f32 %v5991_v19, %v12796_v18  ;;  %v6140_v18 = vmul.f32 %v12901_v39, %v6123_v7 }
 0xee4   : > { %v5995_v23 = vmul.f32 0.5, %v5994_v26 }
 0xee5   : > { %v6141_v63 = vmul.f32 %v12901_v39, %v6124_v28 }
 0xee6   : > { %v5996_v44 = vsub.f32 1.5, %v5995_v23 }
 0xee7   : > { %v6158_v21 = vadd.f32 %v12905_v22, %v6141_v63 }
 0xee8   : > { %v5997_v53 = vmul.f32 %v9074_v51, %v5996_v44 }
 0xeea   : > { %v6001_v27 = vsel %vm6000_vm12, %v9074_v51, %v5997_v53 }
 0xeeb   : > { %v6125_v32 = vmul.f32 %v6001_v27, %v12804_v12  ;;  %v6157_v12 = vadd.f32 %v12905_v22, %v6140_v18 }
 0xeed   : > { %v6142_v2 = vmul.f32 %v12901_v39, %v6125_v32 }
 0xeef   : > { %v6159_v4 = vadd.f32 %v12905_v22, %v6142_v2 }
 0xef1   : > { %8436 = vmatpush.xpose.msk.msra.mxu1 %vm1122_vm1, %v6159_v4 }
 0xef5   : > { %8437 = vmatpush.xpose.msk.msra.mxu1 %vm1122_vm1, %v6158_v21 }
 0xef8   : > { %v5824_v5 = vpop.xlane.xlu0 %5823 }
 0xef9   : > { %v5846_v40 = vmul.f32 %v5824_v5, %v12396_v34  ;;  %8438 = vmatpush.xpose.msk.msra.mxu1 %vm1122_vm1, %v6157_v12 }
 0xefb   : > { %v12918_v50 = vsub.f32 %v12813_v46, %v5846_v40 }
 0xefd   : > { %v5878_v49 = vmul.f32 %v12918_v50, %v12918_v50 }
 0xeff   : > { %v5918_v30 = vsel %vm1122_vm1, %v5878_v49, 0.0 }
 0xf00   : > { %5919 = vadd.xlane.f32.xlu0 %v5918_v30  ;;  %v5827_v38 = vpop.xlane.xlu1 %5826  ;;  %v5899_v45 = vpop.xlane.xlu0 %5898 }
 0xf01   : > { %v5847_v8 = vmul.f32 %v5827_v38, %v12396_v34  ;;  %v5935_v11 = vmul.f32 %v5899_v45, %v12396_v34 }
 0xf03   : > { %v12936_v51 = vsub.f32 %v12824_v42, %v5847_v8  ;;  %v12941_v14 = vadd.f32 1e-05, %v5935_v11 }
 0xf05   : > { %v5879_v42 = vmul.f32 %v12936_v51, %v12936_v51  ;;  %vm6018_vm8 = vweird.f32 %v12941_v14 }
 0xf07   : > { %v5921_v27 = vsel %vm1122_vm1, %v5879_v42, 0.0 }
 0xf19   : > { %v5905_v56 = vpop.xlane.xlu1 %5904 }
 0xf1a   : > { %v5937_v60 = vmul.f32 %v5905_v56, %v12396_v34 }
 0xf1c   : > { %v12924_v1 = vadd.f32 1e-05, %v5937_v60 }
 0xf1e   : > { %9075 = vrsqrt.f32 %v12924_v1  ;;  %vm6038_vm2 = vweird.f32 %v12924_v1 }
 0xf1f   : > { %9077 = vrsqrt.f32 %v12941_v14 }
 0xf21   : > { %v5896_v36 = vpop.xlane.xlu1 %5895 }
 0xf22   : > { %v5934_v61 = vmul.f32 %v5896_v36, %v12396_v34 }
 0xf24   : > { %v12939_v26 = vpop.eup %9075  ;;  %v12955_v53 = vadd.f32 1e-05, %v5934_v61 }
 0xf25   : > { %v6033_v44 = vmul.f32 %v12939_v26, %v12924_v1  ;;  %v12963_v4 = vpop.eup %9077  ;;  %vm6039_vm15 = vweird.f32 %v12939_v26 }
 0xf26   : > { %9079 = vrsqrt.f32 %v12955_v53  ;;  %v6013_v40 = vmul.f32 %v12963_v4, %v12941_v14  ;;  %vm6040_vm3 = vmor %vm6038_vm2, %vm6039_vm15  ;;  %vm6019_vm7 = vweird.f32 %v12963_v4  ;;  %vm6008_vm14 = vweird.f32 %v12955_v53 }
 0xf27   : > { %vm13011_vm9 = vmor %vm6018_vm8, %vm6019_vm7 }
 0xf29   : > { %v5833_v25 = vpop.xlane.xlu2 %5832 }
 0xf2a   : > { %v5849_v29 = vmul.f32 %v5833_v25, %v12396_v34 }
 0xf2c   : > { %v12930_v46 = vsub.f32 %v12845_v62, %v5849_v29  ;;  %v12972_v30 = vpop.eup %9079  ;;  %v6014_v29 = vmul.f32 %v12963_v4, %v6013_v40 }
 0xf2d   : > { %v6003_v8 = vmul.f32 %v12972_v30, %v12955_v53  ;;  %vm6009_vm11 = vweird.f32 %v12972_v30 }
 0xf2e   : > { %v5881_v31 = vmul.f32 %v12930_v46, %v12930_v46  ;;  %vm6010_vm15 = vmor %vm6008_vm14, %vm6009_vm11 }
 0xf2f   : > { %v6004_v42 = vmul.f32 %v12972_v30, %v6003_v8 }
 0xf30   : > { %v5927_v48 = vsel %vm1122_vm1, %v5881_v31, 0.0 }
 0xf31   : > { %5928 = vadd.xlane.f32.xlu2 %v5927_v48  ;;  %v5830_v58 = vpop.xlane.xlu2 %5829  ;;  %v5911_v32 = vpop.xlane.xlu1 %5910 }
 0xf32   : > { %v5848_v62 = vmul.f32 %v5830_v58, %v12396_v34  ;;  %v5939_v63 = vmul.f32 %v5911_v32, %v12396_v34 }
 0xf34   : > { %v12946_v23 = vsub.f32 %v12856_v24, %v5848_v62  ;;  %v6034_v24 = vmul.f32 %v12939_v26, %v6033_v44  ;;  %v12970_v49 = vadd.f32 1e-05, %v5939_v63  ;;  %v6015_v62 = vmul.f32 0.5, %v6014_v29 }
 0xf36   : > { %v5880_v19 = vmul.f32 %v12946_v23, %v12946_v23  ;;  %v6035_v18 = vmul.f32 0.5, %v6034_v24  ;;  %v6016_v32 = vsub.f32 1.5, %v6015_v62 }
 0xf37   : > { %v5914_v17 = vpop.xlane.xlu0 %5913 }
 0xf38   : > { %v5924_v28 = vsel %vm1122_vm1, %v5880_v19, 0.0  ;;  %v5940_v55 = vmul.f32 %v5914_v17, %v12396_v34  ;;  %v6036_v38 = vsub.f32 1.5, %v6035_v18 }
 0xf39   : > { %v5884_v2 = vpop.xlane.xlu2 %5883  ;;  %5922 = vadd.xlane.f32.xlu2 %v5921_v27  ;;  %5925 = vadd.xlane.f32.xlu1 %v5924_v28 }
 0xf3a   : > { %v5930_v7 = vmul.f32 %v5884_v2, %v12396_v34  ;;  %v12966_v12 = vadd.f32 1e-05, %v5940_v55  ;;  %v6037_v31 = vmul.f32 %v12939_v26, %v6036_v38 }
 0xf3c   : > { %v5946_v21 = vadd.f32 1e-05, %v5930_v7  ;;  %v6041_v44 = vsel %vm6040_vm3, %v12939_v26, %v6037_v31  ;;  %v6005_v7 = vmul.f32 0.5, %v6004_v42 }
 0xf3d   : > { %v6129_v2 = vmul.f32 %v6041_v44, %v12831_v13 }
 0xf3e   : > { %9081 = vrsqrt.f32 %v5946_v21  ;;  %vm5968_vm5 = vweird.f32 %v5946_v21  ;;  %v6006_v29 = vsub.f32 1.5, %v6005_v7 }
 0xf3f   : > { %v5908_v5 = vpop.xlane.xlu0 %5907  ;;  %9083 = vrsqrt.f32 %v12966_v12 }
 0xf40   : > { %v5938_v56 = vmul.f32 %v5908_v5, %v12396_v34  ;;  %9085 = vrsqrt.f32 %v12970_v49  ;;  %v6007_v44 = vmul.f32 %v12972_v30, %v6006_v29 }
 0xf41   : > { %v5902_v60 = vpop.xlane.xlu2 %5901 }
 0xf42   : > { %v5936_v25 = vmul.f32 %v5902_v60, %v12396_v34  ;;  %v12983_v48 = vadd.f32 1e-05, %v5938_v56  ;;  %v6017_v56 = vmul.f32 %v12963_v4, %v6016_v32 }
 0xf44   : > { %v9082_v45 = vpop.eup %9081  ;;  %v5952_v11 = vadd.f32 1e-05, %v5936_v25  ;;  %v6146_v25 = vmul.f32 %v12901_v39, %v6129_v2  ;;  %v6021_v42 = vsel %vm13011_vm9, %v12963_v4, %v6017_v56  ;;  %vm6058_vm9 = vweird.f32 %v12970_v49 }
 0xf45   : > { %v5963_v36 = vmul.f32 %v9082_v45, %v5946_v21  ;;  %v12985_v58 = vpop.eup %9083  ;;  %vm5969_vm4 = vweird.f32 %v9082_v45 }
 0xf46   : > { %9087 = vrsqrt.f32 %v5952_v11  ;;  %v12991_v27 = vpop.eup %9085  ;;  %v6063_v28 = vmul.f32 %v12985_v58, %v12966_v12  ;;  %vm5970_vm6 = vmor %vm5968_vm5, %vm5969_vm4  ;;  %vm6028_vm12 = vweird.f32 %v5952_v11  ;;  %vm6069_vm2 = vweird.f32 %v12985_v58 }
 0xf47   : > { %v5964_v61 = vmul.f32 %v9082_v45, %v5963_v36  ;;  %9089 = vrsqrt.f32 %v12983_v48  ;;  %v6053_v26 = vmul.f32 %v12991_v27, %v12970_v49  ;;  %vm6068_vm4 = vweird.f32 %v12966_v12 }
 0xf48   : > { %v6064_v40 = vmul.f32 %v12985_v58, %v6063_v28  ;;  %vm13044_vm5 = vmor %vm6068_vm4, %vm6069_vm2  ;;  %vm6059_vm7 = vweird.f32 %v12991_v27 }
 0xf49   : > { %v5965_v17 = vmul.f32 0.5, %v5964_v61  ;;  %v5917_v19 = vpop.xlane.xlu2 %5916  ;;  %v6054_v21 = vmul.f32 %v12991_v27, %v6053_v26  ;;  %v6127_v26 = vmul.f32 %v6021_v42, %v12816_v3 }
 0xf4a   : > { %v5941_v24 = vmul.f32 %v5917_v19, %v12396_v34  ;;  %v6065_v62 = vmul.f32 0.5, %v6064_v40  ;;  %v6163_v19 = vadd.f32 %v12905_v22, %v6146_v25 }
 0xf4b   : > { %v5966_v55 = vsub.f32 1.5, %v5965_v17  ;;  %v6055_v28 = vmul.f32 0.5, %v6054_v21 }
 0xf4c   : > { %v9088_v1 = vpop.eup %9087  ;;  %v12997_v63 = vadd.f32 1e-05, %v5941_v24 }
 0xf4d   : > { %v5967_v18 = vmul.f32 %v9082_v45, %v5966_v55  ;;  %v6023_v5 = vmul.f32 %v9088_v1, %v5952_v11  ;;  %v13003_v38 = vpop.eup %9089  ;;  %vm6029_vm10 = vweird.f32 %v9088_v1  ;;  %v6066_v55 = vsub.f32 1.5, %v6065_v62 }
 0xf4e   : > { %9091 = vrsqrt.f32 %v12997_v63  ;;  %v6043_v61 = vmul.f32 %v13003_v38, %v12983_v48  ;;  %vm6030_vm13 = vmor %vm6028_vm12, %vm6029_vm10  ;;  %vm6049_vm11 = vweird.f32 %v13003_v38  ;;  %vm6048_vm12 = vweird.f32 %v12983_v48 }
 0xf4f   : > { %v5971_v13 = vsel %vm5970_vm6, %v9082_v45, %v5967_v18  ;;  %v6024_v60 = vmul.f32 %v9088_v1, %v6023_v5  ;;  %v6011_v18 = vsel %vm6010_vm15, %v12972_v30, %v6007_v44  ;;  %v6056_v5 = vsub.f32 1.5, %v6055_v28  ;;  %vm6060_vm10 = vmor %vm6058_vm9, %vm6059_vm7 }
 0xf50   : > { %v6122_v8 = vmul.f32 %v5971_v13, %v12863_v10  ;;  %v6044_v2 = vmul.f32 %v13003_v38, %v6043_v61  ;;  %v6067_v53 = vmul.f32 %v12985_v58, %v6066_v55  ;;  %v6126_v13 = vmul.f32 %v6011_v18, %v12838_v57 }
 0xf51   : > { %v6025_v31 = vmul.f32 0.5, %v6024_v60  ;;  %v6144_v30 = vmul.f32 %v12901_v39, %v6127_v26  ;;  %vm6078_vm6 = vweird.f32 %v12997_v63  ;;  %v6057_v29 = vmul.f32 %v12991_v27, %v6056_v5 }
 0xf52   : > { %v6139_v45 = vmul.f32 %v12901_v39, %v6122_v8  ;;  %v6071_v57 = vsel %vm13044_vm5, %v12985_v58, %v6067_v53 }
 0xf53   : > { %v6026_v10 = vsub.f32 1.5, %v6025_v31  ;;  %v6161_v31 = vadd.f32 %v12905_v22, %v6144_v30  ;;  %v6132_v36 = vmul.f32 %v6071_v57, %v12869_v59  ;;  %v6061_v58 = vsel %vm6060_vm10, %v12991_v27, %v6057_v29 }
 0xf54   : > { %v9092_v14 = vpop.eup %9091  ;;  %v6156_v17 = vadd.f32 %v12905_v22, %v6139_v45  ;;  %v6131_v59 = vmul.f32 %v6061_v58, %v12852_v52 }
 0xf55   : > { %v6027_v24 = vmul.f32 %v9088_v1, %v6026_v10  ;;  %v6073_v32 = vmul.f32 %v9092_v14, %v12997_v63  ;;  %vm6079_vm3 = vweird.f32 %v9092_v14  ;;  %v6143_v63 = vmul.f32 %v12901_v39, %v6126_v13 }
 0xf56   : > { %8439 = vmatpush.xpose.msk.msra.mxu1 %vm1122_vm1, %v6156_v17  ;;  %vm6080_vm8 = vmor %vm6078_vm6, %vm6079_vm3  ;;  %v6149_v45 = vmul.f32 %v12901_v39, %v6132_v36  ;;  %v6148_v10 = vmul.f32 %v12901_v39, %v6131_v59 }
 0xf57   : > { %v6031_v4 = vsel %vm6030_vm13, %v9088_v1, %v6027_v24  ;;  %v6074_v7 = vmul.f32 %v9092_v14, %v6073_v32  ;;  %v6045_v1 = vmul.f32 0.5, %v6044_v2  ;;  %vm6050_vm13 = vmor %vm6048_vm12, %vm6049_vm11 }
 0xf58   : > { %v6128_v11 = vmul.f32 %v6031_v4, %v12881_v54  ;;  %v6166_v48 = vadd.f32 %v12905_v22, %v6149_v45  ;;  %v6165_v52 = vadd.f32 %v12905_v22, %v6148_v10 }
 0xf59   : > { %v6075_v40 = vmul.f32 0.5, %v6074_v7  ;;  %8440 = vmatmul.msk.f32.vlgmr.msra.gmra.mxu1 %vm1122_vm1, %v11980_v35  ;;  %v6046_v12 = vsub.f32 1.5, %v6045_v1 }
 0xf5a   : > { %8442 = vmatpush.xpose.msk.msrb.mxu1 %vm1122_vm1, %v6163_v19  ;;  %v6145_v56 = vmul.f32 %v12901_v39, %v6128_v11 }
 0xf5b   : > { %v6076_v3 = vsub.f32 1.5, %v6075_v40  ;;  %v6047_v62 = vmul.f32 %v13003_v38, %v6046_v12 }
 0xf5c   : > { %v6162_v54 = vadd.f32 %v12905_v22, %v6145_v56 }
 0xf5d   : > { %v6077_v25 = vmul.f32 %v9092_v14, %v6076_v3  ;;  %v6051_v27 = vsel %vm6050_vm13, %v13003_v38, %v6047_v62 }
 0xf5e   : > { %8443 = vmatpush.xpose.msk.msrb.mxu1 %vm1122_vm1, %v6162_v54  ;;  %v6130_v42 = vmul.f32 %v6051_v27, %v12877_v43 }
 0xf5f   : > { %v6081_v8 = vsel %vm6080_vm8, %v9092_v14, %v6077_v25 }
 0xf60   : > { %v6133_v21 = vmul.f32 %v6081_v8, %v12893_v0  ;;  %v6160_v0 = vadd.f32 %v12905_v22, %v6143_v63  ;;  %v6147_v14 = vmul.f32 %v12901_v39, %v6130_v42 }
 0xf61   : > { %8441 = vmatmul.msk.f32.gmra.mxu1 %vm1122_vm1, %v11987_v47 }
 0xf62   : > { %v6150_v49 = vmul.f32 %v12901_v39, %v6133_v21  ;;  %8444 = vmatpush.xpose.msk.msrb.mxu1 %vm1122_vm1, %v6161_v31  ;;  %v6164_v43 = vadd.f32 %v12905_v22, %v6147_v14 }
 0xf64   : > { %v6167_v61 = vadd.f32 %v12905_v22, %v6150_v49 }
 0xf66   : > { %8445 = vmatpush.xpose.msk.msrb.mxu1 %vm1122_vm1, %v6160_v0 }
 0xf69   : > { %8446 = vmatmul.msk.f32.vlgmr.msrb.gmra.mxu1 %vm1122_vm1, %v11980_v35 }
 0xf6a   : > { %8448 = vmatpush.xpose.msk.msra.mxu1 %vm1122_vm1, %v6167_v61 }
 0xf6e   : > { %8449 = vmatpush.xpose.msk.msra.mxu1 %vm1122_vm1, %v6166_v48 }
 0xf71   : > { %8447 = vmatmul.msk.f32.gmra.mxu1 %vm1122_vm1, %v11987_v47 }
 0xf72   : > { %8450 = vmatpush.xpose.msk.msra.mxu1 %vm1122_vm1, %v6165_v52 }
 0xf73   : > { %v5920_v38 = vpop.xlane.xlu0 %5919 }
 0xf74   : > { %v5942_v44 = vmul.f32 %v5920_v38, %v12396_v34 }
 0xf76   : > { %8451 = vmatpush.xpose.msk.msra.mxu1 %vm1122_vm1, %v6164_v43  ;;  %v5958_v17 = vadd.f32 1e-05, %v5942_v44 }
 0xf78   : > { %9093 = vrsqrt.f32 %v5958_v17  ;;  %vm6088_vm10 = vweird.f32 %v5958_v17 }
 0xf79   : > { %8452 = vmatmul.msk.f32.vlgmr.msra.gmra.mxu1 %vm1122_vm1, %v11980_v35 }
 0xf7e   : > { %v9094_v7 = vpop.eup %9093 }
 0xf7f   : > { %v6083_v40 = vmul.f32 %v9094_v7, %v5958_v17  ;;  %vm6089_vm6 = vweird.f32 %v9094_v7 }
 0xf80   : > { %vm6090_vm11 = vmor %vm6088_vm10, %vm6089_vm6 }
 0xf81   : > { %8453 = vmatmul.msk.f32.gmra.mxu1 %vm1122_vm1, %v11987_v47  ;;  %v6084_v56 = vmul.f32 %v9094_v7, %v6083_v40  ;;  %v13916_v40 = vld [vmem:[#allocation33_spill] sm:$0xff] }
 0xf83   : > { %v6085_v25 = vmul.f32 0.5, %v6084_v56 }
 0xf85   : > { %v6086_v31 = vsub.f32 1.5, %v6085_v25 }
 0xf87   : > { %v6087_v61 = vmul.f32 %v9094_v7, %v6086_v31 }
 0xf89   : > { %v6091_v48 = vsel %vm6090_vm11, %v9094_v7, %v6087_v61  ;;  %v13914_v7 = vld [vmem:[#allocation34_spill] sm:$0xff] }
 0xf8a   : > { %v6134_v52 = vmul.f32 %v6091_v48, %v12918_v50  ;;  %v6316_v50 = vadd.f32 %v11535_v16, %v11956_v6  ;;  %v6318_v6 = vadd.f32 %v11692_v15, %v12007_v37 }
 0xf8c   : > { %v6151_v44 = vmul.f32 %v12901_v39, %v6134_v52 }
 0xfa4   : > { %v5929_v19 = vpop.xlane.xlu2 %5928 }
 0xfa5   : > { %v5945_v28 = vmul.f32 %v5929_v19, %v12396_v34 }
 0xfa7   : > { %v5961_v24 = vadd.f32 1e-05, %v5945_v28 }
 0xfa9   : > { %9095 = vrsqrt.f32 %v5961_v24  ;;  %vm6118_vm15 = vweird.f32 %v5961_v24 }
 0xfac   : > { %v5923_v32 = vpop.xlane.xlu2 %5922  ;;  %v5926_v55 = vpop.xlane.xlu1 %5925 }
 0xfad   : > { %v5943_v2 = vmul.f32 %v5923_v32, %v12396_v34  ;;  %v5944_v4 = vmul.f32 %v5926_v55, %v12396_v34 }
 0xfaf   : > { %v9096_v26 = vpop.eup %9095  ;;  %v5959_v11 = vadd.f32 1e-05, %v5943_v2  ;;  %v5960_v18 = vadd.f32 1e-05, %v5944_v4 }
 0xfb0   : > { %v6113_v5 = vmul.f32 %v9096_v26, %v5961_v24  ;;  %vm6119_vm14 = vweird.f32 %v9096_v26 }
 0xfb1   : > { %9097 = vrsqrt.f32 %v5959_v11  ;;  %vm6120_vm2 = vmor %vm6118_vm15, %vm6119_vm14  ;;  %vm6098_vm5 = vweird.f32 %v5959_v11  ;;  %vm6108_vm8 = vweird.f32 %v5960_v18 }
 0xfb2   : > { %v6114_v53 = vmul.f32 %v9096_v26, %v6113_v5  ;;  %9099 = vrsqrt.f32 %v5960_v18 }
 0xfb4   : > { %v6115_v1 = vmul.f32 0.5, %v6114_v53  ;;  %v13917_v53 = vld [vmem:[#allocation29_spill] sm:$0xff] }
 0xfb6   : > { %v6116_v3 = vsub.f32 1.5, %v6115_v1 }
 0xfb7   : > { %v9098_v13 = vpop.eup %9097 }
 0xfb8   : > { %v9100_v54 = vpop.eup %9099  ;;  %v6117_v30 = vmul.f32 %v9096_v26, %v6116_v3  ;;  %v6093_v60 = vmul.f32 %v9098_v13, %v5959_v11  ;;  %vm6099_vm3 = vweird.f32 %v9098_v13 }
 0xfb9   : > { %v6103_v34 = vmul.f32 %v9100_v54, %v5960_v18  ;;  %vm6109_vm4 = vweird.f32 %v9100_v54  ;;  %vm6100_vm7 = vmor %vm6098_vm5, %vm6099_vm3 }
 0xfba   : > { %v6121_v29 = vsel %vm6120_vm2, %v9096_v26, %v6117_v30  ;;  %v6094_v57 = vmul.f32 %v9098_v13, %v6093_v60  ;;  %vm6110_vm9 = vmor %vm6108_vm8, %vm6109_vm4  ;;  %v13915_v26 = vld [vmem:[#allocation30_spill] sm:$0xff] }
 0xfbb   : > { %v6137_v12 = vmul.f32 %v6121_v29, %v12930_v46  ;;  %v6104_v8 = vmul.f32 %v9100_v54, %v6103_v34  ;;  %v6320_v37 = vadd.f32 %v13915_v26, %v13914_v7 }
 0xfbc   : > { %v6095_v21 = vmul.f32 0.5, %v6094_v57 }
 0xfbd   : > { %v6154_v63 = vmul.f32 %v12901_v39, %v6137_v12  ;;  %v6105_v36 = vmul.f32 0.5, %v6104_v8  ;;  %v13919_v12 = vld [vmem:[#allocation36_spill] sm:$0xff] }
 0xfbe   : > { %v6096_v58 = vsub.f32 1.5, %v6095_v21  ;;  %v13920_v8 = vld [vmem:[#allocation32_spill] sm:$0xff] }
 0xfbf   : > { %v6106_v62 = vsub.f32 1.5, %v6105_v36  ;;  %v6171_v49 = vadd.f32 %v12905_v22, %v6154_v63  ;;  %v6322_v21 = vadd.f32 %v13920_v8, %v13919_v12 }
 0xfc0   : > { %v6097_v0 = vmul.f32 %v9098_v13, %v6096_v58 }
 0xfc1   : > { %v6107_v59 = vmul.f32 %v9100_v54, %v6106_v62  ;;  %8454 = vmatpush.xpose.msk.msrb.mxu3 %vm1122_vm1, %v6171_v49 }
 0xfc2   : > { %v6101_v46 = vsel %vm6100_vm7, %v9098_v13, %v6097_v0 }
 0xfc3   : > { %v6111_v45 = vsel %vm6110_vm9, %v9100_v54, %v6107_v59  ;;  %v6135_v27 = vmul.f32 %v6101_v46, %v12936_v51  ;;  %v6168_v51 = vadd.f32 %v12905_v22, %v6151_v44  ;;  %v13918_v54 = vld [vmem:[#allocation28_spill] sm:$0xff]  ;;  %v13921_v59 = vld [vmem:[#allocation35_spill] sm:$0xff] }
 0xfc4   : > { %v6136_v42 = vmul.f32 %v6111_v45, %v12946_v23  ;;  %v13922_v46 = vld [vmem:[#allocation31_spill] sm:$0xff] }
 0xfc5   : > { %v6152_v43 = vmul.f32 %v12901_v39, %v6135_v27  ;;  %v6323_v45 = vadd.f32 %v13922_v46, %v13921_v59 }
 0xfc6   : > { %v6153_v10 = vmul.f32 %v12901_v39, %v6136_v42  ;;  %v6317_v39 = vadd.f32 %v11493_v20, %v11948_v9  ;;  %v6319_v9 = vadd.f32 %v11683_v33, %v11998_v41  ;;  %v6321_v41 = vadd.f32 %v13917_v53, %v13916_v40 }
 0xfc7   : > { %v6169_v38 = vadd.f32 %v12905_v22, %v6152_v43 }
 0xfc8   : > { %v6170_v14 = vadd.f32 %v12905_v22, %v6153_v10 }
 0xfca   : > { %8455 = vmatpush.xpose.msk.msrb.mxu3 %vm1122_vm1, %v6170_v14 }
 0xfce   : > { %8456 = vmatpush.xpose.msk.msrb.mxu3 %vm1122_vm1, %v6169_v38 }
 0xfd2   : > { %8457 = vmatpush.xpose.msk.msrb.mxu3 %vm1122_vm1, %v6168_v51 }
 0xfd5   : > { %8458 = vmatmul.msk.f32.vlgmr.msrb.gmra.mxu3 %vm1122_vm1, %v11980_v35 }
 0xfd6   : > { %v13116_v23 = vpop.f32.mrf.mxu1 }
 0xfd7   : > { %v6324_v17 = vadd.f32 %v6316_v50, %v13116_v23 }
 0xfd9   : > { %v6332_v19 = vsel %vm728_vm0, %v6324_v17, 0.0 }
 0xfda   : > { %6333 = vadd.xlane.f32.xlu1 %v6332_v19 }
 0xfdd   : > { %8459 = vmatmul.msk.f32.gmra.mxu3 %vm1122_vm1, %v11987_v47 }
 0xfde   : > { %v13124_v22 = vpop.f32.mrf.mxu1 }
 0xfdf   : > { %v6325_v35 = vadd.f32 %v6317_v39, %v13124_v22 }
 0xfe1   : > { %v6335_v28 = vsel %vm728_vm0, %v6325_v35, 0.0 }
 0xfe2   : > { %6336 = vadd.xlane.f32.xlu2 %v6335_v28 }
 0xfe6   : > { %v13130_v24 = vpop.f32.mrf.mxu1 }
 0xfe7   : > { %v6326_v32 = vadd.f32 %v6318_v6, %v13130_v24 }
 0xfe9   : > { %v6338_v55 = vsel %vm728_vm0, %v6326_v32, 0.0 }
 0xfea   : > { %6339 = vadd.xlane.f32.xlu0 %v6338_v55 }
 0xfee   : > { %v13136_v47 = vpop.f32.mrf.mxu1 }
 0xfef   : > { %v6327_v2 = vadd.f32 %v6319_v9, %v13136_v47 }
 0xff1   : > { %v6341_v4 = vsel %vm728_vm0, %v6327_v2, 0.0 }
 0xff2   : > { %6342 = vadd.xlane.f32.xlu1 %v6341_v4 }
 0xff6   : > { %v13142_v11 = vpop.f32.mrf.mxu1 }
 0xff7   : > { %v6328_v18 = vadd.f32 %v6320_v37, %v13142_v11 }
 0xff9   : > { %v6344_v5 = vsel %vm728_vm0, %v6328_v18, 0.0 }
 0xffa   : > { %6345 = vadd.xlane.f32.xlu2 %v6344_v5 }
 0xffe   : > { %v13148_v1 = vpop.f32.mrf.mxu1 }
 0xfff   : > { %v6329_v56 = vadd.f32 %v6321_v41, %v13148_v1 }
0x1001   : > { %v6347_v3 = vsel %vm728_vm0, %v6329_v56, 0.0 }
0x1002   : > { %6348 = vadd.xlane.f32.xlu0 %v6347_v3 }
0x104d   : > { %v6334_v13 = vpop.xlane.xlu1 %6333 }
0x104e   : > { %v6356_v30 = vmul.f32 %v6334_v13, %v13918_v54  ;;  %v8542_v13 = vld [vmem:[#allocation14] sm:$0xff] }
0x1050   : > { %v13153_v60 = vsub.f32 %v6324_v17, %v6356_v30 }
0x1052   : > { %v6372_v25 = vmul.f32 %v13153_v60, %v13153_v60 }
0x1054   : > { %v6380_v34 = vsel %vm728_vm0, %v6372_v25, 0.0 }
0x1055   : > { %v6337_v29 = vpop.xlane.xlu2 %6336  ;;  %6381 = vadd.xlane.f32.xlu1 %v6380_v34 }
0x1056   : > { %v6357_v57 = vmul.f32 %v6337_v29, %v13918_v54 }
0x1058   : > { %v13161_v31 = vsub.f32 %v6325_v35, %v6357_v57  ;;  %v13163_v63 = vpop.f32.mrf.mxu3 }
0x1059   : > { %v6330_v36 = vadd.f32 %v6322_v21, %v13163_v63 }
0x105a   : > { %v6373_v58 = vmul.f32 %v13161_v31, %v13161_v31 }
0x105b   : > { %v6350_v62 = vsel %vm728_vm0, %v6330_v36, 0.0 }
0x105c   : > { %6351 = vadd.xlane.f32.xlu0 %v6350_v62  ;;  %v6383_v49 = vsel %vm728_vm0, %v6373_v58, 0.0 }
0x105d   : > { %6384 = vadd.xlane.f32.xlu2 %v6383_v49  ;;  %v6340_v0 = vpop.xlane.xlu0 %6339 }
0x105e   : > { %v6358_v61 = vmul.f32 %v6340_v0, %v13918_v54 }
0x1060   : > { %v13173_v27 = vsub.f32 %v6326_v32, %v6358_v61  ;;  %v13175_v42 = vpop.f32.mrf.mxu3 }
0x1061   : > { %v6331_v48 = vadd.f32 %v6323_v45, %v13175_v42 }
0x1062   : > { %v6374_v10 = vmul.f32 %v13173_v27, %v13173_v27 }
0x1063   : > { %v6353_v52 = vsel %vm728_vm0, %v6331_v48, 0.0 }
0x1064   : > { %6354 = vadd.xlane.f32.xlu1 %v6353_v52  ;;  %v6386_v14 = vsel %vm728_vm0, %v6374_v10, 0.0 }
0x1065   : > { %v6343_v43 = vpop.xlane.xlu1 %6342  ;;  %6387 = vadd.xlane.f32.xlu2 %v6386_v14 }
0x1066   : > { %v6359_v38 = vmul.f32 %v6343_v43, %v13918_v54 }
0x1068   : > { %v13183_v44 = vsub.f32 %v6327_v2, %v6359_v38 }
0x106a   : > { %v6375_v51 = vmul.f32 %v13183_v44, %v13183_v44 }
0x106c   : > { %v6389_v50 = vsel %vm728_vm0, %v6375_v51, 0.0 }
0x106d   : > { %v6346_v17 = vpop.xlane.xlu2 %6345  ;;  %6390 = vadd.xlane.f32.xlu0 %v6389_v50  ;;  %v13218_v50 = vld [vmem:[%s13834_s10 + $0x2] ss:$0 sm:$0xff] }
0x106e   : > { %v6360_v19 = vmul.f32 %v6346_v17, %v13918_v54 }
0x1070   : > { %v13189_v39 = vsub.f32 %v6328_v18, %v6360_v19  ;;  %v8543_v18 = vld [vmem:[#allocation14 + $0x8] sm:$0xff] }
0x1071   : > { %6597 = vmatpush.bf16.msrb.mxu1 %v8543_v18 }
0x1072   : > { %v6376_v35 = vmul.f32 %v13189_v39, %v13189_v39 }
0x1074   : > { %v6392_v28 = vsel %vm728_vm0, %v6376_v35, 0.0 }
0x1075   : > { %6393 = vadd.xlane.f32.xlu1 %v6392_v28  ;;  %v6349_v6 = vpop.xlane.xlu0 %6348  ;;  %6598 = vmatpush.bf16.msrb.mxu1 %v8542_v13 }
0x1076   : > { %v6361_v32 = vmul.f32 %v6349_v6, %v13918_v54 }
0x1078   : > { %v13195_v55 = vsub.f32 %v6329_v56, %v6361_v32  ;;  %v13225_v32 = vld [vmem:[%s13834_s10 + $0x3] ss:$0 sm:$0xff] }
0x107a   : > { %v6377_v9 = vmul.f32 %v13195_v55, %v13195_v55 }
0x107c   : > { %v6395_v2 = vsel %vm728_vm0, %v6377_v9, 0.0 }
0x107d   : > { %6396 = vadd.xlane.f32.xlu2 %v6395_v2 }
0x10c8   : > { %v6382_v4 = vpop.xlane.xlu1 %6381 }
0x10c9   : > { %v6404_v7 = vmul.f32 %v6382_v4, %v13918_v54 }
0x10cb   : > { %v6412_v37 = vadd.f32 1e-05, %v6404_v7 }
0x10cd   : > { %9101 = vrsqrt.f32 %v6412_v37  ;;  %vm6426_vm13 = vweird.f32 %v6412_v37 }
0x10cf   : > { %v6352_v5 = vpop.xlane.xlu0 %6351 }
0x10d0   : > { %v6362_v40 = vmul.f32 %v6352_v5, %v13918_v54  ;;  %v6385_v41 = vpop.xlane.xlu2 %6384 }
0x10d1   : > { %v6405_v56 = vmul.f32 %v6385_v41, %v13918_v54 }
0x10d2   : > { %v13203_v3 = vsub.f32 %v6330_v36, %v6362_v40 }
0x10d3   : > { %v9102_v30 = vpop.eup %9101  ;;  %v6413_v25 = vadd.f32 1e-05, %v6405_v56 }
0x10d4   : > { %v6421_v34 = vmul.f32 %v9102_v30, %v6412_v37  ;;  %v6378_v29 = vmul.f32 %v13203_v3, %v13203_v3  ;;  %vm6427_vm12 = vweird.f32 %v9102_v30 }
0x10d5   : > { %9103 = vrsqrt.f32 %v6413_v25  ;;  %vm6428_vm14 = vmor %vm6426_vm13, %vm6427_vm12  ;;  %vm6436_vm2 = vweird.f32 %v6413_v25 }
0x10d6   : > { %v6422_v57 = vmul.f32 %v9102_v30, %v6421_v34  ;;  %v6398_v12 = vsel %vm728_vm0, %v6378_v29, 0.0 }
0x10d7   : > { %v6355_v21 = vpop.xlane.xlu1 %6354  ;;  %6399 = vadd.xlane.f32.xlu0 %v6398_v12 }
0x10d8   : > { %v6423_v58 = vmul.f32 0.5, %v6422_v57  ;;  %v6363_v62 = vmul.f32 %v6355_v21, %v13918_v54  ;;  %v6388_v49 = vpop.xlane.xlu2 %6387 }
0x10d9   : > { %v6406_v36 = vmul.f32 %v6388_v49, %v13918_v54 }
0x10da   : > { %v6424_v0 = vsub.f32 1.5, %v6423_v58  ;;  %v13210_v61 = vsub.f32 %v6331_v48, %v6363_v62 }
0x10db   : > { %v9104_v59 = vpop.eup %9103  ;;  %v6414_v45 = vadd.f32 1e-05, %v6406_v36 }
0x10dc   : > { %v6425_v10 = vmul.f32 %v9102_v30, %v6424_v0  ;;  %v6431_v52 = vmul.f32 %v9104_v59, %v6413_v25  ;;  %v6379_v14 = vmul.f32 %v13210_v61, %v13210_v61  ;;  %vm6437_vm15 = vweird.f32 %v9104_v59 }
0x10dd   : > { %9105 = vrsqrt.f32 %v6414_v45  ;;  %vm6438_vm3 = vmor %vm6436_vm2, %vm6437_vm15  ;;  %vm6446_vm5 = vweird.f32 %v6414_v45 }
0x10de   : > { %v6429_v43 = vsel %vm6428_vm14, %v9102_v30, %v6425_v10  ;;  %v6432_v38 = vmul.f32 %v9104_v59, %v6431_v52  ;;  %v6401_v51 = vsel %vm728_vm0, %v6379_v14, 0.0 }
0x10df   : > { %v6500_v48 = vmul.f32 %v6429_v43, %v13153_v60  ;;  %6402 = vadd.xlane.f32.xlu1 %v6401_v51 }
0x10e0   : > { %v6433_v17 = vmul.f32 0.5, %v6432_v38  ;;  %v6391_v19 = vpop.xlane.xlu0 %6390 }
0x10e1   : > { %v6407_v35 = vmul.f32 %v6391_v19, %v13918_v54  ;;  %v6509_v9 = vmul.f32 %v13218_v50, %v6500_v48 }
0x10e2   : > { %v6434_v28 = vsub.f32 1.5, %v6433_v17 }
0x10e3   : > { %v9106_v6 = vpop.eup %9105  ;;  %v6415_v2 = vadd.f32 1e-05, %v6407_v35  ;;  %v13229_v18 = vadd.f32 %v13225_v32, %v6509_v9 }
0x10e4   : > { %v6435_v4 = vmul.f32 %v9104_v59, %v6434_v28  ;;  %v6441_v7 = vmul.f32 %v9106_v6, %v6414_v45  ;;  %vm6447_vm4 = vweird.f32 %v9106_v6 }
0x10e5   : > { %9107 = vrsqrt.f32 %v6415_v2  ;;  %v6526_v25 = vpack.c.bf16 %v13229_v18, %v13229_v18  ;;  %vm6448_vm6 = vmor %vm6446_vm5, %vm6447_vm4  ;;  %vm6456_vm8 = vweird.f32 %v6415_v2 }
0x10e6   : > { %v6439_v60 = vsel %vm6438_vm3, %v9104_v59, %v6435_v4  ;;  %v6442_v37 = vmul.f32 %v9106_v6, %v6441_v7 }
0x10e7   : > { %v6501_v5 = vmul.f32 %v6439_v60, %v13161_v31  ;;  %v6555_v49 = vunpack.c.l.b16 %v6526_v25 }
0x10e8   : > { %v6443_v40 = vmul.f32 0.5, %v6442_v37  ;;  %v6394_v41 = vpop.xlane.xlu1 %6393 }
0x10e9   : > { %v6510_v56 = vmul.f32 %v13218_v50, %v6501_v5  ;;  %v6408_v13 = vmul.f32 %v6394_v41, %v13918_v54 }
0x10ea   : > { %v6444_v30 = vsub.f32 1.5, %v6443_v40 }
0x10eb   : > { %v9108_v34 = vpop.eup %9107  ;;  %v13237_v29 = vadd.f32 %v13225_v32, %v6510_v56  ;;  %v6416_v57 = vadd.f32 1e-05, %v6408_v13 }
0x10ec   : > { %v6445_v12 = vmul.f32 %v9106_v6, %v6444_v30  ;;  %v6451_v21 = vmul.f32 %v9108_v34, %v6415_v2  ;;  %vm6457_vm7 = vweird.f32 %v9108_v34 }
0x10ed   : > { %v6527_v31 = vpack.c.bf16 %v13237_v29, %v13237_v29  ;;  %9109 = vrsqrt.f32 %v6416_v57  ;;  %vm6458_vm9 = vmor %vm6456_vm8, %vm6457_vm7  ;;  %vm6466_vm11 = vweird.f32 %v6416_v57 }
0x10ee   : > { %v6449_v58 = vsel %vm6448_vm6, %v9106_v6, %v6445_v12  ;;  %v6452_v62 = vmul.f32 %v9108_v34, %v6451_v21 }
0x10ef   : > { %v6556_v36 = vunpack.c.l.b16 %v6527_v31  ;;  %v6502_v0 = vmul.f32 %v6449_v58, %v13173_v27 }
0x10f0   : > { %v6453_v59 = vmul.f32 0.5, %v6452_v62  ;;  %v6397_v10 = vpop.xlane.xlu2 %6396 }
0x10f1   : > { %v6409_v52 = vmul.f32 %v6397_v10, %v13918_v54  ;;  %v13243_v14 = vpack.c.b16 %v6556_v36, %v6555_v49  ;;  %v6511_v38 = vmul.f32 %v13218_v50, %v6502_v0 }
0x10f2   : > { %v6454_v43 = vsub.f32 1.5, %v6453_v59 }
0x10f3   : > { %v9110_v45 = vpop.eup %9109  ;;  %v6417_v51 = vadd.f32 1e-05, %v6409_v52  ;;  %8468 = vmatmul.msk.bf16.vlgmr.msrb.gmra.mxu1 %vm728_vm0, %v13243_v14  ;;  %v6580_v48 = vsel %vm728_vm0, %v13243_v14, 0  ;;  %v13251_v28 = vadd.f32 %v13225_v32, %v6511_v38 }
0x10f4   : > { %v6455_v17 = vmul.f32 %v9108_v34, %v6454_v43  ;;  %v6461_v27 = vmul.f32 %v9110_v45, %v6416_v57  ;;  %6643 = vmatpush.bf16.xpose.msra.mxu3 %v6580_v48  ;;  %vm6467_vm10 = vweird.f32 %v9110_v45 }
0x10f5   : > { %9111 = vrsqrt.f32 %v6417_v51  ;;  %v6528_v2 = vpack.c.bf16 %v13251_v28, %v13251_v28  ;;  %vm6468_vm12 = vmor %vm6466_vm11, %vm6467_vm10  ;;  %vm6476_vm14 = vweird.f32 %v6417_v51 }
0x10f6   : > { %v6459_v19 = vsel %vm6458_vm9, %v9108_v34, %v6455_v17  ;;  %v6462_v35 = vmul.f32 %v9110_v45, %v6461_v27 }
0x10f7   : > { %v6503_v6 = vmul.f32 %v6459_v19, %v13183_v44  ;;  %v6557_v30 = vunpack.c.l.b16 %v6528_v2 }
0x10f8   : > { %v6463_v9 = vmul.f32 0.5, %v6462_v35 }
0x10f9   : > { %v6512_v4 = vmul.f32 %v13218_v50, %v6503_v6 }
0x10fa   : > { %v6464_v7 = vsub.f32 1.5, %v6463_v9 }
0x10fb   : > { %v9112_v60 = vpop.eup %9111  ;;  %v13256_v37 = vadd.f32 %v13225_v32, %v6512_v4 }
0x10fc   : > { %v6465_v5 = vmul.f32 %v9110_v45, %v6464_v7  ;;  %v6471_v40 = vmul.f32 %v9112_v60, %v6417_v51  ;;  %vm6477_vm13 = vweird.f32 %v9112_v60 }
0x10fd   : > { %v6529_v41 = vpack.c.bf16 %v13256_v37, %v13256_v37  ;;  %vm6478_vm15 = vmor %vm6476_vm14, %vm6477_vm13 }
0x10fe   : > { %v6469_v44 = vsel %vm6468_vm12, %v9110_v45, %v6465_v5  ;;  %v6472_v56 = vmul.f32 %v9112_v60, %v6471_v40 }
0x10ff   : > { %v6504_v13 = vmul.f32 %v6469_v44, %v13189_v39  ;;  %v6558_v34 = vunpack.c.l.b16 %v6529_v41 }
0x1100   : > { %v6473_v25 = vmul.f32 0.5, %v6472_v56 }
0x1101   : > { %v13263_v12 = vpack.c.b16 %v6558_v34, %v6557_v30  ;;  %v6513_v31 = vmul.f32 %v13218_v50, %v6504_v13 }
0x1102   : > { %v6474_v21 = vsub.f32 1.5, %v6473_v25 }
0x1103   : > { %8469 = vmatmul.msk.bf16.gmra.mxu1 %vm728_vm0, %v13263_v12  ;;  %v6583_v57 = vsel %vm728_vm0, %v13263_v12, 0  ;;  %v13271_v62 = vadd.f32 %v13225_v32, %v6513_v31 }
0x1104   : > { %v6475_v58 = vmul.f32 %v9112_v60, %v6474_v21  ;;  %6665 = vmatpush.bf16.xpose.msrb.mxu3 %v6583_v57 }
0x1105   : > { %v6530_v59 = vpack.c.bf16 %v13271_v62, %v13271_v62 }
0x1106   : > { %v6479_v39 = vsel %vm6478_vm15, %v9112_v60, %v6475_v58 }
0x1107   : > { %v6505_v49 = vmul.f32 %v6479_v39, %v13195_v55  ;;  %v6559_v52 = vunpack.c.l.b16 %v6530_v59 }
0x1109   : > { %v6514_v36 = vmul.f32 %v13218_v50, %v6505_v49 }
0x110b   : > { %v13276_v0 = vadd.f32 %v13225_v32, %v6514_v36 }
0x110d   : > { %v6531_v10 = vpack.c.bf16 %v13276_v0, %v13276_v0 }
0x110f   : > { %v6560_v43 = vunpack.c.l.b16 %v6531_v10 }
0x1111   : > { %v13282_v45 = vpack.c.b16 %v6560_v43, %v6559_v52 }
0x1113   : > { %8470 = vmatmul.msk.bf16.gmra.mxu1 %vm728_vm0, %v13282_v45 }
0x114a   : > { %v6400_v38 = vpop.xlane.xlu0 %6399 }
0x114b   : > { %v6410_v55 = vmul.f32 %v6400_v38, %v13918_v54 }
0x114d   : > { %v6418_v51 = vadd.f32 1e-05, %v6410_v55  ;;  %v6586_v55 = vsel %vm728_vm0, %v13282_v45, 0 }
0x114f   : > { %9113 = vrsqrt.f32 %v6418_v51  ;;  %vm6486_vm3 = vweird.f32 %v6418_v51 }
0x1152   : > { %v6403_v48 = vpop.xlane.xlu1 %6402 }
0x1153   : > { %v6411_v17 = vmul.f32 %v6403_v48, %v13918_v54 }
0x1155   : > { %v9114_v27 = vpop.eup %9113  ;;  %v6419_v19 = vadd.f32 1e-05, %v6411_v17 }
0x1156   : > { %v6481_v35 = vmul.f32 %v9114_v27, %v6418_v51  ;;  %vm6487_vm2 = vweird.f32 %v9114_v27 }
0x1157   : > { %9115 = vrsqrt.f32 %v6419_v19  ;;  %vm6488_vm4 = vmor %vm6486_vm3, %vm6487_vm2  ;;  %vm6496_vm6 = vweird.f32 %v6419_v19 }
0x1158   : > { %v6482_v6 = vmul.f32 %v9114_v27, %v6481_v35 }
0x115a   : > { %v6483_v9 = vmul.f32 0.5, %v6482_v6  ;;  %v8545_v6 = vld [vmem:[#allocation14 + $0x18] sm:$0xff] }
0x115c   : > { %v6484_v4 = vsub.f32 1.5, %v6483_v9 }
0x115d   : > { %v9116_v7 = vpop.eup %9115 }
0x115e   : > { %v6485_v60 = vmul.f32 %v9114_v27, %v6484_v4  ;;  %v6491_v2 = vmul.f32 %v9116_v7, %v6419_v19  ;;  %vm6497_vm5 = vweird.f32 %v9116_v7 }
0x115f   : > { %vm6498_vm7 = vmor %vm6496_vm6, %vm6497_vm5 }
0x1160   : > { %v6489_v5 = vsel %vm6488_vm4, %v9114_v27, %v6485_v60  ;;  %v6492_v40 = vmul.f32 %v9116_v7, %v6491_v2 }
0x1161   : > { %v6506_v41 = vmul.f32 %v6489_v5, %v13203_v3 }
0x1162   : > { %v6493_v44 = vmul.f32 0.5, %v6492_v40 }
0x1163   : > { %v6515_v13 = vmul.f32 %v13218_v50, %v6506_v41 }
0x1164   : > { %v6494_v56 = vsub.f32 1.5, %v6493_v44 }
0x1165   : > { %v13291_v25 = vadd.f32 %v13225_v32, %v6515_v13 }
0x1166   : > { %v6495_v30 = vmul.f32 %v9116_v7, %v6494_v56 }
0x1167   : > { %v6532_v3 = vpack.c.bf16 %v13291_v25, %v13291_v25 }
0x1168   : > { %v6499_v34 = vsel %vm6498_vm7, %v9116_v7, %v6495_v30  ;;  %v8544_v7 = vld [vmem:[#allocation14 + $0x10] sm:$0xff] }
0x1169   : > { %v6507_v21 = vmul.f32 %v6499_v34, %v13210_v61  ;;  %v6561_v49 = vunpack.c.l.b16 %v6532_v3 }
0x116b   : > { %v6516_v31 = vmul.f32 %v13218_v50, %v6507_v21 }
0x116d   : > { %v13296_v57 = vadd.f32 %v13225_v32, %v6516_v31 }
0x116f   : > { %v6533_v58 = vpack.c.bf16 %v13296_v57, %v13296_v57 }
0x1170   : > { %v6600_v39 = vpop.f32.mrf.mxu1 }
0x1171   : > { %v6562_v36 = vunpack.c.l.b16 %v6533_v58  ;;  %v6620_v61 = vpack.c.bf16 %v6600_v39, %v6600_v39 }
0x1173   : > { %v6566_v59 = vpack.c.b16 %v6562_v36, %v6561_v49  ;;  %v6630_v32 = vunpack.c.l.b16 %v6620_v61 }
0x1175   : > { %8471 = vmatmul.msk.bf16.gmra.mxu1 %vm728_vm0, %v6566_v59  ;;  %v6589_v10 = vsel %vm728_vm0, %v6566_v59, 0 }
0x1176   : > { %6709 = vmatpush.bf16.xpose.msrb.mxu2 %v6589_v10 }
0x1178   : > { %v6602_v50 = vpop.f32.mrf.mxu1 }
0x1179   : > { %v6621_v52 = vpack.c.bf16 %v6602_v50, %v6602_v50 }
0x117b   : > { %v6631_v43 = vunpack.c.l.b16 %v6621_v52 }
0x117d   : > { %v6632_v38 = vpack.c.b16 %v6631_v43, %v6630_v32 }
0x117f   : > { %8472 = vmatmul.msk.bf16.vlgmr.msra.gmra.mxu3 %vm728_vm0, %v6632_v38 }
0x1180   : > { %6687 = vmatpush.bf16.xpose.msra.mxu3 %v6586_v55  ;;  %v6605_v51 = vpop.f32.mrf.mxu1 }
0x1181   : > { %v6622_v48 = vpack.c.bf16 %v6605_v51, %v6605_v51 }
0x1183   : > { %v6652_v19 = vunpack.c.l.b16 %v6622_v48 }
0x1188   : > { %v6607_v17 = vpop.f32.mrf.mxu1 }
0x1189   : > { %v6623_v27 = vpack.c.bf16 %v6607_v17, %v6607_v17 }
0x118b   : > { %v6653_v35 = vunpack.c.l.b16 %v6623_v27 }
0x118d   : > { %v6654_v9 = vpack.c.b16 %v6653_v35, %v6652_v19 }
0x118f   : > { %8473 = vmatmul.msk.bf16.vlgmr.msrb.gmra.mxu3 %vm728_vm0, %v6654_v9 }
0x1190   : > { %v6610_v4 = vpop.f32.mrf.mxu1  ;;  %6931 = vmatpush.bf16.msrb.mxu3 %v8545_v6 }
0x1191   : > { %v6624_v60 = vpack.c.bf16 %v6610_v4, %v6610_v4 }
0x1193   : > { %v6674_v40 = vunpack.c.l.b16 %v6624_v60 }
0x1194   : > { %6932 = vmatpush.bf16.msrb.mxu3 %v8544_v7 }
0x1198   : > { %v6612_v2 = vpop.f32.mrf.mxu1 }
0x1199   : > { %v6625_v5 = vpack.c.bf16 %v6612_v2, %v6612_v2 }
0x119b   : > { %v6675_v41 = vunpack.c.l.b16 %v6625_v5 }
0x119d   : > { %v6676_v44 = vpack.c.b16 %v6675_v41, %v6674_v40 }
0x119f   : > { %8474 = vmatmul.msk.bf16.vlgmr.msra.gmra.mxu3 %vm728_vm0, %v6676_v44 }
0x11af   : > { %8484 = vmatmul.msk.bf16.vlgmr.msrb.gmra.mxu3 %vm728_vm0, %v13243_v14 }
0x11bf   : > { %8485 = vmatmul.msk.bf16.gmra.mxu3 %vm728_vm0, %v13263_v12 }
0x11cf   : > { %8486 = vmatmul.msk.bf16.gmra.mxu3 %vm728_vm0, %v13282_v45 }
0x11df   : > { %8487 = vmatmul.msk.bf16.gmra.mxu3 %vm728_vm0, %v6566_v59 }
0x11f2   : > { %v6615_v56 = vpop.f32.mrf.mxu1 }
0x11f3   : > { %v6626_v13 = vpack.c.bf16 %v6615_v56, %v6615_v56 }
0x11f5   : > { %v6696_v21 = vunpack.c.l.b16 %v6626_v13 }
0x11fa   : > { %v6617_v30 = vpop.f32.mrf.mxu1 }
0x11fb   : > { %v6627_v34 = vpack.c.bf16 %v6617_v30, %v6617_v30 }
0x11fd   : > { %v6697_v31 = vunpack.c.l.b16 %v6627_v34 }
0x11ff   : > { %v6698_v3 = vpack.c.b16 %v6697_v31, %v6696_v21 }
0x1201   : > { %8475 = vmatmul.msk.bf16.vlgmr.msrb.gmra.mxu2 %vm728_vm0, %v6698_v3 }
0x1202   : > { %v6645_v58 = vpop.f32.mrf.mxu3 }
0x1203   : > { %v6716_v14 = vsel %vm1122_vm1, %v6645_v58, -inf }
0x1204   : > { %6717 = vmax.xlane.f32.xlu2 %v6716_v14 }
0x120a   : > { %v6647_v39 = vpop.f32.mrf.mxu3 }
0x120b   : > { %v6719_v12 = vsel %vm1122_vm1, %v6647_v39, -inf }
0x120c   : > { %6720 = vmax.xlane.f32.xlu0 %v6719_v12 }
0x1212   : > { %v6667_v45 = vpop.f32.mrf.mxu3 }
0x1213   : > { %v6722_v49 = vsel %vm1122_vm1, %v6667_v45, -inf }
0x1214   : > { %6723 = vmax.xlane.f32.xlu1 %v6722_v49 }
0x121a   : > { %v13320_v36 = vpop.f32.mrf.mxu3 }
0x121b   : > { %v6725_v59 = vsel %vm1122_vm1, %v13320_v36, -inf }
0x121c   : > { %6726 = vmax.xlane.f32.xlu2 %v6725_v59 }
0x1222   : > { %v13324_v10 = vpop.f32.mrf.mxu3 }
0x1223   : > { %v6728_v61 = vsel %vm1122_vm1, %v13324_v10, -inf }
0x1224   : > { %6729 = vmax.xlane.f32.xlu0 %v6728_v61 }
0x122a   : > { %v13328_v50 = vpop.f32.mrf.mxu3 }
0x122b   : > { %v6731_v52 = vsel %vm1122_vm1, %v13328_v50, -inf }
0x122c   : > { %6732 = vmax.xlane.f32.xlu1 %v6731_v52 }
0x1232   : > { %v6934_v32 = vpop.f32.mrf.mxu3 }
0x1233   : > { %v6962_v43 = vpack.c.bf16 %v6934_v32, %v6934_v32 }
0x1235   : > { %v6977_v51 = vunpack.c.l.b16 %v6962_v43 }
0x123a   : > { %v6936_v38 = vpop.f32.mrf.mxu3 }
0x123b   : > { %v6963_v55 = vpack.c.bf16 %v6936_v38, %v6936_v38 }
0x123d   : > { %v6978_v48 = vunpack.c.l.b16 %v6963_v55 }
0x123f   : > { %v6979_v17 = vpack.c.b16 %v6978_v48, %v6977_v51 }
0x1241   : > { %6991 = vmatpush.bf16.msra.mxu1 %v6979_v17 }
0x1242   : > { %v6939_v27 = vpop.f32.mrf.mxu3 }
0x1243   : > { %v6964_v19 = vpack.c.bf16 %v6939_v27, %v6939_v27 }
0x1245   : > { %v7005_v9 = vunpack.c.l.b16 %v6964_v19 }
0x124a   : > { %v6941_v35 = vpop.f32.mrf.mxu3 }
0x124b   : > { %v6965_v6 = vpack.c.bf16 %v6941_v35, %v6941_v35 }
0x124d   : > { %v7006_v4 = vunpack.c.l.b16 %v6965_v6 }
0x124f   : > { %v7007_v7 = vpack.c.b16 %v7006_v4, %v7005_v9 }
0x1251   : > { %7019 = vmatpush.bf16.msra.mxu2 %v7007_v7 }
0x1252   : > { %v6944_v60 = vpop.f32.mrf.mxu3 }
0x1253   : > { %v6966_v2 = vpack.c.bf16 %v6944_v60, %v6944_v60 }
0x1255   : > { %v7033_v41 = vunpack.c.l.b16 %v6966_v2 }
0x125a   : > { %v6946_v5 = vpop.f32.mrf.mxu3 }
0x125b   : > { %v6967_v40 = vpack.c.bf16 %v6946_v5, %v6946_v5 }
0x125d   : > { %v7034_v44 = vunpack.c.l.b16 %v6967_v40 }
0x125f   : > { %v7035_v56 = vpack.c.b16 %v7034_v44, %v7033_v41 }
0x1261   : > { %7047 = vmatpush.bf16.msrb.mxu0 %v7035_v56 }
0x1262   : > { %v6949_v13 = vpop.f32.mrf.mxu3 }
0x1263   : > { %v6968_v30 = vpack.c.bf16 %v6949_v13, %v6949_v13 }
0x1265   : > { %v7061_v31 = vunpack.c.l.b16 %v6968_v30 }
0x126a   : > { %v6951_v34 = vpop.f32.mrf.mxu3 }
0x126b   : > { %v6969_v21 = vpack.c.bf16 %v6951_v34, %v6951_v34 }
0x126d   : > { %v7062_v3 = vunpack.c.l.b16 %v6969_v21 }
0x126f   : > { %v7063_v14 = vpack.c.b16 %v7062_v3, %v7061_v31 }
0x1271   : > { %7075 = vmatpush.bf16.msrb.mxu1 %v7063_v14 }
0x1277   : > { %v6718_v12 = vpop.xlane.xlu2 %6717 }
0x1278   : > { %v6740_v49 = vsub.f32 %v6645_v58, %v6718_v12 }
0x127a   : > { %v6748_v59 = vmul.f32 1.442695, %v6740_v49 }
0x127c   : > { %9117 = vpow2.f32 %v6748_v59 }
0x127f   : > { %v6721_v61 = vpop.xlane.xlu0 %6720 }
0x1280   : > { %v6741_v52 = vsub.f32 %v6647_v39, %v6721_v61 }
0x1282   : > { %v13332_v32 = vpop.eup %9117  ;;  %v6750_v43 = vmul.f32 1.442695, %v6741_v52 }
0x1283   : > { %v6764_v38 = vsel %vm1122_vm1, %v13332_v32, 0.0 }
0x1284   : > { %9119 = vpow2.f32 %v6750_v43  ;;  %v6711_v55 = vpop.f32.mrf.mxu2  ;;  %6765 = vadd.xlane.f32.xlu1 %v6764_v38 }
0x1285   : > { %v6734_v51 = vsel %vm1122_vm1, %v6711_v55, -inf }
0x1286   : > { %6735 = vmax.xlane.f32.xlu2 %v6734_v51 }
0x1287   : > { %v6724_v48 = vpop.xlane.xlu1 %6723 }
0x1288   : > { %v6742_v17 = vsub.f32 %v6667_v45, %v6724_v48 }
0x128a   : > { %v13337_v27 = vpop.eup %9119  ;;  %v6752_v58 = vmul.f32 1.442695, %v6742_v17 }
0x128b   : > { %v6767_v39 = vsel %vm1122_vm1, %v13337_v27, 0.0 }
0x128c   : > { %9121 = vpow2.f32 %v6752_v58  ;;  %v6713_v19 = vpop.f32.mrf.mxu2 }
0x128d   : > { %v6737_v35 = vsel %vm1122_vm1, %v6713_v19, -inf }
0x128e   : > { %6738 = vmax.xlane.f32.xlu0 %v6737_v35  ;;  %6768 = vadd.xlane.f32.xlu2 %v6767_v39 }
0x128f   : > { %v6727_v6 = vpop.xlane.xlu2 %6726 }
0x1290   : > { %v6743_v9 = vsub.f32 %v13320_v36, %v6727_v6 }
0x1292   : > { %v13343_v4 = vpop.eup %9121  ;;  %v6754_v7 = vmul.f32 1.442695, %v6743_v9 }
0x1293   : > { %v6770_v45 = vsel %vm1122_vm1, %v13343_v4, 0.0 }
0x1294   : > { %9123 = vpow2.f32 %v6754_v7 }
0x1296   : > { %6771 = vadd.xlane.f32.xlu0 %v6770_v45 }
0x1297   : > { %v6730_v60 = vpop.xlane.xlu0 %6729 }
0x1298   : > { %v6744_v2 = vsub.f32 %v13324_v10, %v6730_v60 }
0x129a   : > { %v13348_v5 = vpop.eup %9123  ;;  %v6756_v40 = vmul.f32 1.442695, %v6744_v2 }
0x129b   : > { %v6773_v41 = vsel %vm1122_vm1, %v13348_v5, 0.0 }
0x129c   : > { %9125 = vpow2.f32 %v6756_v40  ;;  %6774 = vadd.xlane.f32.xlu1 %v6773_v41 }
0x129f   : > { %v6733_v36 = vpop.xlane.xlu1 %6732 }
0x12a0   : > { %v6745_v44 = vsub.f32 %v13328_v50, %v6733_v36 }
0x12a2   : > { %v13353_v56 = vpop.eup %9125  ;;  %v6758_v13 = vmul.f32 1.442695, %v6745_v44 }
0x12a3   : > { %v6776_v30 = vsel %vm1122_vm1, %v13353_v56, 0.0 }
0x12a4   : > { %9127 = vpow2.f32 %v6758_v13  ;;  %6777 = vadd.xlane.f32.xlu2 %v6776_v30 }
0x12aa   : > { %v13357_v10 = vpop.eup %9127 }
0x12ab   : > { %v6779_v34 = vsel %vm1122_vm1, %v13357_v10, 0.0 }
0x12ac   : > { %6780 = vadd.xlane.f32.xlu0 %v6779_v34 }
0x12f7   : > { %v6766_v21 = vpop.xlane.xlu1 %6765 }
0x12f8   : > { %9129 = vrcp.f32 %v6766_v21  ;;  %v6799_v58 = vand.u32 2147483648, %v6766_v21  ;;  %vm6793_vm9 = vweird.f32 %v6766_v21 }
0x12f9   : > { %v6736_v31 = vpop.xlane.xlu2 %6735 }
0x12fa   : > { %v6746_v3 = vsub.f32 %v6711_v55, %v6736_v31  ;;  %v6797_v55 = vand.u32 2147483647, %v6766_v21  ;;  %v6800_v7 = vor.u32 1.1754944e-38, %v6799_v58 }
0x12fc   : > { %v6760_v14 = vmul.f32 1.442695, %v6746_v3  ;;  %vm6798_vm11 = vcmp.eq.f32.partialorder %v6797_v55, 8.507059e+37 }
0x12fe   : > { %v9130_v50 = vpop.eup %9129  ;;  %9131 = vpow2.f32 %v6760_v14 }
0x12ff   : > { %v6789_v12 = vmul.f32 %v9130_v50, %v6766_v21  ;;  %vm6794_vm8 = vweird.f32 %v9130_v50 }
0x1300   : > { %vm6795_vm10 = vmor %vm6793_vm9, %vm6794_vm8 }
0x1301   : > { %v6790_v49 = vsub.f32 1.0, %v6789_v12  ;;  %v6769_v59 = vpop.xlane.xlu2 %6768  ;;  %v6739_v61 = vpop.xlane.xlu0 %6738 }
0x1302   : > { %9133 = vrcp.f32 %v6769_v59  ;;  %v6747_v43 = vsub.f32 %v6713_v19, %v6739_v61  ;;  %v6814_v60 = vand.u32 2147483648, %v6769_v59  ;;  %v6812_v41 = vand.u32 2147483647, %v6769_v59 }
0x1303   : > { %v6791_v52 = vmul.f32 %v9130_v50, %v6790_v49  ;;  %vm6808_vm13 = vweird.f32 %v6769_v59 }
0x1304   : > { %v13361_v38 = vpop.eup %9131  ;;  %v6762_v48 = vmul.f32 1.442695, %v6747_v43  ;;  %v6815_v21 = vor.u32 1.1754944e-38, %v6814_v60  ;;  %vm6813_vm15 = vcmp.eq.f32.partialorder %v6812_v41, 8.507059e+37 }
0x1305   : > { %v6792_v51 = vadd.f32 %v9130_v50, %v6791_v52  ;;  %v6782_v17 = vsel %vm1122_vm1, %v13361_v38, 0.0 }
0x1306   : > { %6783 = vadd.xlane.f32.xlu1 %v6782_v17  ;;  %9135 = vpow2.f32 %v6762_v48 }
0x1307   : > { %v6796_v35 = vsel %vm6795_vm10, %v9130_v50, %v6792_v51 }
0x1308   : > { %v9134_v39 = vpop.eup %9133  ;;  %v6801_v45 = vsel %vm6798_vm11, %v6800_v7, %v6796_v35 }
0x1309   : > { %v6804_v6 = vmul.f32 %v9134_v39, %v6769_v59  ;;  %v6772_v9 = vpop.xlane.xlu0 %6771  ;;  %vm6809_vm12 = vweird.f32 %v9134_v39  ;;  %v6802_v44 = vmul.f32 %v13332_v32, %v6801_v45 }
0x130a   : > { %9137 = vrcp.f32 %v6772_v9  ;;  %vm6810_vm14 = vmor %vm6808_vm13, %vm6809_vm12  ;;  %v6829_v61 = vand.u32 2147483648, %v6772_v9  ;;  %v6827_v32 = vand.u32 2147483647, %v6772_v9  ;;  %vm6823_vm3 = vweird.f32 %v6772_v9 }
0x130b   : > { %v6805_v19 = vsub.f32 1.0, %v6804_v6  ;;  %v6954_v50 = vpack.c.bf16 %v6802_v44, %v6802_v44 }
0x130c   : > { %v13365_v2 = vpop.eup %9135  ;;  %vm6828_vm5 = vcmp.eq.f32.partialorder %v6827_v32, 8.507059e+37 }
0x130d   : > { %v6806_v40 = vmul.f32 %v9134_v39, %v6805_v19  ;;  %v6785_v36 = vsel %vm1122_vm1, %v13365_v2, 0.0  ;;  %v6972_v51 = vunpack.c.l.b16 %v6954_v50 }
0x130e   : > { %6786 = vadd.xlane.f32.xlu2 %v6785_v36 }
0x130f   : > { %v6807_v13 = vadd.f32 %v9134_v39, %v6806_v40  ;;  %v6775_v30 = vpop.xlane.xlu1 %6774 }
0x1310   : > { %v9138_v34 = vpop.eup %9137  ;;  %9139 = vrcp.f32 %v6775_v30  ;;  %v6844_v19 = vand.u32 2147483648, %v6775_v30  ;;  %v6842_v60 = vand.u32 2147483647, %v6775_v30  ;;  %vm6838_vm7 = vweird.f32 %v6775_v30 }
0x1311   : > { %v6811_v31 = vsel %vm6810_vm14, %v9134_v39, %v6807_v13  ;;  %v6819_v3 = vmul.f32 %v9138_v34, %v6772_v9  ;;  %vm6824_vm2 = vweird.f32 %v9138_v34  ;;  %v6830_v39 = vor.u32 1.1754944e-38, %v6829_v61 }
0x1312   : > { %v6816_v14 = vsel %vm6813_vm15, %v6815_v21, %v6811_v31  ;;  %vm6825_vm4 = vmor %vm6823_vm3, %vm6824_vm2  ;;  %v6845_v36 = vor.u32 1.1754944e-38, %v6844_v19  ;;  %vm6843_vm9 = vcmp.eq.f32.partialorder %v6842_v60, 8.507059e+37 }
0x1313   : > { %v6817_v12 = vmul.f32 %v13337_v27, %v6816_v14  ;;  %v6820_v49 = vsub.f32 1.0, %v6819_v3 }
0x1315   : > { %v6955_v52 = vpack.c.bf16 %v6817_v12, %v6817_v12  ;;  %v6821_v43 = vmul.f32 %v9138_v34, %v6820_v49 }
0x1316   : > { %v9140_v59 = vpop.eup %9139 }
0x1317   : > { %v6973_v48 = vunpack.c.l.b16 %v6955_v52  ;;  %v6822_v17 = vadd.f32 %v9138_v34, %v6821_v43  ;;  %v6834_v58 = vmul.f32 %v9140_v59, %v6775_v30  ;;  %v6778_v55 = vpop.xlane.xlu2 %6777  ;;  %vm6839_vm6 = vweird.f32 %v9140_v59 }
0x1318   : > { %9141 = vrcp.f32 %v6778_v55  ;;  %vm6840_vm8 = vmor %vm6838_vm7, %vm6839_vm6  ;;  %vm6853_vm11 = vweird.f32 %v6778_v55  ;;  %v6857_v52 = vand.u32 2147483647, %v6778_v55 }
0x1319   : > { %v6974_v35 = vpack.c.b16 %v6973_v48, %v6972_v51  ;;  %v6826_v6 = vsel %vm6825_vm4, %v9138_v34, %v6822_v17  ;;  %v6835_v27 = vsub.f32 1.0, %v6834_v58 }
0x131a   : > { %v6831_v7 = vsel %vm6828_vm5, %v6830_v39, %v6826_v6  ;;  %vm6858_vm13 = vcmp.eq.f32.partialorder %v6857_v52, 8.507059e+37 }
0x131b   : > { %v6836_v45 = vmul.f32 %v9140_v59, %v6835_v27  ;;  %8488 = vmatmul.msk.bf16.vlgmr.msra.gmra.mxu1 %vm1122_vm1, %v6974_v35  ;;  %v6832_v9 = vmul.f32 %v13343_v4, %v6831_v7  ;;  %v6859_v4 = vand.u32 2147483648, %v6778_v55 }
0x131d   : > { %v6837_v40 = vadd.f32 %v9140_v59, %v6836_v45  ;;  %v6956_v31 = vpack.c.bf16 %v6832_v9, %v6832_v9  ;;  %v6860_v48 = vor.u32 1.1754944e-38, %v6859_v4 }
0x131e   : > { %v9142_v41 = vpop.eup %9141 }
0x131f   : > { %v6841_v44 = vsel %vm6840_vm8, %v9140_v59, %v6837_v40  ;;  %v6849_v13 = vmul.f32 %v9142_v41, %v6778_v55  ;;  %v6781_v34 = vpop.xlane.xlu0 %6780  ;;  %vm6854_vm10 = vweird.f32 %v9142_v41  ;;  %v7000_v49 = vunpack.c.l.b16 %v6956_v31 }
0x1320   : > { %v6846_v21 = vsel %vm6843_vm9, %v6845_v36, %v6841_v44  ;;  %9143 = vrcp.f32 %v6781_v34  ;;  %vm6855_vm12 = vmor %vm6853_vm11, %vm6854_vm10  ;;  %v6874_v58 = vand.u32 2147483648, %v6781_v34  ;;  %v6872_v35 = vand.u32 2147483647, %v6781_v34 }
0x1321   : > { %v6847_v3 = vmul.f32 %v13348_v5, %v6846_v21  ;;  %v6850_v14 = vsub.f32 1.0, %v6849_v13  ;;  %vm6868_vm15 = vweird.f32 %v6781_v34 }
0x1322   : > { %v6875_v55 = vor.u32 1.1754944e-38, %v6874_v58  ;;  %vm6873_vm3 = vcmp.eq.f32.partialorder %v6872_v35, 8.507059e+37 }
0x1323   : > { %v6957_v50 = vpack.c.bf16 %v6847_v3, %v6847_v3  ;;  %v6851_v12 = vmul.f32 %v9142_v41, %v6850_v14 }
0x1325   : > { %v7001_v30 = vunpack.c.l.b16 %v6957_v50  ;;  %v6852_v61 = vadd.f32 %v9142_v41, %v6851_v12 }
0x1326   : > { %v9144_v43 = vpop.eup %9143 }
0x1327   : > { %v7002_v32 = vpack.c.b16 %v7001_v30, %v7000_v49  ;;  %v6856_v59 = vsel %vm6855_vm12, %v9142_v41, %v6852_v61  ;;  %v6864_v51 = vmul.f32 %v9144_v43, %v6781_v34  ;;  %vm6869_vm14 = vweird.f32 %v9144_v43 }
0x1328   : > { %v6861_v5 = vsel %vm6858_vm13, %v6860_v48, %v6856_v59  ;;  %vm6870_vm2 = vmor %vm6868_vm15, %vm6869_vm14 }
0x1329   : > { %v6865_v17 = vsub.f32 1.0, %v6864_v51  ;;  %8489 = vmatmul.msk.bf16.vlgmr.msra.gmra.mxu2 %vm1122_vm1, %v7002_v32  ;;  %v6862_v6 = vmul.f32 %v13353_v56, %v6861_v5 }
0x132b   : > { %v6866_v39 = vmul.f32 %v9144_v43, %v6865_v17  ;;  %v6958_v45 = vpack.c.bf16 %v6862_v6, %v6862_v6  ;;  %v8737_v6 = vld [vmem:[#allocation17] ss:$0 sm:$0xff] }
0x132d   : > { %v6867_v27 = vadd.f32 %v9144_v43, %v6866_v39  ;;  %v7028_v40 = vunpack.c.l.b16 %v6958_v45 }
0x132f   : > { %v6871_v7 = vsel %vm6870_vm2, %v9144_v43, %v6867_v27 }
0x1330   : > { %v6876_v19 = vsel %vm6873_vm3, %v6875_v55, %v6871_v7 }
0x1331   : > { %v6877_v60 = vmul.f32 %v13357_v10, %v6876_v19 }
0x1333   : > { %v6959_v9 = vpack.c.bf16 %v6877_v60, %v6877_v60 }
0x1335   : > { %v7029_v41 = vunpack.c.l.b16 %v6959_v9 }
0x1337   : > { %v7030_v36 = vpack.c.b16 %v7029_v41, %v7028_v40 }
0x1339   : > { %8490 = vmatmul.msk.bf16.vlgmr.msrb.gmra.mxu0 %vm1122_vm1, %v7030_v36 }
0x1379   : > { %v6784_v44 = vpop.xlane.xlu1 %6783 }
0x137a   : > { %9145 = vrcp.f32 %v6784_v44  ;;  %v6889_v14 = vand.u32 2147483648, %v6784_v44  ;;  %vm6883_vm5 = vweird.f32 %v6784_v44  ;;  %v6887_v50 = vand.u32 2147483647, %v6784_v44 }
0x137c   : > { %v6890_v49 = vor.u32 1.1754944e-38, %v6889_v14  ;;  %vm6888_vm7 = vcmp.eq.f32.partialorder %v6887_v50, 8.507059e+37 }
0x1380   : > { %v9146_v13 = vpop.eup %9145 }
0x1381   : > { %v6879_v56 = vmul.f32 %v9146_v13, %v6784_v44  ;;  %v6787_v21 = vpop.xlane.xlu2 %6786  ;;  %vm6884_vm4 = vweird.f32 %v9146_v13 }
0x1382   : > { %9147 = vrcp.f32 %v6787_v21  ;;  %vm6885_vm6 = vmor %vm6883_vm5, %vm6884_vm4  ;;  %v6904_v52 = vand.u32 2147483648, %v6787_v21  ;;  %v6902_v32 = vand.u32 2147483647, %v6787_v21  ;;  %vm6898_vm9 = vweird.f32 %v6787_v21 }
0x1383   : > { %v6880_v34 = vsub.f32 1.0, %v6879_v56 }
0x1384   : > { %v6905_v48 = vor.u32 1.1754944e-38, %v6904_v52  ;;  %vm6903_vm11 = vcmp.eq.f32.partialorder %v6902_v32, 8.507059e+37 }
0x1385   : > { %v6881_v31 = vmul.f32 %v9146_v13, %v6880_v34 }
0x1387   : > { %v6882_v3 = vadd.f32 %v9146_v13, %v6881_v31 }
0x1388   : > { %v9148_v10 = vpop.eup %9147 }
0x1389   : > { %v6886_v12 = vsel %vm6885_vm6, %v9146_v13, %v6882_v3  ;;  %v6894_v4 = vmul.f32 %v9148_v10, %v6787_v21  ;;  %vm6899_vm8 = vweird.f32 %v9148_v10 }
0x138a   : > { %v6891_v61 = vsel %vm6888_vm7, %v6890_v49, %v6886_v12  ;;  %vm6900_vm10 = vmor %vm6898_vm9, %vm6899_vm8 }
0x138b   : > { %v6895_v30 = vsub.f32 1.0, %v6894_v4  ;;  %v6892_v59 = vmul.f32 %v13361_v38, %v6891_v61 }
0x138d   : > { %v6896_v43 = vmul.f32 %v9148_v10, %v6895_v30  ;;  %v6960_v58 = vpack.c.bf16 %v6892_v59, %v6892_v59 }
0x138f   : > { %v6897_v51 = vadd.f32 %v9148_v10, %v6896_v43  ;;  %v7056_v27 = vunpack.c.l.b16 %v6960_v58 }
0x1391   : > { %v6901_v17 = vsel %vm6900_vm10, %v9148_v10, %v6897_v51 }
0x1392   : > { %v6906_v5 = vsel %vm6903_vm11, %v6905_v48, %v6901_v17 }
0x1393   : > { %v6907_v39 = vmul.f32 %v13365_v2, %v6906_v5 }
0x1395   : > { %v6961_v35 = vpack.c.bf16 %v6907_v39, %v6907_v39 }
0x1397   : > { %v7057_v55 = vunpack.c.l.b16 %v6961_v35 }
0x1398   : > { %v6993_v7 = vpop.f32.mrf.mxu1 }
0x1399   : > { %v7082_v19 = vadd.f32 %v6993_v7, %v13229_v18  ;;  %v7058_v45 = vpack.c.b16 %v7057_v55, %v7056_v27 }
0x139b   : > { %v7091_v60 = vadd.f32 %v8737_v6, %v7082_v19  ;;  %8491 = vmatmul.msk.bf16.vlgmr.msrb.gmra.mxu1 %vm1122_vm1, %v7058_v45 }
0x139d   : > { %v7099_v38 = vsel %vm728_vm0, %v7091_v60, 0.0 }
0x139e   : > { %7100 = vadd.xlane.f32.xlu0 %v7099_v38 }
0x13a0   : > { %v6995_v9 = vpop.f32.mrf.mxu1 }
0x13a1   : > { %v7083_v40 = vadd.f32 %v6995_v9, %v13237_v29 }
0x13a3   : > { %v7092_v41 = vadd.f32 %v8737_v6, %v7083_v40 }
0x13a5   : > { %v7102_v2 = vsel %vm728_vm0, %v7092_v41, 0.0 }
0x13a6   : > { %7103 = vadd.xlane.f32.xlu1 %v7102_v2 }
0x13ac   : > { %v7021_v36 = vpop.f32.mrf.mxu2 }
0x13ad   : > { %v7084_v44 = vadd.f32 %v7021_v36, %v13251_v28 }
0x13af   : > { %v7093_v13 = vadd.f32 %v8737_v6, %v7084_v44 }
0x13b1   : > { %v7105_v56 = vsel %vm728_vm0, %v7093_v13, 0.0 }
0x13b2   : > { %7106 = vadd.xlane.f32.xlu2 %v7105_v56 }
0x13b4   : > { %v7023_v21 = vpop.f32.mrf.mxu2 }
0x13b5   : > { %v7085_v34 = vadd.f32 %v7023_v21, %v13256_v37 }
0x13b6   : > { %v7049_v31 = vpop.f32.mrf.mxu0 }
0x13b7   : > { %v7094_v3 = vadd.f32 %v8737_v6, %v7085_v34  ;;  %v7086_v14 = vadd.f32 %v7049_v31, %v13271_v62 }
0x13b9   : > { %v7095_v50 = vadd.f32 %v8737_v6, %v7086_v14  ;;  %v7108_v10 = vsel %vm728_vm0, %v7094_v3, 0.0 }
0x13ba   : > { %7109 = vadd.xlane.f32.xlu0 %v7108_v10 }
0x13bb   : > { %v7111_v12 = vsel %vm728_vm0, %v7095_v50, 0.0 }
0x13bc   : > { %7112 = vadd.xlane.f32.xlu1 %v7111_v12 }
0x13be   : > { %v7051_v4 = vpop.f32.mrf.mxu0 }
0x13bf   : > { %v7087_v49 = vadd.f32 %v7051_v4, %v13276_v0 }
0x13c1   : > { %v7096_v30 = vadd.f32 %v8737_v6, %v7087_v49 }
0x13c3   : > { %v7114_v61 = vsel %vm728_vm0, %v7096_v30, 0.0 }
0x13c4   : > { %7115 = vadd.xlane.f32.xlu2 %v7114_v61 }
0x1411   : > { %v7101_v52 = vpop.xlane.xlu0 %7100 }
0x1412   : > { %v7123_v43 = vmul.f32 %v7101_v52, %v13918_v54 }
0x1414   : > { %v13394_v32 = vsub.f32 %v7091_v60, %v7123_v43 }
0x1416   : > { %v7139_v59 = vmul.f32 %v13394_v32, %v13394_v32 }
0x1418   : > { %v7147_v51 = vsel %vm728_vm0, %v7139_v59, 0.0  ;;  %v7077_v48 = vpop.f32.mrf.mxu1  ;;  %v8547_v59 = vld [vmem:[#allocation16 + $0x8] sm:$0xff] }
0x1419   : > { %v7104_v17 = vpop.xlane.xlu1 %7103  ;;  %7148 = vadd.xlane.f32.xlu0 %v7147_v51  ;;  %v7088_v5 = vadd.f32 %v7077_v48, %v13291_v25  ;;  %7332 = vmatpush.bf16.msrb.mxu2 %v8547_v59  ;;  %v8546_v48 = vld [vmem:[#allocation16] sm:$0xff] }
0x141a   : > { %v7124_v58 = vmul.f32 %v7104_v17, %v13918_v54 }
0x141b   : > { %v7097_v39 = vadd.f32 %v8737_v6, %v7088_v5 }
0x141c   : > { %v13401_v35 = vsub.f32 %v7092_v41, %v7124_v58 }
0x141d   : > { %v7117_v27 = vsel %vm728_vm0, %v7097_v39, 0.0  ;;  %7333 = vmatpush.bf16.msrb.mxu2 %v8546_v48 }
0x141e   : > { %v7140_v55 = vmul.f32 %v13401_v35, %v13401_v35  ;;  %7118 = vadd.xlane.f32.xlu2 %v7117_v27 }
0x1420   : > { %v7150_v7 = vsel %vm728_vm0, %v7140_v55, 0.0  ;;  %v7079_v19 = vpop.f32.mrf.mxu1 }
0x1421   : > { %7151 = vadd.xlane.f32.xlu1 %v7150_v7  ;;  %v7089_v45 = vadd.f32 %v7079_v19, %v13296_v57 }
0x1423   : > { %v7098_v60 = vadd.f32 %v8737_v6, %v7089_v45 }
0x1425   : > { %v7107_v38 = vpop.xlane.xlu2 %7106  ;;  %v7120_v40 = vsel %vm728_vm0, %v7098_v60, 0.0 }
0x1426   : > { %v7125_v9 = vmul.f32 %v7107_v38, %v13918_v54  ;;  %7121 = vadd.xlane.f32.xlu0 %v7120_v40 }
0x1428   : > { %v13410_v41 = vsub.f32 %v7093_v13, %v7125_v9 }
0x142a   : > { %v7141_v2 = vmul.f32 %v13410_v41, %v13410_v41 }
0x142c   : > { %v7153_v36 = vsel %vm728_vm0, %v7141_v2, 0.0 }
0x142d   : > { %7154 = vadd.xlane.f32.xlu1 %v7153_v36  ;;  %v7110_v44 = vpop.xlane.xlu0 %7109 }
0x142e   : > { %v7126_v56 = vmul.f32 %v7110_v44, %v13918_v54 }
0x142f   : > { %v7113_v21 = vpop.xlane.xlu1 %7112 }
0x1430   : > { %v13416_v34 = vsub.f32 %v7094_v3, %v7126_v56  ;;  %v7127_v6 = vmul.f32 %v7113_v21, %v13918_v54 }
0x1432   : > { %v13419_v31 = vsub.f32 %v7095_v50, %v7127_v6  ;;  %v7142_v13 = vmul.f32 %v13416_v34, %v13416_v34 }
0x1434   : > { %v7156_v14 = vsel %vm728_vm0, %v7142_v13, 0.0  ;;  %v7143_v10 = vmul.f32 %v13419_v31, %v13419_v31 }
0x1435   : > { %7157 = vadd.xlane.f32.xlu2 %v7156_v14 }
0x1436   : > { %v7159_v12 = vsel %vm728_vm0, %v7143_v10, 0.0 }
0x1437   : > { %v7116_v4 = vpop.xlane.xlu2 %7115  ;;  %7160 = vadd.xlane.f32.xlu0 %v7159_v12 }
0x1438   : > { %v7128_v3 = vmul.f32 %v7116_v4, %v13918_v54 }
0x143a   : > { %v13428_v49 = vsub.f32 %v7096_v30, %v7128_v3 }
0x143c   : > { %v7144_v50 = vmul.f32 %v13428_v49, %v13428_v49 }
0x143e   : > { %v7162_v61 = vsel %vm728_vm0, %v7144_v50, 0.0 }
0x143f   : > { %7163 = vadd.xlane.f32.xlu1 %v7162_v61 }
0x148c   : > { %v7149_v52 = vpop.xlane.xlu0 %7148 }
0x148d   : > { %v7171_v43 = vmul.f32 %v7149_v52, %v13918_v54  ;;  %v13448_v52 = vld [vmem:[#allocation17 + $0x2] ss:$0 sm:$0xff] }
0x148f   : > { %v7179_v51 = vadd.f32 1e-05, %v7171_v43 }
0x1491   : > { %9149 = vrsqrt.f32 %v7179_v51  ;;  %v7119_v17 = vpop.xlane.xlu2 %7118  ;;  %vm7193_vm12 = vweird.f32 %v7179_v51 }
0x1492   : > { %v7129_v5 = vmul.f32 %v7119_v17, %v13918_v54 }
0x1494   : > { %v7152_v30 = vpop.xlane.xlu1 %7151  ;;  %v13435_v58 = vsub.f32 %v7097_v39, %v7129_v5 }
0x1495   : > { %v7172_v27 = vmul.f32 %v7152_v30, %v13918_v54 }
0x1496   : > { %v7145_v19 = vmul.f32 %v13435_v58, %v13435_v58 }
0x1497   : > { %v9150_v55 = vpop.eup %9149  ;;  %v7180_v7 = vadd.f32 1e-05, %v7172_v27  ;;  %v13452_v27 = vld [vmem:[#allocation17 + $0x3] ss:$0 sm:$0xff] }
0x1498   : > { %v7188_v45 = vmul.f32 %v9150_v55, %v7179_v51  ;;  %v7165_v38 = vsel %vm728_vm0, %v7145_v19, 0.0  ;;  %vm7194_vm1 = vweird.f32 %v9150_v55 }
0x1499   : > { %9151 = vrsqrt.f32 %v7180_v7  ;;  %7166 = vadd.xlane.f32.xlu2 %v7165_v38  ;;  %v7122_v40 = vpop.xlane.xlu0 %7121  ;;  %vm7195_vm13 = vmor %vm7193_vm12, %vm7194_vm1  ;;  %vm7203_vm15 = vweird.f32 %v7180_v7 }
0x149a   : > { %v7189_v9 = vmul.f32 %v9150_v55, %v7188_v45  ;;  %v7130_v2 = vmul.f32 %v7122_v40, %v13918_v54 }
0x149c   : > { %v7190_v36 = vmul.f32 0.5, %v7189_v9  ;;  %v13442_v44 = vsub.f32 %v7098_v60, %v7130_v2 }
0x149e   : > { %v7191_v39 = vsub.f32 1.5, %v7190_v36  ;;  %v7146_v21 = vmul.f32 %v13442_v44, %v13442_v44 }
0x149f   : > { %v9152_v56 = vpop.eup %9151 }
0x14a0   : > { %v7192_v6 = vmul.f32 %v9150_v55, %v7191_v39  ;;  %v7198_v13 = vmul.f32 %v9152_v56, %v7180_v7  ;;  %v7155_v14 = vpop.xlane.xlu1 %7154  ;;  %v7168_v12 = vsel %vm728_vm0, %v7146_v21, 0.0  ;;  %vm7204_vm14 = vweird.f32 %v9152_v56 }
0x14a1   : > { %v7173_v10 = vmul.f32 %v7155_v14, %v13918_v54  ;;  %7169 = vadd.xlane.f32.xlu0 %v7168_v12  ;;  %vm7205_vm2 = vmor %vm7203_vm15, %vm7204_vm14  ;;  %vm7383_vm14 = vcmask 523264  }
0x14a2   : > { %v7199_v4 = vmul.f32 %v9152_v56, %v7198_v13  ;;  %v7196_v60 = vsel %vm7195_vm13, %v9150_v55, %v7192_v6 }
0x14a3   : > { %v7181_v3 = vadd.f32 1e-05, %v7173_v10  ;;  %v7267_v43 = vmul.f32 %v7196_v60, %v13394_v32 }
0x14a4   : > { %v7200_v50 = vmul.f32 0.5, %v7199_v4 }
0x14a5   : > { %9153 = vrsqrt.f32 %v7181_v3  ;;  %v7276_v55 = vmul.f32 %v13448_v52, %v7267_v43  ;;  %vm7213_vm4 = vweird.f32 %v7181_v3 }
0x14a6   : > { %v7201_v61 = vsub.f32 1.5, %v7200_v50 }
0x14a7   : > { %v13459_v2 = vadd.f32 %v13452_v27, %v7276_v55 }
0x14a8   : > { %v7202_v59 = vmul.f32 %v9152_v56, %v7201_v61  ;;  %v7158_v48 = vpop.xlane.xlu2 %7157 }
0x14a9   : > { %v7174_v17 = vmul.f32 %v7158_v48, %v13918_v54 }
0x14aa   : > { %v7206_v51 = vsel %vm7205_vm2, %v9152_v56, %v7202_v59  ;;  %v7161_v5 = vpop.xlane.xlu0 %7160 }
0x14ab   : > { %v9154_v30 = vpop.eup %9153  ;;  %v7268_v19 = vmul.f32 %v7206_v51, %v13401_v35  ;;  %v7182_v45 = vadd.f32 1e-05, %v7174_v17  ;;  %v7175_v38 = vmul.f32 %v7161_v5, %v13918_v54 }
0x14ac   : > { %v7208_v9 = vmul.f32 %v9154_v30, %v7181_v3  ;;  %vm7214_vm3 = vweird.f32 %v9154_v30 }
0x14ad   : > { %v7277_v32 = vmul.f32 %v13448_v52, %v7268_v19  ;;  %9155 = vrsqrt.f32 %v7182_v45  ;;  %v7183_v7 = vadd.f32 1e-05, %v7175_v38  ;;  %vm7215_vm5 = vmor %vm7213_vm4, %vm7214_vm3  ;;  %vm7223_vm7 = vweird.f32 %v7182_v45 }
0x14ae   : > { %v7209_v40 = vmul.f32 %v9154_v30, %v7208_v9 }
0x14af   : > { %v13462_v36 = vadd.f32 %v13452_v27, %v7277_v32  ;;  %9157 = vrsqrt.f32 %v7183_v7  ;;  %vm7233_vm11 = vweird.f32 %v7183_v7 }
0x14b0   : > { %v7210_v39 = vmul.f32 0.5, %v7209_v40 }
0x14b1   : > { %v7293_v35 = vpack.c.bf16 %v13462_v36, %v13459_v2 }
0x14b2   : > { %v7211_v56 = vsub.f32 1.5, %v7210_v39  ;;  %v7164_v21 = vpop.xlane.xlu1 %7163 }
0x14b3   : > { %v9156_v6 = vpop.eup %9155  ;;  %v7176_v13 = vmul.f32 %v7164_v21, %v13918_v54  ;;  %8500 = vmatmul.msk.bf16.vlgmr.msrb.gmra.mxu2 %vm728_vm0, %v7293_v35 }
0x14b4   : > { %v7212_v14 = vmul.f32 %v9154_v30, %v7211_v56  ;;  %v7218_v10 = vmul.f32 %v9156_v6, %v7182_v45  ;;  %vm7224_vm6 = vweird.f32 %v9156_v6 }
0x14b5   : > { %v9158_v12 = vpop.eup %9157  ;;  %v7184_v4 = vadd.f32 1e-05, %v7176_v13  ;;  %vm7225_vm8 = vmor %vm7223_vm7, %vm7224_vm6 }
0x14b6   : > { %v7219_v60 = vmul.f32 %v9156_v6, %v7218_v10  ;;  %v7228_v50 = vmul.f32 %v9158_v12, %v7183_v7  ;;  %v7216_v61 = vsel %vm7215_vm5, %v9154_v30, %v7212_v14  ;;  %vm7234_vm9 = vweird.f32 %v9158_v12 }
0x14b7   : > { %9159 = vrsqrt.f32 %v7184_v4  ;;  %v7269_v17 = vmul.f32 %v7216_v61, %v13410_v41  ;;  %vm7235_vm1 = vmor %vm7233_vm11, %vm7234_vm9  ;;  %vm7243_vm12 = vweird.f32 %v7184_v4 }
0x14b8   : > { %v7220_v43 = vmul.f32 0.5, %v7219_v60  ;;  %v7229_v59 = vmul.f32 %v9158_v12, %v7228_v50 }
0x14b9   : > { %v7278_v9 = vmul.f32 %v13448_v52, %v7269_v17 }
0x14ba   : > { %v7221_v48 = vsub.f32 1.5, %v7220_v43  ;;  %v7230_v5 = vmul.f32 0.5, %v7229_v59 }
0x14bb   : > { %v13473_v35 = vadd.f32 %v13452_v27, %v7278_v9 }
0x14bc   : > { %v7222_v51 = vmul.f32 %v9156_v6, %v7221_v48  ;;  %v7231_v32 = vsub.f32 1.5, %v7230_v5  ;;  %v8549_v48 = vld [vmem:[#allocation16 + $0x18] sm:$0xff] }
0x14bd   : > { %v9160_v55 = vpop.eup %9159  ;;  %v7400_v5 = vsel %vm7383_vm14, %v8549_v48, 0 }
0x14be   : > { %v7226_v19 = vsel %vm7225_vm8, %v9156_v6, %v7222_v51  ;;  %v7238_v38 = vmul.f32 %v9160_v55, %v7184_v4  ;;  %v7232_v45 = vmul.f32 %v9158_v12, %v7231_v32  ;;  %vm7244_vm10 = vweird.f32 %v9160_v55  ;;  %7408 = vmatpush.bf16.xpose.msra.mxu0 %v7400_v5 }
0x14bf   : > { %v7270_v3 = vmul.f32 %v7226_v19, %v13416_v34  ;;  %vm7245_vm13 = vmor %vm7243_vm12, %vm7244_vm10 }
0x14c0   : > { %v7239_v40 = vmul.f32 %v9160_v55, %v7238_v38  ;;  %v7236_v6 = vsel %vm7235_vm1, %v9158_v12, %v7232_v45 }
0x14c1   : > { %v7279_v30 = vmul.f32 %v13448_v52, %v7270_v3  ;;  %v7271_v10 = vmul.f32 %v7236_v6, %v13419_v31  ;;  %v8548_v3 = vld [vmem:[#allocation16 + $0x10] sm:$0xff] }
0x14c2   : > { %v7240_v39 = vmul.f32 0.5, %v7239_v40  ;;  %v7397_v40 = vsel %vm7383_vm14, %v8548_v3, 0 }
0x14c3   : > { %v13476_v41 = vadd.f32 %v13452_v27, %v7279_v30  ;;  %v7280_v50 = vmul.f32 %v13448_v52, %v7271_v10 }
0x14c4   : > { %v7241_v56 = vsub.f32 1.5, %v7240_v39 }
0x14c5   : > { %v7294_v34 = vpack.c.bf16 %v13476_v41, %v13473_v35  ;;  %v13489_v61 = vadd.f32 %v13452_v27, %v7280_v50 }
0x14c6   : > { %v7242_v21 = vmul.f32 %v9160_v55, %v7241_v56  ;;  %7409 = vmatpush.bf16.xpose.msra.mxu0 %v7397_v40 }
0x14c7   : > { %8501 = vmatmul.msk.bf16.gmra.mxu2 %vm728_vm0, %v7294_v34 }
0x14c8   : > { %v7246_v13 = vsel %vm7245_vm13, %v9160_v55, %v7242_v21 }
0x14c9   : > { %v7272_v14 = vmul.f32 %v7246_v13, %v13428_v49 }
0x14cb   : > { %v7281_v60 = vmul.f32 %v13448_v52, %v7272_v14 }
0x14cd   : > { %v13486_v7 = vadd.f32 %v13452_v27, %v7281_v60 }
0x14cf   : > { %v7295_v4 = vpack.c.bf16 %v13486_v7, %v13489_v61 }
0x14d7   : > { %8502 = vmatmul.msk.bf16.gmra.mxu2 %vm728_vm0, %v7295_v4 }
0x150c   : > { %v7167_v12 = vpop.xlane.xlu2 %7166 }
0x150d   : > { %v7177_v49 = vmul.f32 %v7167_v12, %v13918_v54 }
0x150f   : > { %v7185_v43 = vadd.f32 1e-05, %v7177_v49 }
0x1511   : > { %9161 = vrsqrt.f32 %v7185_v43  ;;  %vm7253_vm2 = vweird.f32 %v7185_v43 }
0x1514   : > { %v7170_v31 = vpop.xlane.xlu0 %7169 }
0x1515   : > { %v7178_v59 = vmul.f32 %v7170_v31, %v13918_v54 }
0x1517   : > { %v9162_v17 = vpop.eup %9161  ;;  %v7186_v51 = vadd.f32 1e-05, %v7178_v59 }
0x1518   : > { %v7248_v55 = vmul.f32 %v9162_v17, %v7185_v43  ;;  %vm7254_vm15 = vweird.f32 %v9162_v17 }
0x1519   : > { %9163 = vrsqrt.f32 %v7186_v51  ;;  %vm7255_vm3 = vmor %vm7253_vm2, %vm7254_vm15  ;;  %vm7263_vm5 = vweird.f32 %v7186_v51 }
0x151a   : > { %v7249_v19 = vmul.f32 %v9162_v17, %v7248_v55 }
0x151c   : > { %v7250_v38 = vmul.f32 0.5, %v7249_v19 }
0x151e   : > { %v7251_v9 = vsub.f32 1.5, %v7250_v38 }
0x151f   : > { %v9164_v32 = vpop.eup %9163 }
0x1520   : > { %v7252_v30 = vmul.f32 %v9162_v17, %v7251_v9  ;;  %v7258_v39 = vmul.f32 %v9164_v32, %v7186_v51  ;;  %vm7264_vm4 = vweird.f32 %v9164_v32 }
0x1521   : > { %vm7265_vm6 = vmor %vm7263_vm5, %vm7264_vm4 }
0x1522   : > { %v7259_v45 = vmul.f32 %v9164_v32, %v7258_v39  ;;  %v7256_v56 = vsel %vm7255_vm3, %v9162_v17, %v7252_v30 }
0x1523   : > { %v7273_v6 = vmul.f32 %v7256_v56, %v13435_v58  ;;  %v6541_v58 = vld [vmem:[#allocation16 + $0x20] sm:$0xf] }
0x1524   : > { %v7260_v34 = vmul.f32 0.5, %v7259_v45  ;;  %v6542_v43 = vunpack.c.l.bf16 %v6541_v58 }
0x1525   : > { %v7282_v60 = vmul.f32 %v13448_v52, %v7273_v6 }
0x1526   : > { %v7261_v21 = vsub.f32 1.5, %v7260_v34  ;;  %v7301_v59 = vperm.slane %v6542_v43, 0 }
0x1527   : > { %v13503_v4 = vadd.f32 %v13452_v27, %v7282_v60 }
0x1528   : > { %v7262_v13 = vmul.f32 %v9164_v32, %v7261_v21 }
0x152a   : > { %v7266_v14 = vsel %vm7265_vm6, %v9164_v32, %v7262_v13 }
0x152b   : > { %v7274_v10 = vmul.f32 %v7266_v14, %v13442_v44 }
0x152d   : > { %v7283_v50 = vmul.f32 %v13448_v52, %v7274_v10  ;;  %v8740_v10 = vld [vmem:[#allocation17 + $0x1] ss:$0 sm:$0xff] }
0x152f   : > { %v13506_v12 = vadd.f32 %v13452_v27, %v7283_v50 }
0x1531   : > { %v7296_v49 = vpack.c.bf16 %v13506_v12, %v13503_v4 }
0x1533   : > { %8503 = vmatmul.msk.bf16.gmra.mxu2 %vm728_vm0, %v7296_v49 }
0x1536   : > { %v7335_v31 = vpop.f32.mrf.mxu2 }
0x1537   : > { %v7336_v44 = vadd.f32 %v7335_v31, %v7301_v59 }
0x1539   : > { %v7355_v51 = vmax.f32 %v7336_v44, 0.0 }
0x153e   : > { %v7337_v48 = vpop.f32.mrf.mxu2 }
0x153f   : > { %v7338_v17 = vadd.f32 %v7337_v48, %v7301_v59 }
0x1541   : > { %v7356_v52 = vmax.f32 %v7338_v17, 0.0 }
0x1543   : > { %v7363_v5 = vpack.c.bf16 %v7356_v52, %v7355_v51 }
0x1545   : > { %8512 = vmatmul.msk.bf16.vlgmr.msra.gmra.mxu0 %vm7383_vm14, %v7363_v5 }
0x154a   : > { %v7340_v55 = vpop.f32.mrf.mxu2 }
0x154b   : > { %v7341_v27 = vadd.f32 %v7340_v55, %v7301_v59 }
0x154d   : > { %v7357_v3 = vmax.f32 %v7341_v27, 0.0 }
0x1552   : > { %v7342_v19 = vpop.f32.mrf.mxu2 }
0x1553   : > { %v7343_v38 = vadd.f32 %v7342_v19, %v7301_v59 }
0x1555   : > { %v7358_v9 = vmax.f32 %v7343_v38, 0.0 }
0x1557   : > { %v7364_v32 = vpack.c.bf16 %v7358_v9, %v7357_v3 }
0x1559   : > { %8513 = vmatmul.msk.bf16.gmra.mxu0 %vm7383_vm14, %v7364_v32 }
0x155a   : > { %v7345_v40 = vpop.f32.mrf.mxu2 }
0x155b   : > { %v7346_v30 = vadd.f32 %v7345_v40, %v7301_v59 }
0x155d   : > { %v7359_v56 = vmax.f32 %v7346_v30, 0.0 }
0x1562   : > { %v7347_v39 = vpop.f32.mrf.mxu2 }
0x1563   : > { %v7348_v45 = vadd.f32 %v7347_v39, %v7301_v59 }
0x1565   : > { %v7360_v34 = vmax.f32 %v7348_v45, 0.0 }
0x1567   : > { %v7365_v21 = vpack.c.bf16 %v7360_v34, %v7359_v56 }
0x1569   : > { %8514 = vmatmul.msk.bf16.gmra.mxu0 %vm7383_vm14, %v7365_v21 }
0x15b6   : > { %v7350_v6 = vpop.f32.mrf.mxu2 }
0x15b7   : > { %v7351_v13 = vadd.f32 %v7350_v6, %v7301_v59 }
0x15b9   : > { %v7361_v50 = vmax.f32 %v7351_v13, 0.0 }
0x15be   : > { %v7352_v14 = vpop.f32.mrf.mxu2 }
0x15bf   : > { %v7353_v60 = vadd.f32 %v7352_v14, %v7301_v59 }
0x15c1   : > { %v7362_v49 = vmax.f32 %v7353_v60, 0.0 }
0x15c2   : > { %v7411_v58 = vpop.f32.mrf.mxu0 }
0x15c3   : > { %v7412_v43 = vadd.f32 %v8740_v10, %v7411_v58  ;;  %v7366_v31 = vpack.c.bf16 %v7362_v49, %v7361_v50 }
0x15c5   : > { %v7431_v44 = vadd.f32 %v7412_v43, %v13459_v2  ;;  %8515 = vmatmul.msk.bf16.gmra.mxu0 %vm7383_vm14, %v7366_v31 }
0x15c7   : > { %v7439_v48 = vsel %vm728_vm0, %v7431_v44, 0.0 }
0x15c8   : > { %7440 = vadd.xlane.f32.xlu1 %v7439_v48 }
0x15ca   : > { %v7413_v17 = vpop.f32.mrf.mxu0 }
0x15cb   : > { %v7414_v51 = vadd.f32 %v8740_v10, %v7413_v17 }
0x15cd   : > { %v7432_v52 = vadd.f32 %v7414_v51, %v13462_v36 }
0x15cf   : > { %v7442_v5 = vsel %vm728_vm0, %v7432_v52, 0.0 }
0x15d0   : > { %7443 = vadd.xlane.f32.xlu2 %v7442_v5 }
0x15d6   : > { %v7416_v59 = vpop.f32.mrf.mxu0 }
0x15d7   : > { %v7417_v55 = vadd.f32 %v8740_v10, %v7416_v59 }
0x15d9   : > { %v7433_v27 = vadd.f32 %v7417_v55, %v13473_v35 }
0x15db   : > { %v7445_v19 = vsel %vm728_vm0, %v7433_v27, 0.0 }
0x15dc   : > { %7446 = vadd.xlane.f32.xlu0 %v7445_v19 }
0x15de   : > { %v7418_v2 = vpop.f32.mrf.mxu0 }
0x15df   : > { %v7419_v38 = vadd.f32 %v8740_v10, %v7418_v2 }
0x15e1   : > { %v7434_v3 = vadd.f32 %v7419_v38, %v13476_v41 }
0x15e3   : > { %v7448_v9 = vsel %vm728_vm0, %v7434_v3, 0.0 }
0x15e4   : > { %7449 = vadd.xlane.f32.xlu1 %v7448_v9 }
0x15e6   : > { %v7421_v32 = vpop.f32.mrf.mxu0 }
0x15e7   : > { %v7422_v40 = vadd.f32 %v8740_v10, %v7421_v32 }
0x15e9   : > { %v7435_v36 = vadd.f32 %v7422_v40, %v13489_v61 }
0x15eb   : > { %v7451_v30 = vsel %vm728_vm0, %v7435_v36, 0.0 }
0x15ec   : > { %7452 = vadd.xlane.f32.xlu2 %v7451_v30 }
0x15ee   : > { %v7423_v39 = vpop.f32.mrf.mxu0 }
0x15ef   : > { %v7424_v45 = vadd.f32 %v8740_v10, %v7423_v39 }
0x15f1   : > { %v7436_v35 = vadd.f32 %v7424_v45, %v13486_v7 }
0x15f3   : > { %v7454_v56 = vsel %vm728_vm0, %v7436_v35, 0.0 }
0x15f4   : > { %7455 = vadd.xlane.f32.xlu0 %v7454_v56 }
0x163b   : > { %v7441_v34 = vpop.xlane.xlu1 %7440 }
0x163c   : > { %v7463_v41 = vmul.f32 %v7441_v34, %v13918_v54 }
0x163e   : > { %v13528_v21 = vsub.f32 %v7431_v44, %v7463_v41 }
0x1640   : > { %v7479_v6 = vmul.f32 %v13528_v21, %v13528_v21 }
0x1642   : > { %v7487_v61 = vsel %vm728_vm0, %v7479_v6, 0.0  ;;  %v7426_v13 = vpop.f32.mrf.mxu0 }
0x1643   : > { %v7444_v14 = vpop.xlane.xlu2 %7443  ;;  %7488 = vadd.xlane.f32.xlu0 %v7487_v61  ;;  %v7427_v60 = vadd.f32 %v8740_v10, %v7426_v13 }
0x1644   : > { %v7464_v50 = vmul.f32 %v7444_v14, %v13918_v54 }
0x1645   : > { %v7437_v7 = vadd.f32 %v7427_v60, %v13503_v4 }
0x1646   : > { %v13535_v49 = vsub.f32 %v7432_v52, %v7464_v50 }
0x1647   : > { %v7457_v58 = vsel %vm728_vm0, %v7437_v7, 0.0 }
0x1648   : > { %7458 = vadd.xlane.f32.xlu1 %v7457_v58  ;;  %v7480_v44 = vmul.f32 %v13535_v49, %v13535_v49 }
0x164a   : > { %v7428_v43 = vpop.f32.mrf.mxu0  ;;  %v7490_v5 = vsel %vm728_vm0, %v7480_v44, 0.0 }
0x164b   : > { %v7429_v31 = vadd.f32 %v8740_v10, %v7428_v43 }
0x164d   : > { %v7438_v48 = vadd.f32 %v7429_v31, %v13506_v12 }
0x164f   : > { %v7447_v17 = vpop.xlane.xlu0 %7446  ;;  %v7460_v51 = vsel %vm728_vm0, %v7438_v48, 0.0 }
0x1650   : > { %v7465_v59 = vmul.f32 %v7447_v17, %v13918_v54  ;;  %7461 = vadd.xlane.f32.xlu2 %v7460_v51  ;;  %7491 = vadd.xlane.f32.xlu1 %v7490_v5 }
0x1652   : > { %v13544_v4 = vsub.f32 %v7433_v27, %v7465_v59 }
0x1654   : > { %v7481_v52 = vmul.f32 %v13544_v4, %v13544_v4 }
0x1656   : > { %v7493_v10 = vsel %vm728_vm0, %v7481_v52, 0.0 }
0x1657   : > { %v7450_v55 = vpop.xlane.xlu1 %7449 }
0x1658   : > { %v7466_v19 = vmul.f32 %v7450_v55, %v13918_v54  ;;  %7494 = vadd.xlane.f32.xlu2 %v7493_v10 }
0x165a   : > { %v13550_v12 = vsub.f32 %v7434_v3, %v7466_v19 }
0x165c   : > { %v7482_v2 = vmul.f32 %v13550_v12, %v13550_v12 }
0x165e   : > { %v7496_v38 = vsel %vm728_vm0, %v7482_v2, 0.0  ;;  %v13581_v2 = vld [vmem:[#allocation17 + $0x4] ss:$0 sm:$0xff] }
0x165f   : > { %7497 = vadd.xlane.f32.xlu0 %v7496_v38  ;;  %v7453_v9 = vpop.xlane.xlu2 %7452 }
0x1660   : > { %v7467_v27 = vmul.f32 %v7453_v9, %v13918_v54 }
0x1662   : > { %v13556_v32 = vsub.f32 %v7435_v36, %v7467_v27 }
0x1664   : > { %v7483_v40 = vmul.f32 %v13556_v32, %v13556_v32 }
0x1666   : > { %v7499_v30 = vsel %vm728_vm0, %v7483_v40, 0.0  ;;  %v13585_v40 = vld [vmem:[#allocation17 + $0x5] ss:$0 sm:$0xff] }
0x1667   : > { %7500 = vadd.xlane.f32.xlu1 %v7499_v30  ;;  %v7456_v39 = vpop.xlane.xlu0 %7455  ;;  %v7633_v30 = vadd.f32 %v11535_v16, %v13229_v18 }
0x1668   : > { %v7468_v3 = vmul.f32 %v7456_v39, %v13918_v54 }
0x166a   : > { %v13562_v45 = vsub.f32 %v7436_v35, %v7468_v3 }
0x166c   : > { %v7484_v56 = vmul.f32 %v13562_v45, %v13562_v45 }
0x166e   : > { %v7502_v34 = vsel %vm728_vm0, %v7484_v56, 0.0 }
0x166f   : > { %7503 = vadd.xlane.f32.xlu2 %v7502_v34 }
0x16b6   : > { %v7489_v41 = vpop.xlane.xlu0 %7488 }
0x16b7   : > { %v7511_v36 = vmul.f32 %v7489_v41, %v13918_v54 }
0x16b9   : > { %v7519_v6 = vadd.f32 1e-05, %v7511_v36  ;;  %v7641_v36 = vadd.f32 %v7633_v30, %v13116_v23 }
0x16bb   : > { %9165 = vrsqrt.f32 %v7519_v6  ;;  %v7459_v61 = vpop.xlane.xlu1 %7458  ;;  %vm7533_vm8 = vweird.f32 %v7519_v6 }
0x16bc   : > { %v7469_v13 = vmul.f32 %v7459_v61, %v13918_v54 }
0x16be   : > { %v13569_v14 = vsub.f32 %v7437_v7, %v7469_v13 }
0x16c0   : > { %v7485_v35 = vmul.f32 %v13569_v14, %v13569_v14 }
0x16c1   : > { %v9166_v60 = vpop.eup %9165 }
0x16c2   : > { %v7528_v50 = vmul.f32 %v9166_v60, %v7519_v6  ;;  %v7505_v58 = vsel %vm728_vm0, %v7485_v35, 0.0  ;;  %vm7534_vm7 = vweird.f32 %v9166_v60 }
0x16c3   : > { %v7462_v31 = vpop.xlane.xlu2 %7461  ;;  %7506 = vadd.xlane.f32.xlu0 %v7505_v58  ;;  %v7492_v44 = vpop.xlane.xlu1 %7491  ;;  %vm7535_vm9 = vmor %vm7533_vm8, %vm7534_vm7 }
0x16c4   : > { %v7529_v43 = vmul.f32 %v9166_v60, %v7528_v50  ;;  %v7470_v17 = vmul.f32 %v7462_v31, %v13918_v54  ;;  %v7512_v51 = vmul.f32 %v7492_v44, %v13918_v54 }
0x16c6   : > { %v7530_v5 = vmul.f32 0.5, %v7529_v43  ;;  %v13576_v59 = vsub.f32 %v7438_v48, %v7470_v17  ;;  %v7520_v7 = vadd.f32 1e-05, %v7512_v51 }
0x16c8   : > { %v7531_v52 = vsub.f32 1.5, %v7530_v5  ;;  %9167 = vrsqrt.f32 %v7520_v7  ;;  %v7486_v10 = vmul.f32 %v13576_v59, %v13576_v59  ;;  %vm7543_vm11 = vweird.f32 %v7520_v7 }
0x16c9   : > { %v7634_v5 = vadd.f32 %v11493_v20, %v13237_v29 }
0x16ca   : > { %v7532_v55 = vmul.f32 %v9166_v60, %v7531_v52  ;;  %v7508_v19 = vsel %vm728_vm0, %v7486_v10, 0.0 }
0x16cb   : > { %7509 = vadd.xlane.f32.xlu1 %v7508_v19  ;;  %v7495_v9 = vpop.xlane.xlu2 %7494 }
0x16cc   : > { %v7536_v38 = vsel %vm7535_vm9, %v9166_v60, %v7532_v55  ;;  %v7513_v48 = vmul.f32 %v7495_v9, %v13918_v54 }
0x16cd   : > { %v7607_v27 = vmul.f32 %v7536_v38, %v13528_v21 }
0x16ce   : > { %v9168_v39 = vpop.eup %9167  ;;  %v7521_v3 = vadd.f32 1e-05, %v7513_v48  ;;  %v7642_v48 = vadd.f32 %v7634_v5, %v13124_v22 }
0x16cf   : > { %v7616_v56 = vmul.f32 %v13581_v2, %v7607_v27  ;;  %v7538_v34 = vmul.f32 %v9168_v39, %v7520_v7  ;;  %vm7544_vm10 = vweird.f32 %v9168_v39 }
0x16d0   : > { %9169 = vrsqrt.f32 %v7521_v3  ;;  %vm7545_vm1 = vmor %vm7543_vm11, %vm7544_vm10  ;;  %vm7553_vm13 = vweird.f32 %v7521_v3 }
0x16d1   : > { %v7625_v41 = vadd.f32 %v13585_v40, %v7616_v56  ;;  %v7539_v6 = vmul.f32 %v9168_v39, %v7538_v34 }
0x16d2   : > { %v7498_v61 = vpop.xlane.xlu0 %7497 }
0x16d3   : > { %v7514_v13 = vmul.f32 %v7498_v61, %v13918_v54  ;;  %v13593_v21 = vadd.f32 %v7641_v36, %v7625_v41  ;;  %v7540_v60 = vmul.f32 0.5, %v7539_v6  ;;  %v7635_v36 = vadd.f32 %v11692_v15, %v13251_v28 }
0x16d4   : > { %v7636_v28 = vadd.f32 %v11683_v33, %v13256_v37 }
0x16d5   : > { %v7522_v35 = vadd.f32 1e-05, %v7514_v13  ;;  %v7657_v16 = vsel %vm728_vm0, %v13593_v21, 0.0  ;;  %v7541_v18 = vsub.f32 1.5, %v7540_v60 }
0x16d6   : > { %7658 = vadd.xlane.f32.xlu2 %v7657_v16  ;;  %v9170_v50 = vpop.eup %9169 }
0x16d7   : > { %9171 = vrsqrt.f32 %v7522_v35  ;;  %v7542_v58 = vmul.f32 %v9168_v39, %v7541_v18  ;;  %v7548_v43 = vmul.f32 %v9170_v50, %v7521_v3  ;;  %vm7554_vm12 = vweird.f32 %v9170_v50 }
0x16d8   : > { %vm7555_vm14 = vmor %vm7553_vm13, %vm7554_vm12  ;;  %vm7563_vm2 = vweird.f32 %v7522_v35  ;;  %v7643_v18 = vadd.f32 %v7635_v36, %v13130_v24 }
0x16d9   : > { %v7546_v23 = vsel %vm7545_vm1, %v9168_v39, %v7542_v58  ;;  %v7549_v31 = vmul.f32 %v9170_v50, %v7548_v43 }
0x16da   : > { %v7501_v44 = vpop.xlane.xlu1 %7500  ;;  %v7608_v51 = vmul.f32 %v7546_v23, %v13535_v49 }
0x16db   : > { %v7515_v17 = vmul.f32 %v7501_v44, %v13918_v54  ;;  %v7550_v52 = vmul.f32 0.5, %v7549_v31 }
0x16dc   : > { %v7617_v19 = vmul.f32 %v13581_v2, %v7608_v51 }
0x16dd   : > { %v9172_v10 = vpop.eup %9171  ;;  %v7523_v55 = vadd.f32 1e-05, %v7515_v17  ;;  %v7551_v38 = vsub.f32 1.5, %v7550_v52  ;;  %v7644_v17 = vadd.f32 %v7636_v28, %v13136_v47 }
0x16de   : > { %v7558_v7 = vmul.f32 %v9172_v10, %v7522_v35  ;;  %v7626_v9 = vadd.f32 %v13585_v40, %v7617_v19  ;;  %vm7564_vm15 = vweird.f32 %v9172_v10  ;;  %v7637_v19 = vadd.f32 %v13915_v26, %v13271_v62 }
0x16df   : > { %9173 = vrsqrt.f32 %v7523_v55  ;;  %v7552_v27 = vmul.f32 %v9170_v50, %v7551_v38  ;;  %vm7565_vm3 = vmor %vm7563_vm2, %vm7564_vm15  ;;  %vm7573_vm5 = vweird.f32 %v7523_v55  ;;  %v7638_v62 = vadd.f32 %v13917_v53, %v13276_v0 }
0x16e0   : > { %v7559_v30 = vmul.f32 %v9172_v10, %v7558_v7  ;;  %v13604_v49 = vadd.f32 %v7642_v48, %v7626_v9  ;;  %v7645_v9 = vadd.f32 %v7637_v19, %v13142_v11 }
0x16e1   : > { %v7556_v20 = vsel %vm7555_vm14, %v9170_v50, %v7552_v27  ;;  %v7646_v11 = vadd.f32 %v7638_v62, %v13148_v1 }
0x16e2   : > { %v7560_v29 = vmul.f32 0.5, %v7559_v30  ;;  %v7504_v39 = vpop.xlane.xlu2 %7503  ;;  %v7660_v56 = vsel %vm728_vm0, %v13604_v49, 0.0  ;;  %v7609_v41 = vmul.f32 %v7556_v20, %v13544_v4 }
0x16e3   : > { %v7516_v34 = vmul.f32 %v7504_v39, %v13918_v54  ;;  %7661 = vadd.xlane.f32.xlu0 %v7660_v56 }
0x16e4   : > { %v7561_v22 = vsub.f32 1.5, %v7560_v29  ;;  %v7618_v61 = vmul.f32 %v13581_v2, %v7609_v41 }
0x16e5   : > { %v9174_v3 = vpop.eup %9173  ;;  %v7524_v6 = vadd.f32 1e-05, %v7516_v34 }
0x16e6   : > { %v7562_v13 = vmul.f32 %v9172_v10, %v7561_v22  ;;  %v7568_v60 = vmul.f32 %v9174_v3, %v7523_v55  ;;  %v7627_v16 = vadd.f32 %v13585_v40, %v7618_v61  ;;  %vm7574_vm4 = vweird.f32 %v9174_v3 }
0x16e7   : > { %9175 = vrsqrt.f32 %v7524_v6  ;;  %vm7575_vm6 = vmor %vm7573_vm5, %vm7574_vm4  ;;  %vm7583_vm8 = vweird.f32 %v7524_v6 }
0x16e8   : > { %v7566_v4 = vsel %vm7565_vm3, %v9172_v10, %v7562_v13  ;;  %v7569_v50 = vmul.f32 %v9174_v3, %v7568_v60  ;;  %v13615_v58 = vadd.f32 %v7643_v18, %v7627_v16 }
0x16e9   : > { %v7610_v15 = vmul.f32 %v7566_v4, %v13550_v12 }
0x16ea   : > { %v7570_v43 = vmul.f32 0.5, %v7569_v50  ;;  %v7663_v35 = vsel %vm728_vm0, %v13615_v58, 0.0 }
0x16eb   : > { %v7619_v23 = vmul.f32 %v13581_v2, %v7610_v15  ;;  %7664 = vadd.xlane.f32.xlu1 %v7663_v35 }
0x16ec   : > { %v7571_v31 = vsub.f32 1.5, %v7570_v43 }
0x16ed   : > { %v9176_v44 = vpop.eup %9175  ;;  %v7628_v24 = vadd.f32 %v13585_v40, %v7619_v23  ;;  %v7639_v23 = vadd.f32 %v13920_v8, %v13291_v25  ;;  %v7640_v25 = vadd.f32 %v13922_v46, %v13296_v57 }
0x16ee   : > { %v7572_v51 = vmul.f32 %v9174_v3, %v7571_v31  ;;  %v7578_v12 = vmul.f32 %v9176_v44, %v7524_v6  ;;  %vm7584_vm7 = vweird.f32 %v9176_v44 }
0x16ef   : > { %v13625_v5 = vadd.f32 %v7644_v17, %v7628_v24  ;;  %vm7585_vm9 = vmor %vm7583_vm8, %vm7584_vm7 }
0x16f0   : > { %v7576_v33 = vsel %vm7575_vm6, %v9174_v3, %v7572_v51  ;;  %v7579_v37 = vmul.f32 %v9176_v44, %v7578_v12  ;;  %v7647_v51 = vadd.f32 %v7639_v23, %v13163_v63 }
0x16f1   : > { %v7666_v52 = vsel %vm728_vm0, %v13625_v5, 0.0  ;;  %v7611_v10 = vmul.f32 %v7576_v33, %v13556_v32 }
0x16f2   : > { %v7580_v38 = vmul.f32 0.5, %v7579_v37  ;;  %7667 = vadd.xlane.f32.xlu2 %v7666_v52 }
0x16f3   : > { %v7620_v47 = vmul.f32 %v13581_v2, %v7611_v10 }
0x16f4   : > { %v7581_v7 = vsub.f32 1.5, %v7580_v38 }
0x16f5   : > { %v7629_v55 = vadd.f32 %v13585_v40, %v7620_v47  ;;  %v7648_v47 = vadd.f32 %v7640_v25, %v13175_v42 }
0x16f6   : > { %v7582_v48 = vmul.f32 %v9176_v44, %v7581_v7 }
0x16f7   : > { %v13635_v27 = vadd.f32 %v7645_v9, %v7629_v55 }
0x16f8   : > { %v7586_v30 = vsel %vm7585_vm9, %v9176_v44, %v7582_v48 }
0x16f9   : > { %v7669_v32 = vsel %vm728_vm0, %v13635_v27, 0.0  ;;  %v7612_v26 = vmul.f32 %v7586_v30, %v13562_v45 }
0x16fa   : > { %7670 = vadd.xlane.f32.xlu0 %v7669_v32 }
0x16fb   : > { %v7621_v20 = vmul.f32 %v13581_v2, %v7612_v26 }
0x16fd   : > { %v7630_v29 = vadd.f32 %v13585_v40, %v7621_v20 }
0x16ff   : > { %v13645_v39 = vadd.f32 %v7646_v11, %v7630_v29 }
0x1701   : > { %v7672_v56 = vsel %vm728_vm0, %v13645_v39, 0.0 }
0x1702   : > { %7673 = vadd.xlane.f32.xlu1 %v7672_v56 }
0x1736   : > { %v7507_v34 = vpop.xlane.xlu0 %7506 }
0x1737   : > { %v7517_v41 = vmul.f32 %v7507_v34, %v13918_v54 }
0x1739   : > { %v7525_v45 = vadd.f32 1e-05, %v7517_v41 }
0x173b   : > { %9177 = vrsqrt.f32 %v7525_v45  ;;  %vm7593_vm11 = vweird.f32 %v7525_v45 }
0x173e   : > { %v7510_v36 = vpop.xlane.xlu1 %7509 }
0x173f   : > { %v7518_v53 = vmul.f32 %v7510_v36, %v13918_v54 }
0x1741   : > { %v9178_v0 = vpop.eup %9177  ;;  %v7526_v22 = vadd.f32 1e-05, %v7518_v53 }
0x1742   : > { %v7588_v3 = vmul.f32 %v9178_v0, %v7525_v45  ;;  %vm7594_vm10 = vweird.f32 %v9178_v0 }
0x1743   : > { %9179 = vrsqrt.f32 %v7526_v22  ;;  %vm7595_vm1 = vmor %vm7593_vm11, %vm7594_vm10  ;;  %vm7603_vm13 = vweird.f32 %v7526_v22 }
0x1744   : > { %v7589_v6 = vmul.f32 %v9178_v0, %v7588_v3 }
0x1746   : > { %v7590_v1 = vmul.f32 0.5, %v7589_v6 }
0x1748   : > { %v7591_v61 = vsub.f32 1.5, %v7590_v1 }
0x1749   : > { %v7659_v13 = vpop.xlane.xlu2 %7658  ;;  %v9180_v60 = vpop.eup %9179 }
0x174a   : > { %v7681_v16 = vmul.f32 %v7659_v13, %v13918_v54  ;;  %v7592_v18 = vmul.f32 %v9178_v0, %v7591_v61  ;;  %v7598_v4 = vmul.f32 %v9180_v60, %v7526_v22  ;;  %vm7604_vm12 = vweird.f32 %v9180_v60 }
0x174b   : > { %vm7605_vm14 = vmor %vm7603_vm13, %vm7604_vm12 }
0x174c   : > { %v13653_v50 = vsub.f32 %v13593_v21, %v7681_v16  ;;  %v7596_v15 = vsel %vm7595_vm1, %v9178_v0, %v7592_v18  ;;  %v7599_v28 = vmul.f32 %v9180_v60, %v7598_v4 }
0x174d   : > { %v7613_v35 = vmul.f32 %v7596_v15, %v13569_v14 }
0x174e   : > { %v7697_v43 = vmul.f32 %v13653_v50, %v13653_v50  ;;  %v7600_v31 = vmul.f32 0.5, %v7599_v28 }
0x174f   : > { %v7622_v24 = vmul.f32 %v13581_v2, %v7613_v35 }
0x1750   : > { %v7705_v44 = vsel %vm728_vm0, %v7697_v43, 0.0  ;;  %v7601_v17 = vsub.f32 1.5, %v7600_v31 }
0x1751   : > { %7706 = vadd.xlane.f32.xlu1 %v7705_v44  ;;  %v7631_v21 = vadd.f32 %v13585_v40, %v7622_v24  ;;  %v13723_v44 = vld [vmem:[%s13834_s10 + $0x4] ss:$0 sm:$0xff] }
0x1752   : > { %v7602_v12 = vmul.f32 %v9180_v60, %v7601_v17 }
0x1753   : > { %v7655_v33 = vadd.f32 %v7647_v51, %v7631_v21  ;;  %v13729_v51 = vld [vmem:[%s13834_s10 + $0x5] ss:$0 sm:$0xff] }
0x1754   : > { %v7606_v14 = vsel %vm7605_vm14, %v9180_v60, %v7602_v12 }
0x1755   : > { %v7675_v37 = vsel %vm728_vm0, %v7655_v33, 0.0  ;;  %v7614_v8 = vmul.f32 %v7606_v14, %v13576_v59 }
0x1756   : > { %7676 = vadd.xlane.f32.xlu2 %v7675_v37  ;;  %v7662_v52 = vpop.xlane.xlu0 %7661 }
0x1757   : > { %v7682_v10 = vmul.f32 %v7662_v52, %v13918_v54  ;;  %v7623_v19 = vmul.f32 %v13581_v2, %v7614_v8 }
0x1759   : > { %v13671_v63 = vsub.f32 %v13604_v49, %v7682_v10  ;;  %v7632_v38 = vadd.f32 %v13585_v40, %v7623_v19 }
0x175b   : > { %v7656_v7 = vadd.f32 %v7648_v47, %v7632_v38  ;;  %v7698_v59 = vmul.f32 %v13671_v63, %v13671_v63 }
0x175d   : > { %v7678_v55 = vsel %vm728_vm0, %v7656_v7, 0.0  ;;  %v7708_v46 = vsel %vm728_vm0, %v7698_v59, 0.0 }
0x175e   : > { %7679 = vadd.xlane.f32.xlu0 %v7678_v55  ;;  %v7665_v57 = vpop.xlane.xlu1 %7664  ;;  %7709 = vadd.xlane.f32.xlu2 %v7708_v46 }
0x175f   : > { %v7683_v2 = vmul.f32 %v7665_v57, %v13918_v54 }
0x1761   : > { %v13681_v49 = vsub.f32 %v13615_v58, %v7683_v2 }
0x1763   : > { %v7699_v40 = vmul.f32 %v13681_v49, %v13681_v49 }
0x1765   : > { %v7668_v42 = vpop.xlane.xlu2 %7667  ;;  %v7711_v9 = vsel %vm728_vm0, %v7699_v40, 0.0 }
0x1766   : > { %v7684_v48 = vmul.f32 %v7668_v42, %v13918_v54  ;;  %7712 = vadd.xlane.f32.xlu0 %v7711_v9 }
0x1768   : > { %v13688_v30 = vsub.f32 %v13625_v5, %v7684_v48 }
0x176a   : > { %v7700_v32 = vmul.f32 %v13688_v30, %v13688_v30 }
0x176c   : > { %v7714_v26 = vsel %vm728_vm0, %v7700_v32, 0.0 }
0x176d   : > { %7715 = vadd.xlane.f32.xlu1 %v7714_v26  ;;  %v7671_v58 = vpop.xlane.xlu0 %7670 }
0x176e   : > { %v7685_v62 = vmul.f32 %v7671_v58, %v13918_v54 }
0x1770   : > { %v13695_v20 = vsub.f32 %v13635_v27, %v7685_v62 }
0x1772   : > { %v7701_v29 = vmul.f32 %v13695_v20, %v13695_v20 }
0x1774   : > { %v7717_v11 = vsel %vm728_vm0, %v7701_v29, 0.0 }
0x1775   : > { %v7674_v56 = vpop.xlane.xlu1 %7673  ;;  %7718 = vadd.xlane.f32.xlu2 %v7717_v11 }
0x1776   : > { %v7686_v5 = vmul.f32 %v7674_v56, %v13918_v54 }
0x1778   : > { %v13702_v34 = vsub.f32 %v13645_v39, %v7686_v5 }
0x177a   : > { %v7702_v41 = vmul.f32 %v13702_v34, %v13702_v34 }
0x177c   : > { %v7720_v45 = vsel %vm728_vm0, %v7702_v41, 0.0 }
0x177d   : > { %7721 = vadd.xlane.f32.xlu0 %v7720_v45 }
0x17c4   : > { %v7707_v27 = vpop.xlane.xlu1 %7706 }
0x17c5   : > { %v7729_v36 = vmul.f32 %v7707_v27, %v13918_v54 }
0x17c7   : > { %v7737_v53 = vadd.f32 1e-05, %v7729_v36 }
0x17c9   : > { %9181 = vrsqrt.f32 %v7737_v53  ;;  %v7677_v0 = vpop.xlane.xlu2 %7676  ;;  %vm7751_vm2 = vweird.f32 %v7737_v53 }
0x17ca   : > { %v7687_v22 = vmul.f32 %v7677_v0, %v13918_v54 }
0x17cc   : > { %v13709_v3 = vsub.f32 %v7655_v33, %v7687_v22 }
0x17ce   : > { %v7703_v39 = vmul.f32 %v13709_v3, %v13709_v3 }
0x17cf   : > { %v9182_v6 = vpop.eup %9181 }
0x17d0   : > { %v7746_v1 = vmul.f32 %v9182_v6, %v7737_v53  ;;  %v7723_v61 = vsel %vm728_vm0, %v7703_v39, 0.0  ;;  %vm7752_vm15 = vweird.f32 %v9182_v6 }
0x17d1   : > { %7724 = vadd.xlane.f32.xlu1 %v7723_v61  ;;  %v7710_v60 = vpop.xlane.xlu2 %7709  ;;  %v7680_v16 = vpop.xlane.xlu0 %7679  ;;  %vm7753_vm3 = vmor %vm7751_vm2, %vm7752_vm15 }
0x17d2   : > { %v7747_v13 = vmul.f32 %v9182_v6, %v7746_v1  ;;  %v7730_v18 = vmul.f32 %v7710_v60, %v13918_v54  ;;  %v7688_v4 = vmul.f32 %v7680_v16, %v13918_v54 }
0x17d4   : > { %v7748_v15 = vmul.f32 0.5, %v7747_v13  ;;  %v7738_v28 = vadd.f32 1e-05, %v7730_v18  ;;  %v13716_v43 = vsub.f32 %v7656_v7, %v7688_v4 }
0x17d6   : > { %v7749_v35 = vsub.f32 1.5, %v7748_v15  ;;  %9183 = vrsqrt.f32 %v7738_v28  ;;  %v7704_v23 = vmul.f32 %v13716_v43, %v13716_v43  ;;  %vm7761_vm5 = vweird.f32 %v7738_v28 }
0x17d8   : > { %v7750_v31 = vmul.f32 %v9182_v6, %v7749_v35  ;;  %v7726_v24 = vsel %vm728_vm0, %v7704_v23, 0.0 }
0x17d9   : > { %7727 = vadd.xlane.f32.xlu2 %v7726_v24  ;;  %v7713_v21 = vpop.xlane.xlu0 %7712 }
0x17da   : > { %v7754_v17 = vsel %vm7753_vm3, %v9182_v6, %v7750_v31  ;;  %v7731_v33 = vmul.f32 %v7713_v21, %v13918_v54 }
0x17db   : > { %v7825_v12 = vmul.f32 %v7754_v17, %v13653_v50 }
0x17dc   : > { %v9184_v14 = vpop.eup %9183  ;;  %v7739_v8 = vadd.f32 1e-05, %v7731_v33 }
0x17dd   : > { %v7834_v37 = vmul.f32 %v13723_v44, %v7825_v12  ;;  %v7756_v25 = vmul.f32 %v9184_v14, %v7738_v28  ;;  %vm7762_vm4 = vweird.f32 %v9184_v14 }
0x17de   : > { %9185 = vrsqrt.f32 %v7739_v8  ;;  %vm7763_vm6 = vmor %vm7761_vm5, %vm7762_vm4  ;;  %vm7771_vm8 = vweird.f32 %v7739_v8 }
0x17df   : > { %v7843_v52 = vadd.f32 %v13729_v51, %v7834_v37  ;;  %v7757_v10 = vmul.f32 %v9184_v14, %v7756_v25 }
0x17e0   : > { %v7716_v19 = vpop.xlane.xlu1 %7715 }
0x17e1   : > { %v8516_v38 = vmul.f32 -1.442695, %v7843_v52  ;;  %v7732_v47 = vmul.f32 %v7716_v19, %v13918_v54  ;;  %v7758_v7 = vmul.f32 0.5, %v7757_v10 }
0x17e3   : > { %9187 = vpow2.f32 %v8516_v38  ;;  %v7740_v59 = vadd.f32 1e-05, %v7732_v47  ;;  %v7759_v55 = vsub.f32 1.5, %v7758_v7 }
0x17e4   : > { %v9186_v50 = vpop.eup %9185 }
0x17e5   : > { %9189 = vrsqrt.f32 %v7740_v59  ;;  %v7760_v46 = vmul.f32 %v9184_v14, %v7759_v55  ;;  %v7766_v57 = vmul.f32 %v9186_v50, %v7739_v8  ;;  %vm7772_vm7 = vweird.f32 %v9186_v50 }
0x17e6   : > { %vm7773_vm9 = vmor %vm7771_vm8, %vm7772_vm7  ;;  %vm7781_vm11 = vweird.f32 %v7740_v59 }
0x17e7   : > { %v7764_v2 = vsel %vm7763_vm6, %v9184_v14, %v7760_v46  ;;  %v7767_v40 = vmul.f32 %v9186_v50, %v7766_v57 }
0x17e8   : > { %v7719_v42 = vpop.xlane.xlu2 %7718  ;;  %v7826_v48 = vmul.f32 %v7764_v2, %v13671_v63 }
0x17e9   : > { %v9188_v9 = vpop.eup %9187  ;;  %v7733_v32 = vmul.f32 %v7719_v42, %v13918_v54  ;;  %v7768_v58 = vmul.f32 0.5, %v7767_v40 }
0x17ea   : > { %v7875_v26 = vadd.f32 1.0, %v9188_v9  ;;  %v7835_v29 = vmul.f32 %v13723_v44, %v7826_v48 }
0x17eb   : > { %v9190_v62 = vpop.eup %9189  ;;  %v13739_v11 = vadd.f32 1e-05, %v7733_v32  ;;  %v7769_v5 = vsub.f32 1.5, %v7768_v58 }
0x17ec   : > { %9191 = vrcp.f32 %v7875_v26  ;;  %v7844_v56 = vadd.f32 %v13729_v51, %v7835_v29  ;;  %v7776_v41 = vmul.f32 %v9190_v62, %v7740_v59  ;;  %vm7782_vm10 = vweird.f32 %v9190_v62 }
0x17ed   : > { %9193 = vrsqrt.f32 %v13739_v11  ;;  %v7770_v27 = vmul.f32 %v9186_v50, %v7769_v5  ;;  %v7892_v28 = vand.u32 2147483647, %v7875_v26  ;;  %v7894_v35 = vand.u32 2147483648, %v7875_v26  ;;  %vm7783_vm1 = vmor %vm7781_vm11, %vm7782_vm10 }
0x17ee   : > { %v8517_v45 = vmul.f32 -1.442695, %v7844_v56  ;;  %v7777_v63 = vmul.f32 %v9190_v62, %v7776_v41  ;;  %vm7888_vm13 = vweird.f32 %v7875_v26  ;;  %vm7791_vm3 = vweird.f32 %v13739_v11 }
0x17ef   : > { %v7774_v53 = vsel %vm7773_vm9, %v9186_v50, %v7770_v27  ;;  %vm7893_vm15 = vcmp.eq.f32.partialorder %v7892_v28, 8.507059e+37  ;;  %v7895_v8 = vor.u32 1.1754944e-38, %v7894_v35 }
0x17f0   : > { %v7722_v36 = vpop.xlane.xlu0 %7721  ;;  %9195 = vpow2.f32 %v8517_v45  ;;  %v7778_v0 = vmul.f32 0.5, %v7777_v63  ;;  %v7827_v39 = vmul.f32 %v7774_v53, %v13681_v49 }
0x17f1   : > { %v7734_v22 = vmul.f32 %v7722_v36, %v13918_v54 }
0x17f2   : > { %v9192_v6 = vpop.eup %9191  ;;  %v7779_v61 = vsub.f32 1.5, %v7778_v0  ;;  %v7836_v16 = vmul.f32 %v13723_v44, %v7827_v39 }
0x17f3   : > { %v7884_v1 = vmul.f32 %v9192_v6, %v7875_v26  ;;  %v13745_v13 = vadd.f32 1e-05, %v7734_v22  ;;  %v9194_v60 = vpop.eup %9193  ;;  %vm7889_vm12 = vweird.f32 %v9192_v6 }
0x17f4   : > { %v7780_v4 = vmul.f32 %v9190_v62, %v7779_v61  ;;  %v7786_v15 = vmul.f32 %v9194_v60, %v13739_v11  ;;  %v7845_v23 = vadd.f32 %v13729_v51, %v7836_v16  ;;  %vm7890_vm14 = vmor %vm7888_vm13, %vm7889_vm12  ;;  %vm7792_vm2 = vweird.f32 %v9194_v60 }
0x17f5   : > { %v7885_v18 = vsub.f32 1.0, %v7884_v1  ;;  %9197 = vrsqrt.f32 %v13745_v13  ;;  %vm7793_vm5 = vmor %vm7791_vm3, %vm7792_vm2  ;;  %vm7801_vm7 = vweird.f32 %v13745_v13 }
0x17f6   : > { %v9196_v49 = vpop.eup %9195  ;;  %v7784_v24 = vsel %vm7783_vm1, %v9190_v62, %v7780_v4  ;;  %v7787_v17 = vmul.f32 %v9194_v60, %v7786_v15  ;;  %v8518_v12 = vmul.f32 -1.442695, %v7845_v23 }
0x17f7   : > { %v7886_v31 = vmul.f32 %v9192_v6, %v7885_v18  ;;  %v7876_v21 = vadd.f32 1.0, %v9196_v49  ;;  %v7828_v33 = vmul.f32 %v7784_v24, %v13688_v30 }
0x17f8   : > { %v7788_v37 = vmul.f32 0.5, %v7787_v17 }
0x17f9   : > { %v7887_v14 = vadd.f32 %v9192_v6, %v7886_v31  ;;  %9199 = vrcp.f32 %v7876_v21  ;;  %v7837_v52 = vmul.f32 %v13723_v44, %v7828_v33  ;;  %v7907_v62 = vand.u32 2147483647, %v7876_v21 }
0x17fa   : > { %9201 = vpow2.f32 %v8518_v12  ;;  %v7789_v10 = vsub.f32 1.5, %v7788_v37  ;;  %v7909_v29 = vand.u32 2147483648, %v7876_v21  ;;  %vm7903_vm10 = vweird.f32 %v7876_v21 }
0x17fb   : > { %v7891_v25 = vsel %vm7890_vm14, %v9192_v6, %v7887_v14  ;;  %v9198_v19 = vpop.eup %9197  ;;  %v7846_v30 = vadd.f32 %v13729_v51, %v7837_v52  ;;  %vm7908_vm1 = vcmp.eq.f32.partialorder %v7907_v62, 8.507059e+37 }
0x17fc   : > { %v7896_v38 = vsel %vm7893_vm15, %v7895_v8, %v7891_v25  ;;  %v7790_v47 = vmul.f32 %v9194_v60, %v7789_v10  ;;  %v7796_v7 = vmul.f32 %v9198_v19, %v13745_v13  ;;  %vm7802_vm6 = vweird.f32 %v9198_v19 }
0x17fd   : > { %vm8003_vm4 = vcmp.gt.f32.partialorder %v7896_v38, 0.25  ;;  %v8519_v55 = vmul.f32 -1.442695, %v7846_v30  ;;  %vm7803_vm9 = vmor %vm7801_vm7, %vm7802_vm6  ;;  %v7910_v63 = vor.u32 1.1754944e-38, %v7909_v29 }
0x17fe   : > { %v8011_v59 = vsel %vm8003_vm4, %v7896_v38, 0.0  ;;  %v7794_v50 = vsel %vm7793_vm5, %v9194_v60, %v7790_v47  ;;  %v7797_v46 = vmul.f32 %v9198_v19, %v7796_v7 }
0x17ff   : > { %8019 = vst.msk [vmem:[%s13757_s30] sm:$0xff] %vm728_vm0, %v8011_v59  ;;  %v9200_v57 = vpop.eup %9199  ;;  %v7829_v2 = vmul.f32 %v7794_v50, %v13695_v20  ;;  %9203 = vpow2.f32 %v8519_v55 }
0x1800   : > { %v9202_v40 = vpop.eup %9201  ;;  %v7899_v42 = vmul.f32 %v9200_v57, %v7876_v21  ;;  %v7798_v9 = vmul.f32 0.5, %v7797_v46  ;;  %vm7904_vm8 = vweird.f32 %v9200_v57 }
0x1801   : > { %v7877_v48 = vadd.f32 1.0, %v9202_v40  ;;  %v7838_v32 = vmul.f32 %v13723_v44, %v7829_v2  ;;  %vm7905_vm11 = vmor %vm7903_vm10, %vm7904_vm8 }
0x1802   : > { %v7900_v26 = vsub.f32 1.0, %v7899_v42  ;;  %v7799_v58 = vsub.f32 1.5, %v7798_v9 }
0x1803   : > { %9205 = vrcp.f32 %v7877_v48  ;;  %v7847_v56 = vadd.f32 %v13729_v51, %v7838_v32  ;;  %v7924_v60 = vand.u32 2147483648, %v7877_v48  ;;  %vm7918_vm14 = vweird.f32 %v7877_v48 }
0x1804   : > { %v7901_v11 = vmul.f32 %v9200_v57, %v7900_v26  ;;  %v7800_v20 = vmul.f32 %v9198_v19, %v7799_v58 }
0x1805   : > { %v9204_v5 = vpop.eup %9203  ;;  %v8520_v45 = vmul.f32 -1.442695, %v7847_v56  ;;  %v7925_v31 = vor.u32 1.1754944e-38, %v7924_v60 }
0x1806   : > { %v7902_v41 = vadd.f32 %v9200_v57, %v7901_v11  ;;  %v7804_v27 = vsel %vm7803_vm9, %v9198_v19, %v7800_v20  ;;  %v7878_v36 = vadd.f32 1.0, %v9204_v5 }
0x1807   : > { %v7830_v53 = vmul.f32 %v7804_v27, %v13702_v34  ;;  %9207 = vpow2.f32 %v8520_v45  ;;  %v7922_v34 = vand.u32 2147483647, %v7877_v48 }
0x1808   : > { %v7906_v0 = vsel %vm7905_vm11, %v9200_v57, %v7902_v41  ;;  %9209 = vrcp.f32 %v7878_v36  ;;  %v7939_v12 = vand.u32 2147483648, %v7878_v36  ;;  %v7937_v14 = vand.u32 2147483647, %v7878_v36 }
0x1809   : > { %v9206_v22 = vpop.eup %9205  ;;  %v7911_v6 = vsel %vm7908_vm1, %v7910_v63, %v7906_v0  ;;  %v7839_v61 = vmul.f32 %v13723_v44, %v7830_v53  ;;  %vm7923_vm2 = vcmp.eq.f32.partialorder %v7922_v34, 8.507059e+37  ;;  %vm7933_vm5 = vweird.f32 %v7878_v36 }
0x180a   : > { %vm8004_vm12 = vcmp.gt.f32.partialorder %v7911_v6, 0.25  ;;  %v7914_v39 = vmul.f32 %v9206_v22, %v7877_v48  ;;  %vm7919_vm13 = vweird.f32 %v9206_v22  ;;  %v7940_v52 = vor.u32 1.1754944e-38, %v7939_v12 }
0x180b   : > { %v8012_v1 = vsel %vm8004_vm12, %v7911_v6, 0.0  ;;  %v7848_v16 = vadd.f32 %v13729_v51, %v7839_v61  ;;  %vm7920_vm15 = vmor %vm7918_vm14, %vm7919_vm13  ;;  %vm7938_vm7 = vcmp.eq.f32.partialorder %v7937_v14, 8.507059e+37 }
0x180c   : > { %8020 = vst.msk [vmem:[%s13757_s30 + $0x8] sm:$0xff] %vm728_vm0, %v8012_v1  ;;  %v7915_v13 = vsub.f32 1.0, %v7914_v39 }
0x180d   : > { %v9208_v18 = vpop.eup %9207  ;;  %v8521_v35 = vmul.f32 -1.442695, %v7848_v16 }
0x180e   : > { %v7916_v4 = vmul.f32 %v9206_v22, %v7915_v13  ;;  %v9210_v15 = vpop.eup %9209  ;;  %v7879_v28 = vadd.f32 1.0, %v9208_v18 }
0x180f   : > { %v7929_v49 = vmul.f32 %v9210_v15, %v7878_v36  ;;  %vm7934_vm4 = vweird.f32 %v9210_v15 }
0x1810   : > { %v7917_v23 = vadd.f32 %v9206_v22, %v7916_v4  ;;  %9211 = vrcp.f32 %v7879_v28  ;;  %vm7935_vm6 = vmor %vm7933_vm5, %vm7934_vm4  ;;  %v7954_v55 = vand.u32 2147483648, %v7879_v28  ;;  %v7952_v46 = vand.u32 2147483647, %v7879_v28 }
0x1811   : > { %v7930_v17 = vsub.f32 1.0, %v7929_v49  ;;  %9213 = vpow2.f32 %v8521_v35  ;;  %vm7948_vm10 = vweird.f32 %v7879_v28 }
0x1812   : > { %v7921_v24 = vsel %vm7920_vm15, %v9206_v22, %v7917_v23  ;;  %v7955_v2 = vor.u32 1.1754944e-38, %v7954_v55  ;;  %vm7953_vm1 = vcmp.eq.f32.partialorder %v7952_v46, 8.507059e+37 }
0x1813   : > { %v7926_v21 = vsel %vm7923_vm2, %v7925_v31, %v7921_v24  ;;  %v7931_v33 = vmul.f32 %v9210_v15, %v7930_v17 }
0x1814   : > { %vm8005_vm3 = vcmp.gt.f32.partialorder %v7926_v21, 0.25 }
0x1815   : > { %v8013_v37 = vsel %vm8005_vm3, %v7926_v21, 0.0  ;;  %v7932_v8 = vadd.f32 %v9210_v15, %v7931_v33 }
0x1816   : > { %8021 = vst.msk [vmem:[%s13757_s30 + $0x10] sm:$0xff] %vm728_vm0, %v8013_v37  ;;  %v9212_v25 = vpop.eup %9211 }
0x1817   : > { %v9214_v10 = vpop.eup %9213  ;;  %v7936_v19 = vsel %vm7935_vm6, %v9210_v15, %v7932_v8  ;;  %v7944_v38 = vmul.f32 %v9212_v25, %v7879_v28  ;;  %vm7949_vm9 = vweird.f32 %v9212_v25 }
0x1818   : > { %v7941_v30 = vsel %vm7938_vm7, %v7940_v52, %v7936_v19  ;;  %v7880_v47 = vadd.f32 1.0, %v9214_v10  ;;  %vm7950_vm11 = vmor %vm7948_vm10, %vm7949_vm9 }
0x1819   : > { %vm8006_vm8 = vcmp.gt.f32.partialorder %v7941_v30, 0.25  ;;  %v7945_v7 = vsub.f32 1.0, %v7944_v38 }
0x181a   : > { %v8014_v59 = vsel %vm8006_vm8, %v7941_v30, 0.0  ;;  %9215 = vrcp.f32 %v7880_v47  ;;  %v7969_v58 = vand.u32 2147483648, %v7880_v47  ;;  %v7967_v29 = vand.u32 2147483647, %v7880_v47 }
0x181b   : > { %8022 = vst.msk [vmem:[%s13757_s30 + $0x18] sm:$0xff] %vm728_vm0, %v8014_v59  ;;  %v7946_v50 = vmul.f32 %v9212_v25, %v7945_v7  ;;  %vm7963_vm14 = vweird.f32 %v7880_v47 }
0x181c   : > { %v7970_v56 = vor.u32 1.1754944e-38, %v7969_v58  ;;  %vm7968_vm2 = vcmp.eq.f32.partialorder %v7967_v29, 8.507059e+37 }
0x181d   : > { %v7947_v57 = vadd.f32 %v9212_v25, %v7946_v50 }
0x181f   : > { %v7951_v40 = vsel %vm7950_vm11, %v9212_v25, %v7947_v57 }
0x1820   : > { %v9216_v42 = vpop.eup %9215  ;;  %v7956_v9 = vsel %vm7953_vm1, %v7955_v2, %v7951_v40 }
0x1821   : > { %vm8007_vm12 = vcmp.gt.f32.partialorder %v7956_v9, 0.25  ;;  %v7959_v48 = vmul.f32 %v9216_v42, %v7880_v47  ;;  %vm7964_vm13 = vweird.f32 %v9216_v42 }
0x1822   : > { %v8015_v32 = vsel %vm8007_vm12, %v7956_v9, 0.0  ;;  %vm7965_vm15 = vmor %vm7963_vm14, %vm7964_vm13 }
0x1823   : > { %8023 = vst.msk [vmem:[%s13757_s30 + $0x20] sm:$0xff] %vm728_vm0, %v8015_v32  ;;  %v7960_v26 = vsub.f32 1.0, %v7959_v48 }
0x1825   : > { %v7961_v62 = vmul.f32 %v9216_v42, %v7960_v26 }
0x1827   : > { %v7962_v11 = vadd.f32 %v9216_v42, %v7961_v62 }
0x1829   : > { %v7966_v20 = vsel %vm7965_vm15, %v9216_v42, %v7962_v11 }
0x182a   : > { %v7971_v5 = vsel %vm7968_vm2, %v7970_v56, %v7966_v20 }
0x182b   : > { %vm8008_vm3 = vcmp.gt.f32.partialorder %v7971_v5, 0.25 }
0x182c   : > { %v8016_v41 = vsel %vm8008_vm3, %v7971_v5, 0.0 }
0x182d   : > { %8024 = vst.msk [vmem:[%s13757_s30 + $0x28] sm:$0xff] %vm728_vm0, %v8016_v41 }
0x1844   : > { %v7725_v45 = vpop.xlane.xlu1 %7724 }
0x1845   : > { %v7735_v27 = vmul.f32 %v7725_v45, %v13918_v54 }
0x1847   : > { %v7743_v63 = vadd.f32 1e-05, %v7735_v27 }
0x1849   : > { %9217 = vrsqrt.f32 %v7743_v63  ;;  %vm7811_vm5 = vweird.f32 %v7743_v63 }
0x184c   : > { %v7728_v36 = vpop.xlane.xlu2 %7727 }
0x184d   : > { %v7736_v53 = vmul.f32 %v7728_v36, %v13918_v54 }
0x184f   : > { %v9218_v0 = vpop.eup %9217  ;;  %v7744_v22 = vadd.f32 1e-05, %v7736_v53 }
0x1850   : > { %v7806_v6 = vmul.f32 %v9218_v0, %v7743_v63  ;;  %vm7812_vm4 = vweird.f32 %v9218_v0 }
0x1851   : > { %9219 = vrsqrt.f32 %v7744_v22  ;;  %vm7813_vm6 = vmor %vm7811_vm5, %vm7812_vm4  ;;  %vm7821_vm8 = vweird.f32 %v7744_v22 }
0x1852   : > { %v7807_v39 = vmul.f32 %v9218_v0, %v7806_v6 }
0x1854   : > { %v7808_v1 = vmul.f32 0.5, %v7807_v39 }
0x1856   : > { %v7809_v61 = vsub.f32 1.5, %v7808_v1 }
0x1857   : > { %v9220_v13 = vpop.eup %9219 }
0x1858   : > { %v7810_v60 = vmul.f32 %v9218_v0, %v7809_v61  ;;  %v7816_v16 = vmul.f32 %v9220_v13, %v7744_v22  ;;  %vm7822_vm7 = vweird.f32 %v9220_v13 }
0x1859   : > { %vm7823_vm9 = vmor %vm7821_vm8, %vm7822_vm7 }
0x185a   : > { %v7814_v18 = vsel %vm7813_vm6, %v9218_v0, %v7810_v60  ;;  %v7817_v4 = vmul.f32 %v9220_v13, %v7816_v16 }
0x185b   : > { %v7831_v34 = vmul.f32 %v7814_v18, %v13709_v3 }
0x185c   : > { %v7818_v15 = vmul.f32 0.5, %v7817_v4 }
0x185d   : > { %v7840_v54 = vmul.f32 %v13723_v44, %v7831_v34 }
0x185e   : > { %v7819_v28 = vsub.f32 1.5, %v7818_v15 }
0x185f   : > { %v7849_v35 = vadd.f32 %v13729_v51, %v7840_v54 }
0x1860   : > { %v7820_v23 = vmul.f32 %v9220_v13, %v7819_v28 }
0x1861   : > { %v8522_v49 = vmul.f32 -1.442695, %v7849_v35 }
0x1862   : > { %v7824_v31 = vsel %vm7823_vm9, %v9220_v13, %v7820_v23 }
0x1863   : > { %9221 = vpow2.f32 %v8522_v49  ;;  %v7832_v24 = vmul.f32 %v7824_v31, %v13716_v43 }
0x1865   : > { %v7841_v17 = vmul.f32 %v13723_v44, %v7832_v24 }
0x1867   : > { %v7850_v21 = vadd.f32 %v13729_v51, %v7841_v17 }
0x1869   : > { %v9222_v3 = vpop.eup %9221  ;;  %v8523_v12 = vmul.f32 -1.442695, %v7850_v21 }
0x186a   : > { %v7881_v33 = vadd.f32 1.0, %v9222_v3 }
0x186b   : > { %9223 = vpow2.f32 %v8523_v12 }
0x186c   : > { %9225 = vrcp.f32 %v7881_v33  ;;  %v7984_v10 = vand.u32 2147483648, %v7881_v33  ;;  %v7982_v43 = vand.u32 2147483647, %v7881_v33  ;;  %vm7978_vm11 = vweird.f32 %v7881_v33 }
0x186e   : > { %v7985_v38 = vor.u32 1.1754944e-38, %v7984_v10  ;;  %vm7983_vm12 = vcmp.eq.f32.partialorder %v7982_v43, 8.507059e+37 }
0x1871   : > { %v9224_v14 = vpop.eup %9223 }
0x1872   : > { %v9226_v37 = vpop.eup %9225  ;;  %v7882_v8 = vadd.f32 1.0, %v9224_v14 }
0x1873   : > { %v7974_v25 = vmul.f32 %v9226_v37, %v7881_v33  ;;  %vm7979_vm10 = vweird.f32 %v9226_v37 }
0x1874   : > { %9227 = vrcp.f32 %v7882_v8  ;;  %vm7980_vm1 = vmor %vm7978_vm11, %vm7979_vm10  ;;  %v7999_v50 = vand.u32 2147483648, %v7882_v8  ;;  %v7997_v57 = vand.u32 2147483647, %v7882_v8  ;;  %vm7993_vm15 = vweird.f32 %v7882_v8 }
0x1875   : > { %v7975_v52 = vsub.f32 1.0, %v7974_v25 }
0x1876   : > { %v8000_v40 = vor.u32 1.1754944e-38, %v7999_v50  ;;  %vm7998_vm3 = vcmp.eq.f32.partialorder %v7997_v57, 8.507059e+37 }
0x1877   : > { %v7976_v19 = vmul.f32 %v9226_v37, %v7975_v52 }
0x1879   : > { %v7977_v44 = vadd.f32 %v9226_v37, %v7976_v19 }
0x187a   : > { %v9228_v51 = vpop.eup %9227 }
0x187b   : > { %v7981_v30 = vsel %vm7980_vm1, %v9226_v37, %v7977_v44  ;;  %v7989_v47 = vmul.f32 %v9228_v51, %v7882_v8  ;;  %vm7994_vm14 = vweird.f32 %v9228_v51 }
0x187c   : > { %v7986_v7 = vsel %vm7983_vm12, %v7985_v38, %v7981_v30  ;;  %vm7995_vm2 = vmor %vm7993_vm15, %vm7994_vm14 }
0x187d   : > { %vm8009_vm13 = vcmp.gt.f32.partialorder %v7986_v7, 0.25  ;;  %v7990_v59 = vsub.f32 1.0, %v7989_v47 }
0x187e   : > { %v8017_v55 = vsel %vm8009_vm13, %v7986_v7, 0.0 }
0x187f   : > { %8025 = vst.msk [vmem:[%s13757_s30 + $0x30] sm:$0xff] %vm728_vm0, %v8017_v55  ;;  %v7991_v46 = vmul.f32 %v9228_v51, %v7990_v59 }
0x1881   : > { %v7992_v2 = vadd.f32 %v9228_v51, %v7991_v46 }
0x1883   : > { %v7996_v42 = vsel %vm7995_vm2, %v9228_v51, %v7992_v2 }
0x1884   : > { %v8001_v9 = vsel %vm7998_vm3, %v8000_v40, %v7996_v42 }
0x1885   : > { %vm8010_vm4 = vcmp.gt.f32.partialorder %v8001_v9, 0.25 }
0x1886   : > { %v8018_v48 = vsel %vm8010_vm4, %v8001_v9, 0.0 }
0x1887   : > { %8026 = vst.msk [vmem:[%s13757_s30 + $0x38] sm:$0xff] %vm728_vm0, %v8018_v48 }
0x1888   : > { %9639 = shalt.err (!%p9636_p9)
}
0x1889   : > { %s9717_s6 = smov 128   ;;  %s9718_s4 = smov 8  }
0x188a   : > { %8607 = dma.vmem_to_hbm [thread:$0]  (%p9915_p4), %s8042_s20, 1024, %s8044_s28, %s8028_s5, %s9717_s6, %s9717_s6, %s9718_s4  }
0x188b PF: > { %s8058_s29 = sand.u32 1, %s9686_s21   ;;  %p13923_p10 = scmp.ge.s32.totalorder %s9698_s24, 2 }
0x188c   : > { %s8059_s30 = scalar_lea.sflag [#allocation4], %s8058_s29 }
0x188d   : > { %p8645_p11 = pnand %p13923_p10, %p9919_p6 }
0x188f   : > { %p8646_p13 = pneg %p8645_p11 }
0x1891   : > { %9681 = dma.done.wait (%p8646_p13), %s8059_s30, 1024  }
0x1892   : > { %9683 = vsyncadd (%p8646_p13), %s8059_s30, 4294966272  ;;  %p30_p0 = scmp.ge.s32.totalorder %s9893_s18, 4   ;;  %s13924_s21 = smov %s9690_s22 }
0x1893   : > { %s13925_s22 = smov %s9694_s23  ;;  %s13926_s23 = smov %s9904_s1 }
0x1894   : > { %s13927_s24 = smov %s9893_s18  ;;  %32 = sbr.rel (!%p30_p0) target bundleno = 19 (0x13), region = 162 }
0x1899   :  { %8065 = vsyncpa [#allocation3], 1 }
0x189a   :  { %8067 = vsyncpa [#allocation3 + $0x1], 1 }
0x189b   :  { %8068 = vsyncpa [#allocation6], 1 }
0x189c   :  { %8069 = vsyncpa [#allocation9], 1 }
0x189d   :  { %8070 = vsyncpa [#allocation12], 1 }
0x189e   :  { %8071 = vsyncpa [#allocation15], 1 }
0x189f   :  { %8072 = vsyncpa [#allocation18], 1 }
0x18a0   :  { %8073 = vsyncpa [#allocation4], 1 }
0x18a1   :  { %8075 = vsyncpa [#allocation4 + $0x1], 1 }

</bundles_post_ra>
